<compile_context>
chip_gen: v6e
topology: v6e:2x2x1
jax: 0.10.0
libtpu: 0.0.40
codegen_flags: <defaults>
</compile_context>

<pallas_src>
import functools

import jax
import jax.numpy as jnp
from jax.experimental import pallas as pl
from jax.experimental.pallas import tpu as pltpu

LATENT_DIM = 20
INVARIANT_DIM = 10
NUM_CLASSES = 10

TILE_M = 512  # rows per grid step; keeps per-block VMEM well under limits


def _round_up(n, m):
    return (n + m - 1) // m * m


# --------------------------------------------------------------------------
# Pallas kernel 1: generic M-tiled GEMM + bias + activation (conv / deconv)
# --------------------------------------------------------------------------
def _gemm_bias_act_kernel(x_ref, w_ref, b_ref, o_ref, *, activation):
    """One M-tile of o = act(x @ w + b). bf16 operands, f32 accumulate/epilogue."""
    acc = jnp.dot(x_ref[...], w_ref[...], preferred_element_type=jnp.float32)
    acc = acc + b_ref[...]  # (tile_m, N) + (1, N)
    if activation == "relu":
        acc = jnp.maximum(acc, 0.0)
    elif activation == "sigmoid":
        # Stable sigmoid: exp of a non-positive argument only (no overflow),
        # exact divide so the result is guaranteed in [0, 1].
        ex = jnp.exp(-jnp.abs(acc))
        num = jnp.where(acc >= 0.0, 1.0, ex)
        acc = num / (1.0 + ex)
    o_ref[...] = acc.astype(o_ref.dtype)


def gemm_bias_act(x, w, b, activation="none", out_dtype=jnp.float32):
    """y = act(x @ w + b), tiled over M with a 'parallel' grid axis."""
    M, K = x.shape
    K2, N = w.shape
    assert K == K2, (K, K2)

    tile_m = min(TILE_M, _round_up(M, 8))
    Mp = _round_up(M, tile_m)
    x_p = jnp.pad(x, ((0, Mp - M), (0, 0))) if Mp != M else x

    x_b = x_p.astype(jnp.bfloat16)          # bf16 MXU operands, halves HBM bytes
    w_b = w.astype(jnp.bfloat16)
    b2 = b.reshape(1, N).astype(jnp.float32)

    kernel = functools.partial(_gemm_bias_act_kernel, activation=activation)
    out = pl.pallas_call(
        kernel,
        out_shape=jax.ShapeDtypeStruct((Mp, N), out_dtype),
        grid=(Mp // tile_m,),
        in_specs=[
            pl.BlockSpec((tile_m, K), lambda i: (i, 0)),
            pl.BlockSpec((K, N), lambda i: (0, 0)),
            pl.BlockSpec((1, N), lambda i: (0, 0)),
        ],
        out_specs=pl.BlockSpec((tile_m, N), lambda i: (i, 0)),
        compiler_params=pltpu.CompilerParams(
            dimension_semantics=("parallel",),
            vmem_limit_bytes=32 * 1024 * 1024,
        ),
    )(x_b, w_b, b2)
    return out[:M] if Mp != M else out


# --------------------------------------------------------------------------
# Pallas kernel 2: fused FC stack
#   h3 = relu(flat @ enc_fc)            [B, 256]
#   [mu|logvar] = h3 @ lat_w + lat_b    [B, 40]
#   z = mu + eps * exp(0.5 * logvar)
#   heads = z @ head_w + head_b         [B, 11]  (block-diag classifier|rotation)
#   d1 = relu(z @ dec_fc1)              [B, 256]
#   d2 = relu(d1 @ dec_fc2)             [B, 3136]
# --------------------------------------------------------------------------
def _fc_stack_kernel(flat_ref, encw_ref, encb_ref,
                     latw_ref, latb_ref, eps_ref,
                     headw_ref, headb_ref,
                     d1w_ref, d1b_ref, d2w_ref, d2b_ref,
                     mu_ref, lv_ref, z_ref, cls_ref, rot_ref, d2_ref):
    # encoder FC (bf16 MXU operands, f32 accumulate)
    h3 = jnp.dot(flat_ref[...], encw_ref[...], preferred_element_type=jnp.float32)
    h3 = jnp.maximum(h3 + encb_ref[...], 0.0)                    # [B, 256] f32

    # mu / logvar projection (tiny -> keep f32)
    acc = jnp.dot(h3, latw_ref[...], preferred_element_type=jnp.float32)
    acc = acc + latb_ref[...]                                    # [B, 2*LATENT_DIM]
    mu = acc[:, :LATENT_DIM]
    lv = acc[:, LATENT_DIM:]
    z = mu + eps_ref[...] * jnp.exp(0.5 * lv)                    # reparameterize

    # classifier + rotation heads (block-diagonal weight)
    heads = jnp.dot(z, headw_ref[...], preferred_element_type=jnp.float32)
    heads = heads + headb_ref[...]                               # [B, NUM_CLASSES+1]

    # decoder FC stack
    d1 = jnp.dot(z, d1w_ref[...], preferred_element_type=jnp.float32)
    d1 = jnp.maximum(d1 + d1b_ref[...], 0.0)                     # [B, 256] f32
    d2 = jnp.dot(d1.astype(jnp.bfloat16), d2w_ref[...],
                 preferred_element_type=jnp.float32)
    d2 = jnp.maximum(d2 + d2b_ref[...], 0.0)                     # [B, 3136]

    mu_ref[...] = mu
    lv_ref[...] = lv
    z_ref[...] = z
    cls_ref[...] = heads[:, :NUM_CLASSES]
    rot_ref[...] = heads[:, NUM_CLASSES:NUM_CLASSES + 1]
    d2_ref[...] = d2.astype(d2_ref.dtype)


def fc_latent_decoder(flat, p, eps):
    B = flat.shape[0]
    vmem = pl.BlockSpec(memory_space=pltpu.MemorySpace.VMEM)
    out_shape = (
        jax.ShapeDtypeStruct((B, LATENT_DIM), jnp.float32),       # mu
        jax.ShapeDtypeStruct((B, LATENT_DIM), jnp.float32),       # logvar
        jax.ShapeDtypeStruct((B, LATENT_DIM), jnp.float32),       # z
        jax.ShapeDtypeStruct((B, NUM_CLASSES), jnp.float32),      # class_pred
        jax.ShapeDtypeStruct((B, 1), jnp.float32),                # rotation_pred
        jax.ShapeDtypeStruct((B, 64 * 7 * 7), jnp.bfloat16),      # decoder features
    )
    return pl.pallas_call(
        _fc_stack_kernel,
        out_shape=out_shape,
        in_specs=[vmem] * 12,
        out_specs=(vmem,) * 6,
        compiler_params=pltpu.CompilerParams(
            vmem_limit_bytes=32 * 1024 * 1024,
        ),
    )(flat.astype(jnp.bfloat16),
      p["enc_fc_w"].astype(jnp.bfloat16), p["enc_fc_b"].reshape(1, -1),
      p["lat_w"], p["lat_b"].reshape(1, -1),
      eps,
      p["head_w"], p["head_b"].reshape(1, -1),
      p["dec_fc1_w"], p["dec_fc1_b"].reshape(1, -1),
      p["dec_fc2_w"].astype(jnp.bfloat16), p["dec_fc2_b"].reshape(1, -1))


# --------------------------------------------------------------------------
# Plain-JAX glue (layout only): NHWC im2col, 2x2-patch extraction, phase merge
# --------------------------------------------------------------------------
def im2col_nhwc(x, k, stride, pad_lo, pad_hi):
    """3x3 patches of an NHWC tensor. Rows (B,Ho,Wo), columns (kh,kw,C)."""
    B, H, W, C = x.shape
    xp = jnp.pad(x, ((0, 0), (pad_lo, pad_hi), (pad_lo, pad_hi), (0, 0)))
    Ho = (H + pad_lo + pad_hi - k) // stride + 1
    Wo = (W + pad_lo + pad_hi - k) // stride + 1
    cols = []
    for kh in range(k):
        for kw in range(k):
            cols.append(xp[:, kh:kh + stride * Ho:stride,
                           kw:kw + stride * Wo:stride, :])       # [B,Ho,Wo,C]
    col = jnp.concatenate(cols, axis=-1)                         # [B,Ho,Wo,k*k*C]
    return col.reshape(B * Ho * Wo, k * k * C), Ho, Wo


def im2col_2x2(x):
    """2x2 patches (pad bottom/right by 1). Rows (B,H,W), columns (tap, C)."""
    B, H, W, C = x.shape
    xp = jnp.pad(x, ((0, 0), (0, 1), (0, 1), (0, 0)))
    taps = [xp[:, dy:dy + H, dx:dx + W, :] for dy in (0, 1) for dx in (0, 1)]
    col = jnp.concatenate(taps, axis=-1)                         # [B,H,W,4*C]
    return col.reshape(B * H * W, 4 * C)


def phase_to_nhwc(y, B, H, W, cout):
    """[B*H*W, 4*cout] (phase-major columns) -> NHWC [B, 2H, 2W, cout]."""
    y = y.reshape(B, H, W, 2, 2, cout)          # (B, i, j, py, px, c)
    y = y.transpose(0, 1, 3, 2, 4, 5)           # (B, i, py, j, px, c)
    return y.reshape(B, 2 * H, 2 * W, cout)


# 4-phase sub-pixel decomposition of ConvTranspose2d(k=3, s=2, p=1, op=1):
#   output parity 0 uses kernel row/col 1; parity 1 uses rows/cols {2 (tap 0),
#   0 (tap 1)}.  All four phases at output block (i,j) read only x[i:i+2, j:j+2].
_PHASE_TAPS = {0: ((0, 1),), 1: ((0, 2), (1, 0))}   # parity -> ((tap_offset, k), ...)


def make_phase_deconv_weight(ker):
    """ker: [3,3,Cin,Cout] conv-transpose taps -> phase GEMM weight [4*Cin, 4*Cout]."""
    cin, cout = ker.shape[2], ker.shape[3]
    wp = jnp.zeros((4 * cin, 4 * cout), jnp.float32)
    for py in (0, 1):
        for px in (0, 1):
            phase = py * 2 + px
            for dy, ky in _PHASE_TAPS[py]:
                for dx, kx in _PHASE_TAPS[px]:
                    tap = dy * 2 + dx
                    wp = wp.at[tap * cin:(tap + 1) * cin,
                               phase * cout:(phase + 1) * cout].set(ker[ky, kx])
    return wp


# --------------------------------------------------------------------------
# Parameter init (deterministic, synthetic — same fan-in scaling as PyTorch)
# --------------------------------------------------------------------------
def _init_linear(key, fan_in, fan_out):
    k1, k2 = jax.random.split(key)
    lim = 1.0 / jnp.sqrt(float(fan_in))
    w = jax.random.uniform(k1, (fan_in, fan_out), jnp.float32, -lim, lim)
    b = jax.random.uniform(k2, (fan_out,), jnp.float32, -lim, lim)
    return w, b


def _init_deconv_phase(key, cin, cout):
    k1, k2 = jax.random.split(key)
    lim = 1.0 / jnp.sqrt(float(cin * 9))
    ker = jax.random.uniform(k1, (3, 3, cin, cout), jnp.float32, -lim, lim)
    b = jax.random.uniform(k2, (cout,), jnp.float32, -lim, lim)
    return make_phase_deconv_weight(ker), jnp.tile(b, 4)   # bias per (phase, cout)


def init_params(key):
    ks = jax.random.split(key, 10)
    p = {}
    # encoder
    p["conv1_w"], p["conv1_b"] = _init_linear(ks[0], 1 * 3 * 3, 32)      # [9,32]
    p["conv2_w"], p["conv2_b"] = _init_linear(ks[1], 32 * 3 * 3, 64)     # [288,64]
    p["enc_fc_w"], p["enc_fc_b"] = _init_linear(ks[2], 64 * 7 * 7, 256)
    # fused mu|logvar projection: [256, 2*LATENT_DIM]
    mu_w, mu_b = _init_linear(ks[3], 256, LATENT_DIM)
    lv_w, lv_b = _init_linear(ks[4], 256, LATENT_DIM)
    p["lat_w"] = jnp.concatenate([mu_w, lv_w], axis=1)
    p["lat_b"] = jnp.concatenate([mu_b, lv_b])
    # decoder
    p["dec_fc1_w"], p["dec_fc1_b"] = _init_linear(ks[5], LATENT_DIM, 256)
    p["dec_fc2_w"], p["dec_fc2_b"] = _init_linear(ks[6], 256, 64 * 7 * 7)
    p["deconv1_w"], p["deconv1_b"] = _init_deconv_phase(ks[7], 64, 32)   # [256,128]
    p["deconv2_w"], p["deconv2_b"] = _init_deconv_phase(ks[8], 32, 1)    # [128,4]
    # fused heads: block-diagonal [LATENT_DIM, NUM_CLASSES+1]
    k9a, k9b = jax.random.split(ks[9])
    cls_w, cls_b = _init_linear(k9a, INVARIANT_DIM, NUM_CLASSES)
    rot_w, rot_b = _init_linear(k9b, LATENT_DIM - INVARIANT_DIM, 1)
    head_w = jnp.zeros((LATENT_DIM, NUM_CLASSES + 1), jnp.float32)
    head_w = head_w.at[:INVARIANT_DIM, :NUM_CLASSES].set(cls_w)
    head_w = head_w.at[INVARIANT_DIM:, NUM_CLASSES:].set(rot_w)
    p["head_w"] = head_w
    p["head_b"] = jnp.concatenate([cls_b, rot_b])
    return p


# --------------------------------------------------------------------------
# Forward pass (matches InvariantVAE.forward)
# --------------------------------------------------------------------------
def forward(params, x_nchw, eps_key):
    B = x_nchw.shape[0]
    x = x_nchw.transpose(0, 2, 3, 1)                               # NHWC, once

    # ---- encoder convs (im2col -> GEMM, bf16 intermediates) ----
    col1, H1, W1 = im2col_nhwc(x, 3, 2, 1, 1)                      # 28 -> 14
    h1 = gemm_bias_act(col1, params["conv1_w"], params["conv1_b"],
                       "relu", out_dtype=jnp.bfloat16)
    h1 = h1.reshape(B, H1, W1, 32)                                 # NHWC, no transpose

    col2, H2, W2 = im2col_nhwc(h1, 3, 2, 1, 1)                     # 14 -> 7
    h2 = gemm_bias_act(col2, params["conv2_w"], params["conv2_b"],
                       "relu", out_dtype=jnp.bfloat16)
    h2 = h2.reshape(B, H2, W2, 64)
    flat = h2.reshape(B, H2 * W2 * 64)                             # [B, 3136] bf16

    # ---- fused FC stack: enc_fc -> mu/logvar -> z -> heads -> dec_fc1/2 ----
    eps = jax.random.normal(eps_key, (B, LATENT_DIM), dtype=jnp.float32)
    mu, logvar, z, class_pred, rotation_pred, d2 = fc_latent_decoder(
        flat, params, eps)
    d2 = d2.reshape(B, 7, 7, 64)                                   # bf16 NHWC

    # ---- decoder deconvs ----
    # ConvTranspose2d(64,32,3,s2,p1,op1): 7 -> 14 via 4-phase sub-pixel GEMM
    col3 = im2col_2x2(d2)                                          # [B*49, 256]
    d3 = gemm_bias_act(col3, params["deconv1_w"], params["deconv1_b"],
                       "relu", out_dtype=jnp.bfloat16)
    d3 = phase_to_nhwc(d3, B, 7, 7, 32)                            # [B,14,14,32]

    # ConvTranspose2d(32,1,3,s2,p1,op1) + Sigmoid: 14 -> 28
    col4 = im2col_2x2(d3)                                          # [B*196, 128]
    xr = gemm_bias_act(col4, params["deconv2_w"], params["deconv2_b"],
                       "sigmoid", out_dtype=jnp.float32)
    x_recon = phase_to_nhwc(xr, B, 14, 14, 1)                      # [B,28,28,1]
    x_recon = x_recon.transpose(0, 3, 1, 2)                        # back to NCHW

    z_invariant = z[:, :INVARIANT_DIM]
    z_variant = z[:, INVARIANT_DIM:]
    return x_recon, class_pred, rotation_pred, mu, logvar, z_invariant, z_variant


# --------------------------------------------------------------------------
if __name__ == "__main__":
    key = jax.random.PRNGKey(0)
    pkey, xkey, ekey = jax.random.split(key, 3)

    params = init_params(pkey)
    # MNIST-like input implied by the 64*7*7 flatten: [B, 1, 28, 28]
    x = jax.random.uniform(xkey, (2, 1, 28, 28), dtype=jnp.float32)

    outs = jax.jit(forward)(params, x, ekey)
    outs = jax.block_until_ready(outs)

    x_recon, class_pred, rotation_pred, mu, logvar, z_inv, z_var = outs
    assert x_recon.shape == (2, 1, 28, 28)
    assert class_pred.shape == (2, NUM_CLASSES)
    assert rotation_pred.shape == (2, 1)
    assert mu.shape == (2, LATENT_DIM) and logvar.shape == (2, LATENT_DIM)
    assert z_inv.shape == (2, INVARIANT_DIM)
    assert z_var.shape == (2, LATENT_DIM - INVARIANT_DIM)
    assert bool(jnp.all(jnp.isfinite(x_recon)))
    assert bool(jnp.all((x_recon >= 0.0) & (x_recon <= 1.0)))
    assert bool(jnp.all(jnp.isfinite(mu))) and bool(jnp.all(jnp.isfinite(logvar)))

    print("KERNEL_OK")
</pallas_src>

<mosaic_0001>
module attributes {stable_mosaic.version = 11 : i64} {
  func.func @_gemm_bias_act_kernel(%arg0: i32, %arg1: memref<392x9xbf16, #tpu.memory_space<vmem>>, %arg2: memref<9x32xbf16, #tpu.memory_space<vmem>>, %arg3: memref<1x32xf32, #tpu.memory_space<vmem>>, %arg4: memref<392x32xbf16, #tpu.memory_space<vmem>>) attributes {dimension_semantics = [#tpu.dimension_semantics<parallel>], iteration_bounds = array<i64: 1>, scalar_prefetch = 0 : i64, scratch_operands = 0 : i64, tpu.core_type = #tpu.core_type<tc>, window_params = [{transform_indices = @transform_0, window_bounds = array<i64: 392, 9>}, {pipeline_mode = #tpu.pipeline_mode<synchronous>, transform_indices = @transform_1, window_bounds = array<i64: 9, 32>}, {pipeline_mode = #tpu.pipeline_mode<synchronous>, transform_indices = @transform_2, window_bounds = array<i64: 1, 32>}, {transform_indices = @transform_3, window_bounds = array<i64: 392, 32>}]} {
    %c0 = arith.constant 0 : index
    %c0_0 = arith.constant 0 : index
    %0 = vector.load %arg1[%c0, %c0_0] : memref<392x9xbf16, #tpu.memory_space<vmem>>, vector<392x9xbf16>
    %c0_1 = arith.constant 0 : index
    %c0_2 = arith.constant 0 : index
    %1 = vector.load %arg2[%c0_1, %c0_2] : memref<9x32xbf16, #tpu.memory_space<vmem>>, vector<9x32xbf16>
    %cst = arith.constant dense<0.000000e+00> : vector<392x32xf32>
    %2 = tpu.matmul %0, %1, %cst {dimension_numbers = #tpu.dot_dimension_numbers<[1], [0], [0], [1], [0, 0, 1, 1], [], []>} : vector<392x9xbf16>, vector<9x32xbf16>, vector<392x32xf32> -> vector<392x32xf32>
    %c0_3 = arith.constant 0 : index
    %c0_4 = arith.constant 0 : index
    %3 = vector.load %arg3[%c0_3, %c0_4] : memref<1x32xf32, #tpu.memory_space<vmem>>, vector<1x32xf32>
    %4 = vector.broadcast %3 : vector<1x32xf32> to vector<392x32xf32>
    %5 = arith.addf %2, %4 : vector<392x32xf32>
    %cst_5 = arith.constant 0.000000e+00 : f32
    %6 = vector.broadcast %cst_5 : f32 to vector<392x32xf32>
    %7 = arith.maximumf %5, %6 : vector<392x32xf32>
    %8 = arith.truncf %7 : vector<392x32xf32> to vector<392x32xbf16>
    %c0_6 = arith.constant 0 : index
    %c0_7 = arith.constant 0 : index
    %9 = vector.load %arg4[%c0_6, %c0_7] : memref<392x32xbf16, #tpu.memory_space<vmem>>, vector<392x32xbf16>
    tpu.vector_store %arg4[%c0_6, %c0_7], %8 {strides = array<i32>} : memref<392x32xbf16, #tpu.memory_space<vmem>>, vector<392x32xbf16>,
    return
  }
  func.func @transform_0(%arg0: i32) -> (i32, i32) {
    %c0_i32 = arith.constant 0 : i32
    %c0_i32_0 = arith.constant 0 : i32
    return %arg0, %c0_i32 : i32, i32
  }
  func.func @transform_1(%arg0: i32) -> (i32, i32) {
    %c0_i32 = arith.constant 0 : i32
    %c0_i32_0 = arith.constant 0 : i32
    %c0_i32_1 = arith.constant 0 : i32
    return %c0_i32, %c0_i32_0 : i32, i32
  }
  func.func @transform_2(%arg0: i32) -> (i32, i32) {
    %c0_i32 = arith.constant 0 : i32
    %c0_i32_0 = arith.constant 0 : i32
    %c0_i32_1 = arith.constant 0 : i32
    return %c0_i32, %c0_i32_0 : i32, i32
  }
  func.func @transform_3(%arg0: i32) -> (i32, i32) {
    %c0_i32 = arith.constant 0 : i32
    %c0_i32_0 = arith.constant 0 : i32
    return %arg0, %c0_i32 : i32, i32
  }
}

module attributes {stable_mosaic.version = 11 : i64} {
  func.func @_gemm_bias_act_kernel(%arg0: i32, %arg1: memref<104x288xbf16, #tpu.memory_space<vmem>>, %arg2: memref<288x64xbf16, #tpu.memory_space<vmem>>, %arg3: memref<1x64xf32, #tpu.memory_space<vmem>>, %arg4: memref<104x64xbf16, #tpu.memory_space<vmem>>) attributes {dimension_semantics = [#tpu.dimension_semantics<parallel>], iteration_bounds = array<i64: 1>, scalar_prefetch = 0 : i64, scratch_operands = 0 : i64, tpu.core_type = #tpu.core_type<tc>, window_params = [{transform_indices = @transform_0, window_bounds = array<i64: 104, 288>}, {pipeline_mode = #tpu.pipeline_mode<synchronous>, transform_indices = @transform_1, window_bounds = array<i64: 288, 64>}, {pipeline_mode = #tpu.pipeline_mode<synchronous>, transform_indices = @transform_2, window_bounds = array<i64: 1, 64>}, {transform_indices = @transform_3, window_bounds = array<i64: 104, 64>}]} {
    %c0 = arith.constant 0 : index
    %c0_0 = arith.constant 0 : index
    %0 = vector.load %arg1[%c0, %c0_0] : memref<104x288xbf16, #tpu.memory_space<vmem>>, vector<104x288xbf16>
    %c0_1 = arith.constant 0 : index
    %c0_2 = arith.constant 0 : index
    %1 = vector.load %arg2[%c0_1, %c0_2] : memref<288x64xbf16, #tpu.memory_space<vmem>>, vector<288x64xbf16>
    %cst = arith.constant dense<0.000000e+00> : vector<104x64xf32>
    %2 = tpu.matmul %0, %1, %cst {dimension_numbers = #tpu.dot_dimension_numbers<[1], [0], [0], [1], [0, 0, 1, 1], [], []>} : vector<104x288xbf16>, vector<288x64xbf16>, vector<104x64xf32> -> vector<104x64xf32>
    %c0_3 = arith.constant 0 : index
    %c0_4 = arith.constant 0 : index
    %3 = vector.load %arg3[%c0_3, %c0_4] : memref<1x64xf32, #tpu.memory_space<vmem>>, vector<1x64xf32>
    %4 = vector.broadcast %3 : vector<1x64xf32> to vector<104x64xf32>
    %5 = arith.addf %2, %4 : vector<104x64xf32>
    %cst_5 = arith.constant 0.000000e+00 : f32
    %6 = vector.broadcast %cst_5 : f32 to vector<104x64xf32>
    %7 = arith.maximumf %5, %6 : vector<104x64xf32>
    %8 = arith.truncf %7 : vector<104x64xf32> to vector<104x64xbf16>
    %c0_6 = arith.constant 0 : index
    %c0_7 = arith.constant 0 : index
    %9 = vector.load %arg4[%c0_6, %c0_7] : memref<104x64xbf16, #tpu.memory_space<vmem>>, vector<104x64xbf16>
    tpu.vector_store %arg4[%c0_6, %c0_7], %8 {strides = array<i32>} : memref<104x64xbf16, #tpu.memory_space<vmem>>, vector<104x64xbf16>,
    return
  }
  func.func @transform_0(%arg0: i32) -> (i32, i32) {
    %c0_i32 = arith.constant 0 : i32
    %c0_i32_0 = arith.constant 0 : i32
    return %arg0, %c0_i32 : i32, i32
  }
  func.func @transform_1(%arg0: i32) -> (i32, i32) {
    %c0_i32 = arith.constant 0 : i32
    %c0_i32_0 = arith.constant 0 : i32
    %c0_i32_1 = arith.constant 0 : i32
    return %c0_i32, %c0_i32_0 : i32, i32
  }
  func.func @transform_2(%arg0: i32) -> (i32, i32) {
    %c0_i32 = arith.constant 0 : i32
    %c0_i32_0 = arith.constant 0 : i32
    %c0_i32_1 = arith.constant 0 : i32
    return %c0_i32, %c0_i32_0 : i32, i32
  }
  func.func @transform_3(%arg0: i32) -> (i32, i32) {
    %c0_i32 = arith.constant 0 : i32
    %c0_i32_0 = arith.constant 0 : i32
    return %arg0, %c0_i32 : i32, i32
  }
}

module attributes {stable_mosaic.version = 11 : i64} {
  func.func @_fc_stack_kernel(%arg0: memref<2x3136xbf16, #tpu.memory_space<vmem>>, %arg1: memref<3136x256xbf16, #tpu.memory_space<vmem>>, %arg2: memref<1x256xf32, #tpu.memory_space<vmem>>, %arg3: memref<256x40xf32, #tpu.memory_space<vmem>>, %arg4: memref<1x40xf32, #tpu.memory_space<vmem>>, %arg5: memref<2x20xf32, #tpu.memory_space<vmem>>, %arg6: memref<20x11xf32, #tpu.memory_space<vmem>>, %arg7: memref<1x11xf32, #tpu.memory_space<vmem>>, %arg8: memref<20x256xf32, #tpu.memory_space<vmem>>, %arg9: memref<1x256xf32, #tpu.memory_space<vmem>>, %arg10: memref<256x3136xbf16, #tpu.memory_space<vmem>>, %arg11: memref<1x3136xf32, #tpu.memory_space<vmem>>, %arg12: memref<2x20xf32, #tpu.memory_space<vmem>>, %arg13: memref<2x20xf32, #tpu.memory_space<vmem>>, %arg14: memref<2x20xf32, #tpu.memory_space<vmem>>, %arg15: memref<2x10xf32, #tpu.memory_space<vmem>>, %arg16: memref<2x1xf32, #tpu.memory_space<vmem>>, %arg17: memref<2x3136xbf16, #tpu.memory_space<vmem>>) attributes {dimension_semantics = [], scalar_prefetch = 0 : i64, scratch_operands = 0 : i64, tpu.core_type = #tpu.core_type<tc>} {
    %c0 = arith.constant 0 : index
    %c0_0 = arith.constant 0 : index
    %0 = vector.load %arg0[%c0, %c0_0] : memref<2x3136xbf16, #tpu.memory_space<vmem>>, vector<2x3136xbf16>
    %c0_1 = arith.constant 0 : index
    %c0_2 = arith.constant 0 : index
    %1 = vector.load %arg1[%c0_1, %c0_2] : memref<3136x256xbf16, #tpu.memory_space<vmem>>, vector<3136x256xbf16>
    %cst = arith.constant dense<0.000000e+00> : vector<2x256xf32>
    %2 = tpu.matmul %0, %1, %cst {dimension_numbers = #tpu.dot_dimension_numbers<[1], [0], [0], [1], [0, 0, 1, 1], [], []>} : vector<2x3136xbf16>, vector<3136x256xbf16>, vector<2x256xf32> -> vector<2x256xf32>
    %c0_3 = arith.constant 0 : index
    %c0_4 = arith.constant 0 : index
    %3 = vector.load %arg2[%c0_3, %c0_4] : memref<1x256xf32, #tpu.memory_space<vmem>>, vector<1x256xf32>
    %4 = vector.broadcast %3 : vector<1x256xf32> to vector<2x256xf32>
    %5 = arith.addf %2, %4 : vector<2x256xf32>
    %cst_5 = arith.constant 0.000000e+00 : f32
    %6 = vector.broadcast %cst_5 : f32 to vector<2x256xf32>
    %7 = arith.maximumf %5, %6 : vector<2x256xf32>
    %c0_6 = arith.constant 0 : index
    %c0_7 = arith.constant 0 : index
    %8 = vector.load %arg3[%c0_6, %c0_7] : memref<256x40xf32, #tpu.memory_space<vmem>>, vector<256x40xf32>
    %cst_8 = arith.constant dense<0.000000e+00> : vector<2x40xf32>
    %9 = tpu.matmul %7, %8, %cst_8 {dimension_numbers = #tpu.dot_dimension_numbers<[1], [0], [0], [1], [0, 0, 1, 1], [], []>} : vector<2x256xf32>, vector<256x40xf32>, vector<2x40xf32> -> vector<2x40xf32>
    %c0_9 = arith.constant 0 : index
    %c0_10 = arith.constant 0 : index
    %10 = vector.load %arg4[%c0_9, %c0_10] : memref<1x40xf32, #tpu.memory_space<vmem>>, vector<1x40xf32>
    %11 = vector.broadcast %10 : vector<1x40xf32> to vector<2x40xf32>
    %12 = arith.addf %9, %11 : vector<2x40xf32>
    %13 = vector.extract_strided_slice %12 {offsets = [0, 0], sizes = [2, 20], strides = [1, 1]} : vector<2x40xf32> to vector<2x20xf32>
    %14 = vector.extract_strided_slice %12 {offsets = [0, 20], sizes = [2, 20], strides = [1, 1]} : vector<2x40xf32> to vector<2x20xf32>
    %c0_11 = arith.constant 0 : index
    %c0_12 = arith.constant 0 : index
    %15 = vector.load %arg5[%c0_11, %c0_12] : memref<2x20xf32, #tpu.memory_space<vmem>>, vector<2x20xf32>
    %cst_13 = arith.constant 5.000000e-01 : f32
    %16 = vector.broadcast %cst_13 : f32 to vector<2x20xf32>
    %17 = arith.mulf %16, %14 : vector<2x20xf32>
    %18 = math.exp %17 : vector<2x20xf32>
    %19 = arith.mulf %15, %18 : vector<2x20xf32>
    %20 = arith.addf %13, %19 : vector<2x20xf32>
    %c0_14 = arith.constant 0 : index
    %c0_15 = arith.constant 0 : index
    %21 = vector.load %arg6[%c0_14, %c0_15] : memref<20x11xf32, #tpu.memory_space<vmem>>, vector<20x11xf32>
    %cst_16 = arith.constant dense<0.000000e+00> : vector<2x11xf32>
    %22 = tpu.matmul %20, %21, %cst_16 {dimension_numbers = #tpu.dot_dimension_numbers<[1], [0], [0], [1], [0, 0, 1, 1], [], []>} : vector<2x20xf32>, vector<20x11xf32>, vector<2x11xf32> -> vector<2x11xf32>
    %c0_17 = arith.constant 0 : index
    %c0_18 = arith.constant 0 : index
    %23 = vector.load %arg7[%c0_17, %c0_18] : memref<1x11xf32, #tpu.memory_space<vmem>>, vector<1x11xf32>
    %24 = vector.broadcast %23 : vector<1x11xf32> to vector<2x11xf32>
    %25 = arith.addf %22, %24 : vector<2x11xf32>
    %c0_19 = arith.constant 0 : index
    %c0_20 = arith.constant 0 : index
    %26 = vector.load %arg8[%c0_19, %c0_20] : memref<20x256xf32, #tpu.memory_space<vmem>>, vector<20x256xf32>
    %cst_21 = arith.constant dense<0.000000e+00> : vector<2x256xf32>
    %27 = tpu.matmul %20, %26, %cst_21 {dimension_numbers = #tpu.dot_dimension_numbers<[1], [0], [0], [1], [0, 0, 1, 1], [], []>} : vector<2x20xf32>, vector<20x256xf32>, vector<2x256xf32> -> vector<2x256xf32>
    %c0_22 = arith.constant 0 : index
    %c0_23 = arith.constant 0 : index
    %28 = vector.load %arg9[%c0_22, %c0_23] : memref<1x256xf32, #tpu.memory_space<vmem>>, vector<1x256xf32>
    %29 = vector.broadcast %28 : vector<1x256xf32> to vector<2x256xf32>
    %30 = arith.addf %27, %29 : vector<2x256xf32>
    %cst_24 = arith.constant 0.000000e+00 : f32
    %31 = vector.broadcast %cst_24 : f32 to vector<2x256xf32>
    %32 = arith.maximumf %30, %31 : vector<2x256xf32>
    %33 = arith.truncf %32 : vector<2x256xf32> to vector<2x256xbf16>
    %c0_25 = arith.constant 0 : index
    %c0_26 = arith.constant 0 : index
    %34 = vector.load %arg10[%c0_25, %c0_26] : memref<256x3136xbf16, #tpu.memory_space<vmem>>, vector<256x3136xbf16>
    %cst_27 = arith.constant dense<0.000000e+00> : vector<2x3136xf32>
    %35 = tpu.matmul %33, %34, %cst_27 {dimension_numbers = #tpu.dot_dimension_numbers<[1], [0], [0], [1], [0, 0, 1, 1], [], []>} : vector<2x256xbf16>, vector<256x3136xbf16>, vector<2x3136xf32> -> vector<2x3136xf32>
    %c0_28 = arith.constant 0 : index
    %c0_29 = arith.constant 0 : index
    %36 = vector.load %arg11[%c0_28, %c0_29] : memref<1x3136xf32, #tpu.memory_space<vmem>>, vector<1x3136xf32>
    %37 = vector.broadcast %36 : vector<1x3136xf32> to vector<2x3136xf32>
    %38 = arith.addf %35, %37 : vector<2x3136xf32>
    %cst_30 = arith.constant 0.000000e+00 : f32
    %39 = vector.broadcast %cst_30 : f32 to vector<2x3136xf32>
    %40 = arith.maximumf %38, %39 : vector<2x3136xf32>
    %c0_31 = arith.constant 0 : index
    %c0_32 = arith.constant 0 : index
    %41 = vector.load %arg12[%c0_31, %c0_32] : memref<2x20xf32, #tpu.memory_space<vmem>>, vector<2x20xf32>
    tpu.vector_store %arg12[%c0_31, %c0_32], %13 {strides = array<i32>} : memref<2x20xf32, #tpu.memory_space<vmem>>, vector<2x20xf32>,
    %c0_33 = arith.constant 0 : index
    %c0_34 = arith.constant 0 : index
    %42 = vector.load %arg13[%c0_33, %c0_34] : memref<2x20xf32, #tpu.memory_space<vmem>>, vector<2x20xf32>
    tpu.vector_store %arg13[%c0_33, %c0_34], %14 {strides = array<i32>} : memref<2x20xf32, #tpu.memory_space<vmem>>, vector<2x20xf32>,
    %c0_35 = arith.constant 0 : index
    %c0_36 = arith.constant 0 : index
    %43 = vector.load %arg14[%c0_35, %c0_36] : memref<2x20xf32, #tpu.memory_space<vmem>>, vector<2x20xf32>
    tpu.vector_store %arg14[%c0_35, %c0_36], %20 {strides = array<i32>} : memref<2x20xf32, #tpu.memory_space<vmem>>, vector<2x20xf32>,
    %44 = vector.extract_strided_slice %25 {offsets = [0, 0], sizes = [2, 10], strides = [1, 1]} : vector<2x11xf32> to vector<2x10xf32>
    %c0_37 = arith.constant 0 : index
    %c0_38 = arith.constant 0 : index
    %45 = vector.load %arg15[%c0_37, %c0_38] : memref<2x10xf32, #tpu.memory_space<vmem>>, vector<2x10xf32>
    tpu.vector_store %arg15[%c0_37, %c0_38], %44 {strides = array<i32>} : memref<2x10xf32, #tpu.memory_space<vmem>>, vector<2x10xf32>,
    %46 = vector.extract_strided_slice %25 {offsets = [0, 10], sizes = [2, 1], strides = [1, 1]} : vector<2x11xf32> to vector<2x1xf32>
    %c0_39 = arith.constant 0 : index
    %c0_40 = arith.constant 0 : index
    %47 = vector.load %arg16[%c0_39, %c0_40] : memref<2x1xf32, #tpu.memory_space<vmem>>, vector<2x1xf32>
    tpu.vector_store %arg16[%c0_39, %c0_40], %46 {strides = array<i32>} : memref<2x1xf32, #tpu.memory_space<vmem>>, vector<2x1xf32>,
    %48 = arith.truncf %40 : vector<2x3136xf32> to vector<2x3136xbf16>
    %c0_41 = arith.constant 0 : index
    %c0_42 = arith.constant 0 : index
    %49 = vector.load %arg17[%c0_41, %c0_42] : memref<2x3136xbf16, #tpu.memory_space<vmem>>, vector<2x3136xbf16>
    tpu.vector_store %arg17[%c0_41, %c0_42], %48 {strides = array<i32>} : memref<2x3136xbf16, #tpu.memory_space<vmem>>, vector<2x3136xbf16>,
    return
  }
}

module attributes {stable_mosaic.version = 11 : i64} {
  func.func @_gemm_bias_act_kernel(%arg0: i32, %arg1: memref<104x256xbf16, #tpu.memory_space<vmem>>, %arg2: memref<256x128xbf16, #tpu.memory_space<vmem>>, %arg3: memref<1x128xf32, #tpu.memory_space<vmem>>, %arg4: memref<104x128xbf16, #tpu.memory_space<vmem>>) attributes {dimension_semantics = [#tpu.dimension_semantics<parallel>], iteration_bounds = array<i64: 1>, scalar_prefetch = 0 : i64, scratch_operands = 0 : i64, tpu.core_type = #tpu.core_type<tc>, window_params = [{transform_indices = @transform_0, window_bounds = array<i64: 104, 256>}, {pipeline_mode = #tpu.pipeline_mode<synchronous>, transform_indices = @transform_1, window_bounds = array<i64: 256, 128>}, {pipeline_mode = #tpu.pipeline_mode<synchronous>, transform_indices = @transform_2, window_bounds = array<i64: 1, 128>}, {transform_indices = @transform_3, window_bounds = array<i64: 104, 128>}]} {
    %c0 = arith.constant 0 : index
    %c0_0 = arith.constant 0 : index
    %0 = vector.load %arg1[%c0, %c0_0] : memref<104x256xbf16, #tpu.memory_space<vmem>>, vector<104x256xbf16>
    %c0_1 = arith.constant 0 : index
    %c0_2 = arith.constant 0 : index
    %1 = vector.load %arg2[%c0_1, %c0_2] : memref<256x128xbf16, #tpu.memory_space<vmem>>, vector<256x128xbf16>
    %cst = arith.constant dense<0.000000e+00> : vector<104x128xf32>
    %2 = tpu.matmul %0, %1, %cst {dimension_numbers = #tpu.dot_dimension_numbers<[1], [0], [0], [1], [0, 0, 1, 1], [], []>} : vector<104x256xbf16>, vector<256x128xbf16>, vector<104x128xf32> -> vector<104x128xf32>
    %c0_3 = arith.constant 0 : index
    %c0_4 = arith.constant 0 : index
    %3 = vector.load %arg3[%c0_3, %c0_4] : memref<1x128xf32, #tpu.memory_space<vmem>>, vector<1x128xf32>
    %4 = vector.broadcast %3 : vector<1x128xf32> to vector<104x128xf32>
    %5 = arith.addf %2, %4 : vector<104x128xf32>
    %cst_5 = arith.constant 0.000000e+00 : f32
    %6 = vector.broadcast %cst_5 : f32 to vector<104x128xf32>
    %7 = arith.maximumf %5, %6 : vector<104x128xf32>
    %8 = arith.truncf %7 : vector<104x128xf32> to vector<104x128xbf16>
    %c0_6 = arith.constant 0 : index
    %c0_7 = arith.constant 0 : index
    %9 = vector.load %arg4[%c0_6, %c0_7] : memref<104x128xbf16, #tpu.memory_space<vmem>>, vector<104x128xbf16>
    tpu.vector_store %arg4[%c0_6, %c0_7], %8 {strides = array<i32>} : memref<104x128xbf16, #tpu.memory_space<vmem>>, vector<104x128xbf16>,
    return
  }
  func.func @transform_0(%arg0: i32) -> (i32, i32) {
    %c0_i32 = arith.constant 0 : i32
    %c0_i32_0 = arith.constant 0 : i32
    return %arg0, %c0_i32 : i32, i32
  }
  func.func @transform_1(%arg0: i32) -> (i32, i32) {
    %c0_i32 = arith.constant 0 : i32
    %c0_i32_0 = arith.constant 0 : i32
    %c0_i32_1 = arith.constant 0 : i32
    return %c0_i32, %c0_i32_0 : i32, i32
  }
  func.func @transform_2(%arg0: i32) -> (i32, i32) {
    %c0_i32 = arith.constant 0 : i32
    %c0_i32_0 = arith.constant 0 : i32
    %c0_i32_1 = arith.constant 0 : i32
    return %c0_i32, %c0_i32_0 : i32, i32
  }
  func.func @transform_3(%arg0: i32) -> (i32, i32) {
    %c0_i32 = arith.constant 0 : i32
    %c0_i32_0 = arith.constant 0 : i32
    return %arg0, %c0_i32 : i32, i32
  }
}

module attributes {stable_mosaic.version = 11 : i64} {
  func.func @_gemm_bias_act_kernel(%arg0: i32, %arg1: memref<392x128xbf16, #tpu.memory_space<vmem>>, %arg2: memref<128x4xbf16, #tpu.memory_space<vmem>>, %arg3: memref<1x4xf32, #tpu.memory_space<vmem>>, %arg4: memref<392x4xf32, #tpu.memory_space<vmem>>) attributes {dimension_semantics = [#tpu.dimension_semantics<parallel>], iteration_bounds = array<i64: 1>, scalar_prefetch = 0 : i64, scratch_operands = 0 : i64, tpu.core_type = #tpu.core_type<tc>, window_params = [{transform_indices = @transform_0, window_bounds = array<i64: 392, 128>}, {pipeline_mode = #tpu.pipeline_mode<synchronous>, transform_indices = @transform_1, window_bounds = array<i64: 128, 4>}, {pipeline_mode = #tpu.pipeline_mode<synchronous>, transform_indices = @transform_2, window_bounds = array<i64: 1, 4>}, {transform_indices = @transform_3, window_bounds = array<i64: 392, 4>}]} {
    %c0 = arith.constant 0 : index
    %c0_0 = arith.constant 0 : index
    %0 = vector.load %arg1[%c0, %c0_0] : memref<392x128xbf16, #tpu.memory_space<vmem>>, vector<392x128xbf16>
    %c0_1 = arith.constant 0 : index
    %c0_2 = arith.constant 0 : index
    %1 = vector.load %arg2[%c0_1, %c0_2] : memref<128x4xbf16, #tpu.memory_space<vmem>>, vector<128x4xbf16>
    %cst = arith.constant dense<0.000000e+00> : vector<392x4xf32>
    %2 = tpu.matmul %0, %1, %cst {dimension_numbers = #tpu.dot_dimension_numbers<[1], [0], [0], [1], [0, 0, 1, 1], [], []>} : vector<392x128xbf16>, vector<128x4xbf16>, vector<392x4xf32> -> vector<392x4xf32>
    %c0_3 = arith.constant 0 : index
    %c0_4 = arith.constant 0 : index
    %3 = vector.load %arg3[%c0_3, %c0_4] : memref<1x4xf32, #tpu.memory_space<vmem>>, vector<1x4xf32>
    %4 = vector.broadcast %3 : vector<1x4xf32> to vector<392x4xf32>
    %5 = arith.addf %2, %4 : vector<392x4xf32>
    %6 = math.absf %5 : vector<392x4xf32>
    %cst_5 = arith.constant 0.000000e+00 : f32
    %7 = vector.broadcast %cst_5 : f32 to vector<392x4xf32>
    %8 = arith.subf %7, %6 : vector<392x4xf32>
    %9 = math.exp %8 : vector<392x4xf32>
    %cst_6 = arith.constant 0.000000e+00 : f32
    %10 = vector.broadcast %cst_6 : f32 to vector<392x4xf32>
    %11 = arith.cmpf oge, %5, %10 : vector<392x4xf32>
    %cst_7 = arith.constant 1.000000e+00 : f32
    %12 = vector.broadcast %cst_7 : f32 to vector<392x4xf32>
    %13 = arith.select %11, %12, %9 : vector<392x4xi1>, vector<392x4xf32>
    %cst_8 = arith.constant 1.000000e+00 : f32
    %14 = vector.broadcast %cst_8 : f32 to vector<392x4xf32>
    %15 = arith.addf %14, %9 : vector<392x4xf32>
    %16 = arith.divf %13, %15 : vector<392x4xf32>
    %c0_9 = arith.constant 0 : index
    %c0_10 = arith.constant 0 : index
    %17 = vector.load %arg4[%c0_9, %c0_10] : memref<392x4xf32, #tpu.memory_space<vmem>>, vector<392x4xf32>
    tpu.vector_store %arg4[%c0_9, %c0_10], %16 {strides = array<i32>} : memref<392x4xf32, #tpu.memory_space<vmem>>, vector<392x4xf32>,
    return
  }
  func.func @transform_0(%arg0: i32) -> (i32, i32) {
    %c0_i32 = arith.constant 0 : i32
    %c0_i32_0 = arith.constant 0 : i32
    return %arg0, %c0_i32 : i32, i32
  }
  func.func @transform_1(%arg0: i32) -> (i32, i32) {
    %c0_i32 = arith.constant 0 : i32
    %c0_i32_0 = arith.constant 0 : i32
    %c0_i32_1 = arith.constant 0 : i32
    return %c0_i32, %c0_i32_0 : i32, i32
  }
  func.func @transform_2(%arg0: i32) -> (i32, i32) {
    %c0_i32 = arith.constant 0 : i32
    %c0_i32_0 = arith.constant 0 : i32
    %c0_i32_1 = arith.constant 0 : i32
    return %c0_i32, %c0_i32_0 : i32, i32
  }
  func.func @transform_3(%arg0: i32) -> (i32, i32) {
    %c0_i32 = arith.constant 0 : i32
    %c0_i32_0 = arith.constant 0 : i32
    return %arg0, %c0_i32 : i32, i32
  }
}

</mosaic_0001>

<bundles_post_ra>
// kernel: forward.5
= control target key start
LH: loop header
LB: loop body
LE: loop exit
PB: predicated region body
PF: predicated region fallthrough
CT: control target
= control target key end

     0   :  { %8 = vsyncpa [#allocation3], 0  ;;  %s1161_s12 = smov [#allocation2]   ;;  %s1590_s0 = inlined_call_operand.vmem [shape: bf16[392,9], index: 0, kind: input, shape index: {}]   ;;  %s1591_s1 = inlined_call_operand.vmem [shape: bf16[9,32], index: 1, kind: input, shape index: {}]   ;;  %s1592_s2 = inlined_call_operand.hbm [shape: f32[1,32], index: 2, kind: input, shape index: {}]   ;;  %s1593_s3 = inlined_call_operand.vmem [shape: bf16[392,32], index: 3, kind: output, shape index: {}]  }
   0x1   :  { %s19_s13 = sshll.u32 %s1161_s12, 4  ;;  %s20_s13 = int_to_ptr.vmem [resolvable:$true] %s19_s13 }
   0x2   :  { %s1147_s14 = scalar_lea.vmem %s20_s13, 16  ;;  %s1151_s15 = scalar_lea.vmem %s20_s13, 32 }
   0x3   :  { %p1148_p0 = scmp.ne.s32.totalorder %s20_s13, %s1147_s14  ;;  %p1152_p1 = scmp.lt.s32.totalorder %s20_s13, %s20_s13 }
   0x4   :  { %p1153_p2 = scmp.lt.s32.totalorder %s1151_s15, %s1147_s14 }
   0x6   :  { %p1154_p3 = por %p1153_p2, %p1152_p1 }
   0x8   :  { %p1155_p4 = pnand %p1154_p3, %p1148_p0 }
   0xa   :  { %1158 = shalt.err (!%p1155_p4)
}
   0xb   :  { %22 = dma.hbm_to_vmem [thread:$0]  %s1592_s2, 16, %s20_s13, [#allocation3]  }
   0xc   :  { %1159 = dma.done.wait [#allocation3], 16  }
   0xd   :  { %1160 = vsyncadd [#allocation3], 4294967280  ;;  %vm289_vm0 = vcmask 1043456   ;;  %v1162_v0 = vmov 0.0   ;;  %vm1163_vm1 = vmmov 0   ;;  %vm290_vm2 = vcmask 1044480  }
   0xe   :  { %1005 = vmatprep.subr.bf16.mxu0 %v1162_v0  ;;  %1107 = vmatprep.subr.bf16.mxu1 %v1162_v0  ;;  %v1164_v1 = vmov 65535   ;;  %v1113_v4 = vld [vmem:[%s1591_s1] sm:$0x1f]   ;;  %v1115_v7 = vld [vmem:[%s1590_s0 + $0x68] sm:$0xff]   ;;  %vm213_vm3 = vcmask 72704   ;;  %v1117_v9 = vld [vmem:[%s1590_s0 + $0x70] sm:$0xff]  }
   0xf   :  { %1007 = vmatprep.mubr.msk.bf16.mxu0 %vm1163_vm1, %v1162_v0  ;;  %1059 = vmatprep.mubr.msk.bf16.mxu1 %vm1163_vm1, %v1162_v0  ;;  %v291_v2 = vsel %vm289_vm0, 4294967295, %v1164_v1  ;;  %v1114_v6 = vld [vmem:[%s1590_s0] sm:$0xff]   ;;  %v1116_v8 = vld [vmem:[%s1590_s0 + $0x8] sm:$0xff]   ;;  %v1118_v10 = vld [vmem:[%s1590_s0 + $0x10] sm:$0xff]   ;;  %vm774_vm4 = vcmask 257024  }
  0x10   :  { %v292_v3 = vsel %vm290_vm2, %v291_v2, 0  ;;  %v1119_v11 = vld [vmem:[%s1590_s0 + $0x78] sm:$0xff]   ;;  %v1121_v13 = vld [vmem:[%s1590_s0 + $0x80] sm:$0xff]   ;;  %v1123_v15 = vld [vmem:[%s1590_s0 + $0x88] sm:$0xff]  }
  0x11   :  { %v294_v5 = vand.u32 %v1113_v4, %v292_v3  ;;  %v1120_v12 = vld [vmem:[%s1590_s0 + $0x18] sm:$0xff]   ;;  %v1122_v14 = vld [vmem:[%s1590_s0 + $0x20] sm:$0xff]   ;;  %v1124_v16 = vld [vmem:[%s1590_s0 + $0x28] sm:$0xff]  }
  0x12   :  { %v1125_v17 = vld [vmem:[%s1590_s0 + $0x90] sm:$0xff]   ;;  %v1127_v19 = vld [vmem:[%s1590_s0 + $0x98] sm:$0xff]   ;;  %v1129_v21 = vld [vmem:[%s1590_s0 + $0xa0] sm:$0xff]  }
  0x13   :  { %1006 = vmatpush3.bf16.msra.mxu0 %v294_v5  ;;  %1108 = vmatpush3.bf16.msra.mxu1 %v294_v5  ;;  %v1126_v18 = vld [vmem:[%s1590_s0 + $0x30] sm:$0xff]   ;;  %v1128_v20 = vld [vmem:[%s1590_s0 + $0x38] sm:$0xff]   ;;  %v1130_v22 = vld [vmem:[%s1590_s0 + $0x40] sm:$0xff]  }
  0x14   :  { %v1131_v23 = vld [vmem:[%s1590_s0 + $0xa8] sm:$0xff]   ;;  %v1133_v25 = vld [vmem:[%s1590_s0 + $0xb0] sm:$0xff]   ;;  %v1135_v27 = vld [vmem:[%s1590_s0 + $0xb8] sm:$0xff]  }
  0x15   :  { %v1132_v24 = vld [vmem:[%s1590_s0 + $0x48] sm:$0xff]   ;;  %v1134_v26 = vld [vmem:[%s1590_s0 + $0x50] sm:$0xff]   ;;  %v1136_v28 = vld [vmem:[%s1590_s0 + $0x58] sm:$0xff]  }
  0x16   :  { %1008 = vmatmul.mubr.msk.bf16.vlgmr.msra.gmra.mxu0 %vm213_vm3, %v1114_v6  ;;  %1060 = vmatmul.mubr.msk.bf16.vlgmr.msra.gmra.mxu1 %vm213_vm3, %v1115_v7  ;;  %v1137_v29 = vld [vmem:[%s1590_s0 + $0xc0] ss:$0 sps:$4 sm:$0xff]  }
  0x17   :  { %1011 = vmatprep.mubr.msk.bf16.mxu0 %vm1163_vm1, %v1162_v0  ;;  %1063 = vmatprep.mubr.msk.bf16.mxu1 %vm1163_vm1, %v1162_v0  ;;  %v1138_v30 = vld [vmem:[%s1590_s0 + $0x60] sm:$0xff]  }
  0x18   :  { %v1343_v31 = vld [vmem:[#allocation2] ss:$0 sm:$0xff] }
  0x1e   :  { %1012 = vmatmul.mubr.msk.bf16.gmra.mxu0 %vm213_vm3, %v1116_v8  ;;  %1064 = vmatmul.mubr.msk.bf16.gmra.mxu1 %vm213_vm3, %v1117_v9 }
  0x1f   :  { %1015 = vmatprep.mubr.msk.bf16.mxu0 %vm1163_vm1, %v1162_v0  ;;  %1067 = vmatprep.mubr.msk.bf16.mxu1 %vm1163_vm1, %v1162_v0 }
  0x26   :  { %1016 = vmatmul.mubr.msk.bf16.gmra.mxu0 %vm213_vm3, %v1118_v10  ;;  %1068 = vmatmul.mubr.msk.bf16.gmra.mxu1 %vm213_vm3, %v1119_v11 }
  0x27   :  { %1019 = vmatprep.mubr.msk.bf16.mxu0 %vm1163_vm1, %v1162_v0  ;;  %1071 = vmatprep.mubr.msk.bf16.mxu1 %vm1163_vm1, %v1162_v0 }
  0x2e   :  { %1020 = vmatmul.mubr.msk.bf16.gmra.mxu0 %vm213_vm3, %v1120_v12  ;;  %1072 = vmatmul.mubr.msk.bf16.gmra.mxu1 %vm213_vm3, %v1121_v13 }
  0x2f   :  { %1023 = vmatprep.mubr.msk.bf16.mxu0 %vm1163_vm1, %v1162_v0  ;;  %1075 = vmatprep.mubr.msk.bf16.mxu1 %vm1163_vm1, %v1162_v0 }
  0x36   :  { %1024 = vmatmul.mubr.msk.bf16.gmra.mxu0 %vm213_vm3, %v1122_v14  ;;  %1076 = vmatmul.mubr.msk.bf16.gmra.mxu1 %vm213_vm3, %v1123_v15 }
  0x37   :  { %1027 = vmatprep.mubr.msk.bf16.mxu0 %vm1163_vm1, %v1162_v0  ;;  %1079 = vmatprep.mubr.msk.bf16.mxu1 %vm1163_vm1, %v1162_v0 }
  0x3e   :  { %1028 = vmatmul.mubr.msk.bf16.gmra.mxu0 %vm213_vm3, %v1124_v16  ;;  %1080 = vmatmul.mubr.msk.bf16.gmra.mxu1 %vm213_vm3, %v1125_v17 }
  0x3f   :  { %1031 = vmatprep.mubr.msk.bf16.mxu0 %vm1163_vm1, %v1162_v0  ;;  %1083 = vmatprep.mubr.msk.bf16.mxu1 %vm1163_vm1, %v1162_v0 }
  0x46   :  { %1032 = vmatmul.mubr.msk.bf16.gmra.mxu0 %vm213_vm3, %v1126_v18  ;;  %1084 = vmatmul.mubr.msk.bf16.gmra.mxu1 %vm213_vm3, %v1127_v19 }
  0x47   :  { %1035 = vmatprep.mubr.msk.bf16.mxu0 %vm1163_vm1, %v1162_v0  ;;  %1087 = vmatprep.mubr.msk.bf16.mxu1 %vm1163_vm1, %v1162_v0 }
  0x4e   :  { %1036 = vmatmul.mubr.msk.bf16.gmra.mxu0 %vm213_vm3, %v1128_v20  ;;  %1088 = vmatmul.mubr.msk.bf16.gmra.mxu1 %vm213_vm3, %v1129_v21 }
  0x4f   :  { %1039 = vmatprep.mubr.msk.bf16.mxu0 %vm1163_vm1, %v1162_v0  ;;  %1091 = vmatprep.mubr.msk.bf16.mxu1 %vm1163_vm1, %v1162_v0 }
  0x56   :  { %1040 = vmatmul.mubr.msk.bf16.gmra.mxu0 %vm213_vm3, %v1130_v22  ;;  %1092 = vmatmul.mubr.msk.bf16.gmra.mxu1 %vm213_vm3, %v1131_v23 }
  0x57   :  { %1043 = vmatprep.mubr.msk.bf16.mxu0 %vm1163_vm1, %v1162_v0  ;;  %1095 = vmatprep.mubr.msk.bf16.mxu1 %vm1163_vm1, %v1162_v0 }
  0x5e   :  { %1044 = vmatmul.mubr.msk.bf16.gmra.mxu0 %vm213_vm3, %v1132_v24  ;;  %1096 = vmatmul.mubr.msk.bf16.gmra.mxu1 %vm213_vm3, %v1133_v25 }
  0x5f   :  { %1047 = vmatprep.mubr.msk.bf16.mxu0 %vm1163_vm1, %v1162_v0  ;;  %1099 = vmatprep.mubr.msk.bf16.mxu1 %vm1163_vm1, %v1162_v0 }
  0x66   :  { %1048 = vmatmul.mubr.msk.bf16.gmra.mxu0 %vm213_vm3, %v1134_v26  ;;  %1100 = vmatmul.mubr.msk.bf16.gmra.mxu1 %vm213_vm3, %v1135_v27 }
  0x67   :  { %1051 = vmatprep.mubr.msk.bf16.mxu0 %vm1163_vm1, %v1162_v0  ;;  %1103 = vmatprep.mubr.msk.bf16.mxu1 %vm1163_vm1, %v1162_v0 }
  0x6e   :  { %1052 = vmatmul.mubr.msk.bf16.gmra.mxu0 %vm213_vm3, %v1136_v28  ;;  %1104 = vmatmul.mubr.msk.bf16.gmra.mxu1 %vm213_vm3, %v1137_v29 }
  0x6f   :  { %1055 = vmatprep.mubr.msk.bf16.mxu0 %vm1163_vm1, %v1162_v0 }
  0x76   :  { %1056 = vmatmul.mubr.msk.bf16.gmra.mxu0 %vm213_vm3, %v1138_v30 }
  0xd6   :  { %v330_v32 = vpop.f32.mrf.mxu0  ;;  %v434_v33 = vpop.f32.mrf.mxu1 }
  0xd7   :  { %v331_v34 = vadd.f32 %v1343_v31, %v330_v32  ;;  %v435_v35 = vadd.f32 %v1343_v31, %v434_v33 }
  0xd8   :  { %v1009_v36 = vpop.f32.mrf.mxu0  ;;  %v1061_v37 = vpop.f32.mrf.mxu1 }
  0xd9   :  { %v528_v38 = vmax.f32 %v331_v34, 0.0  ;;  %v554_v39 = vmax.f32 %v435_v35, 0.0 }
  0xda   :  { %v333_v40 = vpop.f32.mrf.mxu0  ;;  %v437_v41 = vpop.f32.mrf.mxu1 }
  0xdb   :  { %v930_v42 = vpack.c.bf16 %v528_v38, %v528_v38  ;;  %v334_v43 = vadd.f32 %v1343_v31, %v333_v40  ;;  %v956_v44 = vpack.c.bf16 %v554_v39, %v554_v39  ;;  %v438_v45 = vadd.f32 %v1343_v31, %v437_v41 }
  0xdc   :  { %v1010_v46 = vpop.f32.mrf.mxu0  ;;  %v1062_v47 = vpop.f32.mrf.mxu1 }
  0xdd   :  { %775 = vst.msk [vmem:[%s1593_s3] sm:$0xf] %vm774_vm4, %v930_v42  ;;  %v529_v48 = vmax.f32 %v334_v43, 0.0  ;;  %801 = vst.msk [vmem:[%s1593_s3 + $0x68] sm:$0xf] %vm774_vm4, %v956_v44  ;;  %v555_v49 = vmax.f32 %v438_v45, 0.0 }
  0xde   :  { %v338_v50 = vpop.f32.mrf.mxu0  ;;  %v442_v51 = vpop.f32.mrf.mxu1 }
  0xdf   :  { %v931_v52 = vpack.c.bf16 %v529_v48, %v529_v48  ;;  %v339_v53 = vadd.f32 %v1343_v31, %v338_v50  ;;  %v957_v54 = vpack.c.bf16 %v555_v49, %v555_v49  ;;  %v443_v55 = vadd.f32 %v1343_v31, %v442_v51 }
  0xe0   :  { %v1013_v56 = vpop.f32.mrf.mxu0  ;;  %v1065_v57 = vpop.f32.mrf.mxu1 }
  0xe1   :  { %776 = vst.msk [vmem:[%s1593_s3 + $0x4] sm:$0xf] %vm774_vm4, %v931_v52  ;;  %v530_v58 = vmax.f32 %v339_v53, 0.0  ;;  %802 = vst.msk [vmem:[%s1593_s3 + $0x6c] sm:$0xf] %vm774_vm4, %v957_v54  ;;  %v556_v59 = vmax.f32 %v443_v55, 0.0 }
  0xe2   :  { %v341_v60 = vpop.f32.mrf.mxu0  ;;  %v445_v61 = vpop.f32.mrf.mxu1 }
  0xe3   :  { %v932_v62 = vpack.c.bf16 %v530_v58, %v530_v58  ;;  %v342_v63 = vadd.f32 %v1343_v31, %v341_v60  ;;  %v958_v0 = vpack.c.bf16 %v556_v59, %v556_v59  ;;  %v446_v1 = vadd.f32 %v1343_v31, %v445_v61 }
  0xe4   :  { %v1014_v2 = vpop.f32.mrf.mxu0  ;;  %v1066_v3 = vpop.f32.mrf.mxu1 }
  0xe5   :  { %777 = vst.msk [vmem:[%s1593_s3 + $0x8] sm:$0xf] %vm774_vm4, %v932_v62  ;;  %v531_v4 = vmax.f32 %v342_v63, 0.0  ;;  %803 = vst.msk [vmem:[%s1593_s3 + $0x70] sm:$0xf] %vm774_vm4, %v958_v0  ;;  %v557_v5 = vmax.f32 %v446_v1, 0.0 }
  0xe6   :  { %v346_v6 = vpop.f32.mrf.mxu0  ;;  %v450_v7 = vpop.f32.mrf.mxu1 }
  0xe7   :  { %v933_v8 = vpack.c.bf16 %v531_v4, %v531_v4  ;;  %v347_v9 = vadd.f32 %v1343_v31, %v346_v6  ;;  %v959_v10 = vpack.c.bf16 %v557_v5, %v557_v5  ;;  %v451_v11 = vadd.f32 %v1343_v31, %v450_v7 }
  0xe8   :  { %v1017_v12 = vpop.f32.mrf.mxu0  ;;  %v1069_v13 = vpop.f32.mrf.mxu1 }
  0xe9   :  { %778 = vst.msk [vmem:[%s1593_s3 + $0xc] sm:$0xf] %vm774_vm4, %v933_v8  ;;  %v532_v14 = vmax.f32 %v347_v9, 0.0  ;;  %804 = vst.msk [vmem:[%s1593_s3 + $0x74] sm:$0xf] %vm774_vm4, %v959_v10  ;;  %v558_v15 = vmax.f32 %v451_v11, 0.0 }
  0xea   :  { %v349_v16 = vpop.f32.mrf.mxu0  ;;  %v453_v17 = vpop.f32.mrf.mxu1 }
  0xeb   :  { %v934_v18 = vpack.c.bf16 %v532_v14, %v532_v14  ;;  %v350_v19 = vadd.f32 %v1343_v31, %v349_v16  ;;  %v960_v20 = vpack.c.bf16 %v558_v15, %v558_v15  ;;  %v454_v21 = vadd.f32 %v1343_v31, %v453_v17 }
  0xec   :  { %v1018_v22 = vpop.f32.mrf.mxu0  ;;  %v1070_v23 = vpop.f32.mrf.mxu1 }
  0xed   :  { %779 = vst.msk [vmem:[%s1593_s3 + $0x10] sm:$0xf] %vm774_vm4, %v934_v18  ;;  %v533_v24 = vmax.f32 %v350_v19, 0.0  ;;  %805 = vst.msk [vmem:[%s1593_s3 + $0x78] sm:$0xf] %vm774_vm4, %v960_v20  ;;  %v559_v25 = vmax.f32 %v454_v21, 0.0 }
  0xee   :  { %v354_v26 = vpop.f32.mrf.mxu0  ;;  %v458_v27 = vpop.f32.mrf.mxu1 }
  0xef   :  { %v935_v28 = vpack.c.bf16 %v533_v24, %v533_v24  ;;  %v355_v29 = vadd.f32 %v1343_v31, %v354_v26  ;;  %v961_v30 = vpack.c.bf16 %v559_v25, %v559_v25  ;;  %v459_v32 = vadd.f32 %v1343_v31, %v458_v27 }
  0xf0   :  { %v1021_v33 = vpop.f32.mrf.mxu0  ;;  %v1073_v34 = vpop.f32.mrf.mxu1 }
  0xf1   :  { %780 = vst.msk [vmem:[%s1593_s3 + $0x14] sm:$0xf] %vm774_vm4, %v935_v28  ;;  %v534_v35 = vmax.f32 %v355_v29, 0.0  ;;  %806 = vst.msk [vmem:[%s1593_s3 + $0x7c] sm:$0xf] %vm774_vm4, %v961_v30  ;;  %v560_v36 = vmax.f32 %v459_v32, 0.0 }
  0xf2   :  { %v357_v37 = vpop.f32.mrf.mxu0  ;;  %v461_v38 = vpop.f32.mrf.mxu1 }
  0xf3   :  { %v936_v39 = vpack.c.bf16 %v534_v35, %v534_v35  ;;  %v358_v40 = vadd.f32 %v1343_v31, %v357_v37  ;;  %v962_v41 = vpack.c.bf16 %v560_v36, %v560_v36  ;;  %v462_v42 = vadd.f32 %v1343_v31, %v461_v38 }
  0xf4   :  { %v1022_v43 = vpop.f32.mrf.mxu0  ;;  %v1074_v44 = vpop.f32.mrf.mxu1 }
  0xf5   :  { %781 = vst.msk [vmem:[%s1593_s3 + $0x18] sm:$0xf] %vm774_vm4, %v936_v39  ;;  %v535_v45 = vmax.f32 %v358_v40, 0.0  ;;  %807 = vst.msk [vmem:[%s1593_s3 + $0x80] sm:$0xf] %vm774_vm4, %v962_v41  ;;  %v561_v46 = vmax.f32 %v462_v42, 0.0 }
  0xf6   :  { %v362_v47 = vpop.f32.mrf.mxu0  ;;  %v466_v48 = vpop.f32.mrf.mxu1 }
  0xf7   :  { %v937_v49 = vpack.c.bf16 %v535_v45, %v535_v45  ;;  %v363_v50 = vadd.f32 %v1343_v31, %v362_v47  ;;  %v963_v51 = vpack.c.bf16 %v561_v46, %v561_v46  ;;  %v467_v52 = vadd.f32 %v1343_v31, %v466_v48 }
  0xf8   :  { %v1025_v53 = vpop.f32.mrf.mxu0  ;;  %v1077_v54 = vpop.f32.mrf.mxu1 }
  0xf9   :  { %782 = vst.msk [vmem:[%s1593_s3 + $0x1c] sm:$0xf] %vm774_vm4, %v937_v49  ;;  %v536_v55 = vmax.f32 %v363_v50, 0.0  ;;  %808 = vst.msk [vmem:[%s1593_s3 + $0x84] sm:$0xf] %vm774_vm4, %v963_v51  ;;  %v562_v56 = vmax.f32 %v467_v52, 0.0 }
  0xfa   :  { %v365_v57 = vpop.f32.mrf.mxu0  ;;  %v469_v58 = vpop.f32.mrf.mxu1 }
  0xfb   :  { %v938_v59 = vpack.c.bf16 %v536_v55, %v536_v55  ;;  %v366_v60 = vadd.f32 %v1343_v31, %v365_v57  ;;  %v964_v61 = vpack.c.bf16 %v562_v56, %v562_v56  ;;  %v470_v62 = vadd.f32 %v1343_v31, %v469_v58 }
  0xfc   :  { %v1026_v63 = vpop.f32.mrf.mxu0  ;;  %v1078_v0 = vpop.f32.mrf.mxu1 }
  0xfd   :  { %783 = vst.msk [vmem:[%s1593_s3 + $0x20] sm:$0xf] %vm774_vm4, %v938_v59  ;;  %v537_v1 = vmax.f32 %v366_v60, 0.0  ;;  %809 = vst.msk [vmem:[%s1593_s3 + $0x88] sm:$0xf] %vm774_vm4, %v964_v61  ;;  %v563_v2 = vmax.f32 %v470_v62, 0.0 }
  0xfe   :  { %v370_v3 = vpop.f32.mrf.mxu0  ;;  %v474_v4 = vpop.f32.mrf.mxu1 }
  0xff   :  { %v939_v5 = vpack.c.bf16 %v537_v1, %v537_v1  ;;  %v371_v6 = vadd.f32 %v1343_v31, %v370_v3  ;;  %v965_v7 = vpack.c.bf16 %v563_v2, %v563_v2  ;;  %v475_v8 = vadd.f32 %v1343_v31, %v474_v4 }
 0x100   :  { %v1029_v9 = vpop.f32.mrf.mxu0  ;;  %v1081_v10 = vpop.f32.mrf.mxu1 }
 0x101   :  { %784 = vst.msk [vmem:[%s1593_s3 + $0x24] sm:$0xf] %vm774_vm4, %v939_v5  ;;  %v538_v11 = vmax.f32 %v371_v6, 0.0  ;;  %810 = vst.msk [vmem:[%s1593_s3 + $0x8c] sm:$0xf] %vm774_vm4, %v965_v7  ;;  %v564_v12 = vmax.f32 %v475_v8, 0.0 }
 0x102   :  { %v373_v13 = vpop.f32.mrf.mxu0  ;;  %v477_v14 = vpop.f32.mrf.mxu1 }
 0x103   :  { %v940_v15 = vpack.c.bf16 %v538_v11, %v538_v11  ;;  %v374_v16 = vadd.f32 %v1343_v31, %v373_v13  ;;  %v966_v17 = vpack.c.bf16 %v564_v12, %v564_v12  ;;  %v478_v18 = vadd.f32 %v1343_v31, %v477_v14 }
 0x104   :  { %v1030_v19 = vpop.f32.mrf.mxu0  ;;  %v1082_v20 = vpop.f32.mrf.mxu1 }
 0x105   :  { %785 = vst.msk [vmem:[%s1593_s3 + $0x28] sm:$0xf] %vm774_vm4, %v940_v15  ;;  %v539_v21 = vmax.f32 %v374_v16, 0.0  ;;  %811 = vst.msk [vmem:[%s1593_s3 + $0x90] sm:$0xf] %vm774_vm4, %v966_v17  ;;  %v565_v22 = vmax.f32 %v478_v18, 0.0 }
 0x106   :  { %v378_v23 = vpop.f32.mrf.mxu0  ;;  %v482_v24 = vpop.f32.mrf.mxu1 }
 0x107   :  { %v941_v25 = vpack.c.bf16 %v539_v21, %v539_v21  ;;  %v379_v26 = vadd.f32 %v1343_v31, %v378_v23  ;;  %v967_v27 = vpack.c.bf16 %v565_v22, %v565_v22  ;;  %v483_v28 = vadd.f32 %v1343_v31, %v482_v24 }
 0x108   :  { %v1033_v29 = vpop.f32.mrf.mxu0  ;;  %v1085_v30 = vpop.f32.mrf.mxu1 }
 0x109   :  { %786 = vst.msk [vmem:[%s1593_s3 + $0x2c] sm:$0xf] %vm774_vm4, %v941_v25  ;;  %v540_v32 = vmax.f32 %v379_v26, 0.0  ;;  %812 = vst.msk [vmem:[%s1593_s3 + $0x94] sm:$0xf] %vm774_vm4, %v967_v27  ;;  %v566_v33 = vmax.f32 %v483_v28, 0.0 }
 0x10a   :  { %v381_v34 = vpop.f32.mrf.mxu0  ;;  %v485_v35 = vpop.f32.mrf.mxu1 }
 0x10b   :  { %v942_v36 = vpack.c.bf16 %v540_v32, %v540_v32  ;;  %v382_v37 = vadd.f32 %v1343_v31, %v381_v34  ;;  %v968_v38 = vpack.c.bf16 %v566_v33, %v566_v33  ;;  %v486_v39 = vadd.f32 %v1343_v31, %v485_v35 }
 0x10c   :  { %v1034_v40 = vpop.f32.mrf.mxu0  ;;  %v1086_v41 = vpop.f32.mrf.mxu1 }
 0x10d   :  { %787 = vst.msk [vmem:[%s1593_s3 + $0x30] sm:$0xf] %vm774_vm4, %v942_v36  ;;  %v541_v42 = vmax.f32 %v382_v37, 0.0  ;;  %813 = vst.msk [vmem:[%s1593_s3 + $0x98] sm:$0xf] %vm774_vm4, %v968_v38  ;;  %v567_v43 = vmax.f32 %v486_v39, 0.0 }
 0x10e   :  { %v386_v44 = vpop.f32.mrf.mxu0  ;;  %v490_v45 = vpop.f32.mrf.mxu1 }
 0x10f   :  { %v943_v46 = vpack.c.bf16 %v541_v42, %v541_v42  ;;  %v387_v47 = vadd.f32 %v1343_v31, %v386_v44  ;;  %v969_v48 = vpack.c.bf16 %v567_v43, %v567_v43  ;;  %v491_v49 = vadd.f32 %v1343_v31, %v490_v45 }
 0x110   :  { %v1037_v50 = vpop.f32.mrf.mxu0  ;;  %v1089_v51 = vpop.f32.mrf.mxu1 }
 0x111   :  { %788 = vst.msk [vmem:[%s1593_s3 + $0x34] sm:$0xf] %vm774_vm4, %v943_v46  ;;  %v542_v52 = vmax.f32 %v387_v47, 0.0  ;;  %814 = vst.msk [vmem:[%s1593_s3 + $0x9c] sm:$0xf] %vm774_vm4, %v969_v48  ;;  %v568_v53 = vmax.f32 %v491_v49, 0.0 }
 0x112   :  { %v389_v54 = vpop.f32.mrf.mxu0  ;;  %v493_v55 = vpop.f32.mrf.mxu1 }
 0x113   :  { %v944_v56 = vpack.c.bf16 %v542_v52, %v542_v52  ;;  %v390_v57 = vadd.f32 %v1343_v31, %v389_v54  ;;  %v970_v58 = vpack.c.bf16 %v568_v53, %v568_v53  ;;  %v494_v59 = vadd.f32 %v1343_v31, %v493_v55 }
 0x114   :  { %v1038_v60 = vpop.f32.mrf.mxu0  ;;  %v1090_v61 = vpop.f32.mrf.mxu1 }
 0x115   :  { %789 = vst.msk [vmem:[%s1593_s3 + $0x38] sm:$0xf] %vm774_vm4, %v944_v56  ;;  %v543_v62 = vmax.f32 %v390_v57, 0.0  ;;  %815 = vst.msk [vmem:[%s1593_s3 + $0xa0] sm:$0xf] %vm774_vm4, %v970_v58  ;;  %v569_v63 = vmax.f32 %v494_v59, 0.0 }
 0x116   :  { %v394_v0 = vpop.f32.mrf.mxu0  ;;  %v498_v1 = vpop.f32.mrf.mxu1 }
 0x117   :  { %v945_v2 = vpack.c.bf16 %v543_v62, %v543_v62  ;;  %v395_v3 = vadd.f32 %v1343_v31, %v394_v0  ;;  %v971_v4 = vpack.c.bf16 %v569_v63, %v569_v63  ;;  %v499_v5 = vadd.f32 %v1343_v31, %v498_v1 }
 0x118   :  { %v1041_v6 = vpop.f32.mrf.mxu0  ;;  %v1093_v7 = vpop.f32.mrf.mxu1 }
 0x119   :  { %790 = vst.msk [vmem:[%s1593_s3 + $0x3c] sm:$0xf] %vm774_vm4, %v945_v2  ;;  %v544_v8 = vmax.f32 %v395_v3, 0.0  ;;  %816 = vst.msk [vmem:[%s1593_s3 + $0xa4] sm:$0xf] %vm774_vm4, %v971_v4  ;;  %v570_v9 = vmax.f32 %v499_v5, 0.0 }
 0x11a   :  { %v397_v10 = vpop.f32.mrf.mxu0  ;;  %v501_v11 = vpop.f32.mrf.mxu1 }
 0x11b   :  { %v946_v12 = vpack.c.bf16 %v544_v8, %v544_v8  ;;  %v398_v13 = vadd.f32 %v1343_v31, %v397_v10  ;;  %v972_v14 = vpack.c.bf16 %v570_v9, %v570_v9  ;;  %v502_v15 = vadd.f32 %v1343_v31, %v501_v11 }
 0x11c   :  { %v1042_v16 = vpop.f32.mrf.mxu0  ;;  %v1094_v17 = vpop.f32.mrf.mxu1 }
 0x11d   :  { %791 = vst.msk [vmem:[%s1593_s3 + $0x40] sm:$0xf] %vm774_vm4, %v946_v12  ;;  %v545_v18 = vmax.f32 %v398_v13, 0.0  ;;  %817 = vst.msk [vmem:[%s1593_s3 + $0xa8] sm:$0xf] %vm774_vm4, %v972_v14  ;;  %v571_v19 = vmax.f32 %v502_v15, 0.0 }
 0x11e   :  { %v402_v20 = vpop.f32.mrf.mxu0  ;;  %v506_v21 = vpop.f32.mrf.mxu1 }
 0x11f   :  { %v947_v22 = vpack.c.bf16 %v545_v18, %v545_v18  ;;  %v403_v23 = vadd.f32 %v1343_v31, %v402_v20  ;;  %v973_v24 = vpack.c.bf16 %v571_v19, %v571_v19  ;;  %v507_v25 = vadd.f32 %v1343_v31, %v506_v21 }
 0x120   :  { %v1045_v26 = vpop.f32.mrf.mxu0  ;;  %v1097_v27 = vpop.f32.mrf.mxu1 }
 0x121   :  { %792 = vst.msk [vmem:[%s1593_s3 + $0x44] sm:$0xf] %vm774_vm4, %v947_v22  ;;  %v546_v28 = vmax.f32 %v403_v23, 0.0  ;;  %818 = vst.msk [vmem:[%s1593_s3 + $0xac] sm:$0xf] %vm774_vm4, %v973_v24  ;;  %v572_v29 = vmax.f32 %v507_v25, 0.0 }
 0x122   :  { %v405_v30 = vpop.f32.mrf.mxu0  ;;  %v509_v32 = vpop.f32.mrf.mxu1 }
 0x123   :  { %v948_v33 = vpack.c.bf16 %v546_v28, %v546_v28  ;;  %v406_v34 = vadd.f32 %v1343_v31, %v405_v30  ;;  %v974_v35 = vpack.c.bf16 %v572_v29, %v572_v29  ;;  %v510_v36 = vadd.f32 %v1343_v31, %v509_v32 }
 0x124   :  { %v1046_v37 = vpop.f32.mrf.mxu0  ;;  %v1098_v38 = vpop.f32.mrf.mxu1 }
 0x125   :  { %793 = vst.msk [vmem:[%s1593_s3 + $0x48] sm:$0xf] %vm774_vm4, %v948_v33  ;;  %v547_v39 = vmax.f32 %v406_v34, 0.0  ;;  %819 = vst.msk [vmem:[%s1593_s3 + $0xb0] sm:$0xf] %vm774_vm4, %v974_v35  ;;  %v573_v40 = vmax.f32 %v510_v36, 0.0 }
 0x126   :  { %v410_v41 = vpop.f32.mrf.mxu0  ;;  %v514_v42 = vpop.f32.mrf.mxu1 }
 0x127   :  { %v949_v43 = vpack.c.bf16 %v547_v39, %v547_v39  ;;  %v411_v44 = vadd.f32 %v1343_v31, %v410_v41  ;;  %v975_v45 = vpack.c.bf16 %v573_v40, %v573_v40  ;;  %v515_v46 = vadd.f32 %v1343_v31, %v514_v42 }
 0x128   :  { %v1049_v47 = vpop.f32.mrf.mxu0  ;;  %v1101_v48 = vpop.f32.mrf.mxu1 }
 0x129   :  { %794 = vst.msk [vmem:[%s1593_s3 + $0x4c] sm:$0xf] %vm774_vm4, %v949_v43  ;;  %v548_v49 = vmax.f32 %v411_v44, 0.0  ;;  %820 = vst.msk [vmem:[%s1593_s3 + $0xb4] sm:$0xf] %vm774_vm4, %v975_v45  ;;  %v574_v50 = vmax.f32 %v515_v46, 0.0 }
 0x12a   :  { %v413_v51 = vpop.f32.mrf.mxu0  ;;  %v517_v52 = vpop.f32.mrf.mxu1 }
 0x12b   :  { %v950_v53 = vpack.c.bf16 %v548_v49, %v548_v49  ;;  %v414_v54 = vadd.f32 %v1343_v31, %v413_v51  ;;  %v976_v55 = vpack.c.bf16 %v574_v50, %v574_v50  ;;  %v518_v56 = vadd.f32 %v1343_v31, %v517_v52 }
 0x12c   :  { %v1050_v57 = vpop.f32.mrf.mxu0  ;;  %v1102_v58 = vpop.f32.mrf.mxu1 }
 0x12d   :  { %795 = vst.msk [vmem:[%s1593_s3 + $0x50] sm:$0xf] %vm774_vm4, %v950_v53  ;;  %v549_v59 = vmax.f32 %v414_v54, 0.0  ;;  %821 = vst.msk [vmem:[%s1593_s3 + $0xb8] sm:$0xf] %vm774_vm4, %v976_v55  ;;  %v575_v60 = vmax.f32 %v518_v56, 0.0 }
 0x12e   :  { %v418_v61 = vpop.f32.mrf.mxu0  ;;  %v522_v62 = vpop.f32.mrf.mxu1 }
 0x12f   :  { %v951_v63 = vpack.c.bf16 %v549_v59, %v549_v59  ;;  %v419_v0 = vadd.f32 %v1343_v31, %v418_v61  ;;  %v977_v1 = vpack.c.bf16 %v575_v60, %v575_v60  ;;  %v523_v2 = vadd.f32 %v1343_v31, %v522_v62 }
 0x130   :  { %v1053_v3 = vpop.f32.mrf.mxu0  ;;  %v1105_v4 = vpop.f32.mrf.mxu1 }
 0x131   :  { %796 = vst.msk [vmem:[%s1593_s3 + $0x54] sm:$0xf] %vm774_vm4, %v951_v63  ;;  %v550_v5 = vmax.f32 %v419_v0, 0.0  ;;  %822 = vst.msk [vmem:[%s1593_s3 + $0xbc] sm:$0xf] %vm774_vm4, %v977_v1  ;;  %v576_v6 = vmax.f32 %v523_v2, 0.0 }
 0x132   :  { %v421_v7 = vpop.f32.mrf.mxu0  ;;  %v525_v8 = vpop.f32.mrf.mxu1 }
 0x133   :  { %v952_v9 = vpack.c.bf16 %v550_v5, %v550_v5  ;;  %v422_v10 = vadd.f32 %v1343_v31, %v421_v7  ;;  %v978_v11 = vpack.c.bf16 %v576_v6, %v576_v6 }
 0x134   :  { %v1054_v12 = vpop.f32.mrf.mxu0  ;;  %v1106_v13 = vpop.f32.mrf.mxu1 }
 0x135   :  { %797 = vst.msk [vmem:[%s1593_s3 + $0x58] sm:$0xf] %vm774_vm4, %v952_v9  ;;  %v551_v14 = vmax.f32 %v422_v10, 0.0  ;;  %823 = vst.msk [vmem:[%s1593_s3 + $0xc0] sm:$0xf] %vm774_vm4, %v978_v11 }
 0x136   :  { %v426_v15 = vpop.f32.mrf.mxu0 }
 0x137   :  { %v953_v16 = vpack.c.bf16 %v551_v14, %v551_v14  ;;  %v427_v17 = vadd.f32 %v1343_v31, %v426_v15 }
 0x138   :  { %v1057_v18 = vpop.f32.mrf.mxu0 }
 0x139   :  { %798 = vst.msk [vmem:[%s1593_s3 + $0x5c] sm:$0xf] %vm774_vm4, %v953_v16  ;;  %v552_v19 = vmax.f32 %v427_v17, 0.0 }
 0x13a   :  { %v429_v20 = vpop.f32.mrf.mxu0 }
 0x13b   :  { %v954_v21 = vpack.c.bf16 %v552_v19, %v552_v19  ;;  %v430_v22 = vadd.f32 %v1343_v31, %v429_v20 }
 0x13c   :  { %v1058_v23 = vpop.f32.mrf.mxu0 }
 0x13d   :  { %799 = vst.msk [vmem:[%s1593_s3 + $0x60] sm:$0xf] %vm774_vm4, %v954_v21  ;;  %v553_v24 = vmax.f32 %v430_v22, 0.0 }
 0x13f   :  { %v955_v25 = vpack.c.bf16 %v553_v24, %v553_v24 }
 0x141   :  { %800 = vst.msk [vmem:[%s1593_s3 + $0x64] sm:$0xf] %vm774_vm4, %v955_v25 }
 0x142   :  { %828 = vsyncpa [#allocation3], 1 }

// kernel: forward.6
= control target key start
LH: loop header
LB: loop body
LE: loop exit
PB: predicated region body
PF: predicated region fallthrough
CT: control target
= control target key end

     0   :  { %v793_v1 = vmov 0.0   ;;  %vm794_vm0 = vmmov 0   ;;  %vm292_vm1 = vcmask 261120   ;;  %vm556_vm2 = vcmask 519168   ;;  %s1022_s1 = inlined_call_operand.vmem [shape: bf16[288,64], index: 1, kind: input, shape index: {}]   ;;  %s1023_s0 = inlined_call_operand.vmem [shape: bf16[104,288], index: 0, kind: input, shape index: {}]   ;;  %s1024_s2 = inlined_call_operand.vmem [shape: f32[1,64], index: 2, kind: input, shape index: {}]   ;;  %s1025_s3 = inlined_call_operand.vmem [shape: bf16[104,64], index: 3, kind: output, shape index: {}]  }
   0x1   :  { %v748_v0 = vld [vmem:[%s1022_s1 + $0x78] sm:$0xff]   ;;  %714 = vmatprep.subr.bf16.mxu1 %v793_v1  ;;  %718 = vmatprep.mubr.msk.bf16.mxu1 %vm794_vm0, %v793_v1  ;;  %v750_v3 = vld [vmem:[%s1022_s1 + $0x70] sm:$0xff]   ;;  %v752_v5 = vld [vmem:[%s1022_s1 + $0x68] sm:$0xff]  }
   0x2   :  { %v749_v2 = vld [vmem:[%s1022_s1 + $0x38] sm:$0xff]   ;;  %647 = vmatprep.subr.bf16.mxu0 %v748_v0  ;;  %v751_v4 = vld [vmem:[%s1022_s1 + $0x30] sm:$0xff]   ;;  %v753_v6 = vld [vmem:[%s1022_s1 + $0x28] sm:$0xff]  }
   0x3   :  { %648 = vmatpush3.bf16.msra.mxu0 %v749_v2  ;;  %v754_v7 = vld [vmem:[%s1022_s1 + $0x60] sm:$0xff]   ;;  %v756_v9 = vld [vmem:[%s1022_s1 + $0x58] sm:$0xff]   ;;  %v762_v10 = vld [vmem:[%s1022_s1 + $0x88] sm:$0xff]  }
   0x4   :  { %649 = vmatprep.subr.bf16.mxu0 %v750_v3  ;;  %v755_v8 = vld [vmem:[%s1022_s1 + $0x20] sm:$0xff]   ;;  %v757_v11 = vld [vmem:[%s1022_s1 + $0x18] sm:$0xff]   ;;  %v758_v12 = vld [vmem:[%s1022_s1 + $0x50] sm:$0xff]   ;;  %715 = vmatpush3.bf16.msra.mxu1 %v762_v10 }
   0x5   :  { %v759_v13 = vld [vmem:[%s1022_s1 + $0x10] sm:$0xff]   ;;  %716 = vmatprep.subr.bf16.mxu1 %v793_v1  ;;  %v765_v14 = vld [vmem:[%s1022_s1 + $0x80] sm:$0xff]   ;;  %v760_v15 = vld [vmem:[%s1022_s1 + $0x48] sm:$0xff]  }
   0x6   :  { %v768_v16 = vld [vmem:[%s1023_s0 + $0x4] ss:$12 sps:$4 sm:$0xff]   ;;  %v769_v17 = vld [vmem:[%s1023_s0 + $0x8] ss:$12 sps:$4 sm:$0xff]   ;;  %v773_v21 = vld [vmem:[%s1023_s0 + $0x20] ss:$12 sps:$4 sm:$0xff]  }
   0x7   :  { %650 = vmatpush3.bf16.msra.mxu0 %v751_v4  ;;  %346 = vmatprep.mubr.bf16.mxu0 %v768_v16  ;;  %v761_v18 = vld [vmem:[%s1022_s1 + $0x8] sm:$0xff]   ;;  %v763_v19 = vld [vmem:[%s1022_s1 + $0x40] sm:$0xff]   ;;  %v781_v27 = vld [vmem:[%s1023_s0 + $0x50] ss:$12 sps:$4 sm:$0xff]  }
   0x8   :  { %651 = vmatprep.subr.bf16.mxu0 %v752_v5  ;;  %717 = vmatpush3.bf16.msra.mxu1 %v765_v14  ;;  %v764_v20 = vld [vmem:[%s1022_s1] sm:$0xff]   ;;  %v770_v23 = vld [vmem:[%s1023_s0 + $0x1c] ss:$12 sps:$4 sm:$0xff]   ;;  %v778_v29 = vld [vmem:[%s1023_s0 + $0x4c] ss:$12 sps:$4 sm:$0xff]  }
   0x9   :  { %v766_v22 = vld [vmem:[%s1023_s0] ss:$12 sps:$4 sm:$0xff]   ;;  %v777_v24 = vld [vmem:[%s1023_s0 + $0x38] ss:$12 sps:$4 sm:$0xff]   ;;  %v776_v28 = vld [vmem:[%s1023_s0 + $0x30] ss:$12 sps:$4 sm:$0xff]  }
   0xa   :  { %v772_v25 = vld [vmem:[%s1023_s0 + $0x18] ss:$12 sps:$4 sm:$0xff]   ;;  %v774_v26 = vld [vmem:[%s1023_s0 + $0x34] ss:$12 sps:$4 sm:$0xff]   ;;  %v786_v35 = vld [vmem:[%s1023_s0 + $0x7c] ss:$12 sps:$4 sm:$0xff]  }
   0xb   :  { %652 = vmatpush3.bf16.msra.mxu0 %v753_v6  ;;  %719 = vmatmul.mubr.msk.bf16.vlgmr.msra.gmra.mxu1 %vm292_vm1, %v769_v17  ;;  %v785_v30 = vld [vmem:[%s1023_s0 + $0x68] ss:$12 sps:$4 sm:$0xff]   ;;  %v782_v32 = vld [vmem:[%s1023_s0 + $0x64] ss:$12 sps:$4 sm:$0xff]   ;;  %v789_v33 = vld [vmem:[%s1023_s0 + $0x80] ss:$12 sps:$4 sm:$0xff]  }
   0xc   :  { %653 = vmatprep.subr.bf16.mxu0 %v754_v7  ;;  %722 = vmatprep.mubr.msk.bf16.mxu1 %vm794_vm0, %v793_v1  ;;  %v780_v31 = vld [vmem:[%s1023_s0 + $0x48] ss:$12 sps:$4 sm:$0xff]   ;;  %v784_v34 = vld [vmem:[%s1023_s0 + $0x60] ss:$12 sps:$4 sm:$0xff]   ;;  %v792_v36 = vld [vmem:[%s1023_s0 + $0x98] ss:$0 sps:$4 sm:$0xff]  }
   0xd   :  { %v39_v37 = vld [vmem:[%s1023_s0 + $0x90] sm:$0xff]  ;;  %v788_v38 = vld [vmem:[%s1023_s0 + $0x78] ss:$12 sps:$4 sm:$0xff]   ;;  %v955_v49 = vld [vmem:[%s1024_s2] ss:$0 sm:$0xff] }
   0xe   :  { %v594_v39 = vcombine.high %v39_v37, %v39_v37  ;;  %v593_v40 = vcombine.low %v39_v37, %v39_v37 }
   0xf   :  { %654 = vmatpush3.bf16.msra.mxu0 %v755_v8 }
  0x10   :  { %655 = vmatprep.subr.bf16.mxu0 %v756_v9 }
  0x13   :  { %656 = vmatpush3.bf16.msra.mxu0 %v757_v11  ;;  %723 = vmatmul.mubr.msk.bf16.gmra.mxu1 %vm292_vm1, %v773_v21 }
  0x14   :  { %657 = vmatprep.subr.bf16.mxu0 %v758_v12  ;;  %726 = vmatprep.mubr.msk.bf16.mxu1 %vm794_vm0, %v793_v1 }
  0x17   :  { %658 = vmatpush3.bf16.msra.mxu0 %v759_v13 }
  0x18   :  { %659 = vmatprep.subr.bf16.mxu0 %v760_v15 }
  0x1b   :  { %660 = vmatpush3.bf16.msra.mxu0 %v761_v18  ;;  %727 = vmatmul.mubr.msk.bf16.gmra.mxu1 %vm292_vm1, %v777_v24 }
  0x1c   :  { %661 = vmatprep.subr.bf16.mxu0 %v763_v19  ;;  %730 = vmatprep.mubr.msk.bf16.mxu1 %vm794_vm0, %v793_v1 }
  0x1f   :  { %662 = vmatpush3.bf16.msra.mxu0 %v764_v20 }
  0x22   :  { %347 = vmatmul.mubr.bf16.vlgmr.msra.gmra.mxu0 %v766_v22 }
  0x23   :  { %354 = vmatprep.mubr.bf16.mxu0 %v770_v23  ;;  %731 = vmatmul.mubr.msk.bf16.gmra.mxu1 %vm292_vm1, %v781_v27 }
  0x24   :  { %734 = vmatprep.mubr.msk.bf16.mxu1 %vm794_vm0, %v793_v1 }
  0x2a   :  { %355 = vmatmul.mubr.bf16.gmra.mxu0 %v772_v25 }
  0x2b   :  { %362 = vmatprep.mubr.bf16.mxu0 %v774_v26  ;;  %735 = vmatmul.mubr.msk.bf16.gmra.mxu1 %vm292_vm1, %v785_v30 }
  0x2c   :  { %738 = vmatprep.mubr.msk.bf16.mxu1 %vm794_vm0, %v793_v1 }
  0x32   :  { %363 = vmatmul.mubr.bf16.gmra.mxu0 %v776_v28 }
  0x33   :  { %370 = vmatprep.mubr.bf16.mxu0 %v778_v29  ;;  %739 = vmatmul.mubr.msk.bf16.gmra.mxu1 %vm292_vm1, %v789_v33 }
  0x34   :  { %742 = vmatprep.mubr.msk.bf16.mxu1 %vm794_vm0, %v793_v1 }
  0x3a   :  { %371 = vmatmul.mubr.bf16.gmra.mxu0 %v780_v31 }
  0x3b   :  { %378 = vmatprep.mubr.bf16.mxu0 %v782_v32  ;;  %743 = vmatmul.mubr.msk.bf16.gmra.mxu1 %vm292_vm1, %v792_v36 }
  0x42   :  { %379 = vmatmul.mubr.bf16.gmra.mxu0 %v784_v34 }
  0x43   :  { %386 = vmatprep.mubr.bf16.mxu0 %v786_v35 }
  0x4a   :  { %387 = vmatmul.mubr.bf16.gmra.mxu0 %v788_v38 }
  0x4b   :  { %394 = vmatprep.mubr.bf16.mxu0 %v594_v39 }
  0x52   :  { %395 = vmatmul.mubr.bf16.gmra.mxu0 %v593_v40 }
  0xcb   :  { %v436_v41 = vpop.f32.mrf.mxu1 }
  0xcd   :  { %v720_v42 = vpop.f32.mrf.mxu1 }
  0xcf   :  { %v439_v43 = vpop.f32.mrf.mxu1 }
  0xd1   :  { %v721_v44 = vpop.f32.mrf.mxu1 }
  0xd3   :  { %v444_v45 = vpop.f32.mrf.mxu1 }
  0xd5   :  { %v724_v46 = vpop.f32.mrf.mxu1 }
  0xd7   :  { %v447_v48 = vpop.f32.mrf.mxu1 }
  0xd9   :  { %v725_v52 = vpop.f32.mrf.mxu1 }
  0xdb   :  { %v452_v55 = vpop.f32.mrf.mxu1 }
  0xdd   :  { %v728_v59 = vpop.f32.mrf.mxu1 }
  0xdf   :  { %v455_v63 = vpop.f32.mrf.mxu1 }
  0xe1   :  { %v729_v4 = vpop.f32.mrf.mxu1 }
  0xe2   :  { %v663_v47 = vpop.f32.mrf.mxu0 }
  0xe3   :  { %v460_v8 = vpop.f32.mrf.mxu1 }
  0xe4   :  { %v664_v50 = vpop.f32.mrf.mxu0 }
  0xe5   :  { %v665_v51 = vadd.f32 %v664_v50, %v663_v47  ;;  %v732_v13 = vpop.f32.mrf.mxu1 }
  0xe6   :  { %v666_v53 = vpop.f32.mrf.mxu0 }
  0xe7   :  { %v349_v54 = vadd.f32 %v665_v51, %v955_v49  ;;  %v463_v17 = vpop.f32.mrf.mxu1 }
  0xe8   :  { %v667_v56 = vpop.f32.mrf.mxu0 }
  0xe9   :  { %v437_v57 = vadd.f32 %v436_v41, %v349_v54  ;;  %v668_v58 = vadd.f32 %v667_v56, %v666_v53  ;;  %v733_v22 = vpop.f32.mrf.mxu1 }
  0xea   :  { %v669_v60 = vpop.f32.mrf.mxu0 }
  0xeb   :  { %v490_v61 = vmax.f32 %v437_v57, 0.0  ;;  %v352_v62 = vadd.f32 %v668_v58, %v955_v49  ;;  %v468_v26 = vpop.f32.mrf.mxu1 }
  0xec   :  { %v670_v0 = vpop.f32.mrf.mxu0 }
  0xed   :  { %v634_v1 = vpack.c.bf16 %v490_v61, %v490_v61  ;;  %v440_v2 = vadd.f32 %v439_v43, %v352_v62  ;;  %v671_v3 = vadd.f32 %v670_v0, %v669_v60  ;;  %v736_v31 = vpop.f32.mrf.mxu1 }
  0xee   :  { %v672_v5 = vpop.f32.mrf.mxu0 }
  0xef   :  { %557 = vst.msk [vmem:[%s1025_s3] sm:$0xf] %vm556_vm2, %v634_v1  ;;  %v491_v6 = vmax.f32 %v440_v2, 0.0  ;;  %v357_v7 = vadd.f32 %v671_v3, %v955_v49  ;;  %v471_v35 = vpop.f32.mrf.mxu1 }
  0xf0   :  { %v673_v9 = vpop.f32.mrf.mxu0 }
  0xf1   :  { %v635_v10 = vpack.c.bf16 %v491_v6, %v491_v6  ;;  %v445_v11 = vadd.f32 %v444_v45, %v357_v7  ;;  %v674_v12 = vadd.f32 %v673_v9, %v672_v5  ;;  %v737_v40 = vpop.f32.mrf.mxu1 }
  0xf2   :  { %v675_v14 = vpop.f32.mrf.mxu0 }
  0xf3   :  { %558 = vst.msk [vmem:[%s1025_s3 + $0x4] sm:$0xf] %vm556_vm2, %v635_v10  ;;  %v492_v15 = vmax.f32 %v445_v11, 0.0  ;;  %v360_v16 = vadd.f32 %v674_v12, %v955_v49  ;;  %v476_v44 = vpop.f32.mrf.mxu1 }
  0xf4   :  { %v676_v18 = vpop.f32.mrf.mxu0 }
  0xf5   :  { %v636_v19 = vpack.c.bf16 %v492_v15, %v492_v15  ;;  %v448_v20 = vadd.f32 %v447_v48, %v360_v16  ;;  %v677_v21 = vadd.f32 %v676_v18, %v675_v14  ;;  %v740_v50 = vpop.f32.mrf.mxu1 }
  0xf6   :  { %v678_v23 = vpop.f32.mrf.mxu0 }
  0xf7   :  { %559 = vst.msk [vmem:[%s1025_s3 + $0x8] sm:$0xf] %vm556_vm2, %v636_v19  ;;  %v493_v24 = vmax.f32 %v448_v20, 0.0  ;;  %v365_v25 = vadd.f32 %v677_v21, %v955_v49  ;;  %v479_v54 = vpop.f32.mrf.mxu1 }
  0xf8   :  { %v679_v27 = vpop.f32.mrf.mxu0 }
  0xf9   :  { %v637_v28 = vpack.c.bf16 %v493_v24, %v493_v24  ;;  %v453_v29 = vadd.f32 %v452_v55, %v365_v25  ;;  %v680_v30 = vadd.f32 %v679_v27, %v678_v23  ;;  %v741_v59 = vpop.f32.mrf.mxu1 }
  0xfa   :  { %v681_v32 = vpop.f32.mrf.mxu0 }
  0xfb   :  { %560 = vst.msk [vmem:[%s1025_s3 + $0xc] sm:$0xf] %vm556_vm2, %v637_v28  ;;  %v494_v33 = vmax.f32 %v453_v29, 0.0  ;;  %v368_v34 = vadd.f32 %v680_v30, %v955_v49 }
  0xfc   :  { %v682_v36 = vpop.f32.mrf.mxu0 }
  0xfd   :  { %v638_v37 = vpack.c.bf16 %v494_v33, %v494_v33  ;;  %v456_v38 = vadd.f32 %v455_v63, %v368_v34  ;;  %v683_v39 = vadd.f32 %v682_v36, %v681_v32  ;;  %v484_v63 = vpop.f32.mrf.mxu1 }
  0xfe   :  { %v684_v41 = vpop.f32.mrf.mxu0 }
  0xff   :  { %561 = vst.msk [vmem:[%s1025_s3 + $0x10] sm:$0xf] %vm556_vm2, %v638_v37  ;;  %v495_v42 = vmax.f32 %v456_v38, 0.0  ;;  %v373_v43 = vadd.f32 %v683_v39, %v955_v49  ;;  %v744_v4 = vpop.f32.mrf.mxu1 }
 0x100   :  { %v685_v45 = vpop.f32.mrf.mxu0 }
 0x101   :  { %v639_v46 = vpack.c.bf16 %v495_v42, %v495_v42  ;;  %v461_v47 = vadd.f32 %v460_v8, %v373_v43  ;;  %v686_v48 = vadd.f32 %v685_v45, %v684_v41  ;;  %v487_v8 = vpop.f32.mrf.mxu1 }
 0x102   :  { %v687_v51 = vpop.f32.mrf.mxu0 }
 0x103   :  { %562 = vst.msk [vmem:[%s1025_s3 + $0x14] sm:$0xf] %vm556_vm2, %v639_v46  ;;  %v496_v52 = vmax.f32 %v461_v47, 0.0  ;;  %v376_v53 = vadd.f32 %v686_v48, %v955_v49  ;;  %v745_v13 = vpop.f32.mrf.mxu1 }
 0x104   :  { %v688_v55 = vpop.f32.mrf.mxu0 }
 0x105   :  { %v640_v56 = vpack.c.bf16 %v496_v52, %v496_v52  ;;  %v464_v57 = vadd.f32 %v463_v17, %v376_v53  ;;  %v689_v58 = vadd.f32 %v688_v55, %v687_v51 }
 0x106   :  { %v690_v60 = vpop.f32.mrf.mxu0 }
 0x107   :  { %563 = vst.msk [vmem:[%s1025_s3 + $0x18] sm:$0xf] %vm556_vm2, %v640_v56  ;;  %v497_v61 = vmax.f32 %v464_v57, 0.0  ;;  %v381_v62 = vadd.f32 %v689_v58, %v955_v49 }
 0x108   :  { %v691_v0 = vpop.f32.mrf.mxu0 }
 0x109   :  { %v641_v1 = vpack.c.bf16 %v497_v61, %v497_v61  ;;  %v469_v2 = vadd.f32 %v468_v26, %v381_v62  ;;  %v692_v3 = vadd.f32 %v691_v0, %v690_v60 }
 0x10a   :  { %v693_v5 = vpop.f32.mrf.mxu0 }
 0x10b   :  { %564 = vst.msk [vmem:[%s1025_s3 + $0x1c] sm:$0xf] %vm556_vm2, %v641_v1  ;;  %v498_v6 = vmax.f32 %v469_v2, 0.0  ;;  %v384_v7 = vadd.f32 %v692_v3, %v955_v49 }
 0x10c   :  { %v694_v9 = vpop.f32.mrf.mxu0 }
 0x10d   :  { %v642_v10 = vpack.c.bf16 %v498_v6, %v498_v6  ;;  %v472_v11 = vadd.f32 %v471_v35, %v384_v7  ;;  %v695_v12 = vadd.f32 %v694_v9, %v693_v5 }
 0x10e   :  { %v696_v14 = vpop.f32.mrf.mxu0 }
 0x10f   :  { %565 = vst.msk [vmem:[%s1025_s3 + $0x20] sm:$0xf] %vm556_vm2, %v642_v10  ;;  %v499_v15 = vmax.f32 %v472_v11, 0.0  ;;  %v389_v16 = vadd.f32 %v695_v12, %v955_v49 }
 0x110   :  { %v697_v17 = vpop.f32.mrf.mxu0 }
 0x111   :  { %v643_v18 = vpack.c.bf16 %v499_v15, %v499_v15  ;;  %v477_v19 = vadd.f32 %v476_v44, %v389_v16  ;;  %v698_v20 = vadd.f32 %v697_v17, %v696_v14 }
 0x112   :  { %v699_v21 = vpop.f32.mrf.mxu0 }
 0x113   :  { %566 = vst.msk [vmem:[%s1025_s3 + $0x24] sm:$0xf] %vm556_vm2, %v643_v18  ;;  %v500_v22 = vmax.f32 %v477_v19, 0.0  ;;  %v392_v23 = vadd.f32 %v698_v20, %v955_v49 }
 0x114   :  { %v700_v24 = vpop.f32.mrf.mxu0 }
 0x115   :  { %v644_v25 = vpack.c.bf16 %v500_v22, %v500_v22  ;;  %v480_v26 = vadd.f32 %v479_v54, %v392_v23  ;;  %v701_v27 = vadd.f32 %v700_v24, %v699_v21 }
 0x116   :  { %v702_v28 = vpop.f32.mrf.mxu0 }
 0x117   :  { %567 = vst.msk [vmem:[%s1025_s3 + $0x28] sm:$0xf] %vm556_vm2, %v644_v25  ;;  %v501_v29 = vmax.f32 %v480_v26, 0.0  ;;  %v397_v30 = vadd.f32 %v701_v27, %v955_v49 }
 0x118   :  { %v703_v31 = vpop.f32.mrf.mxu0 }
 0x119   :  { %v645_v32 = vpack.c.bf16 %v501_v29, %v501_v29  ;;  %v485_v33 = vadd.f32 %v484_v63, %v397_v30 }
 0x11b   :  { %568 = vst.msk [vmem:[%s1025_s3 + $0x2c] sm:$0xf] %vm556_vm2, %v645_v32  ;;  %v502_v34 = vmax.f32 %v485_v33, 0.0 }
 0x11d   :  { %v646_v35 = vpack.c.bf16 %v502_v34, %v502_v34 }
 0x11f   :  { %569 = vst.msk [vmem:[%s1025_s3 + $0x30] sm:$0xf] %vm556_vm2, %v646_v35 }

// kernel: forward.8
= control target key start
LH: loop header
LB: loop body
LE: loop exit
PB: predicated region body
PF: predicated region fallthrough
CT: control target
= control target key end

     0   :  { %s749_s1 = inlined_call_operand.vmem [shape: bf16[256,128], index: 1, kind: input, shape index: {}]   ;;  %s750_s0 = inlined_call_operand.vmem [shape: bf16[104,256], index: 0, kind: input, shape index: {}]   ;;  %s751_s2 = inlined_call_operand.vmem [shape: f32[1,128], index: 2, kind: input, shape index: {}]   ;;  %s752_s3 = inlined_call_operand.vmem [shape: bf16[104,128], index: 3, kind: output, shape index: {}]  }
   0x1   :  { %v567_v0 = vld [vmem:[%s749_s1 + $0x78] sm:$0xff]   ;;  %v569_v2 = vld [vmem:[%s749_s1 + $0x70] sm:$0xff]   ;;  %v571_v4 = vld [vmem:[%s749_s1 + $0x68] sm:$0xff]  }
   0x2   :  { %v568_v1 = vld [vmem:[%s749_s1 + $0x38] sm:$0xff]   ;;  %493 = vmatprep.subr.bf16.mxu0 %v567_v0  ;;  %551 = vmatprep.subr.bf16.mxu1 %v567_v0  ;;  %v570_v3 = vld [vmem:[%s749_s1 + $0x30] sm:$0xff]   ;;  %v572_v5 = vld [vmem:[%s749_s1 + $0x28] sm:$0xff]  }
   0x3   :  { %494 = vmatpush3.bf16.msra.mxu0 %v568_v1  ;;  %559 = vmatpush3.bf16.msra.mxu1 %v568_v1  ;;  %v573_v6 = vld [vmem:[%s749_s1 + $0x60] sm:$0xff]   ;;  %v575_v8 = vld [vmem:[%s749_s1 + $0x58] sm:$0xff]   ;;  %v577_v10 = vld [vmem:[%s749_s1 + $0x50] sm:$0xff]  }
   0x4   :  { %495 = vmatprep.subr.bf16.mxu0 %v569_v2  ;;  %552 = vmatprep.subr.bf16.mxu1 %v569_v2  ;;  %v574_v7 = vld [vmem:[%s749_s1 + $0x20] sm:$0xff]   ;;  %v576_v9 = vld [vmem:[%s749_s1 + $0x18] sm:$0xff]   ;;  %v578_v13 = vld [vmem:[%s749_s1 + $0x10] sm:$0xff]  }
   0x5   :  { %v585_v11 = vld [vmem:[%s750_s0 + $0x4] ss:$8 sps:$4 sm:$0xff]   ;;  %v583_v18 = vld [vmem:[%s750_s0] ss:$8 sps:$4 sm:$0xff]   ;;  %v589_v20 = vld [vmem:[%s750_s0 + $0x14] ss:$8 sps:$4 sm:$0xff]  }
   0x6   :  { %v588_v12 = vld [vmem:[%s750_s0 + $0x44] ss:$8 sps:$4 sm:$0xff]   ;;  %262 = vmatprep.mubr.bf16.mxu0 %v585_v11  ;;  %v586_v19 = vld [vmem:[%s750_s0 + $0x40] ss:$8 sps:$4 sm:$0xff]   ;;  %v592_v21 = vld [vmem:[%s750_s0 + $0x54] ss:$8 sps:$4 sm:$0xff]  }
   0x7   :  { %496 = vmatpush3.bf16.msra.mxu0 %v570_v3  ;;  %560 = vmatpush3.bf16.msra.mxu1 %v570_v3  ;;  %v579_v14 = vld [vmem:[%s749_s1 + $0x48] sm:$0xff]   ;;  %v581_v16 = vld [vmem:[%s749_s1 + $0x40] sm:$0xff]   ;;  %v591_v23 = vld [vmem:[%s750_s0 + $0x10] ss:$8 sps:$4 sm:$0xff]  }
   0x8   :  { %497 = vmatprep.subr.bf16.mxu0 %v571_v4  ;;  %553 = vmatprep.subr.bf16.mxu1 %v571_v4  ;;  %v580_v15 = vld [vmem:[%s749_s1 + $0x8] sm:$0xff]   ;;  %v582_v17 = vld [vmem:[%s749_s1] sm:$0xff]   ;;  %v594_v24 = vld [vmem:[%s750_s0 + $0x50] ss:$8 sps:$4 sm:$0xff]  }
   0x9   :  { %294 = vmatprep.mubr.bf16.mxu1 %v588_v12  ;;  %v27_v22 = vld [vmem:[%s750_s0 + $0x60] sm:$0xff]  ;;  %v600_v29 = vld [vmem:[%s750_s0 + $0x34] ss:$8 sps:$4 sm:$0xff]   ;;  %v602_v30 = vld [vmem:[%s750_s0 + $0x30] ss:$8 sps:$4 sm:$0xff]  }
   0xa   :  { %v595_v25 = vld [vmem:[%s750_s0 + $0x24] ss:$8 sps:$4 sm:$0xff]   ;;  %v415_v26 = vcombine.high %v27_v22, %v27_v22  ;;  %v597_v27 = vld [vmem:[%s750_s0 + $0x20] ss:$8 sps:$4 sm:$0xff]   ;;  %v414_v28 = vcombine.low %v27_v22, %v27_v22 }
   0xb   :  { %498 = vmatpush3.bf16.msra.mxu0 %v572_v5  ;;  %561 = vmatpush3.bf16.msra.mxu1 %v572_v5  ;;  %v713_v35 = vld [vmem:[%s751_s2] ss:$0 sm:$0xff] }
   0xc   :  { %499 = vmatprep.subr.bf16.mxu0 %v573_v6  ;;  %554 = vmatprep.subr.bf16.mxu1 %v573_v6 }
   0xf   :  { %500 = vmatpush3.bf16.msra.mxu0 %v574_v7  ;;  %562 = vmatpush3.bf16.msra.mxu1 %v574_v7 }
  0x10   :  { %501 = vmatprep.subr.bf16.mxu0 %v575_v8  ;;  %555 = vmatprep.subr.bf16.mxu1 %v575_v8 }
  0x13   :  { %502 = vmatpush3.bf16.msra.mxu0 %v576_v9  ;;  %563 = vmatpush3.bf16.msra.mxu1 %v576_v9 }
  0x14   :  { %503 = vmatprep.subr.bf16.mxu0 %v577_v10  ;;  %556 = vmatprep.subr.bf16.mxu1 %v577_v10 }
  0x17   :  { %504 = vmatpush3.bf16.msra.mxu0 %v578_v13  ;;  %564 = vmatpush3.bf16.msra.mxu1 %v578_v13 }
  0x18   :  { %505 = vmatprep.subr.bf16.mxu0 %v579_v14  ;;  %557 = vmatprep.subr.bf16.mxu1 %v579_v14 }
  0x1b   :  { %506 = vmatpush3.bf16.msra.mxu0 %v580_v15  ;;  %565 = vmatpush3.bf16.msra.mxu1 %v580_v15 }
  0x1c   :  { %507 = vmatprep.subr.bf16.mxu0 %v581_v16  ;;  %558 = vmatprep.subr.bf16.mxu1 %v581_v16 }
  0x1f   :  { %508 = vmatpush3.bf16.msra.mxu0 %v582_v17  ;;  %566 = vmatpush3.bf16.msra.mxu1 %v582_v17 }
  0x22   :  { %263 = vmatmul.mubr.bf16.vlgmr.msra.gmra.mxu0 %v583_v18  ;;  %295 = vmatmul.mubr.bf16.vlgmr.msra.gmra.mxu1 %v586_v19 }
  0x23   :  { %270 = vmatprep.mubr.bf16.mxu0 %v589_v20  ;;  %302 = vmatprep.mubr.bf16.mxu1 %v592_v21 }
  0x2a   :  { %271 = vmatmul.mubr.bf16.gmra.mxu0 %v591_v23  ;;  %303 = vmatmul.mubr.bf16.gmra.mxu1 %v594_v24 }
  0x2b   :  { %278 = vmatprep.mubr.bf16.mxu0 %v595_v25  ;;  %310 = vmatprep.mubr.bf16.mxu1 %v415_v26 }
  0x32   :  { %279 = vmatmul.mubr.bf16.gmra.mxu0 %v597_v27  ;;  %311 = vmatmul.mubr.bf16.gmra.mxu1 %v414_v28 }
  0x33   :  { %286 = vmatprep.mubr.bf16.mxu0 %v600_v29 }
  0x3a   :  { %287 = vmatmul.mubr.bf16.gmra.mxu0 %v602_v30 }
  0xe2   :  { %v509_v31 = vpop.f32.mrf.mxu0  ;;  %v533_v32 = vpop.f32.mrf.mxu1 }
  0xe4   :  { %v510_v33 = vpop.f32.mrf.mxu0  ;;  %v534_v34 = vpop.f32.mrf.mxu1 }
  0xe5   :  { %v511_v36 = vadd.f32 %v510_v33, %v509_v31  ;;  %v535_v37 = vadd.f32 %v534_v34, %v533_v32 }
  0xe6   :  { %v512_v38 = vpop.f32.mrf.mxu0  ;;  %v536_v39 = vpop.f32.mrf.mxu1 }
  0xe7   :  { %v297_v40 = vadd.f32 %v535_v37, %v713_v35  ;;  %v265_v41 = vadd.f32 %v511_v36, %v713_v35 }
  0xe8   :  { %v513_v42 = vpop.f32.mrf.mxu0  ;;  %v537_v43 = vpop.f32.mrf.mxu1 }
  0xe9   :  { %v514_v44 = vadd.f32 %v513_v42, %v512_v38  ;;  %v538_v45 = vadd.f32 %v537_v43, %v536_v39  ;;  %v326_v49 = vmax.f32 %v297_v40, 0.0  ;;  %v318_v51 = vmax.f32 %v265_v41, 0.0 }
  0xea   :  { %v515_v46 = vpop.f32.mrf.mxu0  ;;  %v539_v47 = vpop.f32.mrf.mxu1 }
  0xeb   :  { %v268_v48 = vadd.f32 %v514_v44, %v713_v35  ;;  %v300_v50 = vadd.f32 %v538_v45, %v713_v35 }
  0xec   :  { %v516_v52 = vpop.f32.mrf.mxu0  ;;  %v540_v53 = vpop.f32.mrf.mxu1 }
  0xed   :  { %v319_v54 = vmax.f32 %v268_v48, 0.0  ;;  %v517_v55 = vadd.f32 %v516_v52, %v515_v46  ;;  %v327_v56 = vmax.f32 %v300_v50, 0.0  ;;  %v541_v57 = vadd.f32 %v540_v53, %v539_v47 }
  0xee   :  { %v518_v58 = vpop.f32.mrf.mxu0  ;;  %v542_v59 = vpop.f32.mrf.mxu1 }
  0xef   :  { %v461_v60 = vpack.c.bf16 %v319_v54, %v318_v51  ;;  %v481_v61 = vpack.c.bf16 %v327_v56, %v326_v49  ;;  %v305_v62 = vadd.f32 %v541_v57, %v713_v35  ;;  %v273_v63 = vadd.f32 %v517_v55, %v713_v35 }
  0xf0   :  { %v519_v0 = vpop.f32.mrf.mxu0  ;;  %v543_v1 = vpop.f32.mrf.mxu1 }
  0xf1   :  { %462 = vst [vmem:[%s752_s3] sm:$0xff] %v461_v60   ;;  %491 = vst [vmem:[%s752_s3 + $0x20] sm:$0xff] %v481_v61   ;;  %v520_v2 = vadd.f32 %v519_v0, %v518_v58  ;;  %v544_v3 = vadd.f32 %v543_v1, %v542_v59  ;;  %v328_v7 = vmax.f32 %v305_v62, 0.0  ;;  %v320_v9 = vmax.f32 %v273_v63, 0.0 }
  0xf2   :  { %v521_v4 = vpop.f32.mrf.mxu0  ;;  %v545_v5 = vpop.f32.mrf.mxu1 }
  0xf3   :  { %v276_v6 = vadd.f32 %v520_v2, %v713_v35  ;;  %v308_v8 = vadd.f32 %v544_v3, %v713_v35 }
  0xf4   :  { %v522_v10 = vpop.f32.mrf.mxu0  ;;  %v546_v11 = vpop.f32.mrf.mxu1 }
  0xf5   :  { %v321_v12 = vmax.f32 %v276_v6, 0.0  ;;  %v523_v13 = vadd.f32 %v522_v10, %v521_v4  ;;  %v329_v14 = vmax.f32 %v308_v8, 0.0  ;;  %v547_v15 = vadd.f32 %v546_v11, %v545_v5 }
  0xf6   :  { %v524_v16 = vpop.f32.mrf.mxu0  ;;  %v548_v17 = vpop.f32.mrf.mxu1 }
  0xf7   :  { %v466_v18 = vpack.c.bf16 %v321_v12, %v320_v9  ;;  %v486_v19 = vpack.c.bf16 %v329_v14, %v328_v7  ;;  %v313_v20 = vadd.f32 %v547_v15, %v713_v35  ;;  %v281_v23 = vadd.f32 %v523_v13, %v713_v35 }
  0xf8   :  { %v525_v21 = vpop.f32.mrf.mxu0  ;;  %v549_v22 = vpop.f32.mrf.mxu1 }
  0xf9   :  { %488 = vst [vmem:[%s752_s3 + $0x8] sm:$0xff] %v466_v18   ;;  %492 = vst [vmem:[%s752_s3 + $0x28] sm:$0xff] %v486_v19   ;;  %v526_v24 = vadd.f32 %v525_v21, %v524_v16  ;;  %v330_v25 = vmax.f32 %v313_v20, 0.0  ;;  %v322_v30 = vmax.f32 %v281_v23, 0.0 }
  0xfa   :  { %v527_v26 = vpop.f32.mrf.mxu0 }
  0xfb   :  { %v284_v27 = vadd.f32 %v526_v24, %v713_v35  ;;  %v457_v28 = vpack.c.bf16 %v330_v25, %v330_v25 }
  0xfc   :  { %v528_v29 = vpop.f32.mrf.mxu0 }
  0xfd   :  { %v323_v31 = vmax.f32 %v284_v27, 0.0  ;;  %396 = vst [vmem:[%s752_s3 + $0x30] sm:$0xf] %v457_v28  ;;  %v529_v32 = vadd.f32 %v528_v29, %v527_v26 }
  0xfe   :  { %v530_v33 = vpop.f32.mrf.mxu0 }
  0xff   :  { %v471_v34 = vpack.c.bf16 %v323_v31, %v322_v30  ;;  %v289_v37 = vadd.f32 %v529_v32, %v713_v35 }
 0x100   :  { %v531_v36 = vpop.f32.mrf.mxu0 }
 0x101   :  { %489 = vst [vmem:[%s752_s3 + $0x10] sm:$0xff] %v471_v34   ;;  %v532_v38 = vadd.f32 %v531_v36, %v530_v33  ;;  %v324_v40 = vmax.f32 %v289_v37, 0.0 }
 0x103   :  { %v292_v39 = vadd.f32 %v532_v38, %v713_v35 }
 0x105   :  { %v325_v41 = vmax.f32 %v292_v39, 0.0 }
 0x107   :  { %v476_v42 = vpack.c.bf16 %v325_v41, %v324_v40 }
 0x109   :  { %490 = vst [vmem:[%s752_s3 + $0x18] sm:$0xff] %v476_v42  }

// kernel: forward.9
= control target key start
LH: loop header
LB: loop body
LE: loop exit
PB: predicated region body
PF: predicated region fallthrough
CT: control target
= control target key end

     0   :  { %v1441_v0 = vmov 0.0   ;;  %vm1442_vm0 = vmmov 0   ;;  %vm956_vm1 = vcmask 31744   ;;  %s2359_s1 = inlined_call_operand.vmem [shape: bf16[128,4], index: 1, kind: input, shape index: {}]   ;;  %s2360_s0 = inlined_call_operand.vmem [shape: bf16[392,128], index: 0, kind: input, shape index: {}]   ;;  %s2361_s2 = inlined_call_operand.vmem [shape: f32[1,4], index: 2, kind: input, shape index: {}]   ;;  %s2362_s3 = inlined_call_operand.vmem [shape: f32[392,4], index: 3, kind: output, shape index: {}]  }
   0x1   :  { %1077 = vmatprep.subr.bf16.mxu0 %v1441_v0  ;;  %1193 = vmatprep.subr.bf16.mxu1 %v1441_v0  ;;  %v1211_v1 = vld [vmem:[%s2359_s1 + $0x38] sm:$0xff]   ;;  %v1212_v2 = vld [vmem:[%s2359_s1 + $0x30] sm:$0xff]   ;;  %v1213_v3 = vld [vmem:[%s2359_s1 + $0x28] sm:$0xff]  }
   0x2   :  { %1093 = vmatprep.mubr.msk.bf16.mxu0 %vm1442_vm0, %v1441_v0  ;;  %1145 = vmatprep.mubr.msk.bf16.mxu1 %vm1442_vm0, %v1441_v0  ;;  %v1214_v4 = vld [vmem:[%s2359_s1 + $0x20] sm:$0xff]   ;;  %v1215_v5 = vld [vmem:[%s2359_s1 + $0x18] sm:$0xff]   ;;  %v1216_v6 = vld [vmem:[%s2359_s1 + $0x10] sm:$0xff]  }
   0x3   :  { %1078 = vmatpush3.bf16.msra.mxu0 %v1211_v1  ;;  %1201 = vmatpush3.bf16.msra.mxu1 %v1211_v1  ;;  %v1217_v7 = vld [vmem:[%s2359_s1 + $0x8] sm:$0xff]   ;;  %v1218_v8 = vld [vmem:[%s2359_s1] sm:$0xff]   ;;  %v1222_v12 = vld [vmem:[%s2360_s0 + $0x70] sm:$0xff]  }
   0x4   :  { %1079 = vmatprep.subr.bf16.mxu0 %v1441_v0  ;;  %1194 = vmatprep.subr.bf16.mxu1 %v1441_v0  ;;  %v1219_v9 = vld [vmem:[%s2360_s0] sm:$0xff]   ;;  %v1220_v10 = vld [vmem:[%s2360_s0 + $0x68] sm:$0xff]   ;;  %v1223_v13 = vld [vmem:[%s2360_s0 + $0x10] sm:$0xff]  }
   0x5   :  { %v1221_v11 = vld [vmem:[%s2360_s0 + $0x8] sm:$0xff]   ;;  %v1224_v14 = vld [vmem:[%s2360_s0 + $0x78] sm:$0xff]   ;;  %v1226_v16 = vld [vmem:[%s2360_s0 + $0x80] sm:$0xff]  }
   0x6   :  { %v1225_v15 = vld [vmem:[%s2360_s0 + $0x18] sm:$0xff]   ;;  %v1227_v17 = vld [vmem:[%s2360_s0 + $0x20] sm:$0xff]   ;;  %v1228_v18 = vld [vmem:[%s2360_s0 + $0x88] sm:$0xff]  }
   0x7   :  { %1080 = vmatpush3.bf16.msra.mxu0 %v1212_v2  ;;  %1202 = vmatpush3.bf16.msra.mxu1 %v1212_v2  ;;  %v1229_v19 = vld [vmem:[%s2360_s0 + $0x28] sm:$0xff]   ;;  %v1230_v20 = vld [vmem:[%s2360_s0 + $0x90] sm:$0xff]   ;;  %v1232_v22 = vld [vmem:[%s2360_s0 + $0x98] sm:$0xff]  }
   0x8   :  { %1081 = vmatprep.subr.bf16.mxu0 %v1441_v0  ;;  %1195 = vmatprep.subr.bf16.mxu1 %v1441_v0  ;;  %v1231_v21 = vld [vmem:[%s2360_s0 + $0x30] sm:$0xff]   ;;  %v1233_v23 = vld [vmem:[%s2360_s0 + $0x38] sm:$0xff]   ;;  %v1234_v24 = vld [vmem:[%s2360_s0 + $0xa0] sm:$0xff]  }
   0x9   :  { %v1235_v25 = vld [vmem:[%s2360_s0 + $0x40] sm:$0xff]   ;;  %v1236_v26 = vld [vmem:[%s2360_s0 + $0xa8] sm:$0xff]   ;;  %v1238_v28 = vld [vmem:[%s2360_s0 + $0xb0] sm:$0xff]  }
   0xa   :  { %v1237_v27 = vld [vmem:[%s2360_s0 + $0x48] sm:$0xff]   ;;  %v1239_v29 = vld [vmem:[%s2360_s0 + $0x50] sm:$0xff]   ;;  %v1240_v30 = vld [vmem:[%s2360_s0 + $0xb8] sm:$0xff]  }
   0xb   :  { %1082 = vmatpush3.bf16.msra.mxu0 %v1213_v3  ;;  %1203 = vmatpush3.bf16.msra.mxu1 %v1213_v3  ;;  %v1241_v31 = vld [vmem:[%s2360_s0 + $0x58] sm:$0xff]   ;;  %v1242_v32 = vld [vmem:[%s2360_s0 + $0xc0] ss:$0 sps:$4 sm:$0xff]  }
   0xc   :  { %1083 = vmatprep.subr.bf16.mxu0 %v1441_v0  ;;  %1196 = vmatprep.subr.bf16.mxu1 %v1441_v0  ;;  %v1243_v33 = vld [vmem:[%s2360_s0 + $0x60] sm:$0xff]  }
   0xd   :  { %v1631_v34 = vld [vmem:[%s2361_s2] ss:$0 sm:$0xff] }
   0xf   :  { %1084 = vmatpush3.bf16.msra.mxu0 %v1214_v4  ;;  %1204 = vmatpush3.bf16.msra.mxu1 %v1214_v4 }
  0x10   :  { %1085 = vmatprep.subr.bf16.mxu0 %v1441_v0  ;;  %1197 = vmatprep.subr.bf16.mxu1 %v1441_v0 }
  0x13   :  { %1086 = vmatpush3.bf16.msra.mxu0 %v1215_v5  ;;  %1205 = vmatpush3.bf16.msra.mxu1 %v1215_v5 }
  0x14   :  { %1087 = vmatprep.subr.bf16.mxu0 %v1441_v0  ;;  %1198 = vmatprep.subr.bf16.mxu1 %v1441_v0 }
  0x17   :  { %1088 = vmatpush3.bf16.msra.mxu0 %v1216_v6  ;;  %1206 = vmatpush3.bf16.msra.mxu1 %v1216_v6 }
  0x18   :  { %1089 = vmatprep.subr.bf16.mxu0 %v1441_v0  ;;  %1199 = vmatprep.subr.bf16.mxu1 %v1441_v0 }
  0x1b   :  { %1090 = vmatpush3.bf16.msra.mxu0 %v1217_v7  ;;  %1207 = vmatpush3.bf16.msra.mxu1 %v1217_v7 }
  0x1c   :  { %1091 = vmatprep.subr.bf16.mxu0 %v1441_v0  ;;  %1200 = vmatprep.subr.bf16.mxu1 %v1441_v0 }
  0x1f   :  { %1092 = vmatpush3.bf16.msra.mxu0 %v1218_v8  ;;  %1208 = vmatpush3.bf16.msra.mxu1 %v1218_v8 }
  0x22   :  { %1094 = vmatmul.mubr.bf16.vlgmr.msra.gmra.mxu0 %v1219_v9  ;;  %1146 = vmatmul.mubr.bf16.vlgmr.msra.gmra.mxu1 %v1220_v10 }
  0x23   :  { %1097 = vmatprep.mubr.msk.bf16.mxu0 %vm1442_vm0, %v1441_v0  ;;  %1149 = vmatprep.mubr.msk.bf16.mxu1 %vm1442_vm0, %v1441_v0 }
  0x2a   :  { %1098 = vmatmul.mubr.bf16.gmra.mxu0 %v1221_v11  ;;  %1150 = vmatmul.mubr.bf16.gmra.mxu1 %v1222_v12 }
  0x2b   :  { %1101 = vmatprep.mubr.msk.bf16.mxu0 %vm1442_vm0, %v1441_v0  ;;  %1153 = vmatprep.mubr.msk.bf16.mxu1 %vm1442_vm0, %v1441_v0 }
  0x32   :  { %1102 = vmatmul.mubr.bf16.gmra.mxu0 %v1223_v13  ;;  %1154 = vmatmul.mubr.bf16.gmra.mxu1 %v1224_v14 }
  0x33   :  { %1105 = vmatprep.mubr.msk.bf16.mxu0 %vm1442_vm0, %v1441_v0  ;;  %1157 = vmatprep.mubr.msk.bf16.mxu1 %vm1442_vm0, %v1441_v0 }
  0x3a   :  { %1106 = vmatmul.mubr.bf16.gmra.mxu0 %v1225_v15  ;;  %1158 = vmatmul.mubr.bf16.gmra.mxu1 %v1226_v16 }
  0x3b   :  { %1109 = vmatprep.mubr.msk.bf16.mxu0 %vm1442_vm0, %v1441_v0  ;;  %1161 = vmatprep.mubr.msk.bf16.mxu1 %vm1442_vm0, %v1441_v0 }
  0x42   :  { %1110 = vmatmul.mubr.bf16.gmra.mxu0 %v1227_v17  ;;  %1162 = vmatmul.mubr.bf16.gmra.mxu1 %v1228_v18 }
  0x43   :  { %1113 = vmatprep.mubr.msk.bf16.mxu0 %vm1442_vm0, %v1441_v0  ;;  %1165 = vmatprep.mubr.msk.bf16.mxu1 %vm1442_vm0, %v1441_v0 }
  0x4a   :  { %1114 = vmatmul.mubr.bf16.gmra.mxu0 %v1229_v19  ;;  %1166 = vmatmul.mubr.bf16.gmra.mxu1 %v1230_v20 }
  0x4b   :  { %1117 = vmatprep.mubr.msk.bf16.mxu0 %vm1442_vm0, %v1441_v0  ;;  %1169 = vmatprep.mubr.msk.bf16.mxu1 %vm1442_vm0, %v1441_v0 }
  0x52   :  { %1118 = vmatmul.mubr.bf16.gmra.mxu0 %v1231_v21  ;;  %1170 = vmatmul.mubr.bf16.gmra.mxu1 %v1232_v22 }
  0x53   :  { %1121 = vmatprep.mubr.msk.bf16.mxu0 %vm1442_vm0, %v1441_v0  ;;  %1173 = vmatprep.mubr.msk.bf16.mxu1 %vm1442_vm0, %v1441_v0 }
  0x5a   :  { %1122 = vmatmul.mubr.bf16.gmra.mxu0 %v1233_v23  ;;  %1174 = vmatmul.mubr.bf16.gmra.mxu1 %v1234_v24 }
  0x5b   :  { %1125 = vmatprep.mubr.msk.bf16.mxu0 %vm1442_vm0, %v1441_v0  ;;  %1177 = vmatprep.mubr.msk.bf16.mxu1 %vm1442_vm0, %v1441_v0 }
  0x62   :  { %1126 = vmatmul.mubr.bf16.gmra.mxu0 %v1235_v25  ;;  %1178 = vmatmul.mubr.bf16.gmra.mxu1 %v1236_v26 }
  0x63   :  { %1129 = vmatprep.mubr.msk.bf16.mxu0 %vm1442_vm0, %v1441_v0  ;;  %1181 = vmatprep.mubr.msk.bf16.mxu1 %vm1442_vm0, %v1441_v0 }
  0x6a   :  { %1130 = vmatmul.mubr.bf16.gmra.mxu0 %v1237_v27  ;;  %1182 = vmatmul.mubr.bf16.gmra.mxu1 %v1238_v28 }
  0x6b   :  { %1133 = vmatprep.mubr.msk.bf16.mxu0 %vm1442_vm0, %v1441_v0  ;;  %1185 = vmatprep.mubr.msk.bf16.mxu1 %vm1442_vm0, %v1441_v0 }
  0x72   :  { %1134 = vmatmul.mubr.bf16.gmra.mxu0 %v1239_v29  ;;  %1186 = vmatmul.mubr.bf16.gmra.mxu1 %v1240_v30 }
  0x73   :  { %1137 = vmatprep.mubr.msk.bf16.mxu0 %vm1442_vm0, %v1441_v0  ;;  %1189 = vmatprep.mubr.msk.bf16.mxu1 %vm1442_vm0, %v1441_v0 }
  0x7a   :  { %1138 = vmatmul.mubr.bf16.gmra.mxu0 %v1241_v31  ;;  %1190 = vmatmul.mubr.bf16.gmra.mxu1 %v1242_v32 }
  0x7b   :  { %1141 = vmatprep.mubr.msk.bf16.mxu0 %vm1442_vm0, %v1441_v0 }
  0x82   :  { %1142 = vmatmul.mubr.bf16.gmra.mxu0 %v1243_v33 }
  0xe2   :  { %v317_v35 = vpop.f32.mrf.mxu0  ;;  %v421_v36 = vpop.f32.mrf.mxu1 }
  0xe3   :  { %v1634_v37 = vadd.f32 %v1631_v34, %v317_v35  ;;  %v1637_v38 = vadd.f32 %v1631_v34, %v421_v36 }
  0xe4   :  { %v1095_v39 = vpop.f32.mrf.mxu0  ;;  %v1147_v40 = vpop.f32.mrf.mxu1 }
  0xe5   :  { %v515_v41 = vand.u32 2147483647, %v1634_v37  ;;  %v541_v42 = vand.u32 2147483647, %v1637_v38  ;;  %vm711_vm2 = vcmp.ge.f32.partialorder %v1634_v37, 0.0  ;;  %vm737_vm3 = vcmp.ge.f32.partialorder %v1637_v38, 0.0 }
  0xe6   :  { %v320_v43 = vpop.f32.mrf.mxu0  ;;  %v424_v44 = vpop.f32.mrf.mxu1 }
  0xe7   :  { %v564_v45 = vsub.f32 0.0, %v515_v41  ;;  %v590_v46 = vsub.f32 0.0, %v541_v42  ;;  %v1642_v47 = vadd.f32 %v1631_v34, %v320_v43  ;;  %v1645_v48 = vadd.f32 %v1631_v34, %v424_v44 }
  0xe8   :  { %v1096_v49 = vpop.f32.mrf.mxu0  ;;  %v1148_v50 = vpop.f32.mrf.mxu1 }
  0xe9   :  { %v613_v51 = vmul.f32 1.442695, %v564_v45  ;;  %v665_v52 = vmul.f32 1.442695, %v590_v46  ;;  %v516_v53 = vand.u32 2147483647, %v1642_v47 }
  0xea   :  { %v542_v54 = vand.u32 2147483647, %v1645_v48  ;;  %v325_v55 = vpop.f32.mrf.mxu0  ;;  %v429_v56 = vpop.f32.mrf.mxu1  ;;  %vm712_vm4 = vcmp.ge.f32.partialorder %v1642_v47, 0.0  ;;  %vm738_vm5 = vcmp.ge.f32.partialorder %v1645_v48, 0.0 }
  0xeb   :  { %1244 = vpow2.f32 %v613_v51  ;;  %v565_v57 = vsub.f32 0.0, %v516_v53  ;;  %v1650_v58 = vadd.f32 %v1631_v34, %v325_v55  ;;  %v1653_v59 = vadd.f32 %v1631_v34, %v429_v56 }
  0xec   :  { %1246 = vpow2.f32 %v665_v52  ;;  %v591_v60 = vsub.f32 0.0, %v542_v54  ;;  %v1099_v61 = vpop.f32.mrf.mxu0  ;;  %v1151_v62 = vpop.f32.mrf.mxu1 }
  0xed   :  { %v615_v63 = vmul.f32 1.442695, %v565_v57  ;;  %v517_v0 = vand.u32 2147483647, %v1650_v58  ;;  %v543_v2 = vand.u32 2147483647, %v1653_v59 }
  0xee   :  { %v667_v1 = vmul.f32 1.442695, %v591_v60  ;;  %v328_v3 = vpop.f32.mrf.mxu0  ;;  %v432_v4 = vpop.f32.mrf.mxu1  ;;  %vm713_vm6 = vcmp.ge.f32.partialorder %v1650_v58, 0.0  ;;  %vm739_vm7 = vcmp.ge.f32.partialorder %v1653_v59, 0.0 }
  0xef   :  { %1248 = vpow2.f32 %v615_v63  ;;  %v566_v5 = vsub.f32 0.0, %v517_v0  ;;  %v1658_v6 = vadd.f32 %v1631_v34, %v328_v3  ;;  %v1661_v7 = vadd.f32 %v1631_v34, %v432_v4 }
  0xf0   :  { %1250 = vpow2.f32 %v667_v1  ;;  %v592_v8 = vsub.f32 0.0, %v543_v2  ;;  %v1100_v9 = vpop.f32.mrf.mxu0  ;;  %v1152_v10 = vpop.f32.mrf.mxu1 }
  0xf1   :  { %v617_v11 = vmul.f32 1.442695, %v566_v5  ;;  %v518_v12 = vand.u32 2147483647, %v1658_v6  ;;  %v544_v14 = vand.u32 2147483647, %v1661_v7 }
  0xf2   :  { %v669_v13 = vmul.f32 1.442695, %v592_v8  ;;  %v333_v15 = vpop.f32.mrf.mxu0  ;;  %v437_v16 = vpop.f32.mrf.mxu1  ;;  %vm714_vm8 = vcmp.ge.f32.partialorder %v1658_v6, 0.0  ;;  %vm740_vm9 = vcmp.ge.f32.partialorder %v1661_v7, 0.0 }
  0xf3   :  { %1252 = vpow2.f32 %v617_v11  ;;  %v567_v17 = vsub.f32 0.0, %v518_v12  ;;  %v1666_v18 = vadd.f32 %v1631_v34, %v333_v15  ;;  %v1669_v19 = vadd.f32 %v1631_v34, %v437_v16 }
  0xf4   :  { %1254 = vpow2.f32 %v669_v13  ;;  %v593_v20 = vsub.f32 0.0, %v544_v14  ;;  %v1103_v21 = vpop.f32.mrf.mxu0  ;;  %v1155_v22 = vpop.f32.mrf.mxu1 }
  0xf5   :  { %v619_v23 = vmul.f32 1.442695, %v567_v17  ;;  %v519_v24 = vand.u32 2147483647, %v1666_v18  ;;  %v545_v26 = vand.u32 2147483647, %v1669_v19 }
  0xf6   :  { %v671_v25 = vmul.f32 1.442695, %v593_v20  ;;  %v336_v27 = vpop.f32.mrf.mxu0  ;;  %v440_v28 = vpop.f32.mrf.mxu1  ;;  %vm715_vm10 = vcmp.ge.f32.partialorder %v1666_v18, 0.0  ;;  %vm741_vm11 = vcmp.ge.f32.partialorder %v1669_v19, 0.0 }
  0xf7   :  { %1256 = vpow2.f32 %v619_v23  ;;  %v568_v29 = vsub.f32 0.0, %v519_v24  ;;  %v1674_v30 = vadd.f32 %v1631_v34, %v336_v27  ;;  %v1677_v31 = vadd.f32 %v1631_v34, %v440_v28 }
  0xf8   :  { %v1679_v32 = vpop.eup %1244  ;;  %1258 = vpow2.f32 %v671_v25  ;;  %v594_v33 = vsub.f32 0.0, %v545_v26  ;;  %v1104_v35 = vpop.f32.mrf.mxu0 }
  0xf9   :  { %v1156_v36 = vpop.f32.mrf.mxu1  ;;  %v1681_v39 = vpop.eup %1246  ;;  %v809_v40 = vadd.f32 1.0, %v1679_v32  ;;  %v621_v41 = vmul.f32 1.442695, %v568_v29  ;;  %v520_v42 = vand.u32 2147483647, %v1674_v30  ;;  %vm716_vm12 = vcmp.ge.f32.partialorder %v1674_v30, 0.0 }
  0xfa   :  { %v835_v43 = vadd.f32 1.0, %v1681_v39  ;;  %v673_v44 = vmul.f32 1.442695, %v594_v33  ;;  %v341_v45 = vpop.f32.mrf.mxu0  ;;  %v546_v50 = vand.u32 2147483647, %v1677_v31  ;;  %vm742_vm13 = vcmp.ge.f32.partialorder %v1677_v31, 0.0 }
  0xfb   :  { %v445_v46 = vpop.f32.mrf.mxu1  ;;  %1260 = vrcp.f32 %v809_v40  ;;  %v569_v49 = vsub.f32 0.0, %v520_v42  ;;  %v1690_v52 = vadd.f32 %v1631_v34, %v341_v45  ;;  %v786_v45 = vsel %vm737_vm3, 1.0, %v1681_v39 }
  0xfc   :  { %v1687_v51 = vpop.eup %1248  ;;  %1262 = vrcp.f32 %v835_v43  ;;  %v1693_v53 = vadd.f32 %v1631_v34, %v445_v46  ;;  %v1107_v54 = vpop.f32.mrf.mxu0  ;;  %v595_v62 = vsub.f32 0.0, %v546_v50 }
  0xfd   :  { %v1159_v55 = vpop.f32.mrf.mxu1  ;;  %v1695_v56 = vpop.eup %1250  ;;  %v810_v57 = vadd.f32 1.0, %v1687_v51  ;;  %1264 = vpow2.f32 %v621_v41  ;;  %v623_v60 = vmul.f32 1.442695, %v569_v49  ;;  %v521_v1 = vand.u32 2147483647, %v1690_v52 }
  0xfe   :  { %v836_v61 = vadd.f32 1.0, %v1695_v56  ;;  %1266 = vpow2.f32 %v673_v44  ;;  %v344_v63 = vpop.f32.mrf.mxu0  ;;  %v547_v2 = vand.u32 2147483647, %v1693_v53  ;;  %v675_v4 = vmul.f32 1.442695, %v595_v62 }
  0xff   :  { %v448_v0 = vpop.f32.mrf.mxu1  ;;  %1268 = vrcp.f32 %v810_v57  ;;  %v1704_v5 = vadd.f32 %v1631_v34, %v344_v63  ;;  %v570_v12 = vsub.f32 0.0, %v521_v1  ;;  %v760_v41 = vsel %vm711_vm2, 1.0, %v1679_v32 }
 0x100   :  { %v1701_v3 = vpop.eup %1252  ;;  %1270 = vrcp.f32 %v836_v61  ;;  %v1108_v8 = vpop.f32.mrf.mxu0  ;;  %v596_v14 = vsub.f32 0.0, %v547_v2  ;;  %v1716_v23 = vadd.f32 %v1631_v34, %v448_v0  ;;  %vm717_vm14 = vcmp.ge.f32.partialorder %v1690_v52, 0.0 }
 0x101   :  { %v1160_v9 = vpop.f32.mrf.mxu1  ;;  %v1706_v10 = vpop.eup %1254  ;;  %v811_v11 = vadd.f32 1.0, %v1701_v3  ;;  %1272 = vpow2.f32 %v623_v60  ;;  %v625_v17 = vmul.f32 1.442695, %v570_v12  ;;  %v522_v20 = vand.u32 2147483647, %v1704_v5 }
 0x102   :  { %v837_v13 = vadd.f32 1.0, %v1706_v10  ;;  %1274 = vpow2.f32 %v675_v4  ;;  %v349_v15 = vpop.f32.mrf.mxu0  ;;  %v677_v22 = vmul.f32 1.442695, %v596_v14  ;;  %v548_v35 = vand.u32 2147483647, %v1716_v23 }
 0x103   :  { %v453_v16 = vpop.f32.mrf.mxu1  ;;  %1276 = vrcp.f32 %v811_v11  ;;  %v1719_v24 = vadd.f32 %v1631_v34, %v349_v15  ;;  %v571_v29 = vsub.f32 0.0, %v522_v20  ;;  %v761_v9 = vsel %vm712_vm4, 1.0, %v1687_v51 }
 0x104   :  { %v1713_v21 = vpop.eup %1256  ;;  %1278 = vrcp.f32 %v837_v13  ;;  %v1111_v25 = vpop.f32.mrf.mxu0  ;;  %v597_v46 = vsub.f32 0.0, %v548_v35  ;;  %v1737_v49 = vadd.f32 %v1631_v34, %v453_v16  ;;  %v762_v35 = vsel %vm713_vm6, 1.0, %v1701_v3 }
 0x105   :  { %v1163_v26 = vpop.f32.mrf.mxu1  ;;  %v1721_v27 = vpop.eup %1258  ;;  %v812_v28 = vadd.f32 1.0, %v1713_v21  ;;  %1280 = vpow2.f32 %v625_v17  ;;  %v627_v42 = vmul.f32 1.442695, %v571_v29  ;;  %v523_v43 = vand.u32 2147483647, %v1719_v24 }
 0x106   :  { %v838_v33 = vadd.f32 1.0, %v1721_v27  ;;  %1282 = vpow2.f32 %v677_v22  ;;  %v352_v36 = vpop.f32.mrf.mxu0  ;;  %v679_v38 = vmul.f32 1.442695, %v597_v46  ;;  %v549_v39 = vand.u32 2147483647, %v1737_v49 }
 0x107   :  { %v456_v40 = vpop.f32.mrf.mxu1  ;;  %1284 = vrcp.f32 %v812_v28  ;;  %v572_v55 = vsub.f32 0.0, %v523_v43  ;;  %v1740_v57 = vadd.f32 %v1631_v34, %v352_v36  ;;  %v787_v17 = vsel %vm738_vm5, 1.0, %v1695_v56 }
 0x108   :  { %v1261_v44 = vpop.eup %1260  ;;  %1286 = vrcp.f32 %v838_v33  ;;  %v1112_v50 = vpop.f32.mrf.mxu0  ;;  %v598_v12 = vsub.f32 0.0, %v549_v39  ;;  %v1769_v51 = vadd.f32 %v1631_v34, %v456_v40  ;;  %v789_v39 = vsel %vm740_vm9, 1.0, %v1721_v27 }
 0x109   :  { %v1164_v54 = vpop.f32.mrf.mxu1  ;;  %v1263_v37 = vpop.eup %1262  ;;  %v859_v32 = vmul.f32 %v1261_v44, %v760_v41  ;;  %1288 = vpow2.f32 %v627_v42  ;;  %v629_v2 = vmul.f32 1.442695, %v572_v55  ;;  %v524_v4 = vand.u32 2147483647, %v1740_v57 }
 0x10a   :  { %v1742_v60 = vpop.eup %1264  ;;  %v911_v61 = vmul.f32 %v1263_v37, %v786_v45  ;;  %v357_v62 = vpop.f32.mrf.mxu0  ;;  %1290 = vpow2.f32 %v679_v38  ;;  %v681_v47 = vmul.f32 1.442695, %v598_v12  ;;  %v550_v40 = vand.u32 2147483647, %v1769_v51 }
 0x10b   :  { %v461_v63 = vpop.f32.mrf.mxu1  ;;  %v1746_v0 = vpop.eup %1266  ;;  %957 = vst.msk [vmem:[%s2362_s3] sm:$0xff] %vm956_vm1, %v859_v32  ;;  %v813_v1 = vadd.f32 1.0, %v1742_v60  ;;  %v573_v20 = vsub.f32 0.0, %v524_v4  ;;  %v788_v45 = vsel %vm739_vm7, 1.0, %v1706_v10  ;;  %v1792_v46 = vadd.f32 %v1631_v34, %v357_v62 }
 0x10c   :  { %v1269_v8 = vpop.eup %1268  ;;  %983 = vst.msk [vmem:[%s2362_s3 + $0xd0] sm:$0xff] %vm956_vm1, %v911_v61  ;;  %v839_v11 = vadd.f32 1.0, %v1746_v0  ;;  %v1115_v13 = vpop.f32.mrf.mxu0  ;;  %v599_v3 = vsub.f32 0.0, %v550_v40  ;;  %v1797_v54 = vadd.f32 %v1631_v34, %v461_v63  ;;  %v763_v38 = vsel %vm714_vm8, 1.0, %v1713_v21 }
 0x10d   :  { %v1167_v14 = vpop.f32.mrf.mxu1  ;;  %v1271_v15 = vpop.eup %1270  ;;  %v861_v16 = vmul.f32 %v1269_v8, %v761_v9  ;;  %1292 = vrcp.f32 %v813_v1  ;;  %v631_v56 = vmul.f32 1.442695, %v573_v20  ;;  %v525_v10 = vand.u32 2147483647, %v1792_v46 }
 0x10e   :  { %v1766_v22 = vpop.eup %1272  ;;  %v913_v25 = vmul.f32 %v1271_v15, %v787_v17  ;;  %1294 = vrcp.f32 %v839_v11  ;;  %v360_v26 = vpop.f32.mrf.mxu0  ;;  %v683_v63 = vmul.f32 1.442695, %v599_v3  ;;  %v551_v11 = vand.u32 2147483647, %v1797_v54 }
 0x10f   :  { %v464_v28 = vpop.f32.mrf.mxu1  ;;  %v1771_v29 = vpop.eup %1274  ;;  %958 = vst.msk [vmem:[%s2362_s3 + $0x8] sm:$0xff] %vm956_vm1, %v861_v16  ;;  %v814_v48 = vadd.f32 1.0, %v1766_v22  ;;  %1296 = vpow2.f32 %v629_v2  ;;  %v574_v9 = vsub.f32 0.0, %v525_v10  ;;  %v1824_v6 = vadd.f32 %v1631_v34, %v360_v26 }
 0x110   :  { %v1277_v33 = vpop.eup %1276  ;;  %984 = vst.msk [vmem:[%s2362_s3 + $0xd8] sm:$0xff] %vm956_vm1, %v913_v25  ;;  %v840_v36 = vadd.f32 1.0, %v1771_v29  ;;  %1298 = vpow2.f32 %v681_v47  ;;  %v1116_v41 = vpop.f32.mrf.mxu0  ;;  %v600_v15 = vsub.f32 0.0, %v551_v11  ;;  %v1841_v17 = vadd.f32 %v1631_v34, %v464_v28 }
 0x111   :  { %v1168_v42 = vpop.f32.mrf.mxu1  ;;  %v1279_v43 = vpop.eup %1278  ;;  %v863_v44 = vmul.f32 %v1277_v33, %v762_v35  ;;  %1300 = vrcp.f32 %v814_v48  ;;  %v633_v14 = vmul.f32 1.442695, %v574_v9  ;;  %v526_v16 = vand.u32 2147483647, %v1824_v6 }
 0x112   :  { %v1794_v50 = vpop.eup %1280  ;;  %v915_v58 = vmul.f32 %v1279_v43, %v788_v45  ;;  %1302 = vrcp.f32 %v840_v36  ;;  %v365_v37 = vpop.f32.mrf.mxu0  ;;  %v764_v26 = vsel %vm715_vm10, 1.0, %v1742_v60  ;;  %v790_v28 = vsel %vm741_vm11, 1.0, %v1746_v0 }
 0x113   :  { %v469_v32 = vpop.f32.mrf.mxu1  ;;  %v1799_v55 = vpop.eup %1282  ;;  %959 = vst.msk [vmem:[%s2362_s3 + $0x10] sm:$0xff] %vm956_vm1, %v863_v44  ;;  %v815_v59 = vadd.f32 1.0, %v1794_v50  ;;  %1304 = vpow2.f32 %v631_v56  ;;  %v1850_v48 = vadd.f32 %v1631_v34, %v365_v37  ;;  %v685_v35 = vmul.f32 1.442695, %v600_v15 }
 0x114   :  { %v1285_v61 = vpop.eup %1284  ;;  %985 = vst.msk [vmem:[%s2362_s3 + $0xe0] sm:$0xff] %vm956_vm1, %v915_v58  ;;  %v841_v62 = vadd.f32 1.0, %v1799_v55  ;;  %v1119_v1 = vpop.f32.mrf.mxu0  ;;  %v575_v41 = vsub.f32 0.0, %v526_v16  ;;  %v552_v42 = vand.u32 2147483647, %v1841_v17  ;;  %v1860_v43 = vadd.f32 %v1631_v34, %v469_v32 }
 0x115   :  { %v1171_v2 = vpop.f32.mrf.mxu1  ;;  %v1287_v4 = vpop.eup %1286  ;;  %v865_v8 = vmul.f32 %v1285_v61, %v763_v38  ;;  %1306 = vrcp.f32 %v815_v59  ;;  %vm743_vm15 = vcmp.ge.f32.partialorder %v1693_v53, 0.0  ;;  %v527_v19 = vand.u32 2147483647, %v1850_v48 }
 0x116   :  { %v1820_v12 = vpop.eup %1288  ;;  %v917_v13 = vmul.f32 %v1287_v4, %v789_v39  ;;  %1308 = vrcp.f32 %v841_v62  ;;  %v368_v7 = vpop.f32.mrf.mxu0  ;;  %v765_v37 = vsel %vm716_vm12, 1.0, %v1766_v22  ;;  %v635_v59 = vmul.f32 1.442695, %v575_v41 }
 0x117   :  { %v1826_v21 = vpop.f32.mrf.mxu1  ;;  %960 = vst.msk [vmem:[%s2362_s3 + $0x18] sm:$0xff] %vm956_vm1, %v865_v8  ;;  %v816_v27 = vadd.f32 1.0, %v1820_v12  ;;  %1310 = vpow2.f32 %v683_v63  ;;  %v1843_v47 = vpop.eup %1290  ;;  %v601_v38 = vsub.f32 0.0, %v552_v42  ;;  %v576_v39 = vsub.f32 0.0, %v527_v19 }
 0x118   :  { %986 = vst.msk [vmem:[%s2362_s3 + $0xe8] sm:$0xff] %vm956_vm1, %v917_v13  ;;  %v1120_v20 = vpop.f32.mrf.mxu0  ;;  %v842_v33 = vadd.f32 1.0, %v1843_v47  ;;  %v1882_v62 = vadd.f32 %v1631_v34, %v368_v7  ;;  %v791_v2 = vsel %vm742_vm13, 1.0, %v1771_v29  ;;  %v553_v4 = vand.u32 2147483647, %v1860_v43 }
 0x119   :  { %v1172_v25 = vpop.f32.mrf.mxu1  ;;  %1312 = vrcp.f32 %v816_v27  ;;  %v687_v11 = vmul.f32 1.442695, %v601_v38  ;;  %v637_v13 = vmul.f32 1.442695, %v576_v39  ;;  %v766_v31 = vsel %vm717_vm14, 1.0, %v1794_v50 }
 0x11a   :  { %v1293_v56 = vpop.eup %1292  ;;  %1314 = vpow2.f32 %v633_v14  ;;  %v373_v36 = vpop.f32.mrf.mxu0  ;;  %v602_v14 = vsub.f32 0.0, %v553_v4  ;;  %v792_v16 = vsel %vm743_vm15, 1.0, %v1799_v55  ;;  %v528_v20 = vand.u32 2147483647, %v1882_v62 }
 0x11b   :  { %v1856_v40 = vpop.f32.mrf.mxu1  ;;  %v1295_v18 = vpop.eup %1294  ;;  %v867_v60 = vmul.f32 %v1293_v56, %v764_v26  ;;  %1316 = vrcp.f32 %v842_v33  ;;  %v1910_v52 = vadd.f32 %v1631_v34, %v1826_v21  ;;  %v1917_v33 = vadd.f32 %v1631_v34, %v373_v36 }
 0x11c   :  { %v1862_v44 = vpop.eup %1296  ;;  %v919_v45 = vmul.f32 %v1295_v18, %v790_v28  ;;  %v1123_v0 = vpop.f32.mrf.mxu0  ;;  %1318 = vpow2.f32 %v685_v35  ;;  %v689_v28 = vmul.f32 1.442695, %v602_v14  ;;  %v577_v35 = vsub.f32 0.0, %v528_v20 }
 0x11d   :  { %v1175_v58 = vpop.f32.mrf.mxu1  ;;  %v1866_v3 = vpop.eup %1298  ;;  %961 = vst.msk [vmem:[%s2362_s3 + $0x20] sm:$0xff] %vm956_vm1, %v867_v60  ;;  %v817_v32 = vadd.f32 1.0, %v1862_v44  ;;  %v554_v18 = vand.u32 2147483647, %v1910_v52  ;;  %vm718_vm0 = vcmp.ge.f32.partialorder %v1704_v5, 0.0  ;;  %vm744_vm2 = vcmp.ge.f32.partialorder %v1716_v23, 0.0 }
 0x11e   :  { %v1301_v10 = vpop.eup %1300  ;;  %987 = vst.msk [vmem:[%s2362_s3 + $0xf0] sm:$0xff] %vm956_vm1, %v919_v45  ;;  %v843_v61 = vadd.f32 1.0, %v1866_v3  ;;  %v376_v63 = vpop.f32.mrf.mxu0  ;;  %v767_v42 = vsel %vm718_vm0, 1.0, %v1820_v12  ;;  %v639_v45 = vmul.f32 1.442695, %v577_v35  ;;  %vm719_vm3 = vcmp.ge.f32.partialorder %v1719_v24, 0.0 }
 0x11f   :  { %v1884_v30 = vpop.f32.mrf.mxu1  ;;  %v1303_v22 = vpop.eup %1302  ;;  %v869_v1 = vmul.f32 %v1301_v10, %v765_v37  ;;  %1320 = vrcp.f32 %v817_v32  ;;  %v603_v19 = vsub.f32 0.0, %v554_v18  ;;  %v529_v0 = vand.u32 2147483647, %v1917_v33 }
 0x120   :  { %v1890_v8 = vpop.eup %1304  ;;  %v921_v9 = vmul.f32 %v1303_v22, %v791_v2  ;;  %1322 = vrcp.f32 %v843_v61  ;;  %v1124_v7 = vpop.f32.mrf.mxu0  ;;  %v1946_v10 = vadd.f32 %v1631_v34, %v376_v63  ;;  %vm745_vm4 = vcmp.ge.f32.partialorder %v1737_v49, 0.0 }
 0x121   :  { %v1176_v27 = vpop.f32.mrf.mxu1  ;;  %962 = vst.msk [vmem:[%s2362_s3 + $0x28] sm:$0xff] %vm956_vm1, %v869_v1  ;;  %v818_v29 = vadd.f32 1.0, %v1890_v8  ;;  %1324 = vpow2.f32 %v635_v59  ;;  %v1943_v59 = vadd.f32 %v1631_v34, %v1856_v40  ;;  %v691_v61 = vmul.f32 1.442695, %v603_v19 }
 0x122   :  { %v1307_v15 = vpop.eup %1306  ;;  %988 = vst.msk [vmem:[%s2362_s3 + $0xf8] sm:$0xff] %vm956_vm1, %v921_v9  ;;  %1326 = vpow2.f32 %v687_v11  ;;  %v1912_v50 = vpop.f32.mrf.mxu0  ;;  %v793_v40 = vsel %vm744_vm2, 1.0, %v1843_v47  ;;  %v578_v63 = vsub.f32 0.0, %v529_v0  ;;  %v530_v2 = vand.u32 2147483647, %v1946_v10 }
 0x123   :  { %v1914_v25 = vpop.f32.mrf.mxu1  ;;  %v1309_v26 = vpop.eup %1308  ;;  %v871_v56 = vmul.f32 %v1307_v15, %v766_v31  ;;  %1328 = vrcp.f32 %v818_v29  ;;  %v555_v1 = vand.u32 2147483647, %v1943_v59  ;;  %v1964_v11 = vadd.f32 %v1631_v34, %v1884_v30 }
 0x124   :  { %v1919_v53 = vpop.eup %1310  ;;  %v923_v55 = vmul.f32 %v1309_v26, %v792_v16  ;;  %1330 = vpow2.f32 %v637_v13  ;;  %v1127_v21 = vpop.f32.mrf.mxu0  ;;  %vm720_vm5 = vcmp.ge.f32.partialorder %v1740_v57, 0.0  ;;  %v641_v47 = vmul.f32 1.442695, %v578_v63 }
 0x125   :  { %v1179_v60 = vpop.f32.mrf.mxu1  ;;  %963 = vst.msk [vmem:[%s2362_s3 + $0x30] sm:$0xff] %vm956_vm1, %v871_v56  ;;  %v844_v36 = vadd.f32 1.0, %v1919_v53  ;;  %1332 = vpow2.f32 %v689_v28  ;;  %v768_v30 = vsel %vm719_vm3, 1.0, %v1862_v44  ;;  %v604_v31 = vsub.f32 0.0, %v555_v1 }
 0x126   :  { %v1313_v41 = vpop.eup %1312  ;;  %989 = vst.msk [vmem:[%s2362_s3 + $0x100] sm:$0xff] %vm956_vm1, %v923_v55  ;;  %v1935_v58 = vpop.f32.mrf.mxu0  ;;  %v579_v29 = vsub.f32 0.0, %v530_v2  ;;  %v556_v14 = vand.u32 2147483647, %v1964_v11  ;;  %v794_v56 = vsel %vm745_vm4, 1.0, %v1866_v3  ;;  %v1985_v28 = vadd.f32 %v1631_v34, %v1912_v50 }
 0x127   :  { %v1937_v5 = vpop.f32.mrf.mxu1  ;;  %v1939_v37 = vpop.eup %1314  ;;  %v873_v32 = vmul.f32 %v1313_v41, %v767_v42  ;;  %1334 = vrcp.f32 %v844_v36  ;;  %v693_v44 = vmul.f32 1.442695, %v604_v31  ;;  %v1991_v35 = vadd.f32 %v1631_v34, %v1914_v25 }
 0x128   :  { %v819_v12 = vadd.f32 1.0, %v1939_v37  ;;  %1336 = vpow2.f32 %v639_v45  ;;  %v1128_v38 = vpop.f32.mrf.mxu0  ;;  %v1317_v22 = vpop.eup %1316  ;;  %v643_v50 = vmul.f32 1.442695, %v579_v29  ;;  %v605_v60 = vsub.f32 0.0, %v556_v14 }
 0x129   :  { %v1180_v39 = vpop.f32.mrf.mxu1  ;;  %964 = vst.msk [vmem:[%s2362_s3 + $0x38] sm:$0xff] %vm956_vm1, %v873_v32  ;;  %v1959_v4 = vpop.eup %1318  ;;  %v925_v9 = vmul.f32 %v1317_v22, %v793_v40  ;;  %v531_v36 = vand.u32 2147483647, %v1985_v28  ;;  %v769_v25 = vsel %vm720_vm5, 1.0, %v1890_v8  ;;  %vm746_vm6 = vcmp.ge.f32.partialorder %v1769_v51, 0.0 }
 0x12a   :  { %1338 = vrcp.f32 %v819_v12  ;;  %v1966_v13 = vpop.f32.mrf.mxu0  ;;  %v845_v23 = vadd.f32 1.0, %v1959_v4  ;;  %v695_v39 = vmul.f32 1.442695, %v605_v60  ;;  %v557_v57 = vand.u32 2147483647, %v1991_v35 }
 0x12b   :  { %v1968_v7 = vpop.f32.mrf.mxu1  ;;  %1340 = vpow2.f32 %v691_v61  ;;  %990 = vst.msk [vmem:[%s2362_s3 + $0x108] sm:$0xff] %vm956_vm1, %v925_v9  ;;  %v580_v12 = vsub.f32 0.0, %v531_v36  ;;  %vm721_vm7 = vcmp.ge.f32.partialorder %v1792_v46, 0.0  ;;  %v795_v2 = vsel %vm746_vm6, 1.0, %v1919_v53 }
 0x12c   :  { %v1321_v27 = vpop.eup %1320  ;;  %v1131_v15 = vpop.f32.mrf.mxu0  ;;  %1342 = vrcp.f32 %v845_v23  ;;  %v606_v9 = vsub.f32 0.0, %v557_v57  ;;  %v2035_v23 = vadd.f32 %v1631_v34, %v1935_v58  ;;  %v2041_v29 = vadd.f32 %v1631_v34, %v1937_v5 }
 0x12d   :  { %v1183_v16 = vpop.f32.mrf.mxu1  ;;  %v1323_v20 = vpop.eup %1322  ;;  %v875_v26 = vmul.f32 %v1321_v27, %v768_v30  ;;  %1344 = vpow2.f32 %v641_v47  ;;  %v645_v63 = vmul.f32 1.442695, %v580_v12  ;;  %v2045_v51 = vadd.f32 %v1631_v34, %v1966_v13 }
 0x12e   :  { %v1987_v55 = vpop.eup %1324  ;;  %v927_v24 = vmul.f32 %v1323_v20, %v794_v56  ;;  %v1993_v18 = vpop.f32.mrf.mxu0  ;;  %1346 = vpow2.f32 %v693_v44  ;;  %vm747_vm8 = vcmp.ge.f32.partialorder %v1797_v54, 0.0  ;;  %v697_v58 = vmul.f32 1.442695, %v606_v9 }
 0x12f   :  { %v1995_v21 = vpop.f32.mrf.mxu1  ;;  %v1997_v49 = vpop.eup %1326  ;;  %965 = vst.msk [vmem:[%s2362_s3 + $0x40] sm:$0xff] %vm956_vm1, %v875_v26  ;;  %v820_v3 = vadd.f32 1.0, %v1987_v55  ;;  %v770_v5 = vsel %vm721_vm7, 1.0, %v1939_v37  ;;  %v532_v13 = vand.u32 2147483647, %v2035_v23  ;;  %vm722_vm9 = vcmp.ge.f32.partialorder %v1824_v6, 0.0 }
 0x130   :  { %v1329_v41 = vpop.eup %1328  ;;  %991 = vst.msk [vmem:[%s2362_s3 + $0x110] sm:$0xff] %vm956_vm1, %v927_v24  ;;  %v846_v42 = vadd.f32 1.0, %v1997_v49  ;;  %v1132_v45 = vpop.f32.mrf.mxu0  ;;  %v558_v20 = vand.u32 2147483647, %v2041_v29  ;;  %v533_v24 = vand.u32 2147483647, %v2045_v51  ;;  %v2113_v6 = vadd.f32 %v1631_v34, %v1995_v21 }
 0x131   :  { %v1184_v19 = vpop.f32.mrf.mxu1  ;;  %v2013_v0 = vpop.eup %1330  ;;  %v877_v32 = vmul.f32 %v1329_v41, %v769_v25  ;;  %1348 = vrcp.f32 %v820_v3  ;;  %vm748_vm10 = vcmp.ge.f32.partialorder %v1841_v17, 0.0  ;;  %v581_v37 = vsub.f32 0.0, %v532_v13 }
 0x132   :  { %v2016_v61 = vpop.eup %1332  ;;  %1350 = vrcp.f32 %v846_v42  ;;  %v821_v38 = vadd.f32 1.0, %v2013_v0  ;;  %v2020_v8 = vpop.f32.mrf.mxu0  ;;  %v796_v60 = vsel %vm747_vm8, 1.0, %v1959_v4  ;;  %v607_v36 = vsub.f32 0.0, %v558_v20 }
 0x133   :  { %v2022_v22 = vpop.f32.mrf.mxu1  ;;  %966 = vst.msk [vmem:[%s2362_s3 + $0x48] sm:$0xff] %vm956_vm1, %v877_v32  ;;  %v847_v40 = vadd.f32 1.0, %v2016_v61  ;;  %1352 = vpow2.f32 %v643_v50  ;;  %v582_v41 = vsub.f32 0.0, %v533_v24  ;;  %v2077_v25 = vadd.f32 %v1631_v34, %v1968_v7 }
 0x134   :  { %v1335_v1 = vpop.eup %1334  ;;  %1354 = vrcp.f32 %v821_v38  ;;  %v1135_v47 = vpop.f32.mrf.mxu0  ;;  %v647_v12 = vmul.f32 1.442695, %v581_v37  ;;  %v2087_v38 = vadd.f32 %v1631_v34, %v1993_v18  ;;  %vm723_vm11 = vcmp.ge.f32.partialorder %v1850_v48, 0.0 }
 0x135   :  { %v1187_v27 = vpop.f32.mrf.mxu1  ;;  %v2037_v30 = vpop.eup %1336  ;;  %v929_v31 = vmul.f32 %v1335_v1, %v795_v2  ;;  %1356 = vrcp.f32 %v847_v40  ;;  %vm749_vm12 = vcmp.ge.f32.partialorder %v1860_v43, 0.0  ;;  %v699_v4 = vmul.f32 1.442695, %v607_v36 }
 0x136   :  { %v822_v53 = vadd.f32 1.0, %v2037_v30  ;;  %1358 = vpow2.f32 %v695_v39  ;;  %v2049_v14 = vpop.f32.mrf.mxu0  ;;  %v649_v40 = vmul.f32 1.442695, %v582_v41  ;;  %v559_v18 = vand.u32 2147483647, %v2077_v25 }
 0x137   :  { %v2051_v15 = vpop.f32.mrf.mxu1  ;;  %v1339_v16 = vpop.eup %1338  ;;  %992 = vst.msk [vmem:[%s2362_s3 + $0x118] sm:$0xff] %vm956_vm1, %v929_v31  ;;  %1360 = vpow2.f32 %v645_v63  ;;  %v534_v63 = vand.u32 2147483647, %v2087_v38  ;;  %v771_v2 = vsel %vm722_vm9, 1.0, %v1987_v55  ;;  %v797_v9 = vsel %vm748_vm10, 1.0, %v1997_v49 }
 0x138   :  { %v2062_v26 = vpop.eup %1340  ;;  %v879_v56 = vmul.f32 %v1339_v16, %v770_v5  ;;  %1362 = vrcp.f32 %v822_v53  ;;  %v1136_v44 = vpop.f32.mrf.mxu0  ;;  %v608_v16 = vsub.f32 0.0, %v559_v18  ;;  %v2117_v17 = vadd.f32 %v1631_v34, %v2020_v8 }
 0x139   :  { %v1188_v3 = vpop.f32.mrf.mxu1  ;;  %v848_v46 = vadd.f32 1.0, %v2062_v26  ;;  %1364 = vpow2.f32 %v697_v58  ;;  %v1343_v50 = vpop.eup %1342  ;;  %v583_v5 = vsub.f32 0.0, %v534_v63  ;;  %v772_v24 = vsel %vm723_vm11, 1.0, %v2013_v0 }
 0x13a   :  { %967 = vst.msk [vmem:[%s2362_s3 + $0x50] sm:$0xff] %vm956_vm1, %v879_v56  ;;  %v2079_v42 = vpop.f32.mrf.mxu0  ;;  %v2083_v19 = vpop.eup %1344  ;;  %v931_v32 = vmul.f32 %v1343_v50, %v796_v60  ;;  %v701_v21 = vmul.f32 1.442695, %v608_v16  ;;  %v798_v8 = vsel %vm749_vm12, 1.0, %v2016_v61  ;;  %v560_v37 = vand.u32 2147483647, %v2113_v6 }
 0x13b   :  { %v2081_v45 = vpop.f32.mrf.mxu1  ;;  %1366 = vrcp.f32 %v848_v46  ;;  %v823_v54 = vadd.f32 1.0, %v2083_v19  ;;  %v2092_v57 = vpop.eup %1346  ;;  %v651_v46 = vmul.f32 1.442695, %v583_v5  ;;  %vm724_vm13 = vcmp.ge.f32.partialorder %v1882_v62, 0.0 }
 0x13c   :  { %v1139_v7 = vpop.f32.mrf.mxu0  ;;  %993 = vst.msk [vmem:[%s2362_s3 + $0x120] sm:$0xff] %vm956_vm1, %v931_v32  ;;  %1368 = vpow2.f32 %v647_v12  ;;  %v849_v47 = vadd.f32 1.0, %v2092_v57  ;;  %v535_v60 = vand.u32 2147483647, %v2117_v17  ;;  %vm750_vm14 = vcmp.ge.f32.partialorder %v1910_v52, 0.0 }
 0x13d   :  { %v1191_v39 = vpop.f32.mrf.mxu1  ;;  %1370 = vrcp.f32 %v823_v54  ;;  %v609_v61 = vsub.f32 0.0, %v560_v37  ;;  %v773_v62 = vsel %vm724_vm13, 1.0, %v2037_v30  ;;  %vm725_vm15 = vcmp.ge.f32.partialorder %v1917_v33, 0.0 }
 0x13e   :  { %v1349_v1 = vpop.eup %1348  ;;  %v2107_v27 = vpop.f32.mrf.mxu0  ;;  %1372 = vpow2.f32 %v699_v4  ;;  %v584_v54 = vsub.f32 0.0, %v535_v60  ;;  %vm751_vm0 = vcmp.ge.f32.partialorder %v1943_v59, 0.0  ;;  %vm726_vm2 = vcmp.ge.f32.partialorder %v1946_v10, 0.0 }
 0x13f   :  { %v512_v31 = vpop.f32.mrf.mxu1  ;;  %v1351_v53 = vpop.eup %1350  ;;  %v881_v58 = vmul.f32 %v1349_v1, %v771_v2  ;;  %1374 = vrcp.f32 %v849_v47  ;;  %v703_v39 = vmul.f32 1.442695, %v609_v61  ;;  %vm752_vm3 = vcmp.ge.f32.partialorder %v1964_v11, 0.0 }
 0x140   :  { %v2109_v13 = vpop.eup %1352  ;;  %v933_v20 = vmul.f32 %v1351_v53, %v797_v9  ;;  %v1140_v55 = vpop.f32.mrf.mxu0  ;;  %1376 = vpow2.f32 %v649_v40  ;;  %v2160_v40 = vld [vmem:[%s2361_s2] ss:$0 sm:$0xff]  ;;  %v653_v1 = vmul.f32 1.442695, %v584_v54  ;;  %v799_v9 = vsel %vm750_vm14, 1.0, %v2062_v26 }
 0x141   :  { %v1192_v49 = vpop.f32.mrf.mxu1  ;;  %v1355_v56 = vpop.eup %1354  ;;  %968 = vst.msk [vmem:[%s2362_s3 + $0x58] sm:$0xff] %vm956_vm1, %v881_v58  ;;  %v824_v44 = vadd.f32 1.0, %v2109_v13  ;;  %v2164_v18 = vadd.f32 %v2160_v40, %v2022_v22  ;;  %v2180_v47 = vadd.f32 %v2160_v40, %v2049_v14  ;;  %v2184_v58 = vadd.f32 %v2160_v40, %v2051_v15 }
 0x142   :  { %v1357_v3 = vpop.eup %1356  ;;  %994 = vst.msk [vmem:[%s2362_s3 + $0x128] sm:$0xff] %vm956_vm1, %v933_v20  ;;  %v883_v34 = vmul.f32 %v1355_v56, %v772_v24  ;;  %v2135_v48 = vpop.f32.mrf.mxu0  ;;  %v2188_v16 = vadd.f32 %v2160_v40, %v2079_v42  ;;  %v774_v15 = vsel %vm725_vm15, 1.0, %v2083_v19  ;;  %v775_v60 = vsel %vm726_vm2, 1.0, %v2109_v13 }
 0x143   :  { %v2137_v0 = vpop.eup %1358  ;;  %v935_v50 = vmul.f32 %v1357_v3, %v798_v8  ;;  %1378 = vrcp.f32 %v824_v44  ;;  %v561_v22 = vand.u32 2147483647, %v2164_v18  ;;  %v536_v14 = vand.u32 2147483647, %v2180_v47 }
 0x144   :  { %v2141_v36 = vpop.eup %1360  ;;  %969 = vst.msk [vmem:[%s2362_s3 + $0x60] sm:$0xff] %vm956_vm1, %v883_v34  ;;  %v850_v43 = vadd.f32 1.0, %v2137_v0  ;;  %1380 = vpow2.f32 %v701_v21  ;;  %v1143_v41 = vpop.f32.mrf.mxu0  ;;  %v562_v20 = vand.u32 2147483647, %v2184_v58  ;;  %v537_v44 = vand.u32 2147483647, %v2188_v16 }
 0x145   :  { %v1363_v32 = vpop.eup %1362  ;;  %995 = vst.msk [vmem:[%s2362_s3 + $0x130] sm:$0xff] %vm956_vm1, %v935_v50  ;;  %v825_v12 = vadd.f32 1.0, %v2141_v36  ;;  %1382 = vpow2.f32 %v651_v46  ;;  %v610_v26 = vsub.f32 0.0, %v561_v22  ;;  %v585_v24 = vsub.f32 0.0, %v536_v14 }
 0x146   :  { %v2155_v4 = vpop.eup %1364  ;;  %v885_v7 = vmul.f32 %v1363_v32, %v773_v62  ;;  %1384 = vrcp.f32 %v850_v43  ;;  %v2166_v63 = vpop.f32.mrf.mxu0  ;;  %v800_v3 = vsel %vm751_vm0, 1.0, %v2092_v57  ;;  %v611_v19 = vsub.f32 0.0, %v562_v20 }
 0x147   :  { %1386 = vrcp.f32 %v825_v12  ;;  %v851_v30 = vadd.f32 1.0, %v2155_v4  ;;  %v705_v56 = vmul.f32 1.442695, %v610_v26  ;;  %v655_v46 = vmul.f32 1.442695, %v585_v24 }
 0x148   :  { %v1367_v2 = vpop.eup %1366  ;;  %970 = vst.msk [vmem:[%s2362_s3 + $0x68] sm:$0xff] %vm956_vm1, %v885_v7  ;;  %1388 = vpow2.f32 %v703_v39  ;;  %v1144_v31 = vpop.f32.mrf.mxu0  ;;  %v586_v37 = vsub.f32 0.0, %v537_v44  ;;  %v707_v57 = vmul.f32 1.442695, %v611_v19  ;;  %v2228_v61 = vadd.f32 %v2160_v40, %v2081_v45 }
 0x149   :  { %v937_v53 = vmul.f32 %v1367_v2, %v799_v9  ;;  %1390 = vrcp.f32 %v851_v30  ;;  %v2190_v52 = vpop.eup %1368  ;;  %v2234_v62 = vadd.f32 %v2160_v40, %v2107_v27  ;;  %v2238_v12 = vadd.f32 %v2160_v40, %v2135_v48 }
 0x14a   :  { %1392 = vpow2.f32 %v653_v1  ;;  %v1371_v5 = vpop.eup %1370  ;;  %v826_v42 = vadd.f32 1.0, %v2190_v52  ;;  %v657_v43 = vmul.f32 1.442695, %v586_v37  ;;  %vm727_vm4 = vcmp.ge.f32.partialorder %v1985_v28, 0.0 }
 0x14b   :  { %996 = vst.msk [vmem:[%s2362_s3 + $0x138] sm:$0xff] %vm956_vm1, %v937_v53  ;;  %v2204_v55 = vpop.eup %1372  ;;  %v887_v49 = vmul.f32 %v1371_v5, %v774_v15  ;;  %v563_v45 = vand.u32 2147483647, %v2228_v61  ;;  %v801_v27 = vsel %vm752_vm3, 1.0, %v2137_v0  ;;  %v776_v48 = vsel %vm727_vm4, 1.0, %v2141_v36 }
 0x14c   :  { %v1375_v21 = vpop.eup %1374  ;;  %1394 = vrcp.f32 %v826_v42  ;;  %v852_v33 = vadd.f32 1.0, %v2204_v55  ;;  %v538_v1 = vand.u32 2147483647, %v2234_v62  ;;  %vm753_vm5 = vcmp.ge.f32.partialorder %v1991_v35, 0.0 }
 0x14d   :  { %v2211_v34 = vpop.eup %1376  ;;  %971 = vst.msk [vmem:[%s2362_s3 + $0x70] sm:$0xff] %vm956_vm1, %v887_v49  ;;  %v939_v8 = vmul.f32 %v1375_v21, %v800_v3  ;;  %1396 = vpow2.f32 %v705_v56  ;;  %v612_v30 = vsub.f32 0.0, %v563_v45  ;;  %v539_v11 = vand.u32 2147483647, %v2238_v12 }
 0x14e   :  { %1398 = vrcp.f32 %v852_v33  ;;  %v827_v59 = vadd.f32 1.0, %v2211_v34  ;;  %v802_v36 = vsel %vm753_vm5, 1.0, %v2155_v4  ;;  %v587_v53 = vsub.f32 0.0, %v538_v1 }
 0x14f   :  { %997 = vst.msk [vmem:[%s2362_s3 + $0x140] sm:$0xff] %vm956_vm1, %v939_v8  ;;  %1400 = vpow2.f32 %v655_v46  ;;  %v709_v31 = vmul.f32 1.442695, %v612_v30  ;;  %v588_v14 = vsub.f32 0.0, %v539_v11  ;;  %v2271_v5 = vadd.f32 %v2160_v40, %v2166_v63 }
 0x150   :  { %v1379_v50 = vpop.eup %1378  ;;  %1402 = vrcp.f32 %v827_v59  ;;  %v659_v42 = vmul.f32 1.442695, %v587_v53  ;;  %vm728_vm6 = vcmp.ge.f32.partialorder %v2035_v23, 0.0  ;;  %vm754_vm7 = vcmp.ge.f32.partialorder %v2041_v29, 0.0 }
 0x151   :  { %v2230_v41 = vpop.eup %1380  ;;  %v889_v32 = vmul.f32 %v1379_v50, %v775_v60  ;;  %1404 = vpow2.f32 %v707_v57  ;;  %v661_v4 = vmul.f32 1.442695, %v588_v14  ;;  %v540_v20 = vand.u32 2147483647, %v2271_v5 }
 0x152   :  { %v2240_v10 = vpop.eup %1382  ;;  %v853_v13 = vadd.f32 1.0, %v2230_v41  ;;  %1406 = vpow2.f32 %v657_v43  ;;  %v777_v56 = vsel %vm728_vm6, 1.0, %v2190_v52  ;;  %v803_v21 = vsel %vm754_vm7, 1.0, %v2204_v55 }
 0x153   :  { %v1385_v54 = vpop.eup %1384  ;;  %972 = vst.msk [vmem:[%s2362_s3 + $0x78] sm:$0xff] %vm956_vm1, %v889_v32  ;;  %v828_v7 = vadd.f32 1.0, %v2240_v10  ;;  %v589_v24 = vsub.f32 0.0, %v540_v20  ;;  %vm729_vm8 = vcmp.ge.f32.partialorder %v2045_v51, 0.0  ;;  %vm755_vm9 = vcmp.ge.f32.partialorder %v2077_v25, 0.0 }
 0x154   :  { %v1387_v28 = vpop.eup %1386  ;;  %v941_v39 = vmul.f32 %v1385_v54, %v801_v27  ;;  %1408 = vrcp.f32 %v853_v13  ;;  %v778_v29 = vsel %vm729_vm8, 1.0, %v2211_v34  ;;  %v804_v34 = vsel %vm755_vm9, 1.0, %v2230_v41 }
 0x155   :  { %v2255_v2 = vpop.eup %1388  ;;  %v891_v9 = vmul.f32 %v1387_v28, %v776_v48  ;;  %1410 = vrcp.f32 %v828_v7  ;;  %v663_v52 = vmul.f32 1.442695, %v589_v24  ;;  %vm730_vm10 = vcmp.ge.f32.partialorder %v2087_v38, 0.0 }
 0x156   :  { %v1391_v0 = vpop.eup %1390  ;;  %998 = vst.msk [vmem:[%s2362_s3 + $0x148] sm:$0xff] %vm956_vm1, %v941_v39  ;;  %v854_v22 = vadd.f32 1.0, %v2255_v2  ;;  %v779_v43 = vsel %vm730_vm10, 1.0, %v2240_v10  ;;  %vm756_vm11 = vcmp.ge.f32.partialorder %v2113_v6, 0.0  ;;  %vm731_vm12 = vcmp.ge.f32.partialorder %v2117_v17, 0.0 }
 0x157   :  { %v1393_v26 = vpop.eup %1392  ;;  %973 = vst.msk [vmem:[%s2362_s3 + $0x80] sm:$0xff] %vm956_vm1, %v891_v9  ;;  %v943_v35 = vmul.f32 %v1391_v0, %v802_v36  ;;  %v805_v38 = vsel %vm756_vm11, 1.0, %v2255_v2  ;;  %vm757_vm13 = vcmp.ge.f32.partialorder %v2164_v18, 0.0  ;;  %vm732_vm14 = vcmp.ge.f32.partialorder %v2180_v47, 0.0 }
 0x158   :  { %1412 = vrcp.f32 %v854_v22  ;;  %v829_v15 = vadd.f32 1.0, %v1393_v26  ;;  %v780_v45 = vsel %vm731_vm12, 1.0, %v1393_v26  ;;  %vm758_vm15 = vcmp.ge.f32.partialorder %v2184_v58, 0.0 }
 0x159   :  { %999 = vst.msk [vmem:[%s2362_s3 + $0x150] sm:$0xff] %vm956_vm1, %v943_v35  ;;  %1414 = vpow2.f32 %v709_v31  ;;  %v1395_v49 = vpop.eup %1394  ;;  %vm733_vm0 = vcmp.ge.f32.partialorder %v2188_v16, 0.0  ;;  %vm759_vm2 = vcmp.ge.f32.partialorder %v2228_v61, 0.0  ;;  %vm734_vm3 = vcmp.ge.f32.partialorder %v2234_v62, 0.0 }
 0x15a   :  { %1416 = vrcp.f32 %v829_v15  ;;  %v1397_v40 = vpop.eup %1396  ;;  %v893_v63 = vmul.f32 %v1395_v49, %v777_v56  ;;  %vm735_vm4 = vcmp.ge.f32.partialorder %v2238_v12, 0.0  ;;  %vm736_vm5 = vcmp.ge.f32.partialorder %v2271_v5, 0.0 }
 0x15b   :  { %1418 = vpow2.f32 %v659_v42  ;;  %v1399_v44 = vpop.eup %1398  ;;  %v855_v3 = vadd.f32 1.0, %v1397_v40  ;;  %v806_v39 = vsel %vm757_vm13, 1.0, %v1397_v40 }
 0x15c   :  { %1420 = vpow2.f32 %v661_v4  ;;  %v1401_v23 = vpop.eup %1400  ;;  %974 = vst.msk [vmem:[%s2362_s3 + $0x88] sm:$0xff] %vm956_vm1, %v893_v63  ;;  %v945_v33 = vmul.f32 %v1399_v44, %v803_v21 }
 0x15d   :  { %v1403_v19 = vpop.eup %1402  ;;  %1422 = vrcp.f32 %v855_v3  ;;  %v830_v8 = vadd.f32 1.0, %v1401_v23  ;;  %v781_v9 = vsel %vm732_vm14, 1.0, %v1401_v23 }
 0x15e   :  { %v1405_v46 = vpop.eup %1404  ;;  %1000 = vst.msk [vmem:[%s2362_s3 + $0x158] sm:$0xff] %vm956_vm1, %v945_v33  ;;  %v895_v55 = vmul.f32 %v1403_v19, %v778_v29  ;;  %1424 = vpow2.f32 %v663_v52 }
 0x15f   :  { %v1407_v37 = vpop.eup %1406  ;;  %1426 = vrcp.f32 %v830_v8  ;;  %v856_v59 = vadd.f32 1.0, %v1405_v46  ;;  %v807_v36 = vsel %vm758_vm15, 1.0, %v1405_v46 }
 0x160   :  { %975 = vst.msk [vmem:[%s2362_s3 + $0x90] sm:$0xff] %vm956_vm1, %v895_v55  ;;  %v831_v57 = vadd.f32 1.0, %v1407_v37  ;;  %v782_v31 = vsel %vm733_vm0, 1.0, %v1407_v37 }
 0x161   :  { %v1409_v51 = vpop.eup %1408  ;;  %1428 = vrcp.f32 %v856_v59 }
 0x162   :  { %v1411_v50 = vpop.eup %1410  ;;  %v947_v60 = vmul.f32 %v1409_v51, %v804_v34  ;;  %1430 = vrcp.f32 %v831_v57 }
 0x163   :  { %v897_v32 = vmul.f32 %v1411_v50, %v779_v43 }
 0x164   :  { %1001 = vst.msk [vmem:[%s2362_s3 + $0x160] sm:$0xff] %vm956_vm1, %v947_v60 }
 0x165   :  { %v1413_v25 = vpop.eup %1412  ;;  %976 = vst.msk [vmem:[%s2362_s3 + $0x98] sm:$0xff] %vm956_vm1, %v897_v32 }
 0x166   :  { %v1415_v41 = vpop.eup %1414  ;;  %v949_v10 = vmul.f32 %v1413_v25, %v805_v38 }
 0x167   :  { %v1417_v13 = vpop.eup %1416  ;;  %v857_v54 = vadd.f32 1.0, %v1415_v41  ;;  %v808_v16 = vsel %vm759_vm2, 1.0, %v1415_v41 }
 0x168   :  { %v1419_v27 = vpop.eup %1418  ;;  %1002 = vst.msk [vmem:[%s2362_s3 + $0x168] sm:$0xff] %vm956_vm1, %v949_v10  ;;  %v899_v6 = vmul.f32 %v1417_v13, %v780_v45 }
 0x169   :  { %v1421_v48 = vpop.eup %1420  ;;  %1432 = vrcp.f32 %v857_v54  ;;  %v832_v7 = vadd.f32 1.0, %v1419_v27  ;;  %v783_v14 = vsel %vm734_vm3, 1.0, %v1419_v27 }
 0x16a   :  { %977 = vst.msk [vmem:[%s2362_s3 + $0xa0] sm:$0xff] %vm956_vm1, %v899_v6  ;;  %v833_v17 = vadd.f32 1.0, %v1421_v48  ;;  %v1423_v28 = vpop.eup %1422  ;;  %v784_v4 = vsel %vm735_vm4, 1.0, %v1421_v48 }
 0x16b   :  { %1434 = vrcp.f32 %v832_v7  ;;  %v1425_v30 = vpop.eup %1424  ;;  %v951_v1 = vmul.f32 %v1423_v28, %v806_v39 }
 0x16c   :  { %1436 = vrcp.f32 %v833_v17  ;;  %v1427_v2 = vpop.eup %1426  ;;  %v834_v11 = vadd.f32 1.0, %v1425_v30  ;;  %v785_v62 = vsel %vm736_vm5, 1.0, %v1425_v30 }
 0x16d   :  { %1003 = vst.msk [vmem:[%s2362_s3 + $0x170] sm:$0xff] %vm956_vm1, %v951_v1  ;;  %v901_v0 = vmul.f32 %v1427_v2, %v781_v9 }
 0x16e   :  { %v1429_v18 = vpop.eup %1428  ;;  %1438 = vrcp.f32 %v834_v11 }
 0x16f   :  { %v1431_v22 = vpop.eup %1430  ;;  %978 = vst.msk [vmem:[%s2362_s3 + $0xa8] sm:$0xff] %vm956_vm1, %v901_v0  ;;  %v953_v47 = vmul.f32 %v1429_v18, %v807_v36 }
 0x170   :  { %v903_v53 = vmul.f32 %v1431_v22, %v782_v31 }
 0x171   :  { %1004 = vst.msk [vmem:[%s2362_s3 + $0x178] sm:$0xff] %vm956_vm1, %v953_v47 }
 0x172   :  { %979 = vst.msk [vmem:[%s2362_s3 + $0xb0] sm:$0xff] %vm956_vm1, %v903_v53 }
 0x176   :  { %v1433_v58 = vpop.eup %1432 }
 0x177   :  { %v955_v26 = vmul.f32 %v1433_v58, %v808_v16 }
 0x178   :  { %v1435_v35 = vpop.eup %1434 }
 0x179   :  { %v1437_v15 = vpop.eup %1436  ;;  %1005 = vst.msk [vmem:[%s2362_s3 + $0x180] sm:$0xff] %vm956_vm1, %v955_v26  ;;  %v905_v42 = vmul.f32 %v1435_v35, %v783_v14 }
 0x17a   :  { %v907_v20 = vmul.f32 %v1437_v15, %v784_v4 }
 0x17b   :  { %980 = vst.msk [vmem:[%s2362_s3 + $0xb8] sm:$0xff] %vm956_vm1, %v905_v42  ;;  %v1439_v61 = vpop.eup %1438 }
 0x17c   :  { %981 = vst.msk [vmem:[%s2362_s3 + $0xc0] sm:$0xff] %vm956_vm1, %v907_v20  ;;  %v909_v12 = vmul.f32 %v1439_v61, %v785_v62 }
 0x17e   :  { %982 = vst.msk [vmem:[%s2362_s3 + $0xc8] sm:$0xff] %vm956_vm1, %v909_v12 }

// kernel: forward.7
= control target key start
LH: loop header
LB: loop body
LE: loop exit
PB: predicated region body
PF: predicated region fallthrough
CT: control target
= control target key end

     0   :  { %s11884_s0 = inlined_call_operand.vmem [shape: bf16[2,3136], index: 0, kind: input, shape index: {}]   ;;  %s11885_s1 = inlined_call_operand.vmem [shape: bf16[3136,256], index: 1, kind: input, shape index: {}]   ;;  %s11886_s2 = inlined_call_operand.vmem [shape: f32[1,256], index: 2, kind: input, shape index: {}]   ;;  %s11887_s3 = inlined_call_operand.vmem [shape: f32[256,40], index: 3, kind: input, shape index: {}]   ;;  %s11888_s4 = inlined_call_operand.vmem [shape: f32[1,40], index: 4, kind: input, shape index: {}]   ;;  %s11889_s5 = inlined_call_operand.vmem [shape: f32[2,20], index: 5, kind: input, shape index: {}]   ;;  %s11890_s6 = inlined_call_operand.vmem [shape: f32[20,11], index: 6, kind: input, shape index: {}]   ;;  %s11891_s7 = inlined_call_operand.vmem [shape: f32[1,11], index: 7, kind: input, shape index: {}]   ;;  %s11892_s8 = inlined_call_operand.vmem [shape: f32[20,256], index: 8, kind: input, shape index: {}]   ;;  %s11893_s9 = inlined_call_operand.vmem [shape: f32[1,256], index: 9, kind: input, shape index: {}]   ;;  %s11894_s10 = inlined_call_operand.vmem [shape: bf16[256,3136], index: 10, kind: input, shape index: {}]   ;;  %s11895_s11 = inlined_call_operand.vmem [shape: f32[1,3136], index: 11, kind: input, shape index: {}]   ;;  %s11896_s12 = inlined_call_operand.hbm [shape: f32[2,20], index: 12, kind: output, shape index: {0}]   ;;  %s11897_s13 = inlined_call_operand.hbm [shape: f32[2,20], index: 13, kind: output, shape index: {1}]   ;;  %s11898_s14 = inlined_call_operand.vmem [shape: f32[2,20], index: 14, kind: output, shape index: {2}]   ;;  %s11899_s15 = inlined_call_operand.hbm [shape: f32[2,10], index: 15, kind: output, shape index: {3}]   ;;  %s11900_s16 = inlined_call_operand.vmem [shape: f32[2,1], index: 16, kind: output, shape index: {4}]   ;;  %s11901_s17 = inlined_call_operand.vmem [shape: bf16[2,3136], index: 17, kind: output, shape index: {5}]  }
   0x1   :  { %11904 = sst [smem:[#allocation9_spill]] %s11884_s0 }
   0x2   :  { %11905 = sst [smem:[#allocation10_spill]] %s11885_s1 }
   0x3   :  { %23 = vsyncpa [#allocation3], 0  ;;  %s11906_s26 = sld [smem:[#allocation10_spill]]  ;;  %v448_v36 = vlaneseq  ;;  %v9005_v37 = vmov 1966171168   ;;  %vm2607_vm0 = vcmask 523264  }
   0x4   :  { %v464_v38 = vunpack.c.l.s4 %v9005_v37  ;;  %s11907_s20 = sld [smem:[#allocation9_spill]] }
   0x5   :  { %v9221_v42 = vshrl.u32 %v448_v36, 7 }
   0x6   :  { %v465_v43 = vunpack.c.0.s8 %v464_v38 }
   0x8   :  { %v9239_v49 = vsub.s32 %v465_v43, %v9221_v42 }
   0x9   :  { %v7756_v0 = vld [vmem:[%s11906_s26 + $0x74] ss:$8 sps:$4 sm:$0xff]   ;;  %v7760_v2 = vld [vmem:[%s11906_s26 + $0x70] ss:$8 sps:$4 sm:$0xff]   ;;  %v7762_v4 = vld [vmem:[%s11906_s26 + $0x64] ss:$8 sps:$4 sm:$0xff]  }
   0xa   :  { %v7758_v1 = vld [vmem:[%s11906_s26 + $0x174] ss:$8 sps:$4 sm:$0xff]   ;;  %2611 = vmatprep.subr.bf16.mxu0 %v7756_v0  ;;  %v7761_v3 = vld [vmem:[%s11906_s26 + $0x170] ss:$8 sps:$4 sm:$0xff]   ;;  %v7764_v5 = vld [vmem:[%s11906_s26 + $0x164] ss:$8 sps:$4 sm:$0xff]  }
   0xb   :  { %2652 = vmatprep.subr.bf16.mxu1 %v7758_v1  ;;  %2612 = vmatpush1.bf16.msra.mxu0 %v7760_v2  ;;  %v7766_v6 = vld [vmem:[%s11906_s26 + $0x60] ss:$8 sps:$4 sm:$0xff]   ;;  %v7768_v8 = vld [vmem:[%s11906_s26 + $0x54] ss:$8 sps:$4 sm:$0xff]   ;;  %v7772_v10 = vld [vmem:[%s11906_s26 + $0x50] ss:$8 sps:$4 sm:$0xff]  }
   0xc   :  { %2653 = vmatpush1.bf16.msra.mxu1 %v7761_v3  ;;  %2613 = vmatprep.subr.bf16.mxu0 %v7762_v4  ;;  %v7767_v7 = vld [vmem:[%s11906_s26 + $0x160] ss:$8 sps:$4 sm:$0xff]   ;;  %v7770_v9 = vld [vmem:[%s11906_s26 + $0x154] ss:$8 sps:$4 sm:$0xff]   ;;  %v7773_v11 = vld [vmem:[%s11906_s26 + $0x150] ss:$8 sps:$4 sm:$0xff]  }
   0xd   :  { %2654 = vmatprep.subr.bf16.mxu1 %v7764_v5  ;;  %v7774_v12 = vld [vmem:[%s11906_s26 + $0x44] ss:$8 sps:$4 sm:$0xff]   ;;  %v7778_v14 = vld [vmem:[%s11906_s26 + $0x40] ss:$8 sps:$4 sm:$0xff]   ;;  %v7780_v16 = vld [vmem:[%s11906_s26 + $0x34] ss:$8 sps:$4 sm:$0xff]  }
   0xe   :  { %v7776_v13 = vld [vmem:[%s11906_s26 + $0x144] ss:$8 sps:$4 sm:$0xff]   ;;  %v7779_v15 = vld [vmem:[%s11906_s26 + $0x140] ss:$8 sps:$4 sm:$0xff]   ;;  %v7782_v17 = vld [vmem:[%s11906_s26 + $0x134] ss:$8 sps:$4 sm:$0xff]  }
   0xf   :  { %2614 = vmatpush1.bf16.msra.mxu0 %v7766_v6  ;;  %v7784_v18 = vld [vmem:[%s11906_s26 + $0x30] ss:$8 sps:$4 sm:$0xff]   ;;  %v7786_v20 = vld [vmem:[%s11906_s26 + $0x24] ss:$8 sps:$4 sm:$0xff]   ;;  %v7790_v22 = vld [vmem:[%s11906_s26 + $0x20] ss:$8 sps:$4 sm:$0xff]  }
  0x10   :  { %2655 = vmatpush1.bf16.msra.mxu1 %v7767_v7  ;;  %2615 = vmatprep.subr.bf16.mxu0 %v7768_v8  ;;  %v7785_v19 = vld [vmem:[%s11906_s26 + $0x130] ss:$8 sps:$4 sm:$0xff]   ;;  %v7788_v21 = vld [vmem:[%s11906_s26 + $0x124] ss:$8 sps:$4 sm:$0xff]   ;;  %v7791_v23 = vld [vmem:[%s11906_s26 + $0x120] ss:$8 sps:$4 sm:$0xff]  }
  0x11   :  { %2656 = vmatprep.subr.bf16.mxu1 %v7770_v9  ;;  %v7792_v24 = vld [vmem:[%s11906_s26 + $0x14] ss:$8 sps:$4 sm:$0xff]   ;;  %v7796_v26 = vld [vmem:[%s11906_s26 + $0x10] ss:$8 sps:$4 sm:$0xff]   ;;  %v7798_v28 = vld [vmem:[%s11906_s26 + $0x4] ss:$8 sps:$4 sm:$0xff]  }
  0x12   :  { %v7794_v25 = vld [vmem:[%s11906_s26 + $0x114] ss:$8 sps:$4 sm:$0xff]   ;;  %v7797_v27 = vld [vmem:[%s11906_s26 + $0x110] ss:$8 sps:$4 sm:$0xff]   ;;  %v7800_v29 = vld [vmem:[%s11906_s26 + $0x104] ss:$8 sps:$4 sm:$0xff]  }
  0x13   :  { %2616 = vmatpush1.bf16.msra.mxu0 %v7772_v10  ;;  %v7802_v30 = vld [vmem:[%s11906_s26] ss:$8 sps:$4 sm:$0xff]   ;;  %v7804_v32 = vld [vmem:[%s11906_s26 + $0xf4] ss:$8 sps:$4 sm:$0xff]   ;;  %v7808_v34 = vld [vmem:[%s11906_s26 + $0xf0] ss:$8 sps:$4 sm:$0xff]  }
  0x14   :  { %2657 = vmatpush1.bf16.msra.mxu1 %v7773_v11  ;;  %2617 = vmatprep.subr.bf16.mxu0 %v7774_v12  ;;  %v7803_v31 = vld [vmem:[%s11906_s26 + $0x100] ss:$8 sps:$4 sm:$0xff]   ;;  %v7806_v33 = vld [vmem:[%s11906_s26 + $0x1f4] ss:$8 sps:$4 sm:$0xff]   ;;  %v7809_v35 = vld [vmem:[%s11906_s26 + $0x1f0] ss:$8 sps:$4 sm:$0xff]  }
  0x15   :  { %2658 = vmatprep.subr.bf16.mxu1 %v7776_v13  ;;  %v7810_v39 = vld [vmem:[%s11906_s26 + $0xe4] ss:$8 sps:$4 sm:$0xff]   ;;  %v7814_v41 = vld [vmem:[%s11906_s26 + $0xe0] ss:$8 sps:$4 sm:$0xff]   ;;  %v7816_v45 = vld [vmem:[%s11906_s26 + $0xd4] ss:$8 sps:$4 sm:$0xff]  }
  0x16   :  { %v7812_v40 = vld [vmem:[%s11906_s26 + $0x1e4] ss:$8 sps:$4 sm:$0xff]   ;;  %v7815_v44 = vld [vmem:[%s11906_s26 + $0x1e0] ss:$8 sps:$4 sm:$0xff]   ;;  %v7818_v46 = vld [vmem:[%s11906_s26 + $0x1d4] ss:$8 sps:$4 sm:$0xff]  }
  0x17   :  { %2618 = vmatpush1.bf16.msra.mxu0 %v7778_v14  ;;  %v7820_v47 = vld [vmem:[%s11906_s26 + $0xd0] ss:$8 sps:$4 sm:$0xff]   ;;  %v7822_v50 = vld [vmem:[%s11906_s26 + $0xc4] ss:$8 sps:$4 sm:$0xff]   ;;  %v7826_v53 = vld [vmem:[%s11906_s26 + $0xc0] ss:$8 sps:$4 sm:$0xff]  }
  0x18   :  { %2659 = vmatpush1.bf16.msra.mxu1 %v7779_v15  ;;  %2619 = vmatprep.subr.bf16.mxu0 %v7780_v16  ;;  %v7821_v48 = vld [vmem:[%s11906_s26 + $0x1d0] ss:$8 sps:$4 sm:$0xff]   ;;  %v7824_v51 = vld [vmem:[%s11906_s26 + $0x1c4] ss:$8 sps:$4 sm:$0xff]   ;;  %v7827_v55 = vld [vmem:[%s11906_s26 + $0x1c0] ss:$8 sps:$4 sm:$0xff]  }
  0x19   :  { %2660 = vmatprep.subr.bf16.mxu1 %v7782_v17  ;;  %v50_v52 = vld [vmem:[%s11907_s20] sm:$0xff]  ;;  %v7828_v56 = vld [vmem:[%s11906_s26 + $0xb4] ss:$8 sps:$4 sm:$0xff]   ;;  %v7832_v59 = vld [vmem:[%s11906_s26 + $0xb0] ss:$8 sps:$4 sm:$0xff]  }
  0x1a   :  { %v469_v54 = vrot.slane %v50_v52, %v9239_v49  ;;  %v7830_v57 = vld [vmem:[%s11906_s26 + $0x1b4] ss:$8 sps:$4 sm:$0xff]   ;;  %v7833_v61 = vld [vmem:[%s11906_s26 + $0x1b0] ss:$8 sps:$4 sm:$0xff]   ;;  %v7834_v62 = vld [vmem:[%s11906_s26 + $0xa4] ss:$8 sps:$4 sm:$0xff]   ;;  %v462_v1 = vcombine.high %v50_v52, %v50_v52 }
  0x1b   :  { %2620 = vmatpush1.bf16.msra.mxu0 %v7784_v18  ;;  %v7836_v63 = vld [vmem:[%s11906_s26 + $0x1a4] ss:$8 sps:$4 sm:$0xff]   ;;  %v7838_v2 = vld [vmem:[%s11906_s26 + $0xa0] ss:$8 sps:$4 sm:$0xff]   ;;  %v7840_v4 = vld [vmem:[%s11906_s26 + $0x94] ss:$8 sps:$4 sm:$0xff]  }
  0x1c   :  { %2661 = vmatpush1.bf16.msra.mxu1 %v7785_v19  ;;  %2621 = vmatprep.subr.bf16.mxu0 %v7786_v20  ;;  %v477_v58 = vcombine.high %v469_v54, %v469_v54  ;;  %v7839_v3 = vld [vmem:[%s11906_s26 + $0x1a0] ss:$8 sps:$4 sm:$0xff]   ;;  %v7842_v5 = vld [vmem:[%s11906_s26 + $0x194] ss:$8 sps:$4 sm:$0xff]   ;;  %v9289_v6 = vrot.slane %v462_v1, %v9239_v49  ;;  %v7844_v7 = vld [vmem:[%s11906_s26 + $0x90] ss:$8 sps:$4 sm:$0xff]   ;;  %v485_v13 = vrot.slane %v469_v54, %v9239_v49 }
  0x1d   :  { %2662 = vmatprep.subr.bf16.mxu1 %v7788_v21  ;;  %v7845_v8 = vld [vmem:[%s11906_s26 + $0x190] ss:$8 sps:$4 sm:$0xff]   ;;  %v7846_v9 = vld [vmem:[%s11906_s26 + $0x84] ss:$8 sps:$4 sm:$0xff]   ;;  %v7850_v12 = vld [vmem:[%s11906_s26 + $0x80] ss:$8 sps:$4 sm:$0xff]  }
  0x1e   :  { %v499_v60 = vrot.slane %v477_v58, %v9239_v49  ;;  %v7848_v10 = vld [vmem:[%s11906_s26 + $0x184] ss:$8 sps:$4 sm:$0xff]   ;;  %v478_v11 = vcombine.high %v9289_v6, %v9289_v6  ;;  %v7851_v14 = vld [vmem:[%s11906_s26 + $0x180] ss:$8 sps:$4 sm:$0xff]   ;;  %v7855_v15 = vld [vmem:[%s11906_s26 + $0x274] ss:$8 sps:$4 sm:$0xff]   ;;  %v507_v18 = vcombine.high %v485_v13, %v485_v13 }
  0x1f   :  { %2622 = vmatpush1.bf16.msra.mxu0 %v7790_v22  ;;  %v7858_v16 = vld [vmem:[%s11906_s26 + $0x374] ss:$8 sps:$4 sm:$0xff]   ;;  %v7853_v19 = vld [vmem:[%s11906_s26 + $0x270] ss:$8 sps:$4 sm:$0xff]   ;;  %v7861_v21 = vld [vmem:[%s11906_s26 + $0x264] ss:$8 sps:$4 sm:$0xff]  }
  0x20   :  { %2663 = vmatpush1.bf16.msra.mxu1 %v7791_v23  ;;  %2623 = vmatprep.subr.bf16.mxu0 %v7792_v24  ;;  %v509_v0 = vcombine.high %v499_v60, %v499_v60  ;;  %v506_v17 = vrot.slane %v478_v11, %v9239_v49  ;;  %v7856_v20 = vld [vmem:[%s11906_s26 + $0x370] ss:$8 sps:$4 sm:$0xff]   ;;  %v7864_v22 = vld [vmem:[%s11906_s26 + $0x364] ss:$8 sps:$4 sm:$0xff]   ;;  %v7859_v24 = vld [vmem:[%s11906_s26 + $0x260] ss:$8 sps:$4 sm:$0xff]  }
  0x21   :  { %2664 = vmatprep.subr.bf16.mxu1 %v7794_v25  ;;  %2643 = vmatprep.mubr.bf16.mxu0 %v499_v60  ;;  %v7862_v25 = vld [vmem:[%s11906_s26 + $0x360] ss:$8 sps:$4 sm:$0xff]   ;;  %v7877_v36 = vld [vmem:[%s11906_s26 + $0x230] ss:$8 sps:$4 sm:$0xff]   ;;  %v7885_v38 = vld [vmem:[%s11906_s26 + $0x224] ss:$8 sps:$4 sm:$0xff]  }
  0x22   :  { %2684 = vmatprep.mubr.bf16.mxu1 %v509_v0  ;;  %v510_v23 = vcombine.high %v506_v17, %v506_v17  ;;  %v7880_v37 = vld [vmem:[%s11906_s26 + $0x330] ss:$8 sps:$4 sm:$0xff]   ;;  %v7891_v43 = vld [vmem:[%s11906_s26 + $0x214] ss:$8 sps:$4 sm:$0xff]   ;;  %v7907_v58 = vld [vmem:[%s11906_s26 + $0x2e0] ss:$8 sps:$4 sm:$0xff]  }
  0x23   :  { %2624 = vmatpush1.bf16.msra.mxu0 %v7796_v26  ;;  %v7867_v26 = vld [vmem:[%s11906_s26 + $0x254] ss:$8 sps:$4 sm:$0xff]   ;;  %v7901_v54 = vld [vmem:[%s11906_s26 + $0x2f0] ss:$8 sps:$4 sm:$0xff]   ;;  %v7921_v0 = vld [vmem:[%s11906_s26 + $0x2c4] ss:$8 sps:$4 sm:$0xff]  }
  0x24   :  { %2665 = vmatpush1.bf16.msra.mxu1 %v7797_v27  ;;  %2625 = vmatprep.subr.bf16.mxu0 %v7798_v28  ;;  %v7870_v27 = vld [vmem:[%s11906_s26 + $0x354] ss:$8 sps:$4 sm:$0xff]   ;;  %v7865_v28 = vld [vmem:[%s11906_s26 + $0x250] ss:$8 sps:$4 sm:$0xff]   ;;  %v7924_v1 = vld [vmem:[%s11906_s26 + $0x3c4] ss:$8 sps:$4 sm:$0xff]  }
  0x25   :  { %2666 = vmatprep.subr.bf16.mxu1 %v7800_v29  ;;  %v7868_v29 = vld [vmem:[%s11906_s26 + $0x350] ss:$8 sps:$4 sm:$0xff]   ;;  %v7903_v52 = vld [vmem:[%s11906_s26 + $0x2f4] ss:$8 sps:$4 sm:$0xff]   ;;  %v7931_v11 = vld [vmem:[%s11906_s26 + $0x2a0] ss:$8 sps:$4 sm:$0xff]  }
  0x26   :  { %v7915_v60 = vld [vmem:[%s11906_s26 + $0x2d4] ss:$8 sps:$4 sm:$0xff]  }
  0x27   :  { %2626 = vmatpush1.bf16.msra.mxu0 %v7802_v30  ;;  %v7873_v30 = vld [vmem:[%s11906_s26 + $0x244] ss:$8 sps:$4 sm:$0xff]  }
  0x28   :  { %2667 = vmatpush1.bf16.msra.mxu1 %v7803_v31  ;;  %2627 = vmatprep.subr.bf16.mxu0 %v7804_v32  ;;  %v7876_v31 = vld [vmem:[%s11906_s26 + $0x344] ss:$8 sps:$4 sm:$0xff]   ;;  %v7871_v32 = vld [vmem:[%s11906_s26 + $0x240] ss:$8 sps:$4 sm:$0xff]  }
  0x29   :  { %2668 = vmatprep.subr.bf16.mxu1 %v7806_v33  ;;  %v7874_v33 = vld [vmem:[%s11906_s26 + $0x340] ss:$8 sps:$4 sm:$0xff]  }
  0x2b   :  { %2628 = vmatpush2.bf16.msra.mxu0 %v7808_v34  ;;  %v7879_v34 = vld [vmem:[%s11906_s26 + $0x234] ss:$8 sps:$4 sm:$0xff]  }
  0x2c   :  { %2669 = vmatpush2.bf16.msra.mxu1 %v7809_v35  ;;  %2629 = vmatprep.subr.bf16.mxu0 %v7810_v39  ;;  %v7882_v35 = vld [vmem:[%s11906_s26 + $0x334] ss:$8 sps:$4 sm:$0xff]   ;;  %v7888_v39 = vld [vmem:[%s11906_s26 + $0x324] ss:$8 sps:$4 sm:$0xff]  }
  0x2d   :  { %2670 = vmatprep.subr.bf16.mxu1 %v7812_v40  ;;  %v7883_v40 = vld [vmem:[%s11906_s26 + $0x220] ss:$8 sps:$4 sm:$0xff]  }
  0x2f   :  { %2630 = vmatpush2.bf16.msra.mxu0 %v7814_v41  ;;  %v7886_v41 = vld [vmem:[%s11906_s26 + $0x320] ss:$8 sps:$4 sm:$0xff]  }
  0x30   :  { %2671 = vmatpush2.bf16.msra.mxu1 %v7815_v44  ;;  %2631 = vmatprep.subr.bf16.mxu0 %v7816_v45  ;;  %v7894_v44 = vld [vmem:[%s11906_s26 + $0x314] ss:$8 sps:$4 sm:$0xff]   ;;  %v7889_v45 = vld [vmem:[%s11906_s26 + $0x210] ss:$8 sps:$4 sm:$0xff]  }
  0x31   :  { %2672 = vmatprep.subr.bf16.mxu1 %v7818_v46  ;;  %v7892_v46 = vld [vmem:[%s11906_s26 + $0x310] ss:$8 sps:$4 sm:$0xff]  }
  0x33   :  { %2632 = vmatpush2.bf16.msra.mxu0 %v7820_v47  ;;  %v7897_v47 = vld [vmem:[%s11906_s26 + $0x204] ss:$8 sps:$4 sm:$0xff]  }
  0x34   :  { %2673 = vmatpush2.bf16.msra.mxu1 %v7821_v48  ;;  %2633 = vmatprep.subr.bf16.mxu0 %v7822_v50  ;;  %v7900_v48 = vld [vmem:[%s11906_s26 + $0x304] ss:$8 sps:$4 sm:$0xff]   ;;  %v7895_v50 = vld [vmem:[%s11906_s26 + $0x200] ss:$8 sps:$4 sm:$0xff]  }
  0x35   :  { %2674 = vmatprep.subr.bf16.mxu1 %v7824_v51  ;;  %v7898_v51 = vld [vmem:[%s11906_s26 + $0x300] ss:$8 sps:$4 sm:$0xff]  }
  0x37   :  { %2634 = vmatpush2.bf16.msra.mxu0 %v7826_v53  ;;  %v7906_v53 = vld [vmem:[%s11906_s26 + $0x3f4] ss:$8 sps:$4 sm:$0xff]  }
  0x38   :  { %2675 = vmatpush2.bf16.msra.mxu1 %v7827_v55  ;;  %2635 = vmatprep.subr.bf16.mxu0 %v7828_v56  ;;  %v7904_v55 = vld [vmem:[%s11906_s26 + $0x3f0] ss:$8 sps:$4 sm:$0xff]   ;;  %v7909_v56 = vld [vmem:[%s11906_s26 + $0x2e4] ss:$8 sps:$4 sm:$0xff]  }
  0x39   :  { %2676 = vmatprep.subr.bf16.mxu1 %v7830_v57  ;;  %v7912_v57 = vld [vmem:[%s11906_s26 + $0x3e4] ss:$8 sps:$4 sm:$0xff]  }
  0x3b   :  { %2636 = vmatpush2.bf16.msra.mxu0 %v7832_v59  ;;  %v7910_v59 = vld [vmem:[%s11906_s26 + $0x3e0] ss:$8 sps:$4 sm:$0xff]  }
  0x3c   :  { %2677 = vmatpush2.bf16.msra.mxu1 %v7833_v61  ;;  %2637 = vmatprep.subr.bf16.mxu0 %v7834_v62  ;;  %v7918_v61 = vld [vmem:[%s11906_s26 + $0x3d4] ss:$8 sps:$4 sm:$0xff]   ;;  %v7913_v62 = vld [vmem:[%s11906_s26 + $0x2d0] ss:$8 sps:$4 sm:$0xff]  }
  0x3d   :  { %2678 = vmatprep.subr.bf16.mxu1 %v7836_v63  ;;  %v7916_v63 = vld [vmem:[%s11906_s26 + $0x3d0] ss:$8 sps:$4 sm:$0xff]  }
  0x3f   :  { %2638 = vmatpush2.bf16.msra.mxu0 %v7838_v2  ;;  %v7919_v2 = vld [vmem:[%s11906_s26 + $0x2c0] ss:$8 sps:$4 sm:$0xff]  }
  0x40   :  { %2679 = vmatpush2.bf16.msra.mxu1 %v7839_v3  ;;  %2639 = vmatprep.subr.bf16.mxu0 %v7840_v4  ;;  %v7922_v3 = vld [vmem:[%s11906_s26 + $0x3c0] ss:$8 sps:$4 sm:$0xff]   ;;  %v7927_v4 = vld [vmem:[%s11906_s26 + $0x2b4] ss:$8 sps:$4 sm:$0xff]  }
  0x41   :  { %2680 = vmatprep.subr.bf16.mxu1 %v7842_v5  ;;  %v7930_v5 = vld [vmem:[%s11906_s26 + $0x3b4] ss:$8 sps:$4 sm:$0xff]  }
  0x43   :  { %2640 = vmatpush2.bf16.msra.mxu0 %v7844_v7  ;;  %v7925_v7 = vld [vmem:[%s11906_s26 + $0x2b0] ss:$8 sps:$4 sm:$0xff]  }
  0x44   :  { %2681 = vmatpush2.bf16.msra.mxu1 %v7845_v8  ;;  %2641 = vmatprep.subr.bf16.mxu0 %v7846_v9  ;;  %v7928_v8 = vld [vmem:[%s11906_s26 + $0x3b0] ss:$8 sps:$4 sm:$0xff]   ;;  %v7933_v9 = vld [vmem:[%s11906_s26 + $0x2a4] ss:$8 sps:$4 sm:$0xff]  }
  0x45   :  { %2682 = vmatprep.subr.bf16.mxu1 %v7848_v10  ;;  %v7936_v10 = vld [vmem:[%s11906_s26 + $0x3a4] ss:$8 sps:$4 sm:$0xff]  }
  0x47   :  { %2642 = vmatpush2.bf16.msra.mxu0 %v7850_v12  ;;  %v7934_v12 = vld [vmem:[%s11906_s26 + $0x3a0] ss:$8 sps:$4 sm:$0xff]  }
  0x48   :  { %2683 = vmatpush2.bf16.msra.mxu1 %v7851_v14  ;;  %2693 = vmatprep.subr.bf16.mxu0 %v7855_v15  ;;  %v7942_v14 = vld [vmem:[%s11906_s26 + $0x394] ss:$8 sps:$4 sm:$0xff]   ;;  %v7937_v15 = vld [vmem:[%s11906_s26 + $0x290] ss:$8 sps:$4 sm:$0xff]  }
  0x49   :  { %2734 = vmatprep.subr.bf16.mxu1 %v7858_v16  ;;  %v7940_v16 = vld [vmem:[%s11906_s26 + $0x390] ss:$8 sps:$4 sm:$0xff]  }
  0x4a   :  { %2644 = vmatmul.mubr.bf16.vlgmr.msra.gmra.mxu0 %v485_v13  ;;  %v7939_v13 = vld [vmem:[%s11906_s26 + $0x294] ss:$8 sps:$4 sm:$0xff]  }
  0x4b   :  { %2685 = vmatmul.mubr.bf16.vlgmr.msra.gmra.mxu1 %v507_v18  ;;  %2694 = vmatpush1.bf16.msra.mxu0 %v7853_v19  ;;  %v7948_v18 = vld [vmem:[%s11906_s26 + $0x384] ss:$8 sps:$4 sm:$0xff]   ;;  %v7943_v19 = vld [vmem:[%s11906_s26 + $0x280] ss:$8 sps:$4 sm:$0xff]  }
  0x4c   :  { %2735 = vmatpush1.bf16.msra.mxu1 %v7856_v20  ;;  %2695 = vmatprep.subr.bf16.mxu0 %v7861_v21  ;;  %v492_v20 = vrot.slane %v9289_v6, %v9239_v49  ;;  %v7946_v21 = vld [vmem:[%s11906_s26 + $0x380] ss:$8 sps:$4 sm:$0xff]   ;;  %v7949_v6 = vld [vmem:[%s11906_s26 + $0x470] ss:$8 sps:$4 sm:$0xff]  }
  0x4d   :  { %2736 = vmatprep.subr.bf16.mxu1 %v7864_v22  ;;  %2725 = vmatprep.mubr.bf16.mxu0 %v506_v17  ;;  %v7945_v17 = vld [vmem:[%s11906_s26 + $0x284] ss:$8 sps:$4 sm:$0xff]   ;;  %v7951_v22 = vld [vmem:[%s11906_s26 + $0x474] ss:$8 sps:$4 sm:$0xff]  }
  0x4e   :  { %2766 = vmatprep.mubr.bf16.mxu1 %v510_v23  ;;  %v7954_v23 = vld [vmem:[%s11906_s26 + $0x574] ss:$8 sps:$4 sm:$0xff]  }
  0x4f   :  { %2696 = vmatpush1.bf16.msra.mxu0 %v7859_v24  ;;  %v508_v24 = vcombine.high %v492_v20, %v492_v20 }
  0x50   :  { %2737 = vmatpush1.bf16.msra.mxu1 %v7862_v25  ;;  %2697 = vmatprep.subr.bf16.mxu0 %v7867_v26  ;;  %v7952_v25 = vld [vmem:[%s11906_s26 + $0x570] ss:$8 sps:$4 sm:$0xff]   ;;  %v9522_v26 = vld [vmem:[%s11907_s20 + $0x8] sm:$0xff] }
  0x51   :  { %2738 = vmatprep.subr.bf16.mxu1 %v7870_v27  ;;  %v7957_v27 = vld [vmem:[%s11906_s26 + $0x464] ss:$8 sps:$4 sm:$0xff]  }
  0x53   :  { %2698 = vmatpush1.bf16.msra.mxu0 %v7865_v28  ;;  %v7960_v28 = vld [vmem:[%s11906_s26 + $0x564] ss:$8 sps:$4 sm:$0xff]  }
  0x54   :  { %2739 = vmatpush1.bf16.msra.mxu1 %v7868_v29  ;;  %2699 = vmatprep.subr.bf16.mxu0 %v7873_v30  ;;  %v9532_v29 = vrot.slane %v9522_v26, %v9239_v49 }
  0x55   :  { %2740 = vmatprep.subr.bf16.mxu1 %v7876_v31  ;;  %v7955_v31 = vld [vmem:[%s11906_s26 + $0x460] ss:$8 sps:$4 sm:$0xff]  }
  0x56   :  { %v526_v30 = vcombine.high %v9532_v29, %v9532_v29 }
  0x57   :  { %2700 = vmatpush1.bf16.msra.mxu0 %v7871_v32  ;;  %v7958_v32 = vld [vmem:[%s11906_s26 + $0x560] ss:$8 sps:$4 sm:$0xff]  }
  0x58   :  { %2741 = vmatpush1.bf16.msra.mxu1 %v7874_v33  ;;  %2701 = vmatprep.subr.bf16.mxu0 %v7879_v34  ;;  %v7963_v33 = vld [vmem:[%s11906_s26 + $0x454] ss:$8 sps:$4 sm:$0xff]  }
  0x59   :  { %2742 = vmatprep.subr.bf16.mxu1 %v7882_v35  ;;  %v7966_v34 = vld [vmem:[%s11906_s26 + $0x554] ss:$8 sps:$4 sm:$0xff]   ;;  %v548_v35 = vrot.slane %v526_v30, %v9239_v49 }
  0x5b   :  { %2702 = vmatpush1.bf16.msra.mxu0 %v7877_v36  ;;  %v558_v36 = vcombine.high %v548_v35, %v548_v35 }
  0x5c   :  { %2743 = vmatpush1.bf16.msra.mxu1 %v7880_v37  ;;  %2703 = vmatprep.subr.bf16.mxu0 %v7885_v38  ;;  %v7961_v37 = vld [vmem:[%s11906_s26 + $0x450] ss:$8 sps:$4 sm:$0xff]  }
  0x5d   :  { %2744 = vmatprep.subr.bf16.mxu1 %v7888_v39  ;;  %v7964_v38 = vld [vmem:[%s11906_s26 + $0x550] ss:$8 sps:$4 sm:$0xff]   ;;  %v7969_v39 = vld [vmem:[%s11906_s26 + $0x444] ss:$8 sps:$4 sm:$0xff]  }
  0x5f   :  { %2704 = vmatpush1.bf16.msra.mxu0 %v7883_v40  ;;  %v7972_v40 = vld [vmem:[%s11906_s26 + $0x544] ss:$8 sps:$4 sm:$0xff]  }
  0x60   :  { %2745 = vmatpush1.bf16.msra.mxu1 %v7886_v41  ;;  %2705 = vmatprep.subr.bf16.mxu0 %v7891_v43  ;;  %v7967_v41 = vld [vmem:[%s11906_s26 + $0x440] ss:$8 sps:$4 sm:$0xff]  }
  0x61   :  { %2746 = vmatprep.subr.bf16.mxu1 %v7894_v44  ;;  %v7970_v43 = vld [vmem:[%s11906_s26 + $0x540] ss:$8 sps:$4 sm:$0xff]   ;;  %v7975_v44 = vld [vmem:[%s11906_s26 + $0x434] ss:$8 sps:$4 sm:$0xff]  }
  0x63   :  { %2706 = vmatpush1.bf16.msra.mxu0 %v7889_v45  ;;  %v7978_v45 = vld [vmem:[%s11906_s26 + $0x534] ss:$8 sps:$4 sm:$0xff]  }
  0x64   :  { %2747 = vmatpush1.bf16.msra.mxu1 %v7892_v46  ;;  %2707 = vmatprep.subr.bf16.mxu0 %v7897_v47  ;;  %v7973_v46 = vld [vmem:[%s11906_s26 + $0x430] ss:$8 sps:$4 sm:$0xff]  }
  0x65   :  { %2748 = vmatprep.subr.bf16.mxu1 %v7900_v48  ;;  %v7976_v47 = vld [vmem:[%s11906_s26 + $0x530] ss:$8 sps:$4 sm:$0xff]   ;;  %v7981_v48 = vld [vmem:[%s11906_s26 + $0x424] ss:$8 sps:$4 sm:$0xff]  }
  0x67   :  { %2708 = vmatpush1.bf16.msra.mxu0 %v7895_v50  ;;  %v7984_v50 = vld [vmem:[%s11906_s26 + $0x524] ss:$8 sps:$4 sm:$0xff]  }
  0x68   :  { %2749 = vmatpush1.bf16.msra.mxu1 %v7898_v51  ;;  %2709 = vmatprep.subr.bf16.mxu0 %v7903_v52  ;;  %v7979_v51 = vld [vmem:[%s11906_s26 + $0x420] ss:$8 sps:$4 sm:$0xff]  }
  0x69   :  { %2750 = vmatprep.subr.bf16.mxu1 %v7906_v53  ;;  %v7982_v52 = vld [vmem:[%s11906_s26 + $0x520] ss:$8 sps:$4 sm:$0xff]   ;;  %v7987_v53 = vld [vmem:[%s11906_s26 + $0x414] ss:$8 sps:$4 sm:$0xff]  }
  0x6b   :  { %2710 = vmatpush2.bf16.msra.mxu0 %v7901_v54  ;;  %v7990_v54 = vld [vmem:[%s11906_s26 + $0x514] ss:$8 sps:$4 sm:$0xff]  }
  0x6c   :  { %2751 = vmatpush2.bf16.msra.mxu1 %v7904_v55  ;;  %2711 = vmatprep.subr.bf16.mxu0 %v7909_v56  ;;  %v7985_v55 = vld [vmem:[%s11906_s26 + $0x410] ss:$8 sps:$4 sm:$0xff]  }
  0x6d   :  { %2752 = vmatprep.subr.bf16.mxu1 %v7912_v57  ;;  %v7988_v56 = vld [vmem:[%s11906_s26 + $0x510] ss:$8 sps:$4 sm:$0xff]   ;;  %v7993_v57 = vld [vmem:[%s11906_s26 + $0x404] ss:$8 sps:$4 sm:$0xff]  }
  0x6f   :  { %2712 = vmatpush2.bf16.msra.mxu0 %v7907_v58  ;;  %v7996_v58 = vld [vmem:[%s11906_s26 + $0x504] ss:$8 sps:$4 sm:$0xff]  }
  0x70   :  { %2753 = vmatpush2.bf16.msra.mxu1 %v7910_v59  ;;  %2713 = vmatprep.subr.bf16.mxu0 %v7915_v60  ;;  %v7991_v59 = vld [vmem:[%s11906_s26 + $0x400] ss:$8 sps:$4 sm:$0xff]  }
  0x71   :  { %2754 = vmatprep.subr.bf16.mxu1 %v7918_v61  ;;  %v7994_v60 = vld [vmem:[%s11906_s26 + $0x500] ss:$8 sps:$4 sm:$0xff]   ;;  %v7999_v61 = vld [vmem:[%s11906_s26 + $0x4f4] ss:$8 sps:$4 sm:$0xff]  }
  0x73   :  { %2714 = vmatpush2.bf16.msra.mxu0 %v7913_v62  ;;  %v8002_v62 = vld [vmem:[%s11906_s26 + $0x5f4] ss:$8 sps:$4 sm:$0xff]  }
  0x74   :  { %2755 = vmatpush2.bf16.msra.mxu1 %v7916_v63  ;;  %2715 = vmatprep.subr.bf16.mxu0 %v7921_v0  ;;  %v7997_v63 = vld [vmem:[%s11906_s26 + $0x4f0] ss:$8 sps:$4 sm:$0xff]  }
  0x75   :  { %2756 = vmatprep.subr.bf16.mxu1 %v7924_v1  ;;  %v8000_v0 = vld [vmem:[%s11906_s26 + $0x5f0] ss:$8 sps:$4 sm:$0xff]   ;;  %v8005_v1 = vld [vmem:[%s11906_s26 + $0x4e4] ss:$8 sps:$4 sm:$0xff]  }
  0x77   :  { %2716 = vmatpush2.bf16.msra.mxu0 %v7919_v2  ;;  %v8008_v2 = vld [vmem:[%s11906_s26 + $0x5e4] ss:$8 sps:$4 sm:$0xff]  }
  0x78   :  { %2757 = vmatpush2.bf16.msra.mxu1 %v7922_v3  ;;  %2717 = vmatprep.subr.bf16.mxu0 %v7927_v4  ;;  %v8003_v3 = vld [vmem:[%s11906_s26 + $0x4e0] ss:$8 sps:$4 sm:$0xff]  }
  0x79   :  { %2758 = vmatprep.subr.bf16.mxu1 %v7930_v5  ;;  %v8006_v4 = vld [vmem:[%s11906_s26 + $0x5e0] ss:$8 sps:$4 sm:$0xff]   ;;  %v8011_v5 = vld [vmem:[%s11906_s26 + $0x4d4] ss:$8 sps:$4 sm:$0xff]  }
  0x7b   :  { %2718 = vmatpush2.bf16.msra.mxu0 %v7925_v7  ;;  %v8014_v7 = vld [vmem:[%s11906_s26 + $0x5d4] ss:$8 sps:$4 sm:$0xff]  }
  0x7c   :  { %2759 = vmatpush2.bf16.msra.mxu1 %v7928_v8  ;;  %2719 = vmatprep.subr.bf16.mxu0 %v7933_v9  ;;  %v8009_v8 = vld [vmem:[%s11906_s26 + $0x4d0] ss:$8 sps:$4 sm:$0xff]  }
  0x7d   :  { %2760 = vmatprep.subr.bf16.mxu1 %v7936_v10  ;;  %v8012_v9 = vld [vmem:[%s11906_s26 + $0x5d0] ss:$8 sps:$4 sm:$0xff]   ;;  %v8017_v10 = vld [vmem:[%s11906_s26 + $0x4c4] ss:$8 sps:$4 sm:$0xff]  }
  0x7f   :  { %2720 = vmatpush2.bf16.msra.mxu0 %v7931_v11  ;;  %v8020_v11 = vld [vmem:[%s11906_s26 + $0x5c4] ss:$8 sps:$4 sm:$0xff]  }
  0x80   :  { %2761 = vmatpush2.bf16.msra.mxu1 %v7934_v12  ;;  %2721 = vmatprep.subr.bf16.mxu0 %v7939_v13  ;;  %v8015_v12 = vld [vmem:[%s11906_s26 + $0x4c0] ss:$8 sps:$4 sm:$0xff]  }
  0x81   :  { %2762 = vmatprep.subr.bf16.mxu1 %v7942_v14  ;;  %v8018_v13 = vld [vmem:[%s11906_s26 + $0x5c0] ss:$8 sps:$4 sm:$0xff]   ;;  %v8023_v14 = vld [vmem:[%s11906_s26 + $0x4b4] ss:$8 sps:$4 sm:$0xff]  }
  0x83   :  { %2722 = vmatpush2.bf16.msra.mxu0 %v7937_v15  ;;  %v8026_v15 = vld [vmem:[%s11906_s26 + $0x5b4] ss:$8 sps:$4 sm:$0xff]  }
  0x84   :  { %2763 = vmatpush2.bf16.msra.mxu1 %v7940_v16  ;;  %2723 = vmatprep.subr.bf16.mxu0 %v7945_v17  ;;  %v8021_v16 = vld [vmem:[%s11906_s26 + $0x4b0] ss:$8 sps:$4 sm:$0xff]  }
  0x85   :  { %2764 = vmatprep.subr.bf16.mxu1 %v7948_v18  ;;  %v8024_v17 = vld [vmem:[%s11906_s26 + $0x5b0] ss:$8 sps:$4 sm:$0xff]   ;;  %v8029_v18 = vld [vmem:[%s11906_s26 + $0x4a4] ss:$8 sps:$4 sm:$0xff]  }
  0x87   :  { %2724 = vmatpush2.bf16.msra.mxu0 %v7943_v19  ;;  %v8032_v19 = vld [vmem:[%s11906_s26 + $0x5a4] ss:$8 sps:$4 sm:$0xff]  }
  0x88   :  { %2765 = vmatpush2.bf16.msra.mxu1 %v7946_v21  ;;  %2775 = vmatprep.subr.bf16.mxu0 %v7951_v22  ;;  %v8027_v21 = vld [vmem:[%s11906_s26 + $0x4a0] ss:$8 sps:$4 sm:$0xff]  }
  0x89   :  { %2816 = vmatprep.subr.bf16.mxu1 %v7954_v23  ;;  %v8030_v22 = vld [vmem:[%s11906_s26 + $0x5a0] ss:$8 sps:$4 sm:$0xff]   ;;  %v8035_v23 = vld [vmem:[%s11906_s26 + $0x494] ss:$8 sps:$4 sm:$0xff]  }
  0x8a   :  { %2726 = vmatmul.mubr.bf16.vlgmr.msra.gmra.mxu0 %v492_v20  ;;  %v511_v20 = vcombine.high %v9522_v26, %v9522_v26  ;;  %v8036_v26 = vld [vmem:[%s11906_s26 + $0x590] ss:$8 sps:$4 sm:$0xff]  }
  0x8b   :  { %2767 = vmatmul.mubr.bf16.vlgmr.msra.gmra.mxu1 %v508_v24  ;;  %2776 = vmatpush1.bf16.msra.mxu0 %v7949_v6  ;;  %v8038_v24 = vld [vmem:[%s11906_s26 + $0x594] ss:$8 sps:$4 sm:$0xff]  }
  0x8c   :  { %2817 = vmatpush1.bf16.msra.mxu1 %v7952_v25  ;;  %2777 = vmatprep.subr.bf16.mxu0 %v7957_v27  ;;  %v9696_v6 = vrot.slane %v511_v20, %v9239_v49  ;;  %v8033_v25 = vld [vmem:[%s11906_s26 + $0x490] ss:$8 sps:$4 sm:$0xff]   ;;  %v8041_v27 = vld [vmem:[%s11906_s26 + $0x484] ss:$8 sps:$4 sm:$0xff]  }
  0x8d   :  { %2818 = vmatprep.subr.bf16.mxu1 %v7960_v28  ;;  %2807 = vmatprep.mubr.bf16.mxu0 %v548_v35  ;;  %v8044_v28 = vld [vmem:[%s11906_s26 + $0x584] ss:$8 sps:$4 sm:$0xff]   ;;  %v8050_v35 = vld [vmem:[%s11906_s26 + $0x774] ss:$8 sps:$4 sm:$0xff]  }
  0x8e   :  { %2848 = vmatprep.mubr.bf16.mxu1 %v558_v36  ;;  %v527_v30 = vcombine.high %v9696_v6, %v9696_v6  ;;  %v8116_v20 = vld [vmem:[%s11906_s26 + $0x7c4] ss:$8 sps:$4 sm:$0xff]  }
  0x8f   :  { %2778 = vmatpush1.bf16.msra.mxu0 %v7955_v31  ;;  %v8039_v31 = vld [vmem:[%s11906_s26 + $0x480] ss:$8 sps:$4 sm:$0xff]  }
  0x90   :  { %2819 = vmatpush1.bf16.msra.mxu1 %v7958_v32  ;;  %2779 = vmatprep.subr.bf16.mxu0 %v7963_v33  ;;  %v534_v32 = vrot.slane %v9532_v29, %v9239_v49  ;;  %v8042_v33 = vld [vmem:[%s11906_s26 + $0x580] ss:$8 sps:$4 sm:$0xff]   ;;  %v555_v36 = vrot.slane %v527_v30, %v9239_v49  ;;  %v8045_v29 = vld [vmem:[%s11906_s26 + $0x670] ss:$8 sps:$4 sm:$0xff]  }
  0x91   :  { %2820 = vmatprep.subr.bf16.mxu1 %v7966_v34  ;;  %v8047_v34 = vld [vmem:[%s11906_s26 + $0x674] ss:$8 sps:$4 sm:$0xff]   ;;  %v8123_v30 = vld [vmem:[%s11906_s26 + $0x6a0] ss:$8 sps:$4 sm:$0xff]  }
  0x93   :  { %2780 = vmatpush1.bf16.msra.mxu0 %v7961_v37  ;;  %v556_v37 = vcombine.high %v534_v32, %v534_v32 }
  0x94   :  { %2821 = vmatpush1.bf16.msra.mxu1 %v7964_v38  ;;  %2781 = vmatprep.subr.bf16.mxu0 %v7969_v39  ;;  %v8048_v38 = vld [vmem:[%s11906_s26 + $0x770] ss:$8 sps:$4 sm:$0xff]   ;;  %v8053_v39 = vld [vmem:[%s11906_s26 + $0x664] ss:$8 sps:$4 sm:$0xff]  }
  0x95   :  { %2822 = vmatprep.subr.bf16.mxu1 %v7972_v40  ;;  %v8056_v40 = vld [vmem:[%s11906_s26 + $0x764] ss:$8 sps:$4 sm:$0xff]  }
  0x97   :  { %2782 = vmatpush1.bf16.msra.mxu0 %v7967_v41  ;;  %v559_v41 = vcombine.high %v555_v36, %v555_v36 }
  0x98   :  { %2823 = vmatpush1.bf16.msra.mxu1 %v7970_v43  ;;  %2783 = vmatprep.subr.bf16.mxu0 %v7975_v44  ;;  %v8051_v43 = vld [vmem:[%s11906_s26 + $0x660] ss:$8 sps:$4 sm:$0xff]  }
  0x99   :  { %2824 = vmatprep.subr.bf16.mxu1 %v7978_v45  ;;  %v8054_v44 = vld [vmem:[%s11906_s26 + $0x760] ss:$8 sps:$4 sm:$0xff]   ;;  %v8059_v45 = vld [vmem:[%s11906_s26 + $0x654] ss:$8 sps:$4 sm:$0xff]  }
  0x9b   :  { %2784 = vmatpush1.bf16.msra.mxu0 %v7973_v46  ;;  %v8062_v46 = vld [vmem:[%s11906_s26 + $0x754] ss:$8 sps:$4 sm:$0xff]  }
  0x9c   :  { %2825 = vmatpush1.bf16.msra.mxu1 %v7976_v47  ;;  %2785 = vmatprep.subr.bf16.mxu0 %v7981_v48  ;;  %v8057_v47 = vld [vmem:[%s11906_s26 + $0x650] ss:$8 sps:$4 sm:$0xff]  }
  0x9d   :  { %2826 = vmatprep.subr.bf16.mxu1 %v7984_v50  ;;  %v8060_v48 = vld [vmem:[%s11906_s26 + $0x750] ss:$8 sps:$4 sm:$0xff]   ;;  %v8065_v50 = vld [vmem:[%s11906_s26 + $0x644] ss:$8 sps:$4 sm:$0xff]  }
  0x9f   :  { %2786 = vmatpush1.bf16.msra.mxu0 %v7979_v51  ;;  %v8068_v51 = vld [vmem:[%s11906_s26 + $0x744] ss:$8 sps:$4 sm:$0xff]  }
  0xa0   :  { %2827 = vmatpush1.bf16.msra.mxu1 %v7982_v52  ;;  %2787 = vmatprep.subr.bf16.mxu0 %v7987_v53  ;;  %v8063_v52 = vld [vmem:[%s11906_s26 + $0x640] ss:$8 sps:$4 sm:$0xff]  }
  0xa1   :  { %2828 = vmatprep.subr.bf16.mxu1 %v7990_v54  ;;  %v8066_v53 = vld [vmem:[%s11906_s26 + $0x740] ss:$8 sps:$4 sm:$0xff]   ;;  %v8071_v54 = vld [vmem:[%s11906_s26 + $0x634] ss:$8 sps:$4 sm:$0xff]  }
  0xa3   :  { %2788 = vmatpush1.bf16.msra.mxu0 %v7985_v55  ;;  %v8074_v55 = vld [vmem:[%s11906_s26 + $0x734] ss:$8 sps:$4 sm:$0xff]  }
  0xa4   :  { %2829 = vmatpush1.bf16.msra.mxu1 %v7988_v56  ;;  %2789 = vmatprep.subr.bf16.mxu0 %v7993_v57  ;;  %v8069_v56 = vld [vmem:[%s11906_s26 + $0x630] ss:$8 sps:$4 sm:$0xff]  }
  0xa5   :  { %2830 = vmatprep.subr.bf16.mxu1 %v7996_v58  ;;  %v8072_v57 = vld [vmem:[%s11906_s26 + $0x730] ss:$8 sps:$4 sm:$0xff]   ;;  %v8077_v58 = vld [vmem:[%s11906_s26 + $0x624] ss:$8 sps:$4 sm:$0xff]  }
  0xa7   :  { %2790 = vmatpush1.bf16.msra.mxu0 %v7991_v59  ;;  %v8080_v59 = vld [vmem:[%s11906_s26 + $0x724] ss:$8 sps:$4 sm:$0xff]  }
  0xa8   :  { %2831 = vmatpush1.bf16.msra.mxu1 %v7994_v60  ;;  %2791 = vmatprep.subr.bf16.mxu0 %v7999_v61  ;;  %v8075_v60 = vld [vmem:[%s11906_s26 + $0x620] ss:$8 sps:$4 sm:$0xff]  }
  0xa9   :  { %2832 = vmatprep.subr.bf16.mxu1 %v8002_v62  ;;  %v8078_v61 = vld [vmem:[%s11906_s26 + $0x720] ss:$8 sps:$4 sm:$0xff]   ;;  %v8083_v62 = vld [vmem:[%s11906_s26 + $0x614] ss:$8 sps:$4 sm:$0xff]  }
  0xab   :  { %2792 = vmatpush2.bf16.msra.mxu0 %v7997_v63  ;;  %v8086_v63 = vld [vmem:[%s11906_s26 + $0x714] ss:$8 sps:$4 sm:$0xff]  }
  0xac   :  { %2833 = vmatpush2.bf16.msra.mxu1 %v8000_v0  ;;  %2793 = vmatprep.subr.bf16.mxu0 %v8005_v1  ;;  %v8081_v0 = vld [vmem:[%s11906_s26 + $0x610] ss:$8 sps:$4 sm:$0xff]  }
  0xad   :  { %2834 = vmatprep.subr.bf16.mxu1 %v8008_v2  ;;  %v8084_v1 = vld [vmem:[%s11906_s26 + $0x710] ss:$8 sps:$4 sm:$0xff]   ;;  %v8089_v2 = vld [vmem:[%s11906_s26 + $0x604] ss:$8 sps:$4 sm:$0xff]  }
  0xaf   :  { %2794 = vmatpush2.bf16.msra.mxu0 %v8003_v3  ;;  %v8092_v3 = vld [vmem:[%s11906_s26 + $0x704] ss:$8 sps:$4 sm:$0xff]  }
  0xb0   :  { %2835 = vmatpush2.bf16.msra.mxu1 %v8006_v4  ;;  %2795 = vmatprep.subr.bf16.mxu0 %v8011_v5  ;;  %v8087_v4 = vld [vmem:[%s11906_s26 + $0x600] ss:$8 sps:$4 sm:$0xff]  }
  0xb1   :  { %2836 = vmatprep.subr.bf16.mxu1 %v8014_v7  ;;  %v8090_v5 = vld [vmem:[%s11906_s26 + $0x700] ss:$8 sps:$4 sm:$0xff]   ;;  %v8095_v7 = vld [vmem:[%s11906_s26 + $0x6f4] ss:$8 sps:$4 sm:$0xff]  }
  0xb3   :  { %2796 = vmatpush2.bf16.msra.mxu0 %v8009_v8  ;;  %v8098_v8 = vld [vmem:[%s11906_s26 + $0x7f4] ss:$8 sps:$4 sm:$0xff]  }
  0xb4   :  { %2837 = vmatpush2.bf16.msra.mxu1 %v8012_v9  ;;  %2797 = vmatprep.subr.bf16.mxu0 %v8017_v10  ;;  %v8093_v9 = vld [vmem:[%s11906_s26 + $0x6f0] ss:$8 sps:$4 sm:$0xff]  }
  0xb5   :  { %2838 = vmatprep.subr.bf16.mxu1 %v8020_v11  ;;  %v8096_v10 = vld [vmem:[%s11906_s26 + $0x7f0] ss:$8 sps:$4 sm:$0xff]   ;;  %v8101_v11 = vld [vmem:[%s11906_s26 + $0x6e4] ss:$8 sps:$4 sm:$0xff]  }
  0xb7   :  { %2798 = vmatpush2.bf16.msra.mxu0 %v8015_v12  ;;  %v8104_v12 = vld [vmem:[%s11906_s26 + $0x7e4] ss:$8 sps:$4 sm:$0xff]  }
  0xb8   :  { %2839 = vmatpush2.bf16.msra.mxu1 %v8018_v13  ;;  %2799 = vmatprep.subr.bf16.mxu0 %v8023_v14  ;;  %v8099_v13 = vld [vmem:[%s11906_s26 + $0x6e0] ss:$8 sps:$4 sm:$0xff]  }
  0xb9   :  { %2840 = vmatprep.subr.bf16.mxu1 %v8026_v15  ;;  %v8102_v14 = vld [vmem:[%s11906_s26 + $0x7e0] ss:$8 sps:$4 sm:$0xff]   ;;  %v8107_v15 = vld [vmem:[%s11906_s26 + $0x6d4] ss:$8 sps:$4 sm:$0xff]  }
  0xbb   :  { %2800 = vmatpush2.bf16.msra.mxu0 %v8021_v16  ;;  %v8110_v16 = vld [vmem:[%s11906_s26 + $0x7d4] ss:$8 sps:$4 sm:$0xff]  }
  0xbc   :  { %2841 = vmatpush2.bf16.msra.mxu1 %v8024_v17  ;;  %2801 = vmatprep.subr.bf16.mxu0 %v8029_v18  ;;  %v8105_v17 = vld [vmem:[%s11906_s26 + $0x6d0] ss:$8 sps:$4 sm:$0xff]  }
  0xbd   :  { %2842 = vmatprep.subr.bf16.mxu1 %v8032_v19  ;;  %v8108_v18 = vld [vmem:[%s11906_s26 + $0x7d0] ss:$8 sps:$4 sm:$0xff]   ;;  %v8113_v19 = vld [vmem:[%s11906_s26 + $0x6c4] ss:$8 sps:$4 sm:$0xff]  }
  0xbf   :  { %2802 = vmatpush2.bf16.msra.mxu0 %v8027_v21  ;;  %v8111_v21 = vld [vmem:[%s11906_s26 + $0x6c0] ss:$8 sps:$4 sm:$0xff]  }
  0xc0   :  { %2843 = vmatpush2.bf16.msra.mxu1 %v8030_v22  ;;  %2803 = vmatprep.subr.bf16.mxu0 %v8035_v23  ;;  %v8114_v22 = vld [vmem:[%s11906_s26 + $0x7c0] ss:$8 sps:$4 sm:$0xff]   ;;  %v8119_v23 = vld [vmem:[%s11906_s26 + $0x6b4] ss:$8 sps:$4 sm:$0xff]  }
  0xc1   :  { %2844 = vmatprep.subr.bf16.mxu1 %v8038_v24  ;;  %v8122_v24 = vld [vmem:[%s11906_s26 + $0x7b4] ss:$8 sps:$4 sm:$0xff]  }
  0xc3   :  { %2804 = vmatpush2.bf16.msra.mxu0 %v8033_v25  ;;  %v8117_v25 = vld [vmem:[%s11906_s26 + $0x6b0] ss:$8 sps:$4 sm:$0xff]  }
  0xc4   :  { %2845 = vmatpush2.bf16.msra.mxu1 %v8036_v26  ;;  %2805 = vmatprep.subr.bf16.mxu0 %v8041_v27  ;;  %v8120_v26 = vld [vmem:[%s11906_s26 + $0x7b0] ss:$8 sps:$4 sm:$0xff]   ;;  %v8125_v27 = vld [vmem:[%s11906_s26 + $0x6a4] ss:$8 sps:$4 sm:$0xff]  }
  0xc5   :  { %2846 = vmatprep.subr.bf16.mxu1 %v8044_v28  ;;  %v8128_v28 = vld [vmem:[%s11906_s26 + $0x7a4] ss:$8 sps:$4 sm:$0xff]  }
  0xc7   :  { %2806 = vmatpush2.bf16.msra.mxu0 %v8039_v31  ;;  %v8126_v31 = vld [vmem:[%s11906_s26 + $0x7a0] ss:$8 sps:$4 sm:$0xff]  }
  0xc8   :  { %2847 = vmatpush2.bf16.msra.mxu1 %v8042_v33  ;;  %2857 = vmatprep.subr.bf16.mxu0 %v8047_v34  ;;  %v8131_v33 = vld [vmem:[%s11906_s26 + $0x694] ss:$8 sps:$4 sm:$0xff]  }
  0xc9   :  { %2898 = vmatprep.subr.bf16.mxu1 %v8050_v35  ;;  %v8134_v34 = vld [vmem:[%s11906_s26 + $0x794] ss:$8 sps:$4 sm:$0xff]  }
  0xca   :  { %2808 = vmatmul.mubr.bf16.vlgmr.msra.gmra.mxu0 %v534_v32  ;;  %v9892_v32 = vld [vmem:[%s11907_s20 + $0x10] sm:$0xff] }
  0xcb   :  { %2849 = vmatmul.mubr.bf16.vlgmr.msra.gmra.mxu1 %v556_v37  ;;  %2858 = vmatpush1.bf16.msra.mxu0 %v8045_v29  ;;  %v9902_v35 = vrot.slane %v9892_v32, %v9239_v49  ;;  %v8132_v37 = vld [vmem:[%s11906_s26 + $0x790] ss:$8 sps:$4 sm:$0xff]   ;;  %v8137_v29 = vld [vmem:[%s11906_s26 + $0x684] ss:$8 sps:$4 sm:$0xff]  }
  0xcc   :  { %2899 = vmatpush1.bf16.msra.mxu1 %v8048_v38  ;;  %2859 = vmatprep.subr.bf16.mxu0 %v8053_v39  ;;  %v8140_v38 = vld [vmem:[%s11906_s26 + $0x784] ss:$8 sps:$4 sm:$0xff]   ;;  %v8135_v39 = vld [vmem:[%s11906_s26 + $0x680] ss:$8 sps:$4 sm:$0xff]  }
  0xcd   :  { %2900 = vmatprep.subr.bf16.mxu1 %v8056_v40  ;;  %2889 = vmatprep.mubr.bf16.mxu0 %v555_v36  ;;  %v8129_v36 = vld [vmem:[%s11906_s26 + $0x690] ss:$8 sps:$4 sm:$0xff]   ;;  %v575_v40 = vcombine.high %v9902_v35, %v9902_v35 }
  0xce   :  { %2930 = vmatprep.mubr.bf16.mxu1 %v559_v41  ;;  %v8138_v41 = vld [vmem:[%s11906_s26 + $0x780] ss:$8 sps:$4 sm:$0xff]  }
  0xcf   :  { %2860 = vmatpush1.bf16.msra.mxu0 %v8051_v43  ;;  %v446_v43 = vld [vmem:[%s11886_s2] sm:$0x3] }
  0xd0   :  { %2901 = vmatpush1.bf16.msra.mxu1 %v8054_v44  ;;  %2861 = vmatprep.subr.bf16.mxu0 %v8059_v45  ;;  %v541_v44 = vrot.slane %v9696_v6, %v9239_v49  ;;  %v9930_v45 = vsub.s32 0, %v9221_v42  ;;  %v597_v6 = vrot.slane %v575_v40, %v9239_v49  ;;  %v8201_v40 = vld [vmem:[%s11906_s26 + $0x9e4] ss:$8 sps:$4 sm:$0xff]  }
  0xd1   :  { %2902 = vmatprep.subr.bf16.mxu1 %v8062_v46  ;;  %v8144_v46 = vld [vmem:[%s11906_s26 + $0x874] ss:$8 sps:$4 sm:$0xff]  }
  0xd3   :  { %2862 = vmatpush1.bf16.msra.mxu0 %v8057_v47  ;;  %v8147_v47 = vld [vmem:[%s11906_s26 + $0x974] ss:$8 sps:$4 sm:$0xff]  }
  0xd4   :  { %2903 = vmatpush1.bf16.msra.mxu1 %v8060_v48  ;;  %2863 = vmatprep.subr.bf16.mxu0 %v8065_v50  ;;  %v9939_v48 = vsub.s32 1, %v9221_v42  ;;  %v557_v50 = vcombine.high %v541_v44, %v541_v44 }
  0xd5   :  { %2904 = vmatprep.subr.bf16.mxu1 %v8068_v51  ;;  %v8142_v51 = vld [vmem:[%s11906_s26 + $0x870] ss:$8 sps:$4 sm:$0xff]  }
  0xd7   :  { %2864 = vmatpush1.bf16.msra.mxu0 %v8063_v52  ;;  %v8145_v52 = vld [vmem:[%s11906_s26 + $0x970] ss:$8 sps:$4 sm:$0xff]  }
  0xd8   :  { %2905 = vmatpush1.bf16.msra.mxu1 %v8066_v53  ;;  %2865 = vmatprep.subr.bf16.mxu0 %v8071_v54  ;;  %v451_v53 = vrot.slane %v446_v43, %v9930_v45  ;;  %v8150_v54 = vld [vmem:[%s11906_s26 + $0x864] ss:$8 sps:$4 sm:$0xff]  }
  0xd9   :  { %2906 = vmatprep.subr.bf16.mxu1 %v8074_v55  ;;  %v8153_v55 = vld [vmem:[%s11906_s26 + $0x964] ss:$8 sps:$4 sm:$0xff]  }
  0xdb   :  { %2866 = vmatpush1.bf16.msra.mxu0 %v8069_v56  ;;  %v455_v56 = vrot.slane %v446_v43, %v9939_v48  ;;  %v8199_v43 = vld [vmem:[%s11906_s26 + $0x9e0] ss:$8 sps:$4 sm:$0xff]  }
  0xdc   :  { %2907 = vmatpush1.bf16.msra.mxu1 %v8072_v57  ;;  %2867 = vmatprep.subr.bf16.mxu0 %v8077_v58  ;;  %v8148_v57 = vld [vmem:[%s11906_s26 + $0x860] ss:$8 sps:$4 sm:$0xff]  }
  0xdd   :  { %2908 = vmatprep.subr.bf16.mxu1 %v8080_v59  ;;  %v8151_v58 = vld [vmem:[%s11906_s26 + $0x960] ss:$8 sps:$4 sm:$0xff]   ;;  %v607_v59 = vcombine.high %v597_v6, %v597_v6 }
  0xdf   :  { %2868 = vmatpush1.bf16.msra.mxu0 %v8075_v60 }
  0xe0   :  { %2909 = vmatpush1.bf16.msra.mxu1 %v8078_v61  ;;  %2869 = vmatprep.subr.bf16.mxu0 %v8083_v62  ;;  %v8156_v62 = vld [vmem:[%s11906_s26 + $0x854] ss:$8 sps:$4 sm:$0xff]  }
  0xe1   :  { %2910 = vmatprep.subr.bf16.mxu1 %v8086_v63 }
  0xe3   :  { %2870 = vmatpush1.bf16.msra.mxu0 %v8081_v0 }
  0xe4   :  { %2911 = vmatpush1.bf16.msra.mxu1 %v8084_v1  ;;  %2871 = vmatprep.subr.bf16.mxu0 %v8089_v2  ;;  %v8159_v2 = vld [vmem:[%s11906_s26 + $0x954] ss:$8 sps:$4 sm:$0xff]  }
  0xe5   :  { %2912 = vmatprep.subr.bf16.mxu1 %v8092_v3 }
  0xe7   :  { %2872 = vmatpush1.bf16.msra.mxu0 %v8087_v4 }
  0xe8   :  { %2913 = vmatpush1.bf16.msra.mxu1 %v8090_v5  ;;  %2873 = vmatprep.subr.bf16.mxu0 %v8095_v7  ;;  %v8154_v5 = vld [vmem:[%s11906_s26 + $0x850] ss:$8 sps:$4 sm:$0xff]  }
  0xe9   :  { %2914 = vmatprep.subr.bf16.mxu1 %v8098_v8  ;;  %v8157_v7 = vld [vmem:[%s11906_s26 + $0x950] ss:$8 sps:$4 sm:$0xff]  }
  0xeb   :  { %2874 = vmatpush2.bf16.msra.mxu0 %v8093_v9 }
  0xec   :  { %2915 = vmatpush2.bf16.msra.mxu1 %v8096_v10  ;;  %2875 = vmatprep.subr.bf16.mxu0 %v8101_v11 }
  0xed   :  { %2916 = vmatprep.subr.bf16.mxu1 %v8104_v12  ;;  %v8162_v12 = vld [vmem:[%s11906_s26 + $0x844] ss:$8 sps:$4 sm:$0xff]  }
  0xef   :  { %2876 = vmatpush2.bf16.msra.mxu0 %v8099_v13  ;;  %v8165_v13 = vld [vmem:[%s11906_s26 + $0x944] ss:$8 sps:$4 sm:$0xff]  }
  0xf0   :  { %2917 = vmatpush2.bf16.msra.mxu1 %v8102_v14  ;;  %2877 = vmatprep.subr.bf16.mxu0 %v8107_v15  ;;  %v8160_v15 = vld [vmem:[%s11906_s26 + $0x840] ss:$8 sps:$4 sm:$0xff]  }
  0xf1   :  { %2918 = vmatprep.subr.bf16.mxu1 %v8110_v16  ;;  %v8163_v16 = vld [vmem:[%s11906_s26 + $0x940] ss:$8 sps:$4 sm:$0xff]  }
  0xf3   :  { %2878 = vmatpush2.bf16.msra.mxu0 %v8105_v17  ;;  %v8168_v17 = vld [vmem:[%s11906_s26 + $0x834] ss:$8 sps:$4 sm:$0xff]  }
  0xf4   :  { %2919 = vmatpush2.bf16.msra.mxu1 %v8108_v18  ;;  %2879 = vmatprep.subr.bf16.mxu0 %v8113_v19  ;;  %v8171_v18 = vld [vmem:[%s11906_s26 + $0x934] ss:$8 sps:$4 sm:$0xff]   ;;  %v8166_v19 = vld [vmem:[%s11906_s26 + $0x830] ss:$8 sps:$4 sm:$0xff]  }
  0xf5   :  { %2920 = vmatprep.subr.bf16.mxu1 %v8116_v20  ;;  %v8169_v20 = vld [vmem:[%s11906_s26 + $0x930] ss:$8 sps:$4 sm:$0xff]  }
  0xf7   :  { %2880 = vmatpush2.bf16.msra.mxu0 %v8111_v21  ;;  %v8174_v21 = vld [vmem:[%s11906_s26 + $0x824] ss:$8 sps:$4 sm:$0xff]  }
  0xf8   :  { %2921 = vmatpush2.bf16.msra.mxu1 %v8114_v22  ;;  %2881 = vmatprep.subr.bf16.mxu0 %v8119_v23  ;;  %v8177_v22 = vld [vmem:[%s11906_s26 + $0x924] ss:$8 sps:$4 sm:$0xff]   ;;  %v8172_v23 = vld [vmem:[%s11906_s26 + $0x820] ss:$8 sps:$4 sm:$0xff]  }
  0xf9   :  { %2922 = vmatprep.subr.bf16.mxu1 %v8122_v24  ;;  %v8175_v24 = vld [vmem:[%s11906_s26 + $0x920] ss:$8 sps:$4 sm:$0xff]  }
  0xfb   :  { %2882 = vmatpush2.bf16.msra.mxu0 %v8117_v25  ;;  %v8180_v25 = vld [vmem:[%s11906_s26 + $0x814] ss:$8 sps:$4 sm:$0xff]  }
  0xfc   :  { %2923 = vmatpush2.bf16.msra.mxu1 %v8120_v26  ;;  %2883 = vmatprep.subr.bf16.mxu0 %v8125_v27  ;;  %v8183_v26 = vld [vmem:[%s11906_s26 + $0x914] ss:$8 sps:$4 sm:$0xff]   ;;  %v8178_v27 = vld [vmem:[%s11906_s26 + $0x810] ss:$8 sps:$4 sm:$0xff]  }
  0xfd   :  { %2924 = vmatprep.subr.bf16.mxu1 %v8128_v28  ;;  %v8181_v28 = vld [vmem:[%s11906_s26 + $0x910] ss:$8 sps:$4 sm:$0xff]  }
  0xff   :  { %2884 = vmatpush2.bf16.msra.mxu0 %v8123_v30  ;;  %v8186_v30 = vld [vmem:[%s11906_s26 + $0x804] ss:$8 sps:$4 sm:$0xff]  }
 0x100   :  { %2925 = vmatpush2.bf16.msra.mxu1 %v8126_v31  ;;  %2885 = vmatprep.subr.bf16.mxu0 %v8131_v33  ;;  %v8189_v31 = vld [vmem:[%s11906_s26 + $0x904] ss:$8 sps:$4 sm:$0xff]   ;;  %v8184_v33 = vld [vmem:[%s11906_s26 + $0x800] ss:$8 sps:$4 sm:$0xff]  }
 0x101   :  { %2926 = vmatprep.subr.bf16.mxu1 %v8134_v34  ;;  %v8187_v34 = vld [vmem:[%s11906_s26 + $0x900] ss:$8 sps:$4 sm:$0xff]  }
 0x103   :  { %2886 = vmatpush2.bf16.msra.mxu0 %v8129_v36  ;;  %v8192_v36 = vld [vmem:[%s11906_s26 + $0x8f4] ss:$8 sps:$4 sm:$0xff]  }
 0x104   :  { %2927 = vmatpush2.bf16.msra.mxu1 %v8132_v37  ;;  %2887 = vmatprep.subr.bf16.mxu0 %v8137_v29  ;;  %v8195_v37 = vld [vmem:[%s11906_s26 + $0x9f4] ss:$8 sps:$4 sm:$0xff]   ;;  %v8190_v29 = vld [vmem:[%s11906_s26 + $0x8f0] ss:$8 sps:$4 sm:$0xff]  }
 0x105   :  { %2928 = vmatprep.subr.bf16.mxu1 %v8140_v38  ;;  %v8193_v38 = vld [vmem:[%s11906_s26 + $0x9f0] ss:$8 sps:$4 sm:$0xff]  }
 0x107   :  { %2888 = vmatpush2.bf16.msra.mxu0 %v8135_v39  ;;  %v8198_v39 = vld [vmem:[%s11906_s26 + $0x8e4] ss:$8 sps:$4 sm:$0xff]  }
 0x108   :  { %2929 = vmatpush2.bf16.msra.mxu1 %v8138_v41  ;;  %2939 = vmatprep.subr.bf16.mxu0 %v8144_v46  ;;  %v8196_v41 = vld [vmem:[%s11906_s26 + $0x8e0] ss:$8 sps:$4 sm:$0xff]   ;;  %v8207_v46 = vld [vmem:[%s11906_s26 + $0x9d4] ss:$8 sps:$4 sm:$0xff]  }
 0x109   :  { %2980 = vmatprep.subr.bf16.mxu1 %v8147_v47  ;;  %v8202_v47 = vld [vmem:[%s11906_s26 + $0x8d0] ss:$8 sps:$4 sm:$0xff]  }
 0x10a   :  { %v2645_v60 = vpop.f32.mrf.mxu0  ;;  %2890 = vmatmul.mubr.bf16.vlgmr.msra.gmra.mxu0 %v541_v44  ;;  %v8204_v44 = vld [vmem:[%s11906_s26 + $0x8d4] ss:$8 sps:$4 sm:$0xff]  }
 0x10b   :  { %v2686_v61 = vpop.f32.mrf.mxu1  ;;  %2931 = vmatmul.mubr.bf16.vlgmr.msra.gmra.mxu1 %v557_v50  ;;  %v2646_v63 = vadd.f32 %v2645_v60, %v451_v53  ;;  %2940 = vmatpush1.bf16.msra.mxu0 %v8142_v51  ;;  %v8210_v50 = vld [vmem:[%s11906_s26 + $0x8c4] ss:$8 sps:$4 sm:$0xff]   ;;  %v8211_v53 = vld [vmem:[%s11906_s26 + $0x9c0] ss:$8 sps:$4 sm:$0xff]  }
 0x10c   :  { %2981 = vmatpush1.bf16.msra.mxu1 %v8145_v52  ;;  %v2647_v0 = vpop.f32.mrf.mxu0  ;;  %2941 = vmatprep.subr.bf16.mxu0 %v8150_v54  ;;  %v8213_v51 = vld [vmem:[%s11906_s26 + $0x9c4] ss:$8 sps:$4 sm:$0xff]   ;;  %v8208_v52 = vld [vmem:[%s11906_s26 + $0x8c0] ss:$8 sps:$4 sm:$0xff]   ;;  %v8216_v54 = vld [vmem:[%s11906_s26 + $0x8b4] ss:$8 sps:$4 sm:$0xff]  }
 0x10d   :  { %v2688_v1 = vpop.f32.mrf.mxu1  ;;  %2982 = vmatprep.subr.bf16.mxu1 %v8153_v55  ;;  %v9968_v3 = vadd.f32 %v2686_v61, %v2646_v63  ;;  %v2648_v4 = vadd.f32 %v2647_v0, %v455_v56  ;;  %2971 = vmatprep.mubr.bf16.mxu0 %v597_v6  ;;  %v8205_v6 = vld [vmem:[%s11906_s26 + $0x9d0] ss:$8 sps:$4 sm:$0xff]   ;;  %v8219_v55 = vld [vmem:[%s11906_s26 + $0x9b4] ss:$8 sps:$4 sm:$0xff]   ;;  %v8220_v60 = vld [vmem:[%s11906_s26 + $0x8a0] ss:$8 sps:$4 sm:$0xff]  }
 0x10e   :  { %3012 = vmatprep.mubr.bf16.mxu1 %v607_v59  ;;  %v2649_v9 = vpop.f32.mrf.mxu0  ;;  %v8214_v56 = vld [vmem:[%s11906_s26 + $0x8b0] ss:$8 sps:$4 sm:$0xff]   ;;  %v8225_v59 = vld [vmem:[%s11906_s26 + $0x9a4] ss:$8 sps:$4 sm:$0xff]   ;;  %v8223_v61 = vld [vmem:[%s11906_s26 + $0x9a0] ss:$8 sps:$4 sm:$0xff]  }
 0x10f   :  { %v2690_v8 = vpop.f32.mrf.mxu1  ;;  %v9976_v10 = vadd.f32 %v2688_v1, %v2648_v4  ;;  %2942 = vmatpush1.bf16.msra.mxu0 %v8148_v57  ;;  %v8217_v57 = vld [vmem:[%s11906_s26 + $0x9b0] ss:$8 sps:$4 sm:$0xff]   ;;  %v8228_v63 = vld [vmem:[%s11906_s26 + $0x894] ss:$8 sps:$4 sm:$0xff]   ;;  %v8234_v4 = vld [vmem:[%s11906_s26 + $0x884] ss:$8 sps:$4 sm:$0xff]  }
 0x110   :  { %2983 = vmatpush1.bf16.msra.mxu1 %v8151_v58  ;;  %2943 = vmatprep.subr.bf16.mxu0 %v8156_v62  ;;  %v2650_v14 = vpop.f32.mrf.mxu0  ;;  %v8222_v58 = vld [vmem:[%s11906_s26 + $0x8a4] ss:$8 sps:$4 sm:$0xff]   ;;  %v560_v62 = vcombine.high %v9892_v32, %v9892_v32  ;;  %v8231_v0 = vld [vmem:[%s11906_s26 + $0x994] ss:$8 sps:$4 sm:$0xff]   ;;  %v8226_v1 = vld [vmem:[%s11906_s26 + $0x890] ss:$8 sps:$4 sm:$0xff]  }
 0x111   :  { %v2691_v11 = vpop.f32.mrf.mxu1  ;;  %2984 = vmatprep.subr.bf16.mxu1 %v8159_v2  ;;  %v8229_v32 = vld [vmem:[%s11906_s26 + $0x990] ss:$8 sps:$4 sm:$0xff]   ;;  %v8235_v8 = vld [vmem:[%s11906_s26 + $0x980] ss:$8 sps:$4 sm:$0xff]  }
 0x112   :  { %v10125_v2 = vrot.slane %v560_v62, %v9239_v49  ;;  %v583_v11 = vrot.slane %v9902_v35, %v9239_v49  ;;  %v8238_v14 = vld [vmem:[%s11906_s26 + $0xa70] ss:$8 sps:$4 sm:$0xff]   ;;  %v8291_v62 = vld [vmem:[%s11906_s26 + $0xbf4] ss:$8 sps:$4 sm:$0xff]  }
 0x113   :  { %2944 = vmatpush1.bf16.msra.mxu0 %v8154_v5  ;;  %v8237_v5 = vld [vmem:[%s11906_s26 + $0x984] ss:$8 sps:$4 sm:$0xff]   ;;  %v8241_v35 = vld [vmem:[%s11906_s26 + $0xb70] ss:$8 sps:$4 sm:$0xff]  }
 0x114   :  { %2985 = vmatpush1.bf16.msra.mxu1 %v8157_v7  ;;  %2945 = vmatprep.subr.bf16.mxu0 %v8162_v12  ;;  %v8232_v7 = vld [vmem:[%s11906_s26 + $0x880] ss:$8 sps:$4 sm:$0xff]   ;;  %v576_v9 = vcombine.high %v10125_v2, %v10125_v2  ;;  %v8240_v12 = vld [vmem:[%s11906_s26 + $0xa74] ss:$8 sps:$4 sm:$0xff]  }
 0x115   :  { %2986 = vmatprep.subr.bf16.mxu1 %v8165_v13  ;;  %v8243_v13 = vld [vmem:[%s11906_s26 + $0xb74] ss:$8 sps:$4 sm:$0xff]  }
 0x117   :  { %2946 = vmatpush1.bf16.msra.mxu0 %v8160_v15  ;;  %v604_v15 = vrot.slane %v576_v9, %v9239_v49  ;;  %v8298_v9 = vld [vmem:[%s11906_s26 + $0xad0] ss:$8 sps:$4 sm:$0xff]  }
 0x118   :  { %2987 = vmatpush1.bf16.msra.mxu1 %v8163_v16  ;;  %2947 = vmatprep.subr.bf16.mxu0 %v8168_v17  ;;  %v605_v16 = vcombine.high %v583_v11, %v583_v11  ;;  %v8246_v17 = vld [vmem:[%s11906_s26 + $0xa64] ss:$8 sps:$4 sm:$0xff]  }
 0x119   :  { %2988 = vmatprep.subr.bf16.mxu1 %v8171_v18  ;;  %v8249_v18 = vld [vmem:[%s11906_s26 + $0xb64] ss:$8 sps:$4 sm:$0xff]  }
 0x11b   :  { %2948 = vmatpush1.bf16.msra.mxu0 %v8166_v19  ;;  %v8244_v19 = vld [vmem:[%s11906_s26 + $0xa60] ss:$8 sps:$4 sm:$0xff]  }
 0x11c   :  { %2989 = vmatpush1.bf16.msra.mxu1 %v8169_v20  ;;  %2949 = vmatprep.subr.bf16.mxu0 %v8174_v21  ;;  %v8247_v20 = vld [vmem:[%s11906_s26 + $0xb60] ss:$8 sps:$4 sm:$0xff]   ;;  %v608_v21 = vcombine.high %v604_v15, %v604_v15 }
 0x11d   :  { %2990 = vmatprep.subr.bf16.mxu1 %v8177_v22 }
 0x11f   :  { %2950 = vmatpush1.bf16.msra.mxu0 %v8172_v23 }
 0x120   :  { %2991 = vmatpush1.bf16.msra.mxu1 %v8175_v24  ;;  %2951 = vmatprep.subr.bf16.mxu0 %v8180_v25  ;;  %v8252_v24 = vld [vmem:[%s11906_s26 + $0xa54] ss:$8 sps:$4 sm:$0xff]  }
 0x121   :  { %2992 = vmatprep.subr.bf16.mxu1 %v8183_v26  ;;  %v8255_v25 = vld [vmem:[%s11906_s26 + $0xb54] ss:$8 sps:$4 sm:$0xff]  }
 0x123   :  { %2952 = vmatpush1.bf16.msra.mxu0 %v8178_v27 }
 0x124   :  { %2993 = vmatpush1.bf16.msra.mxu1 %v8181_v28  ;;  %2953 = vmatprep.subr.bf16.mxu0 %v8186_v30 }
 0x125   :  { %2994 = vmatprep.subr.bf16.mxu1 %v8189_v31 }
 0x127   :  { %2954 = vmatpush1.bf16.msra.mxu0 %v8184_v33  ;;  %v8250_v33 = vld [vmem:[%s11906_s26 + $0xa50] ss:$8 sps:$4 sm:$0xff]  }
 0x128   :  { %2995 = vmatpush1.bf16.msra.mxu1 %v8187_v34  ;;  %2955 = vmatprep.subr.bf16.mxu0 %v8192_v36  ;;  %v8253_v34 = vld [vmem:[%s11906_s26 + $0xb50] ss:$8 sps:$4 sm:$0xff]  }
 0x129   :  { %2996 = vmatprep.subr.bf16.mxu1 %v8195_v37  ;;  %v8258_v37 = vld [vmem:[%s11906_s26 + $0xa44] ss:$8 sps:$4 sm:$0xff]  }
 0x12b   :  { %2956 = vmatpush2.bf16.msra.mxu0 %v8190_v29 }
 0x12c   :  { %2997 = vmatpush2.bf16.msra.mxu1 %v8193_v38  ;;  %2957 = vmatprep.subr.bf16.mxu0 %v8198_v39 }
 0x12d   :  { %2998 = vmatprep.subr.bf16.mxu1 %v8201_v40  ;;  %v8256_v40 = vld [vmem:[%s11906_s26 + $0xa40] ss:$8 sps:$4 sm:$0xff]  }
 0x12f   :  { %2958 = vmatpush2.bf16.msra.mxu0 %v8196_v41  ;;  %v8259_v41 = vld [vmem:[%s11906_s26 + $0xb40] ss:$8 sps:$4 sm:$0xff]  }
 0x130   :  { %2999 = vmatpush2.bf16.msra.mxu1 %v8199_v43  ;;  %2959 = vmatprep.subr.bf16.mxu0 %v8204_v44  ;;  %v8264_v43 = vld [vmem:[%s11906_s26 + $0xa34] ss:$8 sps:$4 sm:$0xff]  }
 0x131   :  { %3000 = vmatprep.subr.bf16.mxu1 %v8207_v46  ;;  %v8267_v44 = vld [vmem:[%s11906_s26 + $0xb34] ss:$8 sps:$4 sm:$0xff]   ;;  %v8262_v46 = vld [vmem:[%s11906_s26 + $0xa30] ss:$8 sps:$4 sm:$0xff]  }
 0x133   :  { %2960 = vmatpush2.bf16.msra.mxu0 %v8202_v47  ;;  %v8265_v47 = vld [vmem:[%s11906_s26 + $0xb30] ss:$8 sps:$4 sm:$0xff]  }
 0x134   :  { %3001 = vmatpush2.bf16.msra.mxu1 %v8205_v6  ;;  %2961 = vmatprep.subr.bf16.mxu0 %v8210_v50  ;;  %v8270_v6 = vld [vmem:[%s11906_s26 + $0xa24] ss:$8 sps:$4 sm:$0xff]  }
 0x135   :  { %3002 = vmatprep.subr.bf16.mxu1 %v8213_v51  ;;  %v8273_v50 = vld [vmem:[%s11906_s26 + $0xb24] ss:$8 sps:$4 sm:$0xff]   ;;  %v8268_v51 = vld [vmem:[%s11906_s26 + $0xa20] ss:$8 sps:$4 sm:$0xff]  }
 0x137   :  { %2962 = vmatpush2.bf16.msra.mxu0 %v8208_v52  ;;  %v8271_v52 = vld [vmem:[%s11906_s26 + $0xb20] ss:$8 sps:$4 sm:$0xff]  }
 0x138   :  { %3003 = vmatpush2.bf16.msra.mxu1 %v8211_v53  ;;  %2963 = vmatprep.subr.bf16.mxu0 %v8216_v54  ;;  %v8276_v53 = vld [vmem:[%s11906_s26 + $0xa14] ss:$8 sps:$4 sm:$0xff]  }
 0x139   :  { %3004 = vmatprep.subr.bf16.mxu1 %v8219_v55  ;;  %v8279_v54 = vld [vmem:[%s11906_s26 + $0xb14] ss:$8 sps:$4 sm:$0xff]   ;;  %v8274_v55 = vld [vmem:[%s11906_s26 + $0xa10] ss:$8 sps:$4 sm:$0xff]  }
 0x13b   :  { %2964 = vmatpush2.bf16.msra.mxu0 %v8214_v56  ;;  %v8277_v56 = vld [vmem:[%s11906_s26 + $0xb10] ss:$8 sps:$4 sm:$0xff]  }
 0x13c   :  { %3005 = vmatpush2.bf16.msra.mxu1 %v8217_v57  ;;  %2965 = vmatprep.subr.bf16.mxu0 %v8222_v58  ;;  %v8282_v57 = vld [vmem:[%s11906_s26 + $0xa04] ss:$8 sps:$4 sm:$0xff]  }
 0x13d   :  { %3006 = vmatprep.subr.bf16.mxu1 %v8225_v59  ;;  %v8285_v58 = vld [vmem:[%s11906_s26 + $0xb04] ss:$8 sps:$4 sm:$0xff]   ;;  %v8280_v59 = vld [vmem:[%s11906_s26 + $0xa00] ss:$8 sps:$4 sm:$0xff]  }
 0x13f   :  { %2966 = vmatpush2.bf16.msra.mxu0 %v8220_v60  ;;  %v8283_v60 = vld [vmem:[%s11906_s26 + $0xb00] ss:$8 sps:$4 sm:$0xff]  }
 0x140   :  { %3007 = vmatpush2.bf16.msra.mxu1 %v8223_v61  ;;  %2967 = vmatprep.subr.bf16.mxu0 %v8228_v63  ;;  %v8288_v61 = vld [vmem:[%s11906_s26 + $0xaf4] ss:$8 sps:$4 sm:$0xff]   ;;  %v8286_v63 = vld [vmem:[%s11906_s26 + $0xaf0] ss:$8 sps:$4 sm:$0xff]  }
 0x141   :  { %3008 = vmatprep.subr.bf16.mxu1 %v8231_v0  ;;  %v8289_v0 = vld [vmem:[%s11906_s26 + $0xbf0] ss:$8 sps:$4 sm:$0xff]  }
 0x143   :  { %2968 = vmatpush2.bf16.msra.mxu0 %v8226_v1  ;;  %v8294_v1 = vld [vmem:[%s11906_s26 + $0xae4] ss:$8 sps:$4 sm:$0xff]  }
 0x144   :  { %3009 = vmatpush2.bf16.msra.mxu1 %v8229_v32  ;;  %2969 = vmatprep.subr.bf16.mxu0 %v8234_v4  ;;  %v8297_v32 = vld [vmem:[%s11906_s26 + $0xbe4] ss:$8 sps:$4 sm:$0xff]   ;;  %v8292_v4 = vld [vmem:[%s11906_s26 + $0xae0] ss:$8 sps:$4 sm:$0xff]  }
 0x145   :  { %3010 = vmatprep.subr.bf16.mxu1 %v8237_v5  ;;  %v8295_v5 = vld [vmem:[%s11906_s26 + $0xbe0] ss:$8 sps:$4 sm:$0xff]  }
 0x147   :  { %2970 = vmatpush2.bf16.msra.mxu0 %v8232_v7  ;;  %v8300_v7 = vld [vmem:[%s11906_s26 + $0xad4] ss:$8 sps:$4 sm:$0xff]  }
 0x148   :  { %3011 = vmatpush2.bf16.msra.mxu1 %v8235_v8  ;;  %3021 = vmatprep.subr.bf16.mxu0 %v8240_v12  ;;  %v8303_v8 = vld [vmem:[%s11906_s26 + $0xbd4] ss:$8 sps:$4 sm:$0xff]   ;;  %v8306_v12 = vld [vmem:[%s11906_s26 + $0xac4] ss:$8 sps:$4 sm:$0xff]  }
 0x149   :  { %3062 = vmatprep.subr.bf16.mxu1 %v8243_v13  ;;  %v8309_v13 = vld [vmem:[%s11906_s26 + $0xbc4] ss:$8 sps:$4 sm:$0xff]  }
 0x14a   :  { %v2727_v22 = vpop.f32.mrf.mxu0  ;;  %2972 = vmatmul.mubr.bf16.vlgmr.msra.gmra.mxu0 %v583_v11  ;;  %v8301_v11 = vld [vmem:[%s11906_s26 + $0xbd0] ss:$8 sps:$4 sm:$0xff]  }
 0x14b   :  { %v2768_v23 = vpop.f32.mrf.mxu1  ;;  %3013 = vmatmul.mubr.bf16.vlgmr.msra.gmra.mxu1 %v605_v16  ;;  %v2728_v26 = vadd.f32 %v2727_v22, %v9968_v3  ;;  %3022 = vmatpush1.bf16.msra.mxu0 %v8238_v14  ;;  %v8304_v14 = vld [vmem:[%s11906_s26 + $0xac0] ss:$8 sps:$4 sm:$0xff]   ;;  %v8315_v16 = vld [vmem:[%s11906_s26 + $0xbb4] ss:$8 sps:$4 sm:$0xff]  }
 0x14c   :  { %3063 = vmatpush1.bf16.msra.mxu1 %v8241_v35  ;;  %v2729_v27 = vpop.f32.mrf.mxu0  ;;  %3023 = vmatprep.subr.bf16.mxu0 %v8246_v17  ;;  %v8307_v35 = vld [vmem:[%s11906_s26 + $0xbc0] ss:$8 sps:$4 sm:$0xff]   ;;  %v8310_v17 = vld [vmem:[%s11906_s26 + $0xab0] ss:$8 sps:$4 sm:$0xff]  }
 0x14d   :  { %v2770_v28 = vpop.f32.mrf.mxu1  ;;  %3064 = vmatprep.subr.bf16.mxu1 %v8249_v18  ;;  %v10175_v30 = vadd.f32 %v2768_v23, %v2728_v26  ;;  %v2730_v31 = vadd.f32 %v2729_v27, %v9976_v10  ;;  %3053 = vmatprep.mubr.bf16.mxu0 %v604_v15  ;;  %v8261_v10 = vld [vmem:[%s11906_s26 + $0xb44] ss:$8 sps:$4 sm:$0xff]   ;;  %v8312_v15 = vld [vmem:[%s11906_s26 + $0xab4] ss:$8 sps:$4 sm:$0xff]   ;;  %v8313_v18 = vld [vmem:[%s11906_s26 + $0xbb0] ss:$8 sps:$4 sm:$0xff]  }
 0x14e   :  { %3094 = vmatprep.mubr.bf16.mxu1 %v608_v21  ;;  %v2731_v36 = vpop.f32.mrf.mxu0  ;;  %v8316_v21 = vld [vmem:[%s11906_s26 + $0xaa0] ss:$8 sps:$4 sm:$0xff]   ;;  %v8324_v23 = vld [vmem:[%s11906_s26 + $0xa94] ss:$8 sps:$4 sm:$0xff]   ;;  %v8325_v26 = vld [vmem:[%s11906_s26 + $0xb90] ss:$8 sps:$4 sm:$0xff]  }
 0x14f   :  { %v2772_v3 = vpop.f32.mrf.mxu1  ;;  %v10190_v29 = vadd.f32 %v2770_v28, %v2730_v31  ;;  %3024 = vmatpush1.bf16.msra.mxu0 %v8244_v19  ;;  %v8318_v19 = vld [vmem:[%s11906_s26 + $0xaa4] ss:$8 sps:$4 sm:$0xff]   ;;  %v8319_v22 = vld [vmem:[%s11906_s26 + $0xba0] ss:$8 sps:$4 sm:$0xff]   ;;  %v8335_v36 = vld [vmem:[%s11906_s26 + $0xc30] ss:$8 sps:$4 sm:$0xff]  }
 0x150   :  { %3065 = vmatpush1.bf16.msra.mxu1 %v8247_v20  ;;  %3025 = vmatprep.subr.bf16.mxu0 %v8252_v24  ;;  %v2732_v39 = vpop.f32.mrf.mxu0  ;;  %v8321_v20 = vld [vmem:[%s11906_s26 + $0xba4] ss:$8 sps:$4 sm:$0xff]   ;;  %v8327_v24 = vld [vmem:[%s11906_s26 + $0xb94] ss:$8 sps:$4 sm:$0xff]   ;;  %v8328_v31 = vld [vmem:[%s11906_s26 + $0xa80] ss:$8 sps:$4 sm:$0xff]  }
 0x151   :  { %v2773_v38 = vpop.f32.mrf.mxu1  ;;  %3066 = vmatprep.subr.bf16.mxu1 %v8255_v25  ;;  %v8322_v25 = vld [vmem:[%s11906_s26 + $0xa90] ss:$8 sps:$4 sm:$0xff]   ;;  %v8330_v27 = vld [vmem:[%s11906_s26 + $0xa84] ss:$8 sps:$4 sm:$0xff]   ;;  %v8337_v3 = vld [vmem:[%s11906_s26 + $0xc34] ss:$8 sps:$4 sm:$0xff]  }
 0x152   :  { %v8333_v28 = vld [vmem:[%s11906_s26 + $0xb84] ss:$8 sps:$4 sm:$0xff]  }
 0x153   :  { %3026 = vmatpush1.bf16.msra.mxu0 %v8250_v33  ;;  %v8331_v33 = vld [vmem:[%s11906_s26 + $0xb80] ss:$8 sps:$4 sm:$0xff]  }
 0x154   :  { %3067 = vmatpush1.bf16.msra.mxu1 %v8253_v34  ;;  %3027 = vmatprep.subr.bf16.mxu0 %v8258_v37  ;;  %v590_v34 = vrot.slane %v10125_v2, %v9239_v49  ;;  %v8338_v2 = vld [vmem:[%s11906_s26 + $0xc20] ss:$8 sps:$4 sm:$0xff]  }
 0x155   :  { %3068 = vmatprep.subr.bf16.mxu1 %v8261_v10  ;;  %v8340_v10 = vld [vmem:[%s11906_s26 + $0xc24] ss:$8 sps:$4 sm:$0xff]  }
 0x156   :  { %v606_v37 = vcombine.high %v590_v34, %v590_v34 }
 0x157   :  { %3028 = vmatpush1.bf16.msra.mxu0 %v8256_v40  ;;  %v8343_v40 = vld [vmem:[%s11906_s26 + $0xc14] ss:$8 sps:$4 sm:$0xff]  }
 0x158   :  { %3069 = vmatpush1.bf16.msra.mxu1 %v8259_v41  ;;  %3029 = vmatprep.subr.bf16.mxu0 %v8264_v43  ;;  %v9006_v43 = vmov 0  }
 0x159   :  { %3070 = vmatprep.subr.bf16.mxu1 %v8267_v44 }
 0x15b   :  { %3030 = vmatpush1.bf16.msra.mxu0 %v8262_v46 }
 0x15c   :  { %3071 = vmatpush1.bf16.msra.mxu1 %v8265_v47  ;;  %3031 = vmatprep.subr.bf16.mxu0 %v8270_v6 }
 0x15d   :  { %3072 = vmatprep.subr.bf16.mxu1 %v8273_v50  ;;  %v8341_v50 = vld [vmem:[%s11906_s26 + $0xc10] ss:$8 sps:$4 sm:$0xff]  }
 0x15f   :  { %3032 = vmatpush1.bf16.msra.mxu0 %v8268_v51 }
 0x160   :  { %3073 = vmatpush1.bf16.msra.mxu1 %v8271_v52  ;;  %3033 = vmatprep.subr.bf16.mxu0 %v8276_v53 }
 0x161   :  { %3074 = vmatprep.subr.bf16.mxu1 %v8279_v54 }
 0x163   :  { %3034 = vmatpush1.bf16.msra.mxu0 %v8274_v55 }
 0x164   :  { %3075 = vmatpush1.bf16.msra.mxu1 %v8277_v56  ;;  %3035 = vmatprep.subr.bf16.mxu0 %v8282_v57  ;;  %v6863_v56 = vld.sshfl [vmem:[%s11907_s20 + $0x18] sm:$0x1 pattern:$0x75316420] }
 0x165   :  { %3076 = vmatprep.subr.bf16.mxu1 %v8285_v58  ;;  %v3177_v57 = vld [vmem:[%s11887_s3 + $0xf8] sm:$0xff]  ;;  %v622_v58 = vrot.slane %v6863_v56, %v9239_v49 }
 0x167   :  { %3036 = vmatpush1.bf16.msra.mxu0 %v8280_v59  ;;  %v3161_v59 = vld [vmem:[%s11887_s3 + $0x78] sm:$0xff] }
 0x168   :  { %3077 = vmatpush1.bf16.msra.mxu1 %v8283_v60  ;;  %3037 = vmatprep.subr.bf16.mxu0 %v8288_v61  ;;  %v3176_v60 = vld [vmem:[%s11887_s3 + $0xf0] sm:$0xff] }
 0x169   :  { %3078 = vmatprep.subr.bf16.mxu1 %v8291_v62  ;;  %v3160_v61 = vld [vmem:[%s11887_s3 + $0x70] sm:$0xff]  ;;  %v3175_v62 = vld [vmem:[%s11887_s3 + $0xe8] sm:$0xff] }
 0x16b   :  { %3038 = vmatpush2.bf16.msra.mxu0 %v8286_v63  ;;  %v3159_v63 = vld [vmem:[%s11887_s3 + $0x68] sm:$0xff] }
 0x16c   :  { %3079 = vmatpush2.bf16.msra.mxu1 %v8289_v0  ;;  %3039 = vmatprep.subr.bf16.mxu0 %v8294_v1 }
 0x16d   :  { %3080 = vmatprep.subr.bf16.mxu1 %v8297_v32 }
 0x16f   :  { %3040 = vmatpush2.bf16.msra.mxu0 %v8292_v4 }
 0x170   :  { %3081 = vmatpush2.bf16.msra.mxu1 %v8295_v5  ;;  %3041 = vmatprep.subr.bf16.mxu0 %v8300_v7 }
 0x171   :  { %3082 = vmatprep.subr.bf16.mxu1 %v8303_v8 }
 0x173   :  { %3042 = vmatpush2.bf16.msra.mxu0 %v8298_v9 }
 0x174   :  { %3083 = vmatpush2.bf16.msra.mxu1 %v8301_v11  ;;  %3043 = vmatprep.subr.bf16.mxu0 %v8306_v12 }
 0x175   :  { %3084 = vmatprep.subr.bf16.mxu1 %v8309_v13 }
 0x177   :  { %3044 = vmatpush2.bf16.msra.mxu0 %v8304_v14 }
 0x178   :  { %3085 = vmatpush2.bf16.msra.mxu1 %v8307_v35  ;;  %3045 = vmatprep.subr.bf16.mxu0 %v8312_v15 }
 0x179   :  { %3086 = vmatprep.subr.bf16.mxu1 %v8315_v16 }
 0x17b   :  { %3046 = vmatpush2.bf16.msra.mxu0 %v8310_v17 }
 0x17c   :  { %3087 = vmatpush2.bf16.msra.mxu1 %v8313_v18  ;;  %3047 = vmatprep.subr.bf16.mxu0 %v8318_v19 }
 0x17d   :  { %3088 = vmatprep.subr.bf16.mxu1 %v8321_v20 }
 0x17f   :  { %3048 = vmatpush2.bf16.msra.mxu0 %v8316_v21 }
 0x180   :  { %3089 = vmatpush2.bf16.msra.mxu1 %v8319_v22  ;;  %3049 = vmatprep.subr.bf16.mxu0 %v8324_v23 }
 0x181   :  { %3090 = vmatprep.subr.bf16.mxu1 %v8327_v24 }
 0x183   :  { %3050 = vmatpush2.bf16.msra.mxu0 %v8322_v25 }
 0x184   :  { %3091 = vmatpush2.bf16.msra.mxu1 %v8325_v26  ;;  %3051 = vmatprep.subr.bf16.mxu0 %v8330_v27 }
 0x185   :  { %3092 = vmatprep.subr.bf16.mxu1 %v8333_v28 }
 0x187   :  { %3052 = vmatpush2.bf16.msra.mxu0 %v8328_v31 }
 0x188   :  { %3093 = vmatpush2.bf16.msra.mxu1 %v8331_v33 }
 0x189   :  { %3111 = vmatprep.subr.bf16.mxu1 %v8337_v3 }
 0x18a   :  { %v2809_v38 = vpop.f32.mrf.mxu0  ;;  %3054 = vmatmul.mubr.bf16.vlgmr.msra.gmra.mxu0 %v590_v34 }
 0x18b   :  { %v2850_v39 = vpop.f32.mrf.mxu1  ;;  %3095 = vmatmul.mubr.bf16.vlgmr.msra.gmra.mxu1 %v606_v37  ;;  %v2810_v41 = vadd.f32 %v2809_v38, %v10175_v30  ;;  %v8346_v30 = vld [vmem:[%s11906_s26 + $0xc04] ss:$8 sps:$4 sm:$0xff]  }
 0x18c   :  { %3112 = vmatpush1.bf16.msra.mxu1 %v8335_v36  ;;  %3135 = vmatprep.mubr.bf16.mxu1 %v9006_v43  ;;  %v2811_v44 = vpop.f32.mrf.mxu0 }
 0x18d   :  { %v2852_v46 = vpop.f32.mrf.mxu1  ;;  %3113 = vmatprep.subr.bf16.mxu1 %v8340_v10  ;;  %v2851_v47 = vadd.f32 %v2850_v39, %v2810_v41  ;;  %v2812_v6 = vadd.f32 %v2811_v44, %v10190_v29  ;;  %v8344_v29 = vld [vmem:[%s11906_s26 + $0xc00] ss:$8 sps:$4 sm:$0xff]  }
 0x18e   :  { %v2813_v52 = vpop.f32.mrf.mxu0 }
 0x18f   :  { %v2854_v51 = vpop.f32.mrf.mxu1  ;;  %v2853_v53 = vadd.f32 %v2852_v46, %v2812_v6 }
 0x190   :  { %3114 = vmatpush1.bf16.msra.mxu1 %v8338_v2  ;;  %v2814_v55 = vpop.f32.mrf.mxu0 }
 0x191   :  { %v2855_v54 = vpop.f32.mrf.mxu1  ;;  %3115 = vmatprep.subr.bf16.mxu1 %v8343_v40 }
 0x194   :  { %3116 = vmatpush1.bf16.msra.mxu1 %v8341_v50 }
 0x195   :  { %3117 = vmatprep.subr.bf16.mxu1 %v8346_v30 }
 0x198   :  { %3118 = vmatpush1.bf16.msra.mxu1 %v8344_v29 }
 0x199   :  { %7677 = vmatprep.subr.mxu1 %v3177_v57 }
 0x19b   :  { %7256 = vmatmul.mubr.msk.bf16.vlgmr.msra.gmra.mxu1 %vm2607_vm0, %v622_v58 }
 0x19c   :  { %7678 = vmatpush3.msra.mxu1 %v3161_v59 }
 0x19d   :  { %7679 = vmatprep.subr.mxu1 %v3176_v60 }
 0x19e   :  { %24 = vsyncpa [#allocation5], 0  ;;  %7680 = vmatpush3.msra.mxu1 %v3160_v61  ;;  %v3174_v0 = vld [vmem:[%s11887_s3 + $0xe0] sm:$0xff]  ;;  %v3173_v32 = vld [vmem:[%s11887_s3 + $0xd8] sm:$0xff]  ;;  %vm3279_vm1 = vcmask 1043456   ;;  %vm6574_vm2 = vcmask 156672  }
 0x19f   :  { %7681 = vmatprep.subr.mxu1 %v3175_v62  ;;  %v3158_v1 = vld [vmem:[%s11887_s3 + $0x60] sm:$0xff]  ;;  %v3157_v7 = vld [vmem:[%s11887_s3 + $0x58] sm:$0xff]  ;;  %v3172_v9 = vld [vmem:[%s11887_s3 + $0xd0] sm:$0xff]  ;;  %vm9008_vm3 = vmmov 0   ;;  %s9009_s22 = smov 108   ;;  %vm3275_vm4 = vcmask 162816  }
 0x1a0   :  { %7682 = vmatpush3.msra.mxu1 %v3159_v63  ;;  %v3156_v13 = vld [vmem:[%s11887_s3 + $0x50] sm:$0xff]  ;;  %v3171_v15 = vld [vmem:[%s11887_s3 + $0xc8] sm:$0xff]  ;;  %v3170_v20 = vld [vmem:[%s11887_s3 + $0xc0] sm:$0xff]  ;;  %vm6582_vm5 = vcmask 74752   ;;  %s9010_s2 = smov 118   ;;  %vm6588_vm6 = vcmask 1024  }
 0x1a1   :  { %7683 = vmatprep.subr.mxu1 %v3174_v0  ;;  %v3155_v18 = vld [vmem:[%s11887_s3 + $0x48] sm:$0xff]  ;;  %v3154_v23 = vld [vmem:[%s11887_s3 + $0x40] sm:$0xff]  ;;  %v3169_v24 = vld [vmem:[%s11887_s3 + $0xb8] sm:$0xff]  ;;  %s9011_s29 = smov [#allocation4]   ;;  %s9012_s0 = smov [#allocation2]  }
 0x1a2   :  { %7684 = vmatpush3.msra.mxu1 %v3158_v1  ;;  %v3153_v25 = vld [vmem:[%s11887_s3 + $0x38] sm:$0xff]  ;;  %v3168_v26 = vld [vmem:[%s11887_s3 + $0xb0] sm:$0xff]  ;;  %v3167_v28 = vld [vmem:[%s11887_s3 + $0xa8] sm:$0xff]  ;;  %s6816_s20 = sshll.u32 %s9012_s0, 4  ;;  %s6817_s20 = int_to_ptr.vmem [resolvable:$true] %s6816_s20 }
 0x1a3   :  { %7685 = vmatprep.subr.mxu1 %v3173_v32  ;;  %v3152_v27 = vld [vmem:[%s11887_s3 + $0x30] sm:$0xff]  ;;  %v3151_v31 = vld [vmem:[%s11887_s3 + $0x28] sm:$0xff]  ;;  %v3166_v33 = vld [vmem:[%s11887_s3 + $0xa0] sm:$0xff] }
 0x1a4   :  { %7686 = vmatpush3.msra.mxu1 %v3157_v7  ;;  %v3150_v34 = vld [vmem:[%s11887_s3 + $0x20] sm:$0xff]  ;;  %v3165_v3 = vld [vmem:[%s11887_s3 + $0x98] sm:$0xff]  ;;  %v3164_v37 = vld [vmem:[%s11887_s3 + $0x90] sm:$0xff] }
 0x1a5   :  { %7687 = vmatprep.subr.mxu1 %v3172_v9  ;;  %v3149_v36 = vld [vmem:[%s11887_s3 + $0x18] sm:$0xff]  ;;  %v3148_v10 = vld [vmem:[%s11887_s3 + $0x10] sm:$0xff]  ;;  %v3163_v2 = vld [vmem:[%s11887_s3 + $0x88] sm:$0xff] }
 0x1a6   :  { %7688 = vmatpush3.msra.mxu1 %v3156_v13  ;;  %v3147_v38 = vld [vmem:[%s11887_s3 + $0x8] sm:$0xff]  ;;  %v3162_v39 = vld [vmem:[%s11887_s3 + $0x80] sm:$0xff]  ;;  %v3267_v13 = vld [vmem:[%s11890_s6 + $0x10] sm:$0xf] }
 0x1a7   :  { %7689 = vmatprep.subr.mxu1 %v3171_v15  ;;  %v3146_v40 = vld [vmem:[%s11887_s3] sm:$0xff] }
 0x1a8   :  { %7690 = vmatpush3.msra.mxu1 %v3155_v18 }
 0x1a9   :  { %7691 = vmatprep.subr.mxu1 %v3170_v20 }
 0x1aa   :  { %7692 = vmatpush3.msra.mxu1 %v3154_v23  ;;  %v3358_v23 = vld [vmem:[%s11892_s8 + $0x28] sm:$0xf] }
 0x1ab   :  { %7693 = vmatprep.subr.mxu1 %v3169_v24  ;;  %v8350_v24 = vld [vmem:[%s11894_s10 + $0x580] ss:$100 sps:$4 sm:$0xff]  }
 0x1ac   :  { %7694 = vmatpush3.msra.mxu1 %v3153_v25  ;;  %v8352_v25 = vld [vmem:[%s11894_s10 + $0x584] ss:$100 sps:$4 sm:$0xff]  }
 0x1ad   :  { %7695 = vmatprep.subr.mxu1 %v3168_v26 }
 0x1ae   :  { %7696 = vmatpush3.msra.mxu1 %v3152_v27  ;;  %v8358_v27 = vld [vmem:[%s11894_s10 + $0x4bc] ss:$100 sps:$4 sm:$0xff]  }
 0x1af   :  { %7697 = vmatprep.subr.mxu1 %v3167_v28  ;;  %v8356_v28 = vld [vmem:[%s11894_s10 + $0x4b8] ss:$100 sps:$4 sm:$0xff]  }
 0x1b0   :  { %7698 = vmatpush3.msra.mxu1 %v3151_v31  ;;  %v8364_v31 = vld [vmem:[%s11894_s10 + $0x3f4] ss:$100 sps:$4 sm:$0xff]  }
 0x1b1   :  { %7699 = vmatprep.subr.mxu1 %v3166_v33  ;;  %v8362_v33 = vld [vmem:[%s11894_s10 + $0x3f0] ss:$100 sps:$4 sm:$0xff]  }
 0x1b2   :  { %7700 = vmatpush3.msra.mxu1 %v3150_v34  ;;  %v8370_v34 = vld [vmem:[%s11894_s10 + $0x32c] ss:$100 sps:$4 sm:$0xff]  }
 0x1b3   :  { %7701 = vmatprep.subr.mxu1 %v3165_v3  ;;  %v8368_v3 = vld [vmem:[%s11894_s10 + $0x328] ss:$100 sps:$4 sm:$0xff]  }
 0x1b4   :  { %7702 = vmatpush3.msra.mxu1 %v3149_v36  ;;  %v8376_v36 = vld [vmem:[%s11894_s10 + $0x264] ss:$100 sps:$4 sm:$0xff]  }
 0x1b5   :  { %7703 = vmatprep.subr.mxu1 %v3164_v37  ;;  %v8374_v37 = vld [vmem:[%s11894_s10 + $0x260] ss:$100 sps:$4 sm:$0xff]  }
 0x1b6   :  { %7704 = vmatpush3.msra.mxu1 %v3148_v10  ;;  %v8382_v10 = vld [vmem:[%s11894_s10 + $0x19c] ss:$100 sps:$4 sm:$0xff]  }
 0x1b7   :  { %7705 = vmatprep.subr.mxu1 %v3163_v2  ;;  %v8380_v2 = vld [vmem:[%s11894_s10 + $0x198] ss:$100 sps:$4 sm:$0xff]  }
 0x1b8   :  { %7706 = vmatpush3.msra.mxu1 %v3147_v38  ;;  %v8388_v38 = vld [vmem:[%s11894_s10 + $0xd4] ss:$100 sps:$4 sm:$0xff]  }
 0x1b9   :  { %7707 = vmatprep.subr.mxu1 %v3162_v39  ;;  %v8386_v39 = vld [vmem:[%s11894_s10 + $0xd0] ss:$100 sps:$4 sm:$0xff]  }
 0x1ba   :  { %7708 = vmatpush3.msra.mxu1 %v3146_v40  ;;  %v8394_v40 = vld [vmem:[%s11894_s10 + $0xc] ss:$100 sps:$4 sm:$0xff]  }
 0x1bb   :  { %6058 = vmatprep.subr.bf16.mxu1 %v8352_v25  ;;  %v8421_v25 = vld [vmem:[%s11894_s10 + $0x89c] ss:$100 sps:$4 sm:$0xff]  }
 0x1ca   :  { %v2891_v4 = vpop.f32.mrf.mxu0 }
 0x1cb   :  { %v2932_v5 = vpop.f32.mrf.mxu1  ;;  %v2892_v8 = vadd.f32 %v2891_v4, %v2851_v47 }
 0x1cc   :  { %v2893_v11 = vpop.f32.mrf.mxu0 }
 0x1cd   :  { %v2934_v12 = vpop.f32.mrf.mxu1  ;;  %v2933_v14 = vadd.f32 %v2932_v5, %v2892_v8  ;;  %v2894_v35 = vadd.f32 %v2893_v11, %v2853_v53 }
 0x1ce   :  { %v2895_v17 = vpop.f32.mrf.mxu0 }
 0x1cf   :  { %v2936_v16 = vpop.f32.mrf.mxu1  ;;  %v2935_v19 = vadd.f32 %v2934_v12, %v2894_v35  ;;  %v3266_v35 = vld [vmem:[%s11890_s6 + $0x8] sm:$0xff] }
 0x1d0   :  { %v2896_v22 = vpop.f32.mrf.mxu0  ;;  %v7257_v16 = vld [vmem:[%s11888_s4] ss:$0 sm:$0xff] }
 0x1d1   :  { %v2937_v21 = vpop.f32.mrf.mxu1  ;;  %v3265_v22 = vld [vmem:[%s11890_s6] sm:$0xff] }
 0x20a   :  { %v2973_v41 = vpop.f32.mrf.mxu0 }
 0x20b   :  { %v3014_v43 = vpop.f32.mrf.mxu1  ;;  %v2974_v44 = vadd.f32 %v2973_v41, %v2933_v14  ;;  %v9007_v14 = vmov 0.0   ;;  %v8392_v41 = vld [vmem:[%s11894_s10 + $0x8] ss:$100 sps:$4 sm:$0xff]  }
 0x20c   :  { %v2975_v46 = vpop.f32.mrf.mxu0  ;;  %7738 = vmatprep.subr.mxu0 %v9007_v14  ;;  %7744 = vmatprep.mubr.msk.f32.mxu0 %vm9008_vm3, %v9007_v14 }
 0x20d   :  { %v3016_v47 = vpop.f32.mrf.mxu1  ;;  %v3015_v6 = vadd.f32 %v3014_v43, %v2974_v44  ;;  %v2976_v50 = vadd.f32 %v2975_v46, %v2935_v19  ;;  %7739 = vmatpush3.msk.msra.mxu0 %vm3279_vm1, %v3267_v13  ;;  %v8400_v43 = vld [vmem:[%s11894_s10 + $0xbc4] ss:$100 sps:$4 sm:$0xff]   ;;  %v8406_v46 = vld [vmem:[%s11894_s10 + $0xafc] ss:$100 sps:$4 sm:$0xff]   ;;  %v8377_v13 = vld [vmem:[%s11894_s10 + $0x190] ss:$100 sps:$4 sm:$0xff]  }
 0x20e   :  { %v2977_v52 = vpop.f32.mrf.mxu0  ;;  %7740 = vmatprep.subr.mxu0 %v9007_v14  ;;  %v8398_v44 = vld [vmem:[%s11894_s10 + $0xbc0] ss:$100 sps:$4 sm:$0xff]  }
 0x20f   :  { %v3018_v51 = vpop.f32.mrf.mxu1  ;;  %v3017_v53 = vadd.f32 %v3016_v47, %v2976_v50  ;;  %7741 = vmatpush3.msra.mxu0 %v3266_v35  ;;  %v8404_v47 = vld [vmem:[%s11894_s10 + $0xaf8] ss:$100 sps:$4 sm:$0xff]   ;;  %v8410_v50 = vld [vmem:[%s11894_s10 + $0xa30] ss:$100 sps:$4 sm:$0xff]   ;;  %v8416_v52 = vld [vmem:[%s11894_s10 + $0x968] ss:$100 sps:$4 sm:$0xff]  }
 0x210   :  { %v2978_v30 = vpop.f32.mrf.mxu0  ;;  %7742 = vmatprep.subr.mxu0 %v9007_v14  ;;  %v8418_v51 = vld [vmem:[%s11894_s10 + $0x96c] ss:$100 sps:$4 sm:$0xff]  }
 0x211   :  { %v3019_v54 = vpop.f32.mrf.mxu1  ;;  %7743 = vmatpush3.msra.mxu0 %v3265_v22  ;;  %v3255_v30 = vld [vmem:[%s11889_s5] sm:$0x3]  ;;  %v8383_v35 = vld [vmem:[%s11894_s10 + $0xc8] ss:$100 sps:$4 sm:$0xff]  }
 0x212   :  { %7261 = vmatprep.subr.msk.mxu0 %vm3279_vm1, %v3358_v23  ;;  %v8422_v54 = vld [vmem:[%s11894_s10 + $0x8a0] ss:$100 sps:$4 sm:$0xff]   ;;  %v8407_v22 = vld [vmem:[%s11894_s10 + $0xa28] ss:$100 sps:$4 sm:$0xff]  }
 0x213   :  { %v8415_v23 = vld [vmem:[%s11894_s10 + $0x964] ss:$100 sps:$4 sm:$0xff]  }
 0x24a   :  { %v3055_v55 = vpop.f32.mrf.mxu0 }
 0x24b   :  { %v3096_v56 = vpop.f32.mrf.mxu1  ;;  %v3056_v62 = vadd.f32 %v3055_v55, %v3015_v6  ;;  %v8412_v6 = vld [vmem:[%s11894_s10 + $0xa34] ss:$100 sps:$4 sm:$0xff]  }
 0x24c   :  { %v3057_v29 = vpop.f32.mrf.mxu0 }
 0x24d   :  { %v3098_v57 = vpop.f32.mrf.mxu1  ;;  %v3058_v63 = vadd.f32 %v3057_v29, %v3017_v53  ;;  %v3097_v0 = vadd.f32 %v3096_v56, %v3056_v62  ;;  %v8424_v53 = vld [vmem:[%s11894_s10 + $0x8a4] ss:$100 sps:$4 sm:$0xff]  }
 0x24e   :  { %v3059_v59 = vpop.f32.mrf.mxu0  ;;  %v3353_v62 = vld [vmem:[%s11892_s8] sm:$0xff] }
 0x24f   :  { %v3100_v58 = vpop.f32.mrf.mxu1  ;;  %v3099_v32 = vadd.f32 %v3098_v57, %v3058_v63  ;;  %v3357_v57 = vld [vmem:[%s11892_s8 + $0x20] sm:$0xf]  ;;  %v3356_v59 = vld [vmem:[%s11892_s8 + $0x18] sm:$0xff] }
 0x250   :  { %v3060_v61 = vpop.f32.mrf.mxu0  ;;  %v8349_v63 = vld [vmem:[%s11894_s10 + $0x57c] ss:$100 sps:$4 sm:$0xff]  }
 0x251   :  { %v3101_v60 = vpop.f32.mrf.mxu1  ;;  %v3354_v61 = vld [vmem:[%s11892_s8 + $0x8] sm:$0xff] }
 0x252   :  { %v3355_v60 = vld [vmem:[%s11892_s8 + $0x10] sm:$0xff]  ;;  %s6826_s8 = sshll.u32 %s9011_s29, 4  ;;  %s6827_s8 = int_to_ptr.vmem [resolvable:$true] %s6826_s8 }
 0x253   :  { %s8941_s26 = scalar_lea.vmem %s6827_s8, 32  ;;  %p8946_p1 = scmp.lt.s32.totalorder %s6827_s8, %s6827_s8 }
 0x254   :  { %p8942_p0 = scmp.ne.s32.totalorder %s6827_s8, %s8941_s26  ;;  %p8947_p2 = scmp.lt.s32.totalorder %s8941_s26, %s8941_s26 }
 0x256   :  { %p8948_p3 = por %p8947_p2, %p8946_p1 }
 0x258   :  { %p8949_p4 = pnand %p8948_p3, %p8942_p0 }
 0x25b   :  { %v3137_v1 = vpop.f32.mrf.mxu1 }
 0x25c   :  { %v3138_v4 = vadd.f32 %v3137_v1, %v3097_v0  ;;  %v8347_v0 = vld [vmem:[%s11894_s10 + $0x578] ss:$100 sps:$4 sm:$0xff]  }
 0x25d   :  { %v3139_v5 = vpop.f32.mrf.mxu1  ;;  %v8355_v1 = vld [vmem:[%s11894_s10 + $0x4b4] ss:$100 sps:$4 sm:$0xff]  }
 0x25e   :  { %v3140_v7 = vadd.f32 %v3139_v5, %v3099_v32  ;;  %v3144_v11 = vmax.f32 %v3138_v4, 0.0  ;;  %v8353_v32 = vld [vmem:[%s11894_s10 + $0x4b0] ss:$100 sps:$4 sm:$0xff]   ;;  %v8359_v5 = vld [vmem:[%s11894_s10 + $0x3e8] ss:$100 sps:$4 sm:$0xff]  }
 0x25f   :  { %v3141_v8 = vpop.f32.mrf.mxu1  ;;  %v8361_v4 = vld [vmem:[%s11894_s10 + $0x3ec] ss:$100 sps:$4 sm:$0xff]  }
 0x260   :  { %v3145_v9 = vmax.f32 %v3140_v7, 0.0  ;;  %v8367_v7 = vld [vmem:[%s11894_s10 + $0x324] ss:$100 sps:$4 sm:$0xff]  }
 0x261   :  { %v3142_v12 = vpop.f32.mrf.mxu1  ;;  %v8365_v8 = vld [vmem:[%s11894_s10 + $0x320] ss:$100 sps:$4 sm:$0xff]  }
 0x262   :  { %3249 = vmatprep.mubr.f32.mxu1 %v3145_v9  ;;  %v8373_v9 = vld [vmem:[%s11894_s10 + $0x25c] ss:$100 sps:$4 sm:$0xff]   ;;  %v8379_v12 = vld [vmem:[%s11894_s10 + $0x194] ss:$100 sps:$4 sm:$0xff]  }
 0x263   :  { %3250 = vmatmul.mubr.f32.vlgmr.msra.gmra.mxu1 %v3144_v11  ;;  %v8371_v11 = vld [vmem:[%s11894_s10 + $0x258] ss:$100 sps:$4 sm:$0xff]  }
 0x264   :  { %6059 = vmatpush1.bf16.msra.mxu1 %v8350_v24  ;;  %v8413_v24 = vld [vmem:[%s11894_s10 + $0x960] ss:$100 sps:$4 sm:$0xff]  }
 0x265   :  { %6060 = vmatprep.subr.bf16.mxu1 %v8358_v27  ;;  %v8427_v27 = vld [vmem:[%s11894_s10 + $0x7d4] ss:$100 sps:$4 sm:$0xff]  }
 0x268   :  { %6061 = vmatpush1.bf16.msra.mxu1 %v8356_v28  ;;  %v8430_v28 = vld [vmem:[%s11894_s10 + $0x7dc] ss:$100 sps:$4 sm:$0xff]  }
 0x269   :  { %6062 = vmatprep.subr.bf16.mxu1 %v8364_v31  ;;  %v8425_v31 = vld [vmem:[%s11894_s10 + $0x7d0] ss:$100 sps:$4 sm:$0xff]  }
 0x26c   :  { %6063 = vmatpush1.bf16.msra.mxu1 %v8362_v33  ;;  %v8428_v33 = vld [vmem:[%s11894_s10 + $0x7d8] ss:$100 sps:$4 sm:$0xff]  }
 0x26d   :  { %6064 = vmatprep.subr.bf16.mxu1 %v8370_v34  ;;  %v8433_v34 = vld [vmem:[%s11894_s10 + $0x70c] ss:$100 sps:$4 sm:$0xff]  }
 0x270   :  { %6065 = vmatpush1.bf16.msra.mxu1 %v8368_v3  ;;  %v8436_v3 = vld [vmem:[%s11894_s10 + $0x714] ss:$100 sps:$4 sm:$0xff]  }
 0x271   :  { %6066 = vmatprep.subr.bf16.mxu1 %v8376_v36  ;;  %v8431_v36 = vld [vmem:[%s11894_s10 + $0x708] ss:$100 sps:$4 sm:$0xff]  }
 0x274   :  { %6067 = vmatpush1.bf16.msra.mxu1 %v8374_v37  ;;  %v8434_v37 = vld [vmem:[%s11894_s10 + $0x710] ss:$100 sps:$4 sm:$0xff]  }
 0x275   :  { %6068 = vmatprep.subr.bf16.mxu1 %v8382_v10  ;;  %v8439_v10 = vld [vmem:[%s11894_s10 + $0x644] ss:$100 sps:$4 sm:$0xff]  }
 0x278   :  { %6069 = vmatpush1.bf16.msra.mxu1 %v8380_v2  ;;  %v8442_v2 = vld [vmem:[%s11894_s10 + $0x64c] ss:$100 sps:$4 sm:$0xff]  }
 0x279   :  { %6070 = vmatprep.subr.bf16.mxu1 %v8388_v38  ;;  %v8437_v38 = vld [vmem:[%s11894_s10 + $0x640] ss:$100 sps:$4 sm:$0xff]  }
 0x27c   :  { %6071 = vmatpush1.bf16.msra.mxu1 %v8386_v39  ;;  %v8440_v39 = vld [vmem:[%s11894_s10 + $0x648] ss:$100 sps:$4 sm:$0xff]  }
 0x27d   :  { %6072 = vmatprep.subr.bf16.mxu1 %v8394_v40  ;;  %v8445_v40 = vld [vmem:[%s11894_s10 + $0x58c] ss:$100 sps:$4 sm:$0xff]  }
 0x280   :  { %6073 = vmatpush1.bf16.msra.mxu1 %v8392_v41  ;;  %v8448_v41 = vld [vmem:[%s11894_s10 + $0x594] ss:$100 sps:$4 sm:$0xff]  }
 0x281   :  { %6074 = vmatprep.subr.bf16.mxu1 %v8400_v43  ;;  %v7258_v43 = vld [vmem:[%s11891_s7] ss:$0 sm:$0xff] }
 0x284   :  { %6075 = vmatpush2.bf16.msra.mxu1 %v8398_v44 }
 0x285   :  { %6076 = vmatprep.subr.bf16.mxu1 %v8406_v46  ;;  %v3359_v46 = vld [vmem:[%s11893_s9] sm:$0x3] }
 0x288   :  { %6077 = vmatpush2.bf16.msra.mxu1 %v8404_v47 }
 0x289   :  { %6078 = vmatprep.subr.bf16.mxu1 %v8412_v6 }
 0x28c   :  { %6079 = vmatpush2.bf16.msra.mxu1 %v8410_v50  ;;  %v3364_v50 = vrot.slane %v3359_v46, %v9930_v45 }
 0x28d   :  { %6080 = vmatprep.subr.bf16.mxu1 %v8418_v51  ;;  %v3368_v51 = vrot.slane %v3359_v46, %v9939_v48  ;;  %v8520_v46 = vld [vmem:[%s11894_s10 + $0x8b4] ss:$100 sps:$4 sm:$0xff]  }
 0x290   :  { %6081 = vmatpush2.bf16.msra.mxu1 %v8416_v52 }
 0x291   :  { %6082 = vmatprep.subr.bf16.mxu1 %v8424_v53 }
 0x294   :  { %6083 = vmatpush2.bf16.msra.mxu1 %v8422_v54 }
 0x295   :  { %6084 = vmatprep.subr.bf16.mxu1 %v8430_v28  ;;  %v8491_v28 = vld [vmem:[%s11894_s10 + $0xbc8] ss:$100 sps:$4 sm:$0xff]  }
 0x298   :  { %6085 = vmatpush2.bf16.msra.mxu1 %v8428_v33  ;;  %v8499_v33 = vld [vmem:[%s11894_s10 + $0xb04] ss:$100 sps:$4 sm:$0xff]  }
 0x299   :  { %6086 = vmatprep.subr.bf16.mxu1 %v8436_v3  ;;  %v8497_v3 = vld [vmem:[%s11894_s10 + $0xb00] ss:$100 sps:$4 sm:$0xff]  }
 0x29c   :  { %6087 = vmatpush2.bf16.msra.mxu1 %v8434_v37  ;;  %v8505_v37 = vld [vmem:[%s11894_s10 + $0xa3c] ss:$100 sps:$4 sm:$0xff]  }
 0x29d   :  { %6088 = vmatprep.subr.bf16.mxu1 %v8442_v2  ;;  %v8503_v2 = vld [vmem:[%s11894_s10 + $0xa38] ss:$100 sps:$4 sm:$0xff]  }
 0x2a0   :  { %6089 = vmatpush2.bf16.msra.mxu1 %v8440_v39  ;;  %v8511_v39 = vld [vmem:[%s11894_s10 + $0x974] ss:$100 sps:$4 sm:$0xff]  }
 0x2a1   :  { %6140 = vmatprep.subr.bf16.mxu1 %v8448_v41  ;;  %v8509_v41 = vld [vmem:[%s11894_s10 + $0x970] ss:$100 sps:$4 sm:$0xff]  }
 0x323   :  { %v7709_v15 = vpop.f32.mrf.mxu1 }
 0x325   :  { %v7710_v17 = vpop.f32.mrf.mxu1 }
 0x326   :  { %v7711_v18 = vadd.f32 %v7710_v17, %v7709_v15  ;;  %v8391_v15 = vld [vmem:[%s11894_s10 + $0x4] ss:$100 sps:$4 sm:$0xff]   ;;  %v8397_v17 = vld [vmem:[%s11894_s10 + $0xbbc] ss:$100 sps:$4 sm:$0xff]  }
 0x328   :  { %v10483_v19 = vadd.f32 %v7711_v18, %v7257_v16  ;;  %v8389_v16 = vld [vmem:[%s11894_s10] ss:$100 sps:$4 sm:$0xff]   ;;  %v8395_v18 = vld [vmem:[%s11894_s10 + $0xbb8] ss:$100 sps:$4 sm:$0xff]  }
 0x32a   :  { %v3256_v20 = vmul.f32 0.5, %v10483_v19  ;;  %6575 = vst.msk [vmem:[#allocation2] sm:$0x3] %vm6574_vm2, %v10483_v19 }
 0x32c   :  { %v3257_v21 = vmul.f32 1.442695, %v3256_v20  ;;  %v8401_v20 = vld [vmem:[%s11894_s10 + $0xaf0] ss:$100 sps:$4 sm:$0xff]  }
 0x32e   :  { %8939 = vpow2.f32 %v3257_v21  ;;  %v8409_v21 = vld [vmem:[%s11894_s10 + $0xa2c] ss:$100 sps:$4 sm:$0xff]  }
 0x33b   :  { %v8940_v26 = vpop.eup %8939 }
 0x33c   :  { %3260 = vrot.lane.b32.xlu0 %v8940_v26, %s9009_s22  ;;  %v8419_v26 = vld [vmem:[%s11894_s10 + $0x898] ss:$100 sps:$4 sm:$0xff]  }
 0x340   :  { %6577 = vrot.lane.b32.xlu0 %v10483_v19, %s9009_s22 }
 0x3ae   :  { %v3261_v55 = vpop.permute.xlu0 %3260 }
 0x3af   :  { %v3263_v56 = vmul.f32 %v3261_v55, %v3255_v30 }
 0x3b1   :  { %v3264_v29 = vadd.f32 %v3263_v56, %v10483_v19  ;;  %v8403_v19 = vld [vmem:[%s11894_s10 + $0xaf4] ss:$100 sps:$4 sm:$0xff]  }
 0x3b2   :  { %v6578_v58 = vpop.permute.xlu0 %6577 }
 0x3b3   :  { %6581 = vst.msk [vmem:[%s11898_s14] sm:$0x3] %vm6574_vm2, %v3264_v29  ;;  %6580 = vst.msk [vmem:[#allocation4] sm:$0x3] %vm6574_vm2, %v6578_v58  ;;  %7745 = vmatmul.mubr.msk.f32.vlgmr.msra.gmra.mxu0 %vm3275_vm4, %v3264_v29  ;;  %v8446_v58 = vld [vmem:[%s11894_s10 + $0x590] ss:$100 sps:$4 sm:$0xff]  }
 0x3b4   :  { %7262 = vmatpush1.msk.msra.mxu0 %vm3279_vm1, %v3357_v57  ;;  %3441 = vmatprep.mubr.f32.mxu0 %v9007_v14  ;;  %v8385_v14 = vld [vmem:[%s11894_s10 + $0xcc] ss:$100 sps:$4 sm:$0xff]  }
 0x3b5   :  { %3405 = vmatprep.subr.mxu0 %v3356_v59  ;;  %v8443_v57 = vld [vmem:[%s11894_s10 + $0x588] ss:$100 sps:$4 sm:$0xff]  }
 0x3b6   :  { %3406 = vmatpush1.msra.mxu0 %v3355_v60  ;;  %v8451_v60 = vld [vmem:[%s11894_s10 + $0x4c4] ss:$100 sps:$4 sm:$0xff]  }
 0x3b7   :  { %3407 = vmatprep.subr.mxu0 %v3354_v61  ;;  %v8454_v61 = vld [vmem:[%s11894_s10 + $0x4cc] ss:$100 sps:$4 sm:$0xff]  }
 0x3b8   :  { %3408 = vmatpush1.msra.mxu0 %v3353_v62  ;;  %v8449_v62 = vld [vmem:[%s11894_s10 + $0x4c0] ss:$100 sps:$4 sm:$0xff]  }
 0x3b9   :  { %7263 = vmatmul.mubr.msk.f32.vlgmr.msra.gmra.mxu0 %vm3275_vm4, %v3264_v29  ;;  %6017 = vmatprep.subr.bf16.mxu0 %v8349_v63  ;;  %v8452_v63 = vld [vmem:[%s11894_s10 + $0x4c8] ss:$100 sps:$4 sm:$0xff]  }
 0x3ba   :  { %6018 = vmatpush1.bf16.msra.mxu0 %v8347_v0  ;;  %v8457_v0 = vld [vmem:[%s11894_s10 + $0x3fc] ss:$100 sps:$4 sm:$0xff]  }
 0x3bb   :  { %6019 = vmatprep.subr.bf16.mxu0 %v8355_v1  ;;  %v8460_v1 = vld [vmem:[%s11894_s10 + $0x404] ss:$100 sps:$4 sm:$0xff]  }
 0x3be   :  { %6020 = vmatpush1.bf16.msra.mxu0 %v8353_v32  ;;  %v8455_v32 = vld [vmem:[%s11894_s10 + $0x3f8] ss:$100 sps:$4 sm:$0xff]  }
 0x3bf   :  { %6021 = vmatprep.subr.bf16.mxu0 %v8361_v4  ;;  %v8458_v4 = vld [vmem:[%s11894_s10 + $0x400] ss:$100 sps:$4 sm:$0xff]  }
 0x3c2   :  { %6022 = vmatpush1.bf16.msra.mxu0 %v8359_v5  ;;  %v8463_v5 = vld [vmem:[%s11894_s10 + $0x334] ss:$100 sps:$4 sm:$0xff]  }
 0x3c3   :  { %6023 = vmatprep.subr.bf16.mxu0 %v8367_v7  ;;  %v8466_v7 = vld [vmem:[%s11894_s10 + $0x33c] ss:$100 sps:$4 sm:$0xff]  }
 0x3c6   :  { %6024 = vmatpush1.bf16.msra.mxu0 %v8365_v8  ;;  %v8461_v8 = vld [vmem:[%s11894_s10 + $0x330] ss:$100 sps:$4 sm:$0xff]  }
 0x3c7   :  { %6025 = vmatprep.subr.bf16.mxu0 %v8373_v9  ;;  %v8464_v9 = vld [vmem:[%s11894_s10 + $0x338] ss:$100 sps:$4 sm:$0xff]  }
 0x3ca   :  { %6026 = vmatpush1.bf16.msra.mxu0 %v8371_v11  ;;  %v8469_v11 = vld [vmem:[%s11894_s10 + $0x26c] ss:$100 sps:$4 sm:$0xff]  }
 0x3cb   :  { %6027 = vmatprep.subr.bf16.mxu0 %v8379_v12  ;;  %v8472_v12 = vld [vmem:[%s11894_s10 + $0x274] ss:$100 sps:$4 sm:$0xff]  }
 0x3ce   :  { %6028 = vmatpush1.bf16.msra.mxu0 %v8377_v13  ;;  %v8467_v13 = vld [vmem:[%s11894_s10 + $0x268] ss:$100 sps:$4 sm:$0xff]  }
 0x3cf   :  { %6029 = vmatprep.subr.bf16.mxu0 %v8385_v14  ;;  %v8470_v14 = vld [vmem:[%s11894_s10 + $0x270] ss:$100 sps:$4 sm:$0xff]  }
 0x3d2   :  { %6030 = vmatpush1.bf16.msra.mxu0 %v8383_v35  ;;  %v8475_v35 = vld [vmem:[%s11894_s10 + $0x1a4] ss:$100 sps:$4 sm:$0xff]  }
 0x3d3   :  { %6031 = vmatprep.subr.bf16.mxu0 %v8391_v15  ;;  %v8478_v15 = vld [vmem:[%s11894_s10 + $0x1ac] ss:$100 sps:$4 sm:$0xff]  }
 0x3d6   :  { %6032 = vmatpush1.bf16.msra.mxu0 %v8389_v16  ;;  %v8473_v16 = vld [vmem:[%s11894_s10 + $0x1a0] ss:$100 sps:$4 sm:$0xff]  }
 0x3d7   :  { %6033 = vmatprep.subr.bf16.mxu0 %v8397_v17  ;;  %v8476_v17 = vld [vmem:[%s11894_s10 + $0x1a8] ss:$100 sps:$4 sm:$0xff]  }
 0x3da   :  { %6034 = vmatpush2.bf16.msra.mxu0 %v8395_v18  ;;  %v8481_v18 = vld [vmem:[%s11894_s10 + $0xdc] ss:$100 sps:$4 sm:$0xff]  }
 0x3db   :  { %6035 = vmatprep.subr.bf16.mxu0 %v8403_v19  ;;  %v8484_v19 = vld [vmem:[%s11894_s10 + $0xe4] ss:$100 sps:$4 sm:$0xff]  }
 0x3de   :  { %6036 = vmatpush2.bf16.msra.mxu0 %v8401_v20  ;;  %v8479_v20 = vld [vmem:[%s11894_s10 + $0xd8] ss:$100 sps:$4 sm:$0xff]  }
 0x3df   :  { %6037 = vmatprep.subr.bf16.mxu0 %v8409_v21  ;;  %v8482_v21 = vld [vmem:[%s11894_s10 + $0xe0] ss:$100 sps:$4 sm:$0xff]  }
 0x3e2   :  { %6038 = vmatpush2.bf16.msra.mxu0 %v8407_v22  ;;  %v8487_v22 = vld [vmem:[%s11894_s10 + $0x14] ss:$100 sps:$4 sm:$0xff]  }
 0x3e3   :  { %6039 = vmatprep.subr.bf16.mxu0 %v8415_v23  ;;  %v8490_v23 = vld [vmem:[%s11894_s10 + $0x1c] ss:$100 sps:$4 sm:$0xff]  }
 0x3e6   :  { %6040 = vmatpush2.bf16.msra.mxu0 %v8413_v24  ;;  %v8485_v24 = vld [vmem:[%s11894_s10 + $0x10] ss:$100 sps:$4 sm:$0xff]  }
 0x3e7   :  { %6041 = vmatprep.subr.bf16.mxu0 %v8421_v25  ;;  %v8488_v25 = vld [vmem:[%s11894_s10 + $0x18] ss:$100 sps:$4 sm:$0xff]  }
 0x3ea   :  { %6042 = vmatpush2.bf16.msra.mxu0 %v8419_v26  ;;  %v8493_v26 = vld [vmem:[%s11894_s10 + $0xbcc] ss:$100 sps:$4 sm:$0xff]  }
 0x3eb   :  { %6043 = vmatprep.subr.bf16.mxu0 %v8427_v27  ;;  %v8496_v27 = vld [vmem:[%s11894_s10 + $0xbd4] ss:$100 sps:$4 sm:$0xff]  }
 0x3ee   :  { %6044 = vmatpush2.bf16.msra.mxu0 %v8425_v31  ;;  %v8494_v31 = vld [vmem:[%s11894_s10 + $0xbd0] ss:$100 sps:$4 sm:$0xff]  }
 0x3ef   :  { %6045 = vmatprep.subr.bf16.mxu0 %v8433_v34  ;;  %v8502_v34 = vld [vmem:[%s11894_s10 + $0xb0c] ss:$100 sps:$4 sm:$0xff]  }
 0x3f2   :  { %6046 = vmatpush2.bf16.msra.mxu0 %v8431_v36  ;;  %v8500_v36 = vld [vmem:[%s11894_s10 + $0xb08] ss:$100 sps:$4 sm:$0xff]  }
 0x3f3   :  { %6047 = vmatprep.subr.bf16.mxu0 %v8439_v10  ;;  %v8508_v10 = vld [vmem:[%s11894_s10 + $0xa44] ss:$100 sps:$4 sm:$0xff]  }
 0x3f6   :  { %6048 = vmatpush2.bf16.msra.mxu0 %v8437_v38  ;;  %v8506_v38 = vld [vmem:[%s11894_s10 + $0xa40] ss:$100 sps:$4 sm:$0xff]  }
 0x3f7   :  { %6099 = vmatprep.subr.bf16.mxu0 %v8445_v40  ;;  %v8514_v40 = vld [vmem:[%s11894_s10 + $0x97c] ss:$100 sps:$4 sm:$0xff]  }
 0x473   :  { %v3349_v44 = vpop.f32.mrf.mxu0 }
 0x474   :  { %v3350_v47 = vadd.f32 %v7258_v43, %v3349_v44  ;;  %v8512_v43 = vld [vmem:[%s11894_s10 + $0x978] ss:$100 sps:$4 sm:$0xff]   ;;  %v8517_v44 = vld [vmem:[%s11894_s10 + $0x8ac] ss:$100 sps:$4 sm:$0xff]  }
 0x475   :  { %v7746_v6 = vpop.f32.mrf.mxu0 }
 0x476   :  { %6585 = vrot.lane.b32.xlu1 %v3350_v47, %s9010_s2  ;;  %6583 = vst.msk [vmem:[#allocation6] sm:$0x3] %vm6582_vm5, %v3350_v47  ;;  %v8515_v47 = vld [vmem:[%s11894_s10 + $0x8a8] ss:$100 sps:$4 sm:$0xff]   ;;  %v8518_v6 = vld [vmem:[%s11894_s10 + $0x8b0] ss:$100 sps:$4 sm:$0xff]  }
 0x479   :  { %v3443_v52 = vpop.f32.mrf.mxu0 }
 0x47a   :  { %v3444_v53 = vadd.f32 %v3443_v52, %v3364_v50  ;;  %v8523_v50 = vld [vmem:[%s11894_s10 + $0x7e4] ss:$100 sps:$4 sm:$0xff]  }
 0x47b   :  { %v3445_v54 = vpop.f32.mrf.mxu0  ;;  %v8521_v52 = vld [vmem:[%s11894_s10 + $0x7e0] ss:$100 sps:$4 sm:$0xff]  }
 0x47c   :  { %v3446_v30 = vadd.f32 %v3445_v54, %v3368_v51  ;;  %v3448_v55 = vmax.f32 %v3444_v53, 0.0  ;;  %v8526_v51 = vld [vmem:[%s11894_s10 + $0x7ec] ss:$100 sps:$4 sm:$0xff]   ;;  %v8529_v54 = vld [vmem:[%s11894_s10 + $0x71c] ss:$100 sps:$4 sm:$0xff]  }
 0x47d   :  { %v8524_v53 = vld [vmem:[%s11894_s10 + $0x7e8] ss:$100 sps:$4 sm:$0xff]  }
 0x47e   :  { %v3449_v56 = vmax.f32 %v3446_v30, 0.0  ;;  %v10739_v59 = vpack.c.bf16 %v3448_v55, %v3448_v55  ;;  %v8532_v30 = vld [vmem:[%s11894_s10 + $0x724] ss:$100 sps:$4 sm:$0xff]   ;;  %v8527_v55 = vld [vmem:[%s11894_s10 + $0x718] ss:$100 sps:$4 sm:$0xff]  }
 0x480   :  { %v10731_v29 = vpack.c.bf16 %v3449_v56, %v3449_v56  ;;  %v8530_v56 = vld [vmem:[%s11894_s10 + $0x720] ss:$100 sps:$4 sm:$0xff]  }
 0x482   :  { %6049 = vmatprep.mubr.bf16.mxu0 %v10731_v29  ;;  %6090 = vmatprep.mubr.bf16.mxu1 %v10731_v29 }
 0x483   :  { %6050 = vmatmul.mubr.bf16.vlgmr.msra.gmra.mxu0 %v10739_v59  ;;  %6091 = vmatmul.mubr.bf16.vlgmr.msra.gmra.mxu1 %v10739_v59 }
 0x484   :  { %6100 = vmatpush1.bf16.msra.mxu0 %v8443_v57  ;;  %6141 = vmatpush1.bf16.msra.mxu1 %v8446_v58  ;;  %v8535_v57 = vld [vmem:[%s11894_s10 + $0x654] ss:$100 sps:$4 sm:$0xff]   ;;  %v8538_v58 = vld [vmem:[%s11894_s10 + $0x65c] ss:$100 sps:$4 sm:$0xff]  }
 0x485   :  { %6131 = vmatprep.mubr.bf16.mxu0 %v10731_v29  ;;  %6172 = vmatprep.mubr.bf16.mxu1 %v10731_v29 }
 0x486   :  { %6101 = vmatprep.subr.bf16.mxu0 %v8451_v60  ;;  %6142 = vmatprep.subr.bf16.mxu1 %v8454_v61  ;;  %v8533_v60 = vld [vmem:[%s11894_s10 + $0x650] ss:$100 sps:$4 sm:$0xff]   ;;  %v8536_v61 = vld [vmem:[%s11894_s10 + $0x658] ss:$100 sps:$4 sm:$0xff]  }
 0x488   :  { %6102 = vmatpush1.bf16.msra.mxu0 %v8449_v62  ;;  %6143 = vmatpush1.bf16.msra.mxu1 %v8452_v63  ;;  %v8541_v62 = vld [vmem:[%s11894_s10 + $0x59c] ss:$100 sps:$4 sm:$0xff]   ;;  %v8544_v63 = vld [vmem:[%s11894_s10 + $0x5a4] ss:$100 sps:$4 sm:$0xff]  }
 0x489   :  { %6103 = vmatprep.subr.bf16.mxu0 %v8457_v0  ;;  %6144 = vmatprep.subr.bf16.mxu1 %v8460_v1  ;;  %v8539_v0 = vld [vmem:[%s11894_s10 + $0x598] ss:$100 sps:$4 sm:$0xff]   ;;  %v8542_v1 = vld [vmem:[%s11894_s10 + $0x5a0] ss:$100 sps:$4 sm:$0xff]  }
 0x48c   :  { %6104 = vmatpush1.bf16.msra.mxu0 %v8455_v32  ;;  %6145 = vmatpush1.bf16.msra.mxu1 %v8458_v4  ;;  %v8547_v32 = vld [vmem:[%s11894_s10 + $0x4d4] ss:$100 sps:$4 sm:$0xff]   ;;  %v8550_v4 = vld [vmem:[%s11894_s10 + $0x4dc] ss:$100 sps:$4 sm:$0xff]  }
 0x48d   :  { %6105 = vmatprep.subr.bf16.mxu0 %v8463_v5  ;;  %6146 = vmatprep.subr.bf16.mxu1 %v8466_v7  ;;  %v8545_v5 = vld [vmem:[%s11894_s10 + $0x4d0] ss:$100 sps:$4 sm:$0xff]   ;;  %v8548_v7 = vld [vmem:[%s11894_s10 + $0x4d8] ss:$100 sps:$4 sm:$0xff]  }
 0x490   :  { %6106 = vmatpush1.bf16.msra.mxu0 %v8461_v8  ;;  %6147 = vmatpush1.bf16.msra.mxu1 %v8464_v9  ;;  %v8553_v8 = vld [vmem:[%s11894_s10 + $0x40c] ss:$100 sps:$4 sm:$0xff]   ;;  %v8556_v9 = vld [vmem:[%s11894_s10 + $0x414] ss:$100 sps:$4 sm:$0xff]  }
 0x491   :  { %6107 = vmatprep.subr.bf16.mxu0 %v8469_v11  ;;  %6148 = vmatprep.subr.bf16.mxu1 %v8472_v12  ;;  %v8551_v11 = vld [vmem:[%s11894_s10 + $0x408] ss:$100 sps:$4 sm:$0xff]   ;;  %v8554_v12 = vld [vmem:[%s11894_s10 + $0x410] ss:$100 sps:$4 sm:$0xff]  }
 0x494   :  { %6108 = vmatpush1.bf16.msra.mxu0 %v8467_v13  ;;  %6149 = vmatpush1.bf16.msra.mxu1 %v8470_v14  ;;  %v8559_v13 = vld [vmem:[%s11894_s10 + $0x344] ss:$100 sps:$4 sm:$0xff]   ;;  %v8562_v14 = vld [vmem:[%s11894_s10 + $0x34c] ss:$100 sps:$4 sm:$0xff]  }
 0x495   :  { %6109 = vmatprep.subr.bf16.mxu0 %v8475_v35  ;;  %6150 = vmatprep.subr.bf16.mxu1 %v8478_v15  ;;  %v8557_v35 = vld [vmem:[%s11894_s10 + $0x340] ss:$100 sps:$4 sm:$0xff]   ;;  %v8560_v15 = vld [vmem:[%s11894_s10 + $0x348] ss:$100 sps:$4 sm:$0xff]  }
 0x498   :  { %6110 = vmatpush1.bf16.msra.mxu0 %v8473_v16  ;;  %6151 = vmatpush1.bf16.msra.mxu1 %v8476_v17  ;;  %v8565_v16 = vld [vmem:[%s11894_s10 + $0x27c] ss:$100 sps:$4 sm:$0xff]   ;;  %v8568_v17 = vld [vmem:[%s11894_s10 + $0x284] ss:$100 sps:$4 sm:$0xff]  }
 0x499   :  { %6111 = vmatprep.subr.bf16.mxu0 %v8481_v18  ;;  %6152 = vmatprep.subr.bf16.mxu1 %v8484_v19  ;;  %v8563_v18 = vld [vmem:[%s11894_s10 + $0x278] ss:$100 sps:$4 sm:$0xff]   ;;  %v8566_v19 = vld [vmem:[%s11894_s10 + $0x280] ss:$100 sps:$4 sm:$0xff]  }
 0x49c   :  { %6112 = vmatpush1.bf16.msra.mxu0 %v8479_v20  ;;  %6153 = vmatpush1.bf16.msra.mxu1 %v8482_v21  ;;  %v8571_v20 = vld [vmem:[%s11894_s10 + $0x1b4] ss:$100 sps:$4 sm:$0xff]   ;;  %v8574_v21 = vld [vmem:[%s11894_s10 + $0x1bc] ss:$100 sps:$4 sm:$0xff]  }
 0x49d   :  { %6113 = vmatprep.subr.bf16.mxu0 %v8487_v22  ;;  %6154 = vmatprep.subr.bf16.mxu1 %v8490_v23  ;;  %v8569_v22 = vld [vmem:[%s11894_s10 + $0x1b0] ss:$100 sps:$4 sm:$0xff]   ;;  %v8572_v23 = vld [vmem:[%s11894_s10 + $0x1b8] ss:$100 sps:$4 sm:$0xff]  }
 0x4a0   :  { %6114 = vmatpush1.bf16.msra.mxu0 %v8485_v24  ;;  %6155 = vmatpush1.bf16.msra.mxu1 %v8488_v25  ;;  %v8577_v24 = vld [vmem:[%s11894_s10 + $0xec] ss:$100 sps:$4 sm:$0xff]   ;;  %v8580_v25 = vld [vmem:[%s11894_s10 + $0xf4] ss:$100 sps:$4 sm:$0xff]  }
 0x4a1   :  { %6115 = vmatprep.subr.bf16.mxu0 %v8493_v26  ;;  %6156 = vmatprep.subr.bf16.mxu1 %v8496_v27  ;;  %v8575_v26 = vld [vmem:[%s11894_s10 + $0xe8] ss:$100 sps:$4 sm:$0xff]   ;;  %v8578_v27 = vld [vmem:[%s11894_s10 + $0xf0] ss:$100 sps:$4 sm:$0xff]  }
 0x4a4   :  { %6116 = vmatpush2.bf16.msra.mxu0 %v8491_v28  ;;  %6157 = vmatpush2.bf16.msra.mxu1 %v8494_v31  ;;  %v8583_v28 = vld [vmem:[%s11894_s10 + $0x24] ss:$100 sps:$4 sm:$0xff]   ;;  %v8586_v31 = vld [vmem:[%s11894_s10 + $0x2c] ss:$100 sps:$4 sm:$0xff]  }
 0x4a5   :  { %6117 = vmatprep.subr.bf16.mxu0 %v8499_v33  ;;  %6158 = vmatprep.subr.bf16.mxu1 %v8502_v34  ;;  %v8581_v33 = vld [vmem:[%s11894_s10 + $0x20] ss:$100 sps:$4 sm:$0xff]   ;;  %v8584_v34 = vld [vmem:[%s11894_s10 + $0x28] ss:$100 sps:$4 sm:$0xff]  }
 0x4a8   :  { %6118 = vmatpush2.bf16.msra.mxu0 %v8497_v3  ;;  %6159 = vmatpush2.bf16.msra.mxu1 %v8500_v36  ;;  %v8589_v3 = vld [vmem:[%s11894_s10 + $0xbdc] ss:$100 sps:$4 sm:$0xff]   ;;  %v8592_v36 = vld [vmem:[%s11894_s10 + $0xbe4] ss:$100 sps:$4 sm:$0xff]  }
 0x4a9   :  { %6119 = vmatprep.subr.bf16.mxu0 %v8505_v37  ;;  %6160 = vmatprep.subr.bf16.mxu1 %v8508_v10  ;;  %v8587_v37 = vld [vmem:[%s11894_s10 + $0xbd8] ss:$100 sps:$4 sm:$0xff]   ;;  %v8590_v10 = vld [vmem:[%s11894_s10 + $0xbe0] ss:$100 sps:$4 sm:$0xff]  }
 0x4ac   :  { %6120 = vmatpush2.bf16.msra.mxu0 %v8503_v2  ;;  %6161 = vmatpush2.bf16.msra.mxu1 %v8506_v38  ;;  %v8595_v2 = vld [vmem:[%s11894_s10 + $0xb14] ss:$100 sps:$4 sm:$0xff]   ;;  %v8598_v38 = vld [vmem:[%s11894_s10 + $0xb1c] ss:$100 sps:$4 sm:$0xff]  }
 0x4ad   :  { %6121 = vmatprep.subr.bf16.mxu0 %v8511_v39  ;;  %6162 = vmatprep.subr.bf16.mxu1 %v8514_v40  ;;  %v8593_v39 = vld [vmem:[%s11894_s10 + $0xb10] ss:$100 sps:$4 sm:$0xff]   ;;  %v8596_v40 = vld [vmem:[%s11894_s10 + $0xb18] ss:$100 sps:$4 sm:$0xff]  }
 0x4b0   :  { %6122 = vmatpush2.bf16.msra.mxu0 %v8509_v41  ;;  %6163 = vmatpush2.bf16.msra.mxu1 %v8512_v43  ;;  %v8601_v41 = vld [vmem:[%s11894_s10 + $0xa4c] ss:$100 sps:$4 sm:$0xff]   ;;  %v8604_v43 = vld [vmem:[%s11894_s10 + $0xa54] ss:$100 sps:$4 sm:$0xff]  }
 0x4b1   :  { %6123 = vmatprep.subr.bf16.mxu0 %v8517_v44  ;;  %6164 = vmatprep.subr.bf16.mxu1 %v8520_v46  ;;  %v8599_v46 = vld [vmem:[%s11894_s10 + $0xa48] ss:$100 sps:$4 sm:$0xff]  }
 0x4b4   :  { %6124 = vmatpush2.bf16.msra.mxu0 %v8515_v47  ;;  %6165 = vmatpush2.bf16.msra.mxu1 %v8518_v6  ;;  %v8602_v47 = vld [vmem:[%s11894_s10 + $0xa50] ss:$100 sps:$4 sm:$0xff]   ;;  %v8607_v6 = vld [vmem:[%s11894_s10 + $0x984] ss:$100 sps:$4 sm:$0xff]  }
 0x4b5   :  { %6125 = vmatprep.subr.bf16.mxu0 %v8523_v50  ;;  %6166 = vmatprep.subr.bf16.mxu1 %v8526_v51  ;;  %v8610_v50 = vld [vmem:[%s11894_s10 + $0x98c] ss:$100 sps:$4 sm:$0xff]   ;;  %v8605_v51 = vld [vmem:[%s11894_s10 + $0x980] ss:$100 sps:$4 sm:$0xff]  }
 0x4b8   :  { %6126 = vmatpush2.bf16.msra.mxu0 %v8521_v52  ;;  %6167 = vmatpush2.bf16.msra.mxu1 %v8524_v53  ;;  %v8608_v52 = vld [vmem:[%s11894_s10 + $0x988] ss:$100 sps:$4 sm:$0xff]   ;;  %v8613_v53 = vld [vmem:[%s11894_s10 + $0x8bc] ss:$100 sps:$4 sm:$0xff]  }
 0x4b9   :  { %6127 = vmatprep.subr.bf16.mxu0 %v8529_v54  ;;  %6168 = vmatprep.subr.bf16.mxu1 %v8532_v30  ;;  %v8616_v54 = vld [vmem:[%s11894_s10 + $0x8c4] ss:$100 sps:$4 sm:$0xff]   ;;  %v8611_v30 = vld [vmem:[%s11894_s10 + $0x8b8] ss:$100 sps:$4 sm:$0xff]  }
 0x4bc   :  { %6128 = vmatpush2.bf16.msra.mxu0 %v8527_v55  ;;  %6169 = vmatpush2.bf16.msra.mxu1 %v8530_v56  ;;  %v8614_v55 = vld [vmem:[%s11894_s10 + $0x8c0] ss:$100 sps:$4 sm:$0xff]   ;;  %v8619_v56 = vld [vmem:[%s11894_s10 + $0x7f4] ss:$100 sps:$4 sm:$0xff]  }
 0x4bd   :  { %6129 = vmatprep.subr.bf16.mxu0 %v8535_v57  ;;  %6170 = vmatprep.subr.bf16.mxu1 %v8538_v58  ;;  %v8622_v57 = vld [vmem:[%s11894_s10 + $0x7fc] ss:$100 sps:$4 sm:$0xff]   ;;  %v8617_v58 = vld [vmem:[%s11894_s10 + $0x7f0] ss:$100 sps:$4 sm:$0xff]  }
 0x4c0   :  { %6130 = vmatpush2.bf16.msra.mxu0 %v8533_v60  ;;  %6171 = vmatpush2.bf16.msra.mxu1 %v8536_v61  ;;  %v8620_v60 = vld [vmem:[%s11894_s10 + $0x7f8] ss:$100 sps:$4 sm:$0xff]   ;;  %v8625_v61 = vld [vmem:[%s11894_s10 + $0x72c] ss:$100 sps:$4 sm:$0xff]  }
 0x4c1   :  { %6181 = vmatprep.subr.bf16.mxu0 %v8541_v62  ;;  %6222 = vmatprep.subr.bf16.mxu1 %v8544_v63  ;;  %v8628_v62 = vld [vmem:[%s11894_s10 + $0x734] ss:$100 sps:$4 sm:$0xff]   ;;  %v8623_v63 = vld [vmem:[%s11894_s10 + $0x728] ss:$100 sps:$4 sm:$0xff]  }
 0x4c3   :  { %6132 = vmatmul.mubr.bf16.vlgmr.msra.gmra.mxu0 %v10739_v59  ;;  %6173 = vmatmul.mubr.bf16.vlgmr.msra.gmra.mxu1 %v10739_v59 }
 0x4c4   :  { %6182 = vmatpush1.bf16.msra.mxu0 %v8539_v0  ;;  %6213 = vmatprep.mubr.bf16.mxu0 %v10731_v29  ;;  %v8626_v0 = vld [vmem:[%s11894_s10 + $0x730] ss:$100 sps:$4 sm:$0xff]  }
 0x4c5   :  { %6223 = vmatpush1.bf16.msra.mxu1 %v8542_v1  ;;  %6254 = vmatprep.mubr.bf16.mxu1 %v10731_v29  ;;  %v8631_v1 = vld [vmem:[%s11894_s10 + $0x664] ss:$100 sps:$4 sm:$0xff]  }
 0x4c6   :  { %6183 = vmatprep.subr.bf16.mxu0 %v8547_v32  ;;  %6224 = vmatprep.subr.bf16.mxu1 %v8550_v4  ;;  %v8634_v32 = vld [vmem:[%s11894_s10 + $0x66c] ss:$100 sps:$4 sm:$0xff]   ;;  %v8629_v4 = vld [vmem:[%s11894_s10 + $0x660] ss:$100 sps:$4 sm:$0xff]  }
 0x4c8   :  { %6184 = vmatpush1.bf16.msra.mxu0 %v8545_v5  ;;  %v8632_v5 = vld [vmem:[%s11894_s10 + $0x668] ss:$100 sps:$4 sm:$0xff]  }
 0x4c9   :  { %6225 = vmatpush1.bf16.msra.mxu1 %v8548_v7  ;;  %6185 = vmatprep.subr.bf16.mxu0 %v8553_v8  ;;  %v8637_v7 = vld [vmem:[%s11894_s10 + $0x5ac] ss:$100 sps:$4 sm:$0xff]   ;;  %v8640_v8 = vld [vmem:[%s11894_s10 + $0x5b4] ss:$100 sps:$4 sm:$0xff]  }
 0x4ca   :  { %6226 = vmatprep.subr.bf16.mxu1 %v8556_v9  ;;  %v8635_v9 = vld [vmem:[%s11894_s10 + $0x5a8] ss:$100 sps:$4 sm:$0xff]  }
 0x4cc   :  { %6186 = vmatpush1.bf16.msra.mxu0 %v8551_v11  ;;  %v8638_v11 = vld [vmem:[%s11894_s10 + $0x5b0] ss:$100 sps:$4 sm:$0xff]  }
 0x4cd   :  { %6227 = vmatpush1.bf16.msra.mxu1 %v8554_v12  ;;  %6187 = vmatprep.subr.bf16.mxu0 %v8559_v13  ;;  %v8643_v12 = vld [vmem:[%s11894_s10 + $0x4e4] ss:$100 sps:$4 sm:$0xff]   ;;  %v8646_v13 = vld [vmem:[%s11894_s10 + $0x4ec] ss:$100 sps:$4 sm:$0xff]  }
 0x4ce   :  { %6228 = vmatprep.subr.bf16.mxu1 %v8562_v14  ;;  %v8641_v14 = vld [vmem:[%s11894_s10 + $0x4e0] ss:$100 sps:$4 sm:$0xff]  }
 0x4d0   :  { %6188 = vmatpush1.bf16.msra.mxu0 %v8557_v35  ;;  %v8644_v35 = vld [vmem:[%s11894_s10 + $0x4e8] ss:$100 sps:$4 sm:$0xff]  }
 0x4d1   :  { %6229 = vmatpush1.bf16.msra.mxu1 %v8560_v15  ;;  %6189 = vmatprep.subr.bf16.mxu0 %v8565_v16  ;;  %v8649_v15 = vld [vmem:[%s11894_s10 + $0x41c] ss:$100 sps:$4 sm:$0xff]   ;;  %v8652_v16 = vld [vmem:[%s11894_s10 + $0x424] ss:$100 sps:$4 sm:$0xff]  }
 0x4d2   :  { %6230 = vmatprep.subr.bf16.mxu1 %v8568_v17  ;;  %v8647_v17 = vld [vmem:[%s11894_s10 + $0x418] ss:$100 sps:$4 sm:$0xff]  }
 0x4d4   :  { %6190 = vmatpush1.bf16.msra.mxu0 %v8563_v18  ;;  %v8650_v18 = vld [vmem:[%s11894_s10 + $0x420] ss:$100 sps:$4 sm:$0xff]  }
 0x4d5   :  { %6231 = vmatpush1.bf16.msra.mxu1 %v8566_v19  ;;  %6191 = vmatprep.subr.bf16.mxu0 %v8571_v20  ;;  %v8655_v19 = vld [vmem:[%s11894_s10 + $0x354] ss:$100 sps:$4 sm:$0xff]   ;;  %v8658_v20 = vld [vmem:[%s11894_s10 + $0x35c] ss:$100 sps:$4 sm:$0xff]  }
 0x4d6   :  { %6232 = vmatprep.subr.bf16.mxu1 %v8574_v21  ;;  %v8653_v21 = vld [vmem:[%s11894_s10 + $0x350] ss:$100 sps:$4 sm:$0xff]  }
 0x4d8   :  { %6192 = vmatpush1.bf16.msra.mxu0 %v8569_v22  ;;  %v8656_v22 = vld [vmem:[%s11894_s10 + $0x358] ss:$100 sps:$4 sm:$0xff]  }
 0x4d9   :  { %6233 = vmatpush1.bf16.msra.mxu1 %v8572_v23  ;;  %6193 = vmatprep.subr.bf16.mxu0 %v8577_v24  ;;  %v8661_v23 = vld [vmem:[%s11894_s10 + $0x28c] ss:$100 sps:$4 sm:$0xff]   ;;  %v8664_v24 = vld [vmem:[%s11894_s10 + $0x294] ss:$100 sps:$4 sm:$0xff]  }
 0x4da   :  { %6234 = vmatprep.subr.bf16.mxu1 %v8580_v25  ;;  %v8659_v25 = vld [vmem:[%s11894_s10 + $0x288] ss:$100 sps:$4 sm:$0xff]  }
 0x4dc   :  { %6194 = vmatpush1.bf16.msra.mxu0 %v8575_v26  ;;  %v8662_v26 = vld [vmem:[%s11894_s10 + $0x290] ss:$100 sps:$4 sm:$0xff]  }
 0x4dd   :  { %6235 = vmatpush1.bf16.msra.mxu1 %v8578_v27  ;;  %6195 = vmatprep.subr.bf16.mxu0 %v8583_v28  ;;  %v8667_v27 = vld [vmem:[%s11894_s10 + $0x1c4] ss:$100 sps:$4 sm:$0xff]   ;;  %v8670_v28 = vld [vmem:[%s11894_s10 + $0x1cc] ss:$100 sps:$4 sm:$0xff]  }
 0x4de   :  { %6236 = vmatprep.subr.bf16.mxu1 %v8586_v31  ;;  %v8665_v31 = vld [vmem:[%s11894_s10 + $0x1c0] ss:$100 sps:$4 sm:$0xff]  }
 0x4e0   :  { %6196 = vmatpush1.bf16.msra.mxu0 %v8581_v33  ;;  %v8668_v33 = vld [vmem:[%s11894_s10 + $0x1c8] ss:$100 sps:$4 sm:$0xff]  }
 0x4e1   :  { %6237 = vmatpush1.bf16.msra.mxu1 %v8584_v34  ;;  %6197 = vmatprep.subr.bf16.mxu0 %v8589_v3  ;;  %v8673_v34 = vld [vmem:[%s11894_s10 + $0xfc] ss:$100 sps:$4 sm:$0xff]   ;;  %v8676_v3 = vld [vmem:[%s11894_s10 + $0x104] ss:$100 sps:$4 sm:$0xff]  }
 0x4e2   :  { %6238 = vmatprep.subr.bf16.mxu1 %v8592_v36  ;;  %v8671_v36 = vld [vmem:[%s11894_s10 + $0xf8] ss:$100 sps:$4 sm:$0xff]  }
 0x4e4   :  { %6198 = vmatpush2.bf16.msra.mxu0 %v8587_v37  ;;  %v8674_v37 = vld [vmem:[%s11894_s10 + $0x100] ss:$100 sps:$4 sm:$0xff]  }
 0x4e5   :  { %6239 = vmatpush2.bf16.msra.mxu1 %v8590_v10  ;;  %6199 = vmatprep.subr.bf16.mxu0 %v8595_v2  ;;  %v8679_v10 = vld [vmem:[%s11894_s10 + $0x34] ss:$100 sps:$4 sm:$0xff]   ;;  %v8682_v2 = vld [vmem:[%s11894_s10 + $0x3c] ss:$100 sps:$4 sm:$0xff]  }
 0x4e6   :  { %6240 = vmatprep.subr.bf16.mxu1 %v8598_v38  ;;  %v8677_v38 = vld [vmem:[%s11894_s10 + $0x30] ss:$100 sps:$4 sm:$0xff]  }
 0x4e8   :  { %6200 = vmatpush2.bf16.msra.mxu0 %v8593_v39  ;;  %v6586_v44 = vpop.permute.xlu1 %6585  ;;  %v8680_v39 = vld [vmem:[%s11894_s10 + $0x38] ss:$100 sps:$4 sm:$0xff]  }
 0x4e9   :  { %6241 = vmatpush2.bf16.msra.mxu1 %v8596_v40  ;;  %6589 = vst.msk [vmem:[%s11900_s16] sm:$0x3] %vm6588_vm6, %v6586_v44  ;;  %6201 = vmatprep.subr.bf16.mxu0 %v8601_v41  ;;  %v8685_v40 = vld [vmem:[%s11894_s10 + $0xbec] ss:$100 sps:$4 sm:$0xff]   ;;  %v8688_v41 = vld [vmem:[%s11894_s10 + $0xbf4] ss:$100 sps:$4 sm:$0xff]  }
 0x4ea   :  { %6242 = vmatprep.subr.bf16.mxu1 %v8604_v43  ;;  %v8683_v43 = vld [vmem:[%s11894_s10 + $0xbe8] ss:$100 sps:$4 sm:$0xff]   ;;  %v8686_v44 = vld [vmem:[%s11894_s10 + $0xbf0] ss:$100 sps:$4 sm:$0xff]  }
 0x4ec   :  { %6202 = vmatpush2.bf16.msra.mxu0 %v8599_v46  ;;  %v8691_v46 = vld [vmem:[%s11894_s10 + $0xb24] ss:$100 sps:$4 sm:$0xff]  }
 0x4ed   :  { %6243 = vmatpush2.bf16.msra.mxu1 %v8602_v47  ;;  %6203 = vmatprep.subr.bf16.mxu0 %v8607_v6  ;;  %v8694_v47 = vld [vmem:[%s11894_s10 + $0xb2c] ss:$100 sps:$4 sm:$0xff]   ;;  %v8689_v6 = vld [vmem:[%s11894_s10 + $0xb20] ss:$100 sps:$4 sm:$0xff]  }
 0x4ee   :  { %6244 = vmatprep.subr.bf16.mxu1 %v8610_v50  ;;  %v8692_v50 = vld [vmem:[%s11894_s10 + $0xb28] ss:$100 sps:$4 sm:$0xff]  }
 0x4f0   :  { %6204 = vmatpush2.bf16.msra.mxu0 %v8605_v51  ;;  %v8697_v51 = vld [vmem:[%s11894_s10 + $0xa5c] ss:$100 sps:$4 sm:$0xff]  }
 0x4f1   :  { %6245 = vmatpush2.bf16.msra.mxu1 %v8608_v52  ;;  %6205 = vmatprep.subr.bf16.mxu0 %v8613_v53  ;;  %v8700_v52 = vld [vmem:[%s11894_s10 + $0xa64] ss:$100 sps:$4 sm:$0xff]   ;;  %v8695_v53 = vld [vmem:[%s11894_s10 + $0xa58] ss:$100 sps:$4 sm:$0xff]  }
 0x4f2   :  { %6246 = vmatprep.subr.bf16.mxu1 %v8616_v54  ;;  %v8698_v54 = vld [vmem:[%s11894_s10 + $0xa60] ss:$100 sps:$4 sm:$0xff]  }
 0x4f4   :  { %6206 = vmatpush2.bf16.msra.mxu0 %v8611_v30  ;;  %v8703_v30 = vld [vmem:[%s11894_s10 + $0x994] ss:$100 sps:$4 sm:$0xff]  }
 0x4f5   :  { %6247 = vmatpush2.bf16.msra.mxu1 %v8614_v55  ;;  %6207 = vmatprep.subr.bf16.mxu0 %v8619_v56  ;;  %v8706_v55 = vld [vmem:[%s11894_s10 + $0x99c] ss:$100 sps:$4 sm:$0xff]   ;;  %v8701_v56 = vld [vmem:[%s11894_s10 + $0x990] ss:$100 sps:$4 sm:$0xff]  }
 0x4f6   :  { %6248 = vmatprep.subr.bf16.mxu1 %v8622_v57  ;;  %v8704_v57 = vld [vmem:[%s11894_s10 + $0x998] ss:$100 sps:$4 sm:$0xff]  }
 0x4f8   :  { %6208 = vmatpush2.bf16.msra.mxu0 %v8617_v58  ;;  %v8709_v58 = vld [vmem:[%s11894_s10 + $0x8cc] ss:$100 sps:$4 sm:$0xff]  }
 0x4f9   :  { %6249 = vmatpush2.bf16.msra.mxu1 %v8620_v60  ;;  %6209 = vmatprep.subr.bf16.mxu0 %v8625_v61  ;;  %v8712_v60 = vld [vmem:[%s11894_s10 + $0x8d4] ss:$100 sps:$4 sm:$0xff]   ;;  %v8707_v61 = vld [vmem:[%s11894_s10 + $0x8c8] ss:$100 sps:$4 sm:$0xff]  }
 0x4fa   :  { %6250 = vmatprep.subr.bf16.mxu1 %v8628_v62  ;;  %v8710_v62 = vld [vmem:[%s11894_s10 + $0x8d0] ss:$100 sps:$4 sm:$0xff]  }
 0x4fc   :  { %6210 = vmatpush2.bf16.msra.mxu0 %v8623_v63  ;;  %v8715_v63 = vld [vmem:[%s11894_s10 + $0x804] ss:$100 sps:$4 sm:$0xff]  }
 0x4fd   :  { %6251 = vmatpush2.bf16.msra.mxu1 %v8626_v0  ;;  %6211 = vmatprep.subr.bf16.mxu0 %v8631_v1  ;;  %v8718_v0 = vld [vmem:[%s11894_s10 + $0x80c] ss:$100 sps:$4 sm:$0xff]   ;;  %v8713_v1 = vld [vmem:[%s11894_s10 + $0x800] ss:$100 sps:$4 sm:$0xff]  }
 0x4fe   :  { %6252 = vmatprep.subr.bf16.mxu1 %v8634_v32  ;;  %v8716_v32 = vld [vmem:[%s11894_s10 + $0x808] ss:$100 sps:$4 sm:$0xff]  }
 0x500   :  { %6212 = vmatpush2.bf16.msra.mxu0 %v8629_v4  ;;  %v8721_v4 = vld [vmem:[%s11894_s10 + $0x73c] ss:$100 sps:$4 sm:$0xff]  }
 0x501   :  { %6253 = vmatpush2.bf16.msra.mxu1 %v8632_v5  ;;  %6263 = vmatprep.subr.bf16.mxu0 %v8637_v7  ;;  %v8724_v5 = vld [vmem:[%s11894_s10 + $0x744] ss:$100 sps:$4 sm:$0xff]   ;;  %v8719_v7 = vld [vmem:[%s11894_s10 + $0x738] ss:$100 sps:$4 sm:$0xff]  }
 0x502   :  { %6304 = vmatprep.subr.bf16.mxu1 %v8640_v8  ;;  %v8722_v8 = vld [vmem:[%s11894_s10 + $0x740] ss:$100 sps:$4 sm:$0xff]  }
 0x503   :  { %6214 = vmatmul.mubr.bf16.vlgmr.msra.gmra.mxu0 %v10739_v59 }
 0x504   :  { %6255 = vmatmul.mubr.bf16.vlgmr.msra.gmra.mxu1 %v10739_v59  ;;  %6264 = vmatpush1.bf16.msra.mxu0 %v8635_v9  ;;  %v8727_v9 = vld [vmem:[%s11894_s10 + $0x674] ss:$100 sps:$4 sm:$0xff]  }
 0x505   :  { %6295 = vmatprep.mubr.bf16.mxu0 %v10731_v29  ;;  %6305 = vmatpush1.bf16.msra.mxu1 %v8638_v11  ;;  %v8730_v11 = vld [vmem:[%s11894_s10 + $0x67c] ss:$100 sps:$4 sm:$0xff]  }
 0x506   :  { %6336 = vmatprep.mubr.bf16.mxu1 %v10731_v29  ;;  %6265 = vmatprep.subr.bf16.mxu0 %v8643_v12  ;;  %v8725_v12 = vld [vmem:[%s11894_s10 + $0x670] ss:$100 sps:$4 sm:$0xff]  }
 0x507   :  { %6306 = vmatprep.subr.bf16.mxu1 %v8646_v13  ;;  %v11320_v13 = vsub.s32 2, %v9221_v42 }
 0x508   :  { %6266 = vmatpush1.bf16.msra.mxu0 %v8641_v14  ;;  %v8728_v14 = vld [vmem:[%s11894_s10 + $0x678] ss:$100 sps:$4 sm:$0xff]  }
 0x509   :  { %6307 = vmatpush1.bf16.msra.mxu1 %v8644_v35  ;;  %6267 = vmatprep.subr.bf16.mxu0 %v8649_v15  ;;  %v8733_v35 = vld [vmem:[%s11894_s10 + $0x5bc] ss:$100 sps:$4 sm:$0xff]  }
 0x50a   :  { %6308 = vmatprep.subr.bf16.mxu1 %v8652_v16  ;;  %v11331_v15 = vld [vmem:[%s11895_s11] sm:$0xff] }
 0x50b   :  { %v8736_v16 = vld [vmem:[%s11894_s10 + $0x5c4] ss:$100 sps:$4 sm:$0xff]  }
 0x50c   :  { %6268 = vmatpush1.bf16.msra.mxu0 %v8647_v17  ;;  %v11337_v17 = vsub.s32 3, %v9221_v42 }
 0x50d   :  { %6309 = vmatpush1.bf16.msra.mxu1 %v8650_v18  ;;  %6269 = vmatprep.subr.bf16.mxu0 %v8655_v19  ;;  %v8731_v18 = vld [vmem:[%s11894_s10 + $0x5b8] ss:$100 sps:$4 sm:$0xff]   ;;  %v3879_v19 = vrot.slane %v11331_v15, %v9930_v45 }
 0x50e   :  { %6310 = vmatprep.subr.bf16.mxu1 %v8658_v20  ;;  %v3887_v20 = vrot.slane %v11331_v15, %v11320_v13 }
 0x510   :  { %6270 = vmatpush1.bf16.msra.mxu0 %v8653_v21  ;;  %v8734_v21 = vld [vmem:[%s11894_s10 + $0x5c0] ss:$100 sps:$4 sm:$0xff]  }
 0x511   :  { %6311 = vmatpush1.bf16.msra.mxu1 %v8656_v22  ;;  %6271 = vmatprep.subr.bf16.mxu0 %v8661_v23  ;;  %v3883_v22 = vrot.slane %v11331_v15, %v9939_v48  ;;  %v3891_v23 = vrot.slane %v11331_v15, %v11337_v17 }
 0x512   :  { %6312 = vmatprep.subr.bf16.mxu1 %v8664_v24  ;;  %v8739_v24 = vld [vmem:[%s11894_s10 + $0x4f4] ss:$100 sps:$4 sm:$0xff]  }
 0x514   :  { %6272 = vmatpush1.bf16.msra.mxu0 %v8659_v25 }
 0x515   :  { %6313 = vmatpush1.bf16.msra.mxu1 %v8662_v26  ;;  %6273 = vmatprep.subr.bf16.mxu0 %v8667_v27  ;;  %v8742_v27 = vld [vmem:[%s11894_s10 + $0x4fc] ss:$100 sps:$4 sm:$0xff]  }
 0x516   :  { %6314 = vmatprep.subr.bf16.mxu1 %v8670_v28 }
 0x518   :  { %6274 = vmatpush1.bf16.msra.mxu0 %v8665_v31 }
 0x519   :  { %6315 = vmatpush1.bf16.msra.mxu1 %v8668_v33  ;;  %6275 = vmatprep.subr.bf16.mxu0 %v8673_v34  ;;  %v8737_v33 = vld [vmem:[%s11894_s10 + $0x4f0] ss:$100 sps:$4 sm:$0xff]  }
 0x51a   :  { %6316 = vmatprep.subr.bf16.mxu1 %v8676_v3 }
 0x51c   :  { %6276 = vmatpush1.bf16.msra.mxu0 %v8671_v36  ;;  %v8740_v36 = vld [vmem:[%s11894_s10 + $0x4f8] ss:$100 sps:$4 sm:$0xff]  }
 0x51d   :  { %6317 = vmatpush1.bf16.msra.mxu1 %v8674_v37  ;;  %6277 = vmatprep.subr.bf16.mxu0 %v8679_v10  ;;  %v8745_v37 = vld [vmem:[%s11894_s10 + $0x42c] ss:$100 sps:$4 sm:$0xff]  }
 0x51e   :  { %6318 = vmatprep.subr.bf16.mxu1 %v8682_v2 }
 0x520   :  { %6278 = vmatpush1.bf16.msra.mxu0 %v8677_v38  ;;  %v8748_v38 = vld [vmem:[%s11894_s10 + $0x434] ss:$100 sps:$4 sm:$0xff]  }
 0x521   :  { %6319 = vmatpush1.bf16.msra.mxu1 %v8680_v39  ;;  %6279 = vmatprep.subr.bf16.mxu0 %v8685_v40 }
 0x522   :  { %6320 = vmatprep.subr.bf16.mxu1 %v8688_v41 }
 0x524   :  { %6280 = vmatpush2.bf16.msra.mxu0 %v8683_v43 }
 0x525   :  { %6321 = vmatpush2.bf16.msra.mxu1 %v8686_v44  ;;  %6281 = vmatprep.subr.bf16.mxu0 %v8691_v46 }
 0x526   :  { %6322 = vmatprep.subr.bf16.mxu1 %v8694_v47  ;;  %v8743_v47 = vld [vmem:[%s11894_s10 + $0x428] ss:$100 sps:$4 sm:$0xff]  }
 0x528   :  { %6282 = vmatpush2.bf16.msra.mxu0 %v8689_v6 }
 0x529   :  { %6323 = vmatpush2.bf16.msra.mxu1 %v8692_v50  ;;  %6283 = vmatprep.subr.bf16.mxu0 %v8697_v51  ;;  %v8746_v51 = vld [vmem:[%s11894_s10 + $0x430] ss:$100 sps:$4 sm:$0xff]  }
 0x52a   :  { %6324 = vmatprep.subr.bf16.mxu1 %v8700_v52  ;;  %v8751_v52 = vld [vmem:[%s11894_s10 + $0x364] ss:$100 sps:$4 sm:$0xff]  }
 0x52c   :  { %6284 = vmatpush2.bf16.msra.mxu0 %v8695_v53 }
 0x52d   :  { %6325 = vmatpush2.bf16.msra.mxu1 %v8698_v54  ;;  %6285 = vmatprep.subr.bf16.mxu0 %v8703_v30  ;;  %v8754_v30 = vld [vmem:[%s11894_s10 + $0x36c] ss:$100 sps:$4 sm:$0xff]  }
 0x52e   :  { %6326 = vmatprep.subr.bf16.mxu1 %v8706_v55 }
 0x530   :  { %6286 = vmatpush2.bf16.msra.mxu0 %v8701_v56 }
 0x531   :  { %6327 = vmatpush2.bf16.msra.mxu1 %v8704_v57  ;;  %6287 = vmatprep.subr.bf16.mxu0 %v8709_v58  ;;  %v8749_v57 = vld [vmem:[%s11894_s10 + $0x360] ss:$100 sps:$4 sm:$0xff]   ;;  %v8752_v58 = vld [vmem:[%s11894_s10 + $0x368] ss:$100 sps:$4 sm:$0xff]  }
 0x532   :  { %6328 = vmatprep.subr.bf16.mxu1 %v8712_v60  ;;  %v8757_v60 = vld [vmem:[%s11894_s10 + $0x29c] ss:$100 sps:$4 sm:$0xff]  }
 0x534   :  { %6288 = vmatpush2.bf16.msra.mxu0 %v8707_v61 }
 0x535   :  { %6329 = vmatpush2.bf16.msra.mxu1 %v8710_v62  ;;  %6289 = vmatprep.subr.bf16.mxu0 %v8715_v63  ;;  %v8760_v62 = vld [vmem:[%s11894_s10 + $0x2a4] ss:$100 sps:$4 sm:$0xff]   ;;  %v8755_v63 = vld [vmem:[%s11894_s10 + $0x298] ss:$100 sps:$4 sm:$0xff]  }
 0x536   :  { %6330 = vmatprep.subr.bf16.mxu1 %v8718_v0  ;;  %v8758_v0 = vld [vmem:[%s11894_s10 + $0x2a0] ss:$100 sps:$4 sm:$0xff]  }
 0x538   :  { %6290 = vmatpush2.bf16.msra.mxu0 %v8713_v1  ;;  %v8763_v1 = vld [vmem:[%s11894_s10 + $0x1d4] ss:$100 sps:$4 sm:$0xff]  }
 0x539   :  { %6331 = vmatpush2.bf16.msra.mxu1 %v8716_v32  ;;  %6291 = vmatprep.subr.bf16.mxu0 %v8721_v4  ;;  %v8766_v32 = vld [vmem:[%s11894_s10 + $0x1dc] ss:$100 sps:$4 sm:$0xff]   ;;  %v8761_v4 = vld [vmem:[%s11894_s10 + $0x1d0] ss:$100 sps:$4 sm:$0xff]  }
 0x53a   :  { %6332 = vmatprep.subr.bf16.mxu1 %v8724_v5  ;;  %v8764_v5 = vld [vmem:[%s11894_s10 + $0x1d8] ss:$100 sps:$4 sm:$0xff]  }
 0x53c   :  { %6292 = vmatpush2.bf16.msra.mxu0 %v8719_v7  ;;  %v8769_v7 = vld [vmem:[%s11894_s10 + $0x10c] ss:$100 sps:$4 sm:$0xff]  }
 0x53d   :  { %6333 = vmatpush2.bf16.msra.mxu1 %v8722_v8  ;;  %6293 = vmatprep.subr.bf16.mxu0 %v8727_v9  ;;  %v8772_v8 = vld [vmem:[%s11894_s10 + $0x114] ss:$100 sps:$4 sm:$0xff]   ;;  %v8767_v9 = vld [vmem:[%s11894_s10 + $0x108] ss:$100 sps:$4 sm:$0xff]  }
 0x53e   :  { %6334 = vmatprep.subr.bf16.mxu1 %v8730_v11  ;;  %v8770_v11 = vld [vmem:[%s11894_s10 + $0x110] ss:$100 sps:$4 sm:$0xff]  }
 0x540   :  { %6294 = vmatpush2.bf16.msra.mxu0 %v8725_v12  ;;  %v8775_v12 = vld [vmem:[%s11894_s10 + $0x44] ss:$100 sps:$4 sm:$0xff]  }
 0x541   :  { %6335 = vmatpush2.bf16.msra.mxu1 %v8728_v14  ;;  %6345 = vmatprep.subr.bf16.mxu0 %v8733_v35  ;;  %v8778_v14 = vld [vmem:[%s11894_s10 + $0x4c] ss:$100 sps:$4 sm:$0xff]   ;;  %v8773_v35 = vld [vmem:[%s11894_s10 + $0x40] ss:$100 sps:$4 sm:$0xff]  }
 0x542   :  { %6386 = vmatprep.subr.bf16.mxu1 %v8736_v16  ;;  %v8776_v16 = vld [vmem:[%s11894_s10 + $0x48] ss:$100 sps:$4 sm:$0xff]  }
 0x543   :  { %6296 = vmatmul.mubr.bf16.vlgmr.msra.gmra.mxu0 %v10739_v59  ;;  %v6051_v25 = vpop.f32.mrf.mxu0  ;;  %v6092_v26 = vpop.f32.mrf.mxu1 }
 0x544   :  { %6337 = vmatmul.mubr.bf16.vlgmr.msra.gmra.mxu1 %v10739_v59  ;;  %v6052_v28 = vadd.f32 %v6051_v25, %v3879_v19  ;;  %v6093_v31 = vadd.f32 %v6092_v26, %v3887_v20  ;;  %6346 = vmatpush1.bf16.msra.mxu0 %v8731_v18  ;;  %v8781_v18 = vld [vmem:[%s11894_s10 + $0xbfc] ss:$100 sps:$4 sm:$0xff]   ;;  %v8784_v19 = vld [vmem:[%s11894_s10 + $0xc04] ss:$100 sps:$4 sm:$0xff]   ;;  %v8793_v26 = vld [vmem:[%s11894_s10 + $0xa6c] ss:$100 sps:$4 sm:$0xff]  }
 0x545   :  { %6377 = vmatprep.mubr.bf16.mxu0 %v10731_v29  ;;  %6387 = vmatpush1.bf16.msra.mxu1 %v8734_v21  ;;  %v6053_v34 = vpop.f32.mrf.mxu0  ;;  %v6094_v3 = vpop.f32.mrf.mxu1  ;;  %v8779_v20 = vld [vmem:[%s11894_s10 + $0xbf8] ss:$100 sps:$4 sm:$0xff]   ;;  %v8782_v21 = vld [vmem:[%s11894_s10 + $0xc00] ss:$100 sps:$4 sm:$0xff]  }
 0x546   :  { %6418 = vmatprep.mubr.bf16.mxu1 %v10731_v29  ;;  %v6054_v10 = vadd.f32 %v6053_v34, %v3883_v22  ;;  %v6095_v2 = vadd.f32 %v6094_v3, %v3891_v23  ;;  %6347 = vmatprep.subr.bf16.mxu0 %v8739_v24  ;;  %v6549_v41 = vmax.f32 %v6052_v28, 0.0  ;;  %v6551_v43 = vmax.f32 %v6093_v31, 0.0  ;;  %v8787_v22 = vld [vmem:[%s11894_s10 + $0xb34] ss:$100 sps:$4 sm:$0xff]   ;;  %v8790_v23 = vld [vmem:[%s11894_s10 + $0xb3c] ss:$100 sps:$4 sm:$0xff]  }
 0x547   :  { %6388 = vmatprep.subr.bf16.mxu1 %v8742_v27  ;;  %v6055_v39 = vpop.f32.mrf.mxu0  ;;  %v6096_v40 = vpop.f32.mrf.mxu1  ;;  %v8785_v24 = vld [vmem:[%s11894_s10 + $0xb30] ss:$100 sps:$4 sm:$0xff]   ;;  %v8788_v25 = vld [vmem:[%s11894_s10 + $0xb38] ss:$100 sps:$4 sm:$0xff]   ;;  %v8791_v28 = vld [vmem:[%s11894_s10 + $0xa68] ss:$100 sps:$4 sm:$0xff]  }
 0x548   :  { %v6550_v44 = vmax.f32 %v6054_v10, 0.0  ;;  %v6552_v46 = vmax.f32 %v6095_v2, 0.0  ;;  %6348 = vmatpush1.bf16.msra.mxu0 %v8737_v33  ;;  %v8796_v27 = vld [vmem:[%s11894_s10 + $0xa74] ss:$100 sps:$4 sm:$0xff]   ;;  %v8799_v33 = vld [vmem:[%s11894_s10 + $0x9a4] ss:$100 sps:$4 sm:$0xff]  }
 0x549   :  { %6389 = vmatpush1.bf16.msra.mxu1 %v8740_v36  ;;  %v6056_v6 = vpop.f32.mrf.mxu0  ;;  %v6097_v50 = vpop.f32.mrf.mxu1  ;;  %6349 = vmatprep.subr.bf16.mxu0 %v8745_v37  ;;  %v8794_v31 = vld [vmem:[%s11894_s10 + $0xa70] ss:$100 sps:$4 sm:$0xff]   ;;  %v8797_v3 = vld [vmem:[%s11894_s10 + $0x9a0] ss:$100 sps:$4 sm:$0xff]   ;;  %v8800_v36 = vld [vmem:[%s11894_s10 + $0x9a8] ss:$100 sps:$4 sm:$0xff]  }
 0x54a   :  { %v7665_v53 = vpack.c.bf16 %v6550_v44, %v6549_v41  ;;  %v7666_v54 = vpack.c.bf16 %v6552_v46, %v6551_v43  ;;  %6390 = vmatprep.subr.bf16.mxu1 %v8748_v38  ;;  %v8802_v34 = vld [vmem:[%s11894_s10 + $0x9ac] ss:$100 sps:$4 sm:$0xff]   ;;  %v8805_v37 = vld [vmem:[%s11894_s10 + $0x8dc] ss:$100 sps:$4 sm:$0xff]   ;;  %v8808_v10 = vld [vmem:[%s11894_s10 + $0x8e4] ss:$100 sps:$4 sm:$0xff]  }
 0x54b   :  { %v8803_v2 = vld [vmem:[%s11894_s10 + $0x8d8] ss:$100 sps:$4 sm:$0xff]   ;;  %v8806_v38 = vld [vmem:[%s11894_s10 + $0x8e0] ss:$100 sps:$4 sm:$0xff]   ;;  %v8809_v41 = vld [vmem:[%s11894_s10 + $0x810] ss:$100 sps:$4 sm:$0xff]  }
 0x54c   :  { %v6650_v55 = vrot.slane %v7665_v53, %v9239_v49  ;;  %v6657_v56 = vrot.slane %v7666_v54, %v9239_v49  ;;  %6350 = vmatpush1.bf16.msra.mxu0 %v8743_v47  ;;  %v8811_v39 = vld [vmem:[%s11894_s10 + $0x814] ss:$100 sps:$4 sm:$0xff]   ;;  %v8814_v40 = vld [vmem:[%s11894_s10 + $0x81c] ss:$100 sps:$4 sm:$0xff]   ;;  %v8817_v44 = vld [vmem:[%s11894_s10 + $0x74c] ss:$100 sps:$4 sm:$0xff]  }
 0x54d   :  { %6391 = vmatpush1.bf16.msra.mxu1 %v8746_v51  ;;  %6351 = vmatprep.subr.bf16.mxu0 %v8751_v52  ;;  %v8812_v43 = vld [vmem:[%s11894_s10 + $0x818] ss:$100 sps:$4 sm:$0xff]   ;;  %v8815_v47 = vld [vmem:[%s11894_s10 + $0x748] ss:$100 sps:$4 sm:$0xff]   ;;  %v8818_v6 = vld [vmem:[%s11894_s10 + $0x750] ss:$100 sps:$4 sm:$0xff]  }
 0x54e   :  { %v11398_v61 = vcombine.low %v6650_v55, %v6657_v56  ;;  %6392 = vmatprep.subr.bf16.mxu1 %v8754_v30  ;;  %v8820_v46 = vld [vmem:[%s11894_s10 + $0x754] ss:$100 sps:$4 sm:$0xff]   ;;  %v8823_v50 = vld [vmem:[%s11894_s10 + $0x684] ss:$100 sps:$4 sm:$0xff]   ;;  %v8826_v51 = vld [vmem:[%s11894_s10 + $0x68c] ss:$100 sps:$4 sm:$0xff]  }
 0x54f   :  { %v8821_v52 = vld [vmem:[%s11894_s10 + $0x680] ss:$100 sps:$4 sm:$0xff]   ;;  %v11539_v53 = vsub.s32 4, %v9221_v42  ;;  %v11542_v54 = vsub.s32 6, %v9221_v42  ;;  %v8824_v30 = vld [vmem:[%s11894_s10 + $0x688] ss:$100 sps:$4 sm:$0xff]  }
 0x550   :  { %6352 = vmatpush1.bf16.msra.mxu0 %v8749_v57  ;;  %v8829_v55 = vld [vmem:[%s11894_s10 + $0x5cc] ss:$100 sps:$4 sm:$0xff]   ;;  %v8832_v56 = vld [vmem:[%s11894_s10 + $0x5d4] ss:$100 sps:$4 sm:$0xff]   ;;  %v11554_v57 = vsub.s32 5, %v9221_v42 }
 0x551   :  { %6393 = vmatpush1.bf16.msra.mxu1 %v8752_v58  ;;  %6353 = vmatprep.subr.bf16.mxu0 %v8757_v60  ;;  %v11557_v58 = vsub.s32 7, %v9221_v42  ;;  %v3895_v60 = vrot.slane %v11331_v15, %v11539_v53 }
 0x552   :  { %6394 = vmatprep.subr.bf16.mxu1 %v8760_v62  ;;  %v3903_v62 = vrot.slane %v11331_v15, %v11542_v54  ;;  %v3899_v42 = vrot.slane %v11331_v15, %v11554_v57 }
 0x554   :  { %6354 = vmatpush1.bf16.msra.mxu0 %v8755_v63  ;;  %v8827_v63 = vld [vmem:[%s11894_s10 + $0x5c8] ss:$100 sps:$4 sm:$0xff]  }
 0x555   :  { %6395 = vmatpush1.bf16.msra.mxu1 %v8758_v0  ;;  %6355 = vmatprep.subr.bf16.mxu0 %v8763_v1  ;;  %v8830_v0 = vld [vmem:[%s11894_s10 + $0x5d0] ss:$100 sps:$4 sm:$0xff]   ;;  %v3907_v1 = vrot.slane %v11331_v15, %v11557_v58  ;;  %v8833_v15 = vld [vmem:[%s11894_s10 + $0x500] ss:$100 sps:$4 sm:$0xff]  }
 0x556   :  { %6396 = vmatprep.subr.bf16.mxu1 %v8766_v32  ;;  %v8835_v32 = vld [vmem:[%s11894_s10 + $0x504] ss:$100 sps:$4 sm:$0xff]  }
 0x558   :  { %6356 = vmatpush1.bf16.msra.mxu0 %v8761_v4 }
 0x559   :  { %6397 = vmatpush1.bf16.msra.mxu1 %v8764_v5  ;;  %6357 = vmatprep.subr.bf16.mxu0 %v8769_v7  ;;  %v8838_v7 = vld [vmem:[%s11894_s10 + $0x50c] ss:$100 sps:$4 sm:$0xff]  }
 0x55a   :  { %6398 = vmatprep.subr.bf16.mxu1 %v8772_v8 }
 0x55c   :  { %6358 = vmatpush1.bf16.msra.mxu0 %v8767_v9 }
 0x55d   :  { %6399 = vmatpush1.bf16.msra.mxu1 %v8770_v11  ;;  %6359 = vmatprep.subr.bf16.mxu0 %v8775_v12 }
 0x55e   :  { %6400 = vmatprep.subr.bf16.mxu1 %v8778_v14  ;;  %v8836_v14 = vld [vmem:[%s11894_s10 + $0x508] ss:$100 sps:$4 sm:$0xff]  }
 0x560   :  { %6360 = vmatpush1.bf16.msra.mxu0 %v8773_v35  ;;  %v8841_v35 = vld [vmem:[%s11894_s10 + $0x43c] ss:$100 sps:$4 sm:$0xff]  }
 0x561   :  { %6401 = vmatpush1.bf16.msra.mxu1 %v8776_v16  ;;  %6361 = vmatprep.subr.bf16.mxu0 %v8781_v18 }
 0x562   :  { %6402 = vmatprep.subr.bf16.mxu1 %v8784_v19  ;;  %v8844_v19 = vld [vmem:[%s11894_s10 + $0x444] ss:$100 sps:$4 sm:$0xff]  }
 0x564   :  { %6362 = vmatpush2.bf16.msra.mxu0 %v8779_v20 }
 0x565   :  { %6403 = vmatpush2.bf16.msra.mxu1 %v8782_v21  ;;  %6363 = vmatprep.subr.bf16.mxu0 %v8787_v22 }
 0x566   :  { %6404 = vmatprep.subr.bf16.mxu1 %v8790_v23 }
 0x568   :  { %6364 = vmatpush2.bf16.msra.mxu0 %v8785_v24 }
 0x569   :  { %6405 = vmatpush2.bf16.msra.mxu1 %v8788_v25  ;;  %6365 = vmatprep.subr.bf16.mxu0 %v8793_v26  ;;  %v8839_v26 = vld [vmem:[%s11894_s10 + $0x438] ss:$100 sps:$4 sm:$0xff]  }
 0x56a   :  { %6406 = vmatprep.subr.bf16.mxu1 %v8796_v27 }
 0x56c   :  { %6366 = vmatpush2.bf16.msra.mxu0 %v8791_v28 }
 0x56d   :  { %6407 = vmatpush2.bf16.msra.mxu1 %v8794_v31  ;;  %6367 = vmatprep.subr.bf16.mxu0 %v8799_v33  ;;  %v8842_v31 = vld [vmem:[%s11894_s10 + $0x440] ss:$100 sps:$4 sm:$0xff]   ;;  %v8847_v33 = vld [vmem:[%s11894_s10 + $0x374] ss:$100 sps:$4 sm:$0xff]  }
 0x56e   :  { %6408 = vmatprep.subr.bf16.mxu1 %v8802_v34 }
 0x570   :  { %6368 = vmatpush2.bf16.msra.mxu0 %v8797_v3 }
 0x571   :  { %6409 = vmatpush2.bf16.msra.mxu1 %v8800_v36  ;;  %6369 = vmatprep.subr.bf16.mxu0 %v8805_v37  ;;  %v8850_v36 = vld [vmem:[%s11894_s10 + $0x37c] ss:$100 sps:$4 sm:$0xff]  }
 0x572   :  { %6410 = vmatprep.subr.bf16.mxu1 %v8808_v10 }
 0x574   :  { %6370 = vmatpush2.bf16.msra.mxu0 %v8803_v2  ;;  %v8845_v2 = vld [vmem:[%s11894_s10 + $0x370] ss:$100 sps:$4 sm:$0xff]  }
 0x575   :  { %6411 = vmatpush2.bf16.msra.mxu1 %v8806_v38  ;;  %6371 = vmatprep.subr.bf16.mxu0 %v8811_v39  ;;  %v8848_v38 = vld [vmem:[%s11894_s10 + $0x378] ss:$100 sps:$4 sm:$0xff]   ;;  %v8853_v39 = vld [vmem:[%s11894_s10 + $0x2ac] ss:$100 sps:$4 sm:$0xff]  }
 0x576   :  { %6412 = vmatprep.subr.bf16.mxu1 %v8814_v40 }
 0x578   :  { %6372 = vmatpush2.bf16.msra.mxu0 %v8809_v41  ;;  %v8856_v41 = vld [vmem:[%s11894_s10 + $0x2b4] ss:$100 sps:$4 sm:$0xff]  }
 0x579   :  { %6413 = vmatpush2.bf16.msra.mxu1 %v8812_v43  ;;  %6373 = vmatprep.subr.bf16.mxu0 %v8817_v44  ;;  %v6680_v43 = vrot.slane %v11398_v61, %v9239_v49  ;;  %v8862_v61 = vld [vmem:[%s11894_s10 + $0x1ec] ss:$100 sps:$4 sm:$0xff]  }
 0x57a   :  { %6414 = vmatprep.subr.bf16.mxu1 %v8820_v46  ;;  %v8851_v46 = vld [vmem:[%s11894_s10 + $0x2a8] ss:$100 sps:$4 sm:$0xff]  }
 0x57c   :  { %6374 = vmatpush2.bf16.msra.mxu0 %v8815_v47  ;;  %v8854_v47 = vld [vmem:[%s11894_s10 + $0x2b0] ss:$100 sps:$4 sm:$0xff]  }
 0x57d   :  { %6415 = vmatpush2.bf16.msra.mxu1 %v8818_v6  ;;  %6375 = vmatprep.subr.bf16.mxu0 %v8823_v50  ;;  %v8859_v6 = vld [vmem:[%s11894_s10 + $0x1e4] ss:$100 sps:$4 sm:$0xff]  }
 0x57e   :  { %6416 = vmatprep.subr.bf16.mxu1 %v8826_v51  ;;  %v8857_v51 = vld [vmem:[%s11894_s10 + $0x1e0] ss:$100 sps:$4 sm:$0xff]  }
 0x580   :  { %6376 = vmatpush2.bf16.msra.mxu0 %v8821_v52  ;;  %v8860_v52 = vld [vmem:[%s11894_s10 + $0x1e8] ss:$100 sps:$4 sm:$0xff]  }
 0x581   :  { %6417 = vmatpush2.bf16.msra.mxu1 %v8824_v30  ;;  %6427 = vmatprep.subr.bf16.mxu0 %v8829_v55  ;;  %v8865_v30 = vld [vmem:[%s11894_s10 + $0x11c] ss:$100 sps:$4 sm:$0xff]   ;;  %v8868_v55 = vld [vmem:[%s11894_s10 + $0x124] ss:$100 sps:$4 sm:$0xff]  }
 0x582   :  { %6468 = vmatprep.subr.bf16.mxu1 %v8832_v56  ;;  %v8863_v56 = vld [vmem:[%s11894_s10 + $0x118] ss:$100 sps:$4 sm:$0xff]  }
 0x583   :  { %v6133_v4 = vpop.f32.mrf.mxu0  ;;  %v6174_v5 = vpop.f32.mrf.mxu1  ;;  %6378 = vmatmul.mubr.bf16.vlgmr.msra.gmra.mxu0 %v10739_v59 }
 0x584   :  { %v6134_v8 = vadd.f32 %v6133_v4, %v3895_v60  ;;  %v6175_v9 = vadd.f32 %v6174_v5, %v3903_v62  ;;  %6419 = vmatmul.mubr.bf16.vlgmr.msra.gmra.mxu1 %v10739_v59  ;;  %6428 = vmatpush1.bf16.msra.mxu0 %v8827_v63  ;;  %v8866_v60 = vld [vmem:[%s11894_s10 + $0x120] ss:$100 sps:$4 sm:$0xff]   ;;  %v8871_v62 = vld [vmem:[%s11894_s10 + $0x54] ss:$100 sps:$4 sm:$0xff]   ;;  %v8875_v4 = vld [vmem:[%s11894_s10 + $0xc08] ss:$100 sps:$4 sm:$0xff]  }
 0x585   :  { %6459 = vmatprep.mubr.bf16.mxu0 %v10731_v29  ;;  %6469 = vmatpush1.bf16.msra.mxu1 %v8830_v0  ;;  %v6135_v11 = vpop.f32.mrf.mxu0  ;;  %v6176_v12 = vpop.f32.mrf.mxu1  ;;  %v8874_v63 = vld [vmem:[%s11894_s10 + $0x5c] ss:$100 sps:$4 sm:$0xff]   ;;  %v8869_v0 = vld [vmem:[%s11894_s10 + $0x50] ss:$100 sps:$4 sm:$0xff]  }
 0x586   :  { %6500 = vmatprep.mubr.bf16.mxu1 %v10731_v29  ;;  %v6136_v16 = vadd.f32 %v6135_v11, %v3899_v42  ;;  %v6177_v18 = vadd.f32 %v6176_v12, %v3907_v1  ;;  %6429 = vmatprep.subr.bf16.mxu0 %v8835_v32  ;;  %v6553_v22 = vmax.f32 %v6134_v8, 0.0  ;;  %v6555_v23 = vmax.f32 %v6175_v9, 0.0  ;;  %v8872_v42 = vld [vmem:[%s11894_s10 + $0x58] ss:$100 sps:$4 sm:$0xff]   ;;  %v8877_v1 = vld [vmem:[%s11894_s10 + $0xc0c] ss:$100 sps:$4 sm:$0xff]  }
 0x587   :  { %v6137_v20 = vpop.f32.mrf.mxu0  ;;  %v6178_v21 = vpop.f32.mrf.mxu1  ;;  %6470 = vmatprep.subr.bf16.mxu1 %v8838_v7  ;;  %v8880_v32 = vld [vmem:[%s11894_s10 + $0xc14] ss:$100 sps:$4 sm:$0xff]   ;;  %v8883_v7 = vld [vmem:[%s11894_s10 + $0xb44] ss:$100 sps:$4 sm:$0xff]   ;;  %v8886_v8 = vld [vmem:[%s11894_s10 + $0xb4c] ss:$100 sps:$4 sm:$0xff]  }
 0x588   :  { %v6554_v24 = vmax.f32 %v6136_v16, 0.0  ;;  %v6556_v25 = vmax.f32 %v6177_v18, 0.0  ;;  %6430 = vmatpush1.bf16.msra.mxu0 %v8833_v15  ;;  %v8878_v5 = vld [vmem:[%s11894_s10 + $0xc10] ss:$100 sps:$4 sm:$0xff]   ;;  %v8881_v9 = vld [vmem:[%s11894_s10 + $0xb40] ss:$100 sps:$4 sm:$0xff]  }
 0x589   :  { %6471 = vmatpush1.bf16.msra.mxu1 %v8836_v14  ;;  %v6138_v27 = vpop.f32.mrf.mxu0  ;;  %v6179_v28 = vpop.f32.mrf.mxu1  ;;  %6431 = vmatprep.subr.bf16.mxu0 %v8841_v35  ;;  %v8884_v15 = vld [vmem:[%s11894_s10 + $0xb48] ss:$100 sps:$4 sm:$0xff]   ;;  %v8889_v11 = vld [vmem:[%s11894_s10 + $0xa7c] ss:$100 sps:$4 sm:$0xff]   ;;  %v8895_v16 = vld [vmem:[%s11894_s10 + $0x9b4] ss:$100 sps:$4 sm:$0xff]  }
 0x58a   :  { %v7667_v34 = vpack.c.bf16 %v6554_v24, %v6553_v22  ;;  %v7668_v3 = vpack.c.bf16 %v6556_v25, %v6555_v23  ;;  %6472 = vmatprep.subr.bf16.mxu1 %v8844_v19  ;;  %v8892_v12 = vld [vmem:[%s11894_s10 + $0xa84] ss:$100 sps:$4 sm:$0xff]   ;;  %v8887_v14 = vld [vmem:[%s11894_s10 + $0xa78] ss:$100 sps:$4 sm:$0xff]   ;;  %v8893_v19 = vld [vmem:[%s11894_s10 + $0x9b0] ss:$100 sps:$4 sm:$0xff]  }
 0x58b   :  { %v8890_v35 = vld [vmem:[%s11894_s10 + $0xa80] ss:$100 sps:$4 sm:$0xff]   ;;  %v8896_v20 = vld [vmem:[%s11894_s10 + $0x9b8] ss:$100 sps:$4 sm:$0xff]   ;;  %v8901_v21 = vld [vmem:[%s11894_s10 + $0x8ec] ss:$100 sps:$4 sm:$0xff]  }
 0x58c   :  { %v6664_v37 = vrot.slane %v7667_v34, %v9239_v49  ;;  %v6671_v10 = vrot.slane %v7668_v3, %v9239_v49  ;;  %6432 = vmatpush1.bf16.msra.mxu0 %v8839_v26  ;;  %v8898_v18 = vld [vmem:[%s11894_s10 + $0x9bc] ss:$100 sps:$4 sm:$0xff]   ;;  %v8904_v22 = vld [vmem:[%s11894_s10 + $0x8f4] ss:$100 sps:$4 sm:$0xff]   ;;  %v8899_v23 = vld [vmem:[%s11894_s10 + $0x8e8] ss:$100 sps:$4 sm:$0xff]  }
 0x58d   :  { %6473 = vmatpush1.bf16.msra.mxu1 %v8842_v31  ;;  %6433 = vmatprep.subr.bf16.mxu0 %v8847_v33  ;;  %v8902_v24 = vld [vmem:[%s11894_s10 + $0x8f0] ss:$100 sps:$4 sm:$0xff]   ;;  %v8907_v25 = vld [vmem:[%s11894_s10 + $0x824] ss:$100 sps:$4 sm:$0xff]   ;;  %v8913_v31 = vld [vmem:[%s11894_s10 + $0x75c] ss:$100 sps:$4 sm:$0xff]  }
 0x58e   :  { %v6673_v40 = vcombine.low %v6664_v37, %v6671_v10  ;;  %6474 = vmatprep.subr.bf16.mxu1 %v8850_v36  ;;  %v8910_v26 = vld [vmem:[%s11894_s10 + $0x82c] ss:$100 sps:$4 sm:$0xff]   ;;  %v8905_v27 = vld [vmem:[%s11894_s10 + $0x820] ss:$100 sps:$4 sm:$0xff]   ;;  %v8911_v34 = vld [vmem:[%s11894_s10 + $0x758] ss:$100 sps:$4 sm:$0xff]  }
 0x58f   :  { %v8908_v28 = vld [vmem:[%s11894_s10 + $0x828] ss:$100 sps:$4 sm:$0xff]   ;;  %v8914_v3 = vld [vmem:[%s11894_s10 + $0x760] ss:$100 sps:$4 sm:$0xff]   ;;  %v8919_v36 = vld [vmem:[%s11894_s10 + $0x694] ss:$100 sps:$4 sm:$0xff]  }
 0x590   :  { %v6687_v44 = vrot.slane %v6673_v40, %v9239_v49  ;;  %6434 = vmatpush1.bf16.msra.mxu0 %v8845_v2  ;;  %v8916_v33 = vld [vmem:[%s11894_s10 + $0x764] ss:$100 sps:$4 sm:$0xff]   ;;  %v8922_v37 = vld [vmem:[%s11894_s10 + $0x69c] ss:$100 sps:$4 sm:$0xff]   ;;  %v8917_v10 = vld [vmem:[%s11894_s10 + $0x690] ss:$100 sps:$4 sm:$0xff]  }
 0x591   :  { %6475 = vmatpush1.bf16.msra.mxu1 %v8848_v38  ;;  %6435 = vmatprep.subr.bf16.mxu0 %v8853_v39  ;;  %v8920_v2 = vld [vmem:[%s11894_s10 + $0x698] ss:$100 sps:$4 sm:$0xff]   ;;  %v11768_v38 = vld [vmem:[%s11895_s11 + $0x8] sm:$0xff] }
 0x592   :  { %v6688_v50 = vcombine.low %v6680_v43, %v6687_v44  ;;  %6476 = vmatprep.subr.bf16.mxu1 %v8856_v41  ;;  %v8923_v39 = vld [vmem:[%s11894_s10 + $0xc18] ss:$100 sps:$4 sm:$0xff]   ;;  %v3911_v40 = vrot.slane %v11768_v38, %v9930_v45  ;;  %v3919_v43 = vrot.slane %v11768_v38, %v11320_v13  ;;  %v8925_v44 = vld [vmem:[%s11894_s10 + $0xb50] ss:$100 sps:$4 sm:$0xff]  }
 0x593   :  { %v8924_v41 = vld [vmem:[%s11894_s10 + $0x5d8] ss:$100 sps:$4 sm:$0xff]  }
 0x594   :  { %6805 = vst [vmem:[%s11901_s17] sm:$0xff] %v6688_v50  ;;  %6436 = vmatpush1.bf16.msra.mxu0 %v8851_v46  ;;  %v3915_v46 = vrot.slane %v11768_v38, %v9939_v48 }
 0x595   :  { %6477 = vmatpush1.bf16.msra.mxu1 %v8854_v47  ;;  %6437 = vmatprep.subr.bf16.mxu0 %v8859_v6  ;;  %v3923_v6 = vrot.slane %v11768_v38, %v11337_v17 }
 0x596   :  { %6478 = vmatprep.subr.bf16.mxu1 %v8862_v61 }
 0x598   :  { %6438 = vmatpush1.bf16.msra.mxu0 %v8857_v51  ;;  %v8926_v51 = vld [vmem:[%s11894_s10 + $0x510] ss:$100 sps:$4 sm:$0xff]  }
 0x599   :  { %6479 = vmatpush1.bf16.msra.mxu1 %v8860_v52  ;;  %6439 = vmatprep.subr.bf16.mxu0 %v8865_v30 }
 0x59a   :  { %6480 = vmatprep.subr.bf16.mxu1 %v8868_v55  ;;  %v8927_v55 = vld [vmem:[%s11894_s10 + $0xa88] ss:$100 sps:$4 sm:$0xff]  }
 0x59c   :  { %6440 = vmatpush1.bf16.msra.mxu0 %v8863_v56 }
 0x59d   :  { %6481 = vmatpush1.bf16.msra.mxu1 %v8866_v60  ;;  %6441 = vmatprep.subr.bf16.mxu0 %v8871_v62 }
 0x59e   :  { %6482 = vmatprep.subr.bf16.mxu1 %v8874_v63 }
 0x5a0   :  { %6442 = vmatpush1.bf16.msra.mxu0 %v8869_v0 }
 0x5a1   :  { %6483 = vmatpush1.bf16.msra.mxu1 %v8872_v42  ;;  %6443 = vmatprep.subr.bf16.mxu0 %v8877_v1 }
 0x5a2   :  { %6484 = vmatprep.subr.bf16.mxu1 %v8880_v32  ;;  %v8928_v32 = vld [vmem:[%s11894_s10 + $0x448] ss:$100 sps:$4 sm:$0xff]  }
 0x5a4   :  { %6444 = vmatpush2.bf16.msra.mxu0 %v8875_v4 }
 0x5a5   :  { %6485 = vmatpush2.bf16.msra.mxu1 %v8878_v5  ;;  %6445 = vmatprep.subr.bf16.mxu0 %v8883_v7  ;;  %v8929_v7 = vld [vmem:[%s11894_s10 + $0x9c0] ss:$100 sps:$4 sm:$0xff]  }
 0x5a6   :  { %6486 = vmatprep.subr.bf16.mxu1 %v8886_v8 }
 0x5a8   :  { %6446 = vmatpush2.bf16.msra.mxu0 %v8881_v9 }
 0x5a9   :  { %6487 = vmatpush2.bf16.msra.mxu1 %v8884_v15  ;;  %6447 = vmatprep.subr.bf16.mxu0 %v8889_v11 }
 0x5aa   :  { %6488 = vmatprep.subr.bf16.mxu1 %v8892_v12  ;;  %v8930_v12 = vld [vmem:[%s11894_s10 + $0x380] ss:$100 sps:$4 sm:$0xff]  }
 0x5ac   :  { %6448 = vmatpush2.bf16.msra.mxu0 %v8887_v14 }
 0x5ad   :  { %6489 = vmatpush2.bf16.msra.mxu1 %v8890_v35  ;;  %6449 = vmatprep.subr.bf16.mxu0 %v8895_v16  ;;  %v8931_v35 = vld [vmem:[%s11894_s10 + $0x8f8] ss:$100 sps:$4 sm:$0xff]  }
 0x5ae   :  { %6490 = vmatprep.subr.bf16.mxu1 %v8898_v18  ;;  %v8932_v18 = vld [vmem:[%s11894_s10 + $0x2b8] ss:$100 sps:$4 sm:$0xff]  }
 0x5b0   :  { %6450 = vmatpush2.bf16.msra.mxu0 %v8893_v19  ;;  %v8933_v19 = vld [vmem:[%s11894_s10 + $0x830] ss:$100 sps:$4 sm:$0xff]  }
 0x5b1   :  { %6491 = vmatpush2.bf16.msra.mxu1 %v8896_v20  ;;  %6451 = vmatprep.subr.bf16.mxu0 %v8901_v21  ;;  %v8934_v20 = vld [vmem:[%s11894_s10 + $0x1f0] ss:$100 sps:$4 sm:$0xff]   ;;  %v8935_v21 = vld [vmem:[%s11894_s10 + $0x768] ss:$100 sps:$4 sm:$0xff]  }
 0x5b2   :  { %6492 = vmatprep.subr.bf16.mxu1 %v8904_v22  ;;  %v8936_v22 = vld [vmem:[%s11894_s10 + $0x128] ss:$100 sps:$4 sm:$0xff]  }
 0x5b4   :  { %6452 = vmatpush2.bf16.msra.mxu0 %v8899_v23  ;;  %v8937_v23 = vld [vmem:[%s11894_s10 + $0x6a0] ss:$100 sps:$4 sm:$0xff]  }
 0x5b5   :  { %6493 = vmatpush2.bf16.msra.mxu1 %v8902_v24  ;;  %6453 = vmatprep.subr.bf16.mxu0 %v8907_v25  ;;  %v8938_v24 = vld [vmem:[%s11894_s10 + $0x60] ss:$100 sps:$4 sm:$0xff]   ;;  %v3927_v25 = vrot.slane %v11768_v38, %v11539_v53 }
 0x5b6   :  { %6494 = vmatprep.subr.bf16.mxu1 %v8910_v26  ;;  %v3935_v26 = vrot.slane %v11768_v38, %v11542_v54 }
 0x5b8   :  { %6454 = vmatpush2.bf16.msra.mxu0 %v8905_v27  ;;  %v3931_v27 = vrot.slane %v11768_v38, %v11554_v57 }
 0x5b9   :  { %6495 = vmatpush2.bf16.msra.mxu1 %v8908_v28  ;;  %6455 = vmatprep.subr.bf16.mxu0 %v8913_v31  ;;  %v3939_v31 = vrot.slane %v11768_v38, %v11557_v58 }
 0x5ba   :  { %6496 = vmatprep.subr.bf16.mxu1 %v8916_v33 }
 0x5bc   :  { %6456 = vmatpush2.bf16.msra.mxu0 %v8911_v34 }
 0x5bd   :  { %6497 = vmatpush2.bf16.msra.mxu1 %v8914_v3  ;;  %6457 = vmatprep.subr.bf16.mxu0 %v8919_v36 }
 0x5be   :  { %6498 = vmatprep.subr.bf16.mxu1 %v8922_v37 }
 0x5c0   :  { %6458 = vmatpush2.bf16.msra.mxu0 %v8917_v10 }
 0x5c1   :  { %6499 = vmatpush2.bf16.msra.mxu1 %v8920_v2  ;;  %7716 = vmatprep.subr.bf16.mxu0 %v8923_v39 }
 0x5c3   :  { %v6215_v47 = vpop.f32.mrf.mxu0  ;;  %6460 = vmatmul.mubr.bf16.vlgmr.msra.gmra.mxu0 %v10739_v59 }
 0x5c4   :  { %v6216_v50 = vadd.f32 %v6215_v47, %v3911_v40  ;;  %v6256_v61 = vpop.f32.mrf.mxu1  ;;  %6501 = vmatmul.mubr.bf16.vlgmr.msra.gmra.mxu1 %v10739_v59  ;;  %7717 = vmatpush3.bf16.msra.mxu0 %v8924_v41 }
 0x5c5   :  { %v6257_v52 = vadd.f32 %v6256_v61, %v3919_v43  ;;  %6541 = vmatprep.mubr.bf16.mxu0 %v10731_v29  ;;  %v6217_v30 = vpop.f32.mrf.mxu0  ;;  %7718 = vmatprep.subr.bf16.mxu0 %v8925_v44 }
 0x5c6   :  { %v6218_v56 = vadd.f32 %v6217_v30, %v3915_v46  ;;  %v6258_v60 = vpop.f32.mrf.mxu1  ;;  %v6557_v0 = vmax.f32 %v6216_v50, 0.0 }
 0x5c7   :  { %v6259_v62 = vadd.f32 %v6258_v60, %v3923_v6  ;;  %v6219_v63 = vpop.f32.mrf.mxu0  ;;  %v6559_v4 = vmax.f32 %v6257_v52, 0.0 }
 0x5c8   :  { %v6558_v42 = vmax.f32 %v6218_v56, 0.0  ;;  %v6260_v1 = vpop.f32.mrf.mxu1  ;;  %7719 = vmatpush3.bf16.msra.mxu0 %v8926_v51 }
 0x5c9   :  { %v6560_v29 = vmax.f32 %v6259_v62, 0.0  ;;  %v6220_v5 = vpop.f32.mrf.mxu0  ;;  %7720 = vmatprep.subr.bf16.mxu0 %v8927_v55 }
 0x5ca   :  { %v7669_v8 = vpack.c.bf16 %v6558_v42, %v6557_v0  ;;  %v6261_v9 = vpop.f32.mrf.mxu1 }
 0x5cb   :  { %v7670_v15 = vpack.c.bf16 %v6560_v29, %v6559_v4 }
 0x5cc   :  { %v6699_v11 = vrot.slane %v7669_v8, %v9239_v49  ;;  %7721 = vmatpush3.bf16.msra.mxu0 %v8928_v32 }
 0x5cd   :  { %v6706_v14 = vrot.slane %v7670_v15, %v9239_v49  ;;  %7722 = vmatprep.subr.bf16.mxu0 %v8929_v7 }
 0x5cf   :  { %v6721_v16 = vcombine.low %v6699_v11, %v6706_v14 }
 0x5d0   :  { %7723 = vmatpush3.bf16.msra.mxu0 %v8930_v12 }
 0x5d1   :  { %7724 = vmatprep.subr.bf16.mxu0 %v8931_v35  ;;  %v6729_v52 = vrot.slane %v6721_v16, %v9239_v49 }
 0x5d4   :  { %7725 = vmatpush3.bf16.msra.mxu0 %v8932_v18 }
 0x5d5   :  { %7726 = vmatprep.subr.bf16.mxu0 %v8933_v19 }
 0x5d8   :  { %7727 = vmatpush3.bf16.msra.mxu0 %v8934_v20 }
 0x5d9   :  { %7728 = vmatprep.subr.bf16.mxu0 %v8935_v21 }
 0x5dc   :  { %7729 = vmatpush3.bf16.msra.mxu0 %v8936_v22 }
 0x5dd   :  { %7730 = vmatprep.subr.bf16.mxu0 %v8937_v23 }
 0x5e0   :  { %7731 = vmatpush3.bf16.msra.mxu0 %v8938_v24 }
 0x5e3   :  { %6542 = vmatmul.mubr.bf16.vlgmr.msra.gmra.mxu0 %v10739_v59 }
 0x603   :  { %v6297_v28 = vpop.f32.mrf.mxu0 }
 0x604   :  { %v6298_v33 = vadd.f32 %v6297_v28, %v3927_v25  ;;  %v6338_v34 = vpop.f32.mrf.mxu1 }
 0x605   :  { %v6339_v3 = vadd.f32 %v6338_v34, %v3935_v26  ;;  %v6299_v36 = vpop.f32.mrf.mxu0 }
 0x606   :  { %v6300_v37 = vadd.f32 %v6299_v36, %v3931_v27  ;;  %v6340_v10 = vpop.f32.mrf.mxu1  ;;  %v6561_v39 = vmax.f32 %v6298_v33, 0.0 }
 0x607   :  { %v6341_v59 = vadd.f32 %v6340_v10, %v3939_v31  ;;  %v6301_v2 = vpop.f32.mrf.mxu0  ;;  %v6563_v43 = vmax.f32 %v6339_v3, 0.0 }
 0x608   :  { %v6562_v40 = vmax.f32 %v6300_v37, 0.0  ;;  %v6342_v41 = vpop.f32.mrf.mxu1 }
 0x609   :  { %v6564_v44 = vmax.f32 %v6341_v59, 0.0  ;;  %v6302_v46 = vpop.f32.mrf.mxu0 }
 0x60a   :  { %v7671_v47 = vpack.c.bf16 %v6562_v40, %v6561_v39  ;;  %v6343_v6 = vpop.f32.mrf.mxu1 }
 0x60b   :  { %v7672_v50 = vpack.c.bf16 %v6564_v44, %v6563_v43 }
 0x60c   :  { %v6713_v61 = vrot.slane %v7671_v47, %v9239_v49 }
 0x60d   :  { %v6720_v38 = vrot.slane %v7672_v50, %v9239_v49 }
 0x60f   :  { %v6722_v51 = vcombine.low %v6713_v61, %v6720_v38 }
 0x611   :  { %v6736_v30 = vrot.slane %v6722_v51, %v9239_v49 }
 0x613   :  { %v6737_v55 = vcombine.low %v6729_v52, %v6736_v30 }
 0x615   :  { %6806 = vst [vmem:[%s11901_s17 + $0x8] sm:$0xff] %v6737_v55 }
 0x616   :  { %8952 = shalt.err (!%p8949_p4)
}
 0x617   :  { %6829 = dma.vmem_to_hbm [thread:$0]  %s6827_s8, 32, %s11897_s13, [#allocation5]  }
 0x618   :  { %s8961_s4 = scalar_lea.vmem %s6817_s20, 32  ;;  %p8966_p6 = scmp.lt.s32.totalorder %s6817_s20, %s6817_s20 }
 0x619   :  { %p8962_p5 = scmp.ne.s32.totalorder %s6817_s20, %s8961_s4  ;;  %p8967_p7 = scmp.lt.s32.totalorder %s8961_s4, %s8961_s4 }
 0x61b   :  { %p8968_p8 = por %p8967_p7, %p8966_p6 }
 0x61d   :  { %p8969_p9 = pnand %p8968_p8, %p8962_p5 }
 0x61f   :  { %8972 = shalt.err (!%p8969_p9)
}
 0x620   :  { %6819 = dma.vmem_to_hbm [thread:$0]  %s6817_s20, 32, %s11896_s12, [#allocation3]  }
 0x621   :  { %s9013_s21 = smov [#allocation6]  }
 0x622   :  { %s6838_s5 = sshll.u32 %s9013_s21, 4  ;;  %s6839_s5 = int_to_ptr.vmem [resolvable:$true] %s6838_s5 }
 0x623   :  { %s8981_s6 = scalar_lea.vmem %s6839_s5, 32  ;;  %p8986_p11 = scmp.lt.s32.totalorder %s6839_s5, %s6839_s5 }
 0x624   :  { %p8982_p10 = scmp.ne.s32.totalorder %s6839_s5, %s8981_s6  ;;  %p8987_p12 = scmp.lt.s32.totalorder %s8981_s6, %s8981_s6 }
 0x626   :  { %p8988_p13 = por %p8987_p12, %p8986_p11 }
 0x628   :  { %p8989_p0 = pnand %p8988_p13, %p8982_p10 }
 0x62a   :  { %8992 = shalt.err (!%p8989_p0)
}
 0x62b   :  { %6841 = dma.vmem_to_hbm [thread:$0]  %s6839_s5, 32, %s11899_s15, [#allocation5]   ;;  %v3870_v56 = vld [vmem:[%s11895_s11 + $0x10] sm:$0xff]  ;;  %v7264_v6 = vld [vmem:[%s11895_s11 + $0x18] ss:$0 sm:$0xff]  ;;  %vm6808_vm7 = vcmask 516096  }
 0x62c   :  { %v3943_v60 = vrot.slane %v3870_v56, %v9930_v45  ;;  %v3951_v62 = vrot.slane %v3870_v56, %v11320_v13  ;;  %v3947_v63 = vrot.slane %v3870_v56, %v9939_v48  ;;  %v3955_v42 = vrot.slane %v3870_v56, %v11337_v17 }
 0x62d   :  { %v3959_v20 = vrot.slane %v3870_v56, %v11539_v53  ;;  %v3967_v21 = vrot.slane %v3870_v56, %v11542_v54  ;;  %v3963_v22 = vrot.slane %v3870_v56, %v11554_v57  ;;  %v3971_v24 = vrot.slane %v3870_v56, %v11557_v58 }
 0x643   :  { %v6379_v0 = vpop.f32.mrf.mxu0 }
 0x644   :  { %v6380_v1 = vadd.f32 %v6379_v0, %v3943_v60  ;;  %v6420_v32 = vpop.f32.mrf.mxu1 }
 0x645   :  { %v6421_v4 = vadd.f32 %v6420_v32, %v3951_v62  ;;  %v6381_v29 = vpop.f32.mrf.mxu0 }
 0x646   :  { %v6382_v5 = vadd.f32 %v6381_v29, %v3947_v63  ;;  %v6422_v7 = vpop.f32.mrf.mxu1  ;;  %v6565_v15 = vmax.f32 %v6380_v1, 0.0 }
 0x647   :  { %v6423_v8 = vadd.f32 %v6422_v7, %v3955_v42  ;;  %v6383_v9 = vpop.f32.mrf.mxu0  ;;  %v6567_v14 = vmax.f32 %v6421_v4, 0.0 }
 0x648   :  { %v6566_v11 = vmax.f32 %v6382_v5, 0.0  ;;  %v6424_v12 = vpop.f32.mrf.mxu1 }
 0x649   :  { %v6568_v45 = vmax.f32 %v6423_v8, 0.0  ;;  %v6384_v35 = vpop.f32.mrf.mxu0 }
 0x64a   :  { %v7673_v13 = vpack.c.bf16 %v6566_v11, %v6565_v15  ;;  %v6425_v16 = vpop.f32.mrf.mxu1 }
 0x64b   :  { %v7674_v48 = vpack.c.bf16 %v6568_v45, %v6567_v14 }
 0x64c   :  { %v6748_v18 = vrot.slane %v7673_v13, %v9239_v49 }
 0x64d   :  { %v6755_v17 = vrot.slane %v7674_v48, %v9239_v49 }
 0x64f   :  { %v6770_v19 = vcombine.low %v6748_v18, %v6755_v17 }
 0x651   :  { %v6778_v43 = vrot.slane %v6770_v19, %v9239_v49 }
 0x683   :  { %v6461_v23 = vpop.f32.mrf.mxu0 }
 0x684   :  { %v6462_v25 = vadd.f32 %v6461_v23, %v3959_v20  ;;  %v6502_v26 = vpop.f32.mrf.mxu1 }
 0x685   :  { %v6503_v27 = vadd.f32 %v6502_v26, %v3967_v21  ;;  %v6463_v28 = vpop.f32.mrf.mxu0 }
 0x686   :  { %v6464_v31 = vadd.f32 %v6463_v28, %v3963_v22  ;;  %v6504_v33 = vpop.f32.mrf.mxu1  ;;  %v6569_v36 = vmax.f32 %v6462_v25, 0.0 }
 0x687   :  { %v6505_v34 = vadd.f32 %v6504_v33, %v3971_v24  ;;  %v6465_v3 = vpop.f32.mrf.mxu0  ;;  %v6571_v59 = vmax.f32 %v6503_v27, 0.0 }
 0x688   :  { %v6570_v37 = vmax.f32 %v6464_v31, 0.0  ;;  %v6506_v10 = vpop.f32.mrf.mxu1 }
 0x689   :  { %v6572_v53 = vmax.f32 %v6505_v34, 0.0  ;;  %v6466_v2 = vpop.f32.mrf.mxu0 }
 0x68a   :  { %v7675_v54 = vpack.c.bf16 %v6570_v37, %v6569_v36  ;;  %v6507_v39 = vpop.f32.mrf.mxu1 }
 0x68b   :  { %v7676_v57 = vpack.c.bf16 %v6572_v53, %v6571_v59 }
 0x68c   :  { %v6762_v40 = vrot.slane %v7675_v54, %v9239_v49 }
 0x68d   :  { %v6769_v58 = vrot.slane %v7676_v57, %v9239_v49 }
 0x68f   :  { %v6771_v41 = vcombine.low %v6762_v40, %v6769_v58 }
 0x691   :  { %v6785_v44 = vrot.slane %v6771_v41, %v9239_v49 }
 0x693   :  { %v6786_v46 = vcombine.low %v6778_v43, %v6785_v44 }
 0x695   :  { %6807 = vst [vmem:[%s11901_s17 + $0x10] sm:$0xff] %v6786_v46 }
 0x6a3   :  { %v7732_v47 = vpop.f32.mrf.mxu0 }
 0x6a5   :  { %v7733_v50 = vpop.f32.mrf.mxu0 }
 0x6a6   :  { %v7734_v61 = vadd.f32 %v7733_v50, %v7732_v47 }
 0x6a7   :  { %v7735_v38 = vpop.f32.mrf.mxu0 }
 0x6a8   :  { %v6544_v51 = vadd.f32 %v7734_v61, %v7264_v6 }
 0x6a9   :  { %v7736_v52 = vpop.f32.mrf.mxu0 }
 0x6aa   :  { %v6573_v30 = vmax.f32 %v6544_v51, 0.0 }
 0x6ac   :  { %v6614_v55 = vpack.c.bf16 %v6573_v30, %v6573_v30 }
 0x6ae   :  { %v6793_v56 = vrot.slane %v6614_v55, %v9239_v49 }
 0x6b0   :  { %v6800_v60 = vrot.slane %v6793_v56, %v9239_v49 }
 0x6b2   :  { %6809 = vst.msk [vmem:[%s11901_s17 + $0x18] sm:$0x1] %vm6808_vm7, %v6800_v60 }
 0x6b3   :  { %9001 = dma.done.wait [#allocation3], 32  }
 0x6b4   :  { %9002 = vsyncadd [#allocation3], 4294967264 }
 0x6b5   :  { %9003 = dma.done.wait [#allocation5], 64  }
 0x6b6   :  { %9004 = vsyncadd [#allocation5], 4294967232 }
 0x6b7   :  { %6861 = vsyncpa [#allocation3], 1 }
 0x6b8   :  { %6862 = vsyncpa [#allocation5], 1 }

</bundles_post_ra>
